<compile_context>
chip_gen: v7x
topology: tpu7x:2x2x1
jax: 0.10.0
libtpu: 0.0.40
codegen_flags: <defaults>
</compile_context>

<pallas_src>
import jax
import jax.numpy as jnp
from jax.experimental import pallas as pl
from jax.experimental.pallas import tpu as pltpu

EPS = 1e-5


def _round_up(x, m):
    return (x + m - 1) // m * m


def _compiler_params():
    """All grid axes are parallel; VMEM limit chosen per TPU generation."""
    kwargs = dict(dimension_semantics=("parallel",))
    try:  # guarded: fall back to the default scoped limit if the query fails
        vcap = int(pltpu.get_tpu_info().vmem_capacity_bytes)
        kwargs["vmem_limit_bytes"] = min(max(vcap // 2, 32 * 2**20), 128 * 2**20)
    except Exception:  # pragma: no cover
        pass
    return pltpu.CompilerParams(**kwargs)


# ------------------------------ in-kernel helpers ----------------------------

def _im2col(a, h, w):
    """a: (h*w, c) bf16 activation tile for ONE image -> (h*w, 9*c) bf16.

    Zero pad of >= w+1 rows handles every out-of-image row access (the tile is
    a single image, so no row predicate is needed); only the two column-wrap
    masks (dw = -1 / +1) are applied, computed once and shared by 3 taps each.
    """
    m, c = a.shape
    pad = _round_up(w + 1, 8)                      # sublane-aligned zero pad
    z = jnp.zeros((pad, c), a.dtype)
    slab = jnp.concatenate([z, a, z], axis=0)      # (m + 2*pad, c), built once

    col = jax.lax.broadcasted_iota(jnp.int32, (m, 1), 0) % w
    not_left = col > 0                             # valid source for dw = -1
    not_right = col < (w - 1)                      # valid source for dw = +1

    pieces = []
    for kh in range(3):                            # tap-major, channel-minor
        for kw in range(3):
            s = (kh - 1) * w + (kw - 1)
            win = slab[pad + s: pad + s + m, :]
            if kw == 0:
                win = jnp.where(not_left, win, jnp.zeros_like(win))
            elif kw == 2:
                win = jnp.where(not_right, win, jnp.zeros_like(win))
            pieces.append(win)
    return jnp.concatenate(pieces, axis=1)         # (m, 9*c)


# ------------------------------ kernels ---------------------------------------

def _stats_kernel(x_ref, st_ref):
    """Per-tile [sum; sum-of-squares] of the tile, accumulated in f32."""
    xf = x_ref[...].astype(jnp.float32)
    s = jnp.sum(xf, axis=0, keepdims=True)
    ss = jnp.sum(xf * xf, axis=0, keepdims=True)
    st_ref[...] = jnp.concatenate([s, ss], axis=0)[None]


def _conv1_kernel(h, w):
    """bn1-apply + relu + 3x3 conv1 (single im2col matmul) + bn2 partial stats."""
    def kernel(x_ref, sc1_ref, sh1_ref, w1_ref, b1_ref, out1_ref, st2_ref):
        f32 = jnp.float32
        a1 = jnp.maximum(x_ref[...].astype(f32) * sc1_ref[...] + sh1_ref[...], 0.0)
        a1 = a1.astype(jnp.bfloat16)               # single cast, hoisted
        cols = _im2col(a1, h, w)                   # (tm, 9*cinp) bf16
        o = jnp.dot(cols, w1_ref[...], preferred_element_type=f32) + b1_ref[...]
        out1_ref[...] = o.astype(out1_ref.dtype)   # bf16 intermediate to HBM
        s = jnp.sum(o, axis=0, keepdims=True)
        ss = jnp.sum(o * o, axis=0, keepdims=True)
        st2_ref[...] = jnp.concatenate([s, ss], axis=0)[None]
    return kernel


def _conv2_kernel(h, w):
    """bn2-apply + relu + 3x3 conv2 + 1x1 shortcut + residual add (lane-dense)."""
    def kernel(o1_ref, x_ref, sc2_ref, sh2_ref, w2_ref, b2_ref, ws_ref, bs_ref,
               o_ref):
        f32 = jnp.float32
        a2 = jnp.maximum(o1_ref[...].astype(f32) * sc2_ref[...] + sh2_ref[...], 0.0)
        a2 = a2.astype(jnp.bfloat16)               # single cast, hoisted
        cols = _im2col(a2, h, w)                   # (tm, 9*c1p) bf16
        out2 = jnp.dot(cols, w2_ref[...], preferred_element_type=f32) + b2_ref[...]
        sc = jnp.dot(x_ref[...], ws_ref[...], preferred_element_type=f32) + bs_ref[...]
        o_ref[...] = (out2 + sc).astype(o_ref.dtype)
    return kernel


# ------------------------------ wrappers --------------------------------------

def _fold_bn(partial_stats, count, gamma_p, beta_p):
    """Fold per-tile [sum, sumsq] partials into one per-channel scale/shift."""
    tot = jnp.sum(partial_stats, axis=0)                       # (2, C)
    mean = tot[0] / count
    var = jnp.maximum(tot[1] / count - mean * mean, 0.0)
    scale = gamma_p * jax.lax.rsqrt(var + EPS)                 # gamma=0 on pads
    shift = beta_p - mean * scale
    return scale.reshape(1, -1), shift.reshape(1, -1)


def pruned_wide_basic_forward_nhwc(params, x_nhwc):
    """NHWC in -> NHWC out (use this form when chaining blocks)."""
    n, h, w, cin = x_nhwc.shape
    tm = h * w
    assert tm % 8 == 0, "H*W must be a multiple of 8"   # TODO(synk): pad spatial
    m = n * tm
    c1 = params["w1"].shape[-1]
    c2 = params["w2"].shape[-1]
    cs = params["ws"].shape[-1]
    cmax = max(c2, cs)

    cinp = _round_up(cin, 8)        # K-dim padding (sublane friendly)
    c1p = _round_up(c1, 8)
    coutp = _round_up(cmax, 128)    # lane-dense final store

    f32, bf16 = jnp.float32, jnp.bfloat16

    # bf16 activation slab, channels zero-padded (halves the dominant HBM read)
    x2 = jnp.pad(x_nhwc.reshape(m, cin), ((0, 0), (0, cinp - cin))).astype(bf16)

    # Weights / biases, zero-padded, im2col layout (tap-major, channel-minor).
    w1 = jnp.zeros((3, 3, cinp, c1p), f32).at[:, :, :cin, :c1].set(params["w1"])
    w1 = w1.reshape(9 * cinp, c1p).astype(bf16)
    w2 = jnp.zeros((3, 3, c1p, coutp), f32).at[:, :, :c1, :c2].set(params["w2"])
    w2 = w2.reshape(9 * c1p, coutp).astype(bf16)
    ws = jnp.zeros((cinp, coutp), f32).at[:cin, :cs].set(params["ws"]).astype(bf16)
    b1 = jnp.zeros((1, c1p), f32).at[0, :c1].set(params["b1"])
    b2 = jnp.zeros((1, coutp), f32).at[0, :c2].set(params["b2"])
    bs = jnp.zeros((1, coutp), f32).at[0, :cs].set(params["bs"])
    g1 = jnp.zeros((cinp,), f32).at[:cin].set(params["bn1_gamma"])
    be1 = jnp.zeros((cinp,), f32).at[:cin].set(params["bn1_beta"])
    g2 = jnp.zeros((c1p,), f32).at[:c1].set(params["bn2_gamma"])
    be2 = jnp.zeros((c1p,), f32).at[:c1].set(params["bn2_beta"])

    nt = n            # one whole image per tile -> 3x3 never crosses tiles
    cp = _compiler_params()

    # ---- pass A: per-tile bn1 partial stats over x --------------------------
    st1 = pl.pallas_call(
        _stats_kernel,
        out_shape=jax.ShapeDtypeStruct((nt, 2, cinp), f32),
        grid=(nt,),
        in_specs=[pl.BlockSpec((tm, cinp), lambda i: (i, 0))],
        out_specs=pl.BlockSpec((1, 2, cinp), lambda i: (i, 0, 0)),
        compiler_params=cp,
        cost_estimate=pl.CostEstimate(
            flops=4 * m * cinp, transcendentals=0,
            bytes_accessed=m * cinp * 2 + nt * 2 * cinp * 4),
    )(x2)
    sc1, sh1 = _fold_bn(st1, m, g1, be1)

    # ---- pass B: bn1 + relu + conv1 (im2col matmul) + bn2 partial stats ------
    out1, st2 = pl.pallas_call(
        _conv1_kernel(h, w),
        out_shape=(jax.ShapeDtypeStruct((m, c1p), bf16),
                   jax.ShapeDtypeStruct((nt, 2, c1p), f32)),
        grid=(nt,),
        in_specs=[pl.BlockSpec((tm, cinp), lambda i: (i, 0)),
                  pl.BlockSpec((1, cinp), lambda i: (0, 0)),      # resident
                  pl.BlockSpec((1, cinp), lambda i: (0, 0)),      # resident
                  pl.BlockSpec((9 * cinp, c1p), lambda i: (0, 0)),  # resident
                  pl.BlockSpec((1, c1p), lambda i: (0, 0))],      # resident
        out_specs=(pl.BlockSpec((tm, c1p), lambda i: (i, 0)),
                   pl.BlockSpec((1, 2, c1p), lambda i: (i, 0, 0))),
        compiler_params=cp,
        cost_estimate=pl.CostEstimate(
            flops=2 * m * 9 * cinp * c1p + 8 * m * c1p,
            transcendentals=0,
            bytes_accessed=m * (cinp + c1p) * 2 + 9 * cinp * c1p * 2
                           + nt * 2 * c1p * 4),
    )(x2, sc1, sh1, w1, b1)
    sc2, sh2 = _fold_bn(st2, m, g2, be2)

    # ---- pass C: bn2 + relu + conv2 + 1x1 shortcut + residual add ------------
    y = pl.pallas_call(
        _conv2_kernel(h, w),
        out_shape=jax.ShapeDtypeStruct((m, coutp), f32),
        grid=(nt,),
        in_specs=[pl.BlockSpec((tm, c1p), lambda i: (i, 0)),
                  pl.BlockSpec((tm, cinp), lambda i: (i, 0)),
                  pl.BlockSpec((1, c1p), lambda i: (0, 0)),        # resident
                  pl.BlockSpec((1, c1p), lambda i: (0, 0)),        # resident
                  pl.BlockSpec((9 * c1p, coutp), lambda i: (0, 0)),  # resident
                  pl.BlockSpec((1, coutp), lambda i: (0, 0)),      # resident
                  pl.BlockSpec((cinp, coutp), lambda i: (0, 0)),   # resident
                  pl.BlockSpec((1, coutp), lambda i: (0, 0))],     # resident
        out_specs=pl.BlockSpec((tm, coutp), lambda i: (i, 0)),     # lane-dense
        compiler_params=cp,
        cost_estimate=pl.CostEstimate(
            flops=2 * m * (9 * c1p + cinp) * coutp,
            transcendentals=0,
            bytes_accessed=m * (c1p + cinp) * 2 + m * coutp * 4
                           + (9 * c1p + cinp) * coutp * 2),
    )(out1, x2, sc2, sh2, w2, b2, ws, bs)

    return y[:, :cmax].reshape(n, h, w, cmax)


def pruned_wide_basic_forward(params, x_nchw):
    """PyTorch-convention NCHW in -> NCHW out."""
    # TODO(synk): in a full network keep activations NHWC (and channel-padded)
    #             between blocks and drop these per-block transposes/slices.
    x_nhwc = jnp.transpose(x_nchw, (0, 2, 3, 1))
    y = pruned_wide_basic_forward_nhwc(params, x_nhwc)
    return jnp.transpose(y, (0, 3, 1, 2))


# ------------------------------ parameters ------------------------------------

def init_params(key, in_planes, planes, mask, stride=1):
    assert stride == 1, "only the stride=1 main branch is implemented"
    c1 = int(sum(mask[:planes]))
    c2 = int(sum(mask[planes:2 * planes]))
    assert c1 > 0 and c2 > 0, "only the un-pruned-block branch is implemented"
    assert len(mask) == 3 * planes and in_planes != planes
    cs = int(sum(mask[2 * planes:3 * planes]))
    assert cs > 0

    ks = jax.random.split(key, 10)
    params = dict(
        bn1_gamma=jax.random.uniform(ks[0], (in_planes,), jnp.float32, 0.5, 1.5),
        bn1_beta=jax.random.normal(ks[1], (in_planes,), jnp.float32) * 0.1,
        w1=jax.random.normal(ks[2], (3, 3, in_planes, c1), jnp.float32) * 0.2,  # HWIO
        b1=jax.random.normal(ks[3], (c1,), jnp.float32) * 0.1,
        bn2_gamma=jax.random.uniform(ks[4], (c1,), jnp.float32, 0.5, 1.5),
        bn2_beta=jax.random.normal(ks[5], (c1,), jnp.float32) * 0.1,
        w2=jax.random.normal(ks[6], (3, 3, c1, c2), jnp.float32) * 0.2,          # HWIO
        b2=jax.random.normal(ks[7], (c2,), jnp.float32) * 0.1,
        ws=jax.random.normal(ks[8], (in_planes, cs), jnp.float32) * 0.2,          # 1x1
        bs=jax.random.normal(ks[9], (cs,), jnp.float32) * 0.1,
    )
    return params, (c1, c2, cs)


# ----------------------------- pure-JAX reference ------------------------------

def _reference_forward(p, x_nchw):
    x = jnp.transpose(x_nchw, (0, 2, 3, 1)).astype(jnp.float32)

    def bn_relu_ref(a, g, b):
        mu = jnp.mean(a, axis=(0, 1, 2), keepdims=True)
        var = jnp.mean((a - mu) ** 2, axis=(0, 1, 2), keepdims=True)
        return jnp.maximum((a - mu) * jax.lax.rsqrt(var + EPS) * g + b, 0.0)

    hi = jax.lax.Precision.HIGHEST
    a1 = bn_relu_ref(x, p["bn1_gamma"], p["bn1_beta"])
    o1 = jax.lax.conv_general_dilated(
        a1, p["w1"], (1, 1), "SAME",
        dimension_numbers=("NHWC", "HWIO", "NHWC"), precision=hi) + p["b1"]
    a2 = bn_relu_ref(o1, p["bn2_gamma"], p["bn2_beta"])
    o2 = jax.lax.conv_general_dilated(
        a2, p["w2"], (1, 1), "SAME",
        dimension_numbers=("NHWC", "HWIO", "NHWC"), precision=hi) + p["b2"]
    sc = jnp.einsum("nhwc,cd->nhwd", x, p["ws"], precision=hi) + p["bs"]
    c2, cs = o2.shape[-1], sc.shape[-1]
    cm = max(c2, cs)
    o2 = jnp.pad(o2, ((0, 0), (0, 0), (0, 0), (0, cm - c2)))
    sc = jnp.pad(sc, ((0, 0), (0, 0), (0, 0), (0, cm - cs)))
    return jnp.transpose(o2 + sc, (0, 3, 1, 2))


# ----------------------------------- main --------------------------------------

if __name__ == "__main__":
    in_planes, planes, stride = 4, 8, 1
    # pruning mask of length 3*planes: keeps 6/8 in conv1, 5/8 in conv2, 7/8 in shortcut
    mask = [1, 1, 0, 1, 1, 0, 1, 1,
            1, 0, 1, 1, 0, 0, 1, 1,
            1, 1, 1, 0, 1, 1, 1, 1]

    key = jax.random.PRNGKey(0)
    kp, kx = jax.random.split(key)
    params, (c1, c2, cs) = init_params(kp, in_planes, planes, mask, stride)

    x = jax.random.normal(kx, (2, in_planes, 16, 16), jnp.float32)  # NCHW like PyTorch

    fwd = jax.jit(pruned_wide_basic_forward)
    out = jax.block_until_ready(fwd(params, x))

    ref = jax.block_until_ready(_reference_forward(params, x))
    assert out.shape == (2, max(c2, cs), 16, 16), out.shape
    # tolerance accounts for the bf16 pipeline (bf16 x / out1 / activations /
    # weights with f32 accumulation) vs an all-f32 HIGHEST-precision reference
    # accumulated over two 3x3 convs.
    assert jnp.allclose(out, ref, atol=5e-2, rtol=5e-2), float(jnp.max(jnp.abs(out - ref)))

    print("KERNEL_OK")
</pallas_src>

<mosaic_0001>
module attributes {stable_mosaic.version = 11 : i64} {
  func.func @_stats_kernel(%arg0: i32, %arg1: memref<256x8xbf16, #tpu.memory_space<vmem>>, %arg2: memref<1x2x8xf32, #tpu.memory_space<vmem>>) attributes {dimension_semantics = [#tpu.dimension_semantics<parallel>], iteration_bounds = array<i64: 2>, scalar_prefetch = 0 : i64, scratch_operands = 0 : i64, tpu.core_type = #tpu.core_type<tc>, window_params = [{transform_indices = @transform_0, window_bounds = array<i64: 256, 8>}, {transform_indices = @transform_1, window_bounds = array<i64: 1, 2, 8>}]} {
    %c0 = arith.constant 0 : index
    %c0_0 = arith.constant 0 : index
    %0 = vector.load %arg1[%c0, %c0_0] : memref<256x8xbf16, #tpu.memory_space<vmem>>, vector<256x8xbf16>
    %1 = arith.extf %0 : vector<256x8xbf16> to vector<256x8xf32>
    %cst = arith.constant dense<0.000000e+00> : vector<8xf32>
    %2 = vector.multi_reduction <add>, %1, %cst [0] : vector<256x8xf32> to vector<8xf32>
    %3 = vector.shape_cast %2 : vector<8xf32> to vector<1x8xf32>
    %4 = arith.mulf %1, %1 : vector<256x8xf32>
    %cst_1 = arith.constant dense<0.000000e+00> : vector<8xf32>
    %5 = vector.multi_reduction <add>, %4, %cst_1 [0] : vector<256x8xf32> to vector<8xf32>
    %6 = vector.shape_cast %5 : vector<8xf32> to vector<1x8xf32>
    %7 = tpu.concatenate %3, %6 in 0 : vector<1x8xf32>, vector<1x8xf32> -> vector<2x8xf32>
    %8 = vector.shape_cast %7 : vector<2x8xf32> to vector<1x2x8xf32>
    %c0_2 = arith.constant 0 : index
    %c0_3 = arith.constant 0 : index
    %c0_4 = arith.constant 0 : index
    %9 = vector.load %arg2[%c0_2, %c0_3, %c0_4] : memref<1x2x8xf32, #tpu.memory_space<vmem>>, vector<1x2x8xf32>
    tpu.vector_store %arg2[%c0_2, %c0_3, %c0_4], %8 {strides = array<i32>} : memref<1x2x8xf32, #tpu.memory_space<vmem>>, vector<1x2x8xf32>,
    return
  }
  func.func @transform_0(%arg0: i32) -> (i32, i32) {
    %c0_i32 = arith.constant 0 : i32
    %c0_i32_0 = arith.constant 0 : i32
    return %arg0, %c0_i32 : i32, i32
  }
  func.func @transform_1(%arg0: i32) -> (i32, i32, i32) {
    %c0_i32 = arith.constant 0 : i32
    %c0_i32_0 = arith.constant 0 : i32
    %c0_i32_1 = arith.constant 0 : i32
    return %arg0, %c0_i32, %c0_i32_0 : i32, i32, i32
  }
}

module attributes {stable_mosaic.version = 11 : i64} {
  func.func @kernel(%arg0: i32, %arg1: memref<256x8xbf16, #tpu.memory_space<vmem>>, %arg2: memref<1x8xf32, #tpu.memory_space<vmem>>, %arg3: memref<1x8xf32, #tpu.memory_space<vmem>>, %arg4: memref<72x8xbf16, #tpu.memory_space<vmem>>, %arg5: memref<1x8xf32, #tpu.memory_space<vmem>>, %arg6: memref<256x8xbf16, #tpu.memory_space<vmem>>, %arg7: memref<1x2x8xf32, #tpu.memory_space<vmem>>) attributes {dimension_semantics = [#tpu.dimension_semantics<parallel>], iteration_bounds = array<i64: 2>, scalar_prefetch = 0 : i64, scratch_operands = 0 : i64, tpu.core_type = #tpu.core_type<tc>, window_params = [{transform_indices = @transform_0, window_bounds = array<i64: 256, 8>}, {pipeline_mode = #tpu.pipeline_mode<synchronous>, transform_indices = @transform_1, window_bounds = array<i64: 1, 8>}, {pipeline_mode = #tpu.pipeline_mode<synchronous>, transform_indices = @transform_2, window_bounds = array<i64: 1, 8>}, {pipeline_mode = #tpu.pipeline_mode<synchronous>, transform_indices = @transform_3, window_bounds = array<i64: 72, 8>}, {pipeline_mode = #tpu.pipeline_mode<synchronous>, transform_indices = @transform_4, window_bounds = array<i64: 1, 8>}, {transform_indices = @transform_5, window_bounds = array<i64: 256, 8>}, {transform_indices = @transform_6, window_bounds = array<i64: 1, 2, 8>}]} {
    %c0 = arith.constant 0 : index
    %c0_0 = arith.constant 0 : index
    %0 = vector.load %arg1[%c0, %c0_0] : memref<256x8xbf16, #tpu.memory_space<vmem>>, vector<256x8xbf16>
    %1 = arith.extf %0 : vector<256x8xbf16> to vector<256x8xf32>
    %c0_1 = arith.constant 0 : index
    %c0_2 = arith.constant 0 : index
    %2 = vector.load %arg2[%c0_1, %c0_2] : memref<1x8xf32, #tpu.memory_space<vmem>>, vector<1x8xf32>
    %3 = vector.broadcast %2 : vector<1x8xf32> to vector<256x8xf32>
    %4 = arith.mulf %1, %3 : vector<256x8xf32>
    %c0_3 = arith.constant 0 : index
    %c0_4 = arith.constant 0 : index
    %5 = vector.load %arg3[%c0_3, %c0_4] : memref<1x8xf32, #tpu.memory_space<vmem>>, vector<1x8xf32>
    %6 = vector.broadcast %5 : vector<1x8xf32> to vector<256x8xf32>
    %7 = arith.addf %4, %6 : vector<256x8xf32>
    %cst = arith.constant 0.000000e+00 : f32
    %8 = vector.broadcast %cst : f32 to vector<256x8xf32>
    %9 = arith.maximumf %7, %8 : vector<256x8xf32>
    %10 = arith.truncf %9 : vector<256x8xf32> to vector<256x8xbf16>
    %cst_5 = arith.constant 0.000000e+00 : bf16
    %11 = vector.broadcast %cst_5 : bf16 to vector<24x8xbf16>
    %12 = tpu.concatenate %11, %10, %11 in 0 : vector<24x8xbf16>, vector<256x8xbf16>, vector<24x8xbf16> -> vector<304x8xbf16>
    %13 = tpu.iota {dimensions = array<i32: 0>} : vector<256x1xi32>
    %c16_i32 = arith.constant 16 : i32
    %c0_i32 = arith.constant 0 : i32
    %14 = arith.cmpi eq, %c16_i32, %c0_i32 : i32
    %c1_i32 = arith.constant 1 : i32
    %15 = arith.select %14, %c1_i32, %c16_i32 : i32
    %16 = vector.broadcast %15 : i32 to vector<256x1xi32>
    %17 = arith.remsi %13, %16 : vector<256x1xi32>
    %c0_i32_6 = arith.constant 0 : i32
    %18 = vector.broadcast %c0_i32_6 : i32 to vector<256x1xi32>
    %19 = arith.cmpi ne, %17, %18 : vector<256x1xi32>
    %c0_i32_7 = arith.constant 0 : i32
    %20 = vector.broadcast %c0_i32_7 : i32 to vector<256x1xi32>
    %21 = arith.cmpi slt, %17, %20 : vector<256x1xi32>
    %c0_i32_8 = arith.constant 0 : i32
    %22 = arith.cmpi slt, %15, %c0_i32_8 : i32
    %23 = vector.broadcast %22 : i1 to vector<256x1xi1>
    %24 = vector.broadcast %23 : vector<256x1xi1> to vector<256x1xi1>
    %25 = arith.xori %21, %24 : vector<256x1xi1>
    %26 = arith.andi %25, %19 : vector<256x1xi1>
    %27 = vector.broadcast %15 : i32 to vector<256x1xi32>
    %28 = arith.addi %17, %27 : vector<256x1xi32>
    %29 = arith.select %26, %28, %17 : vector<256x1xi1>, vector<256x1xi32>
    %c0_i32_9 = arith.constant 0 : i32
    %30 = vector.broadcast %c0_i32_9 : i32 to vector<256x1xi32>
    %31 = arith.cmpi sgt, %29, %30 : vector<256x1xi32>
    %c15_i32 = arith.constant 15 : i32
    %32 = vector.broadcast %c15_i32 : i32 to vector<256x1xi32>
    %33 = arith.cmpi slt, %29, %32 : vector<256x1xi32>
    %34 = vector.extract_strided_slice %12 {offsets = [7, 0], sizes = [256, 8], strides = [1, 1]} : vector<304x8xbf16> to vector<256x8xbf16>
    %cst_10 = arith.constant 0.000000e+00 : bf16
    %35 = vector.broadcast %cst_10 : bf16 to vector<256x8xbf16>
    %36 = vector.shape_cast %31 : vector<256x1xi1> to vector<256x1xi1>
    %37 = vector.broadcast %36 : vector<256x1xi1> to vector<256x8xi1>
    %38 = arith.select %37, %34, %35 : vector<256x8xi1>, vector<256x8xbf16>
    %39 = vector.extract_strided_slice %12 {offsets = [8, 0], sizes = [256, 8], strides = [1, 1]} : vector<304x8xbf16> to vector<256x8xbf16>
    %40 = vector.extract_strided_slice %12 {offsets = [9, 0], sizes = [256, 8], strides = [1, 1]} : vector<304x8xbf16> to vector<256x8xbf16>
    %cst_11 = arith.constant 0.000000e+00 : bf16
    %41 = vector.broadcast %cst_11 : bf16 to vector<256x8xbf16>
    %42 = vector.shape_cast %33 : vector<256x1xi1> to vector<256x1xi1>
    %43 = vector.broadcast %42 : vector<256x1xi1> to vector<256x8xi1>
    %44 = arith.select %43, %40, %41 : vector<256x8xi1>, vector<256x8xbf16>
    %45 = vector.extract_strided_slice %12 {offsets = [23, 0], sizes = [256, 8], strides = [1, 1]} : vector<304x8xbf16> to vector<256x8xbf16>
    %cst_12 = arith.constant 0.000000e+00 : bf16
    %46 = vector.broadcast %cst_12 : bf16 to vector<256x8xbf16>
    %47 = vector.shape_cast %31 : vector<256x1xi1> to vector<256x1xi1>
    %48 = vector.broadcast %47 : vector<256x1xi1> to vector<256x8xi1>
    %49 = arith.select %48, %45, %46 : vector<256x8xi1>, vector<256x8xbf16>
    %50 = vector.extract_strided_slice %12 {offsets = [24, 0], sizes = [256, 8], strides = [1, 1]} : vector<304x8xbf16> to vector<256x8xbf16>
    %51 = vector.extract_strided_slice %12 {offsets = [25, 0], sizes = [256, 8], strides = [1, 1]} : vector<304x8xbf16> to vector<256x8xbf16>
    %cst_13 = arith.constant 0.000000e+00 : bf16
    %52 = vector.broadcast %cst_13 : bf16 to vector<256x8xbf16>
    %53 = vector.shape_cast %33 : vector<256x1xi1> to vector<256x1xi1>
    %54 = vector.broadcast %53 : vector<256x1xi1> to vector<256x8xi1>
    %55 = arith.select %54, %51, %52 : vector<256x8xi1>, vector<256x8xbf16>
    %56 = vector.extract_strided_slice %12 {offsets = [39, 0], sizes = [256, 8], strides = [1, 1]} : vector<304x8xbf16> to vector<256x8xbf16>
    %cst_14 = arith.constant 0.000000e+00 : bf16
    %57 = vector.broadcast %cst_14 : bf16 to vector<256x8xbf16>
    %58 = vector.shape_cast %31 : vector<256x1xi1> to vector<256x1xi1>
    %59 = vector.broadcast %58 : vector<256x1xi1> to vector<256x8xi1>
    %60 = arith.select %59, %56, %57 : vector<256x8xi1>, vector<256x8xbf16>
    %61 = vector.extract_strided_slice %12 {offsets = [40, 0], sizes = [256, 8], strides = [1, 1]} : vector<304x8xbf16> to vector<256x8xbf16>
    %62 = vector.extract_strided_slice %12 {offsets = [41, 0], sizes = [256, 8], strides = [1, 1]} : vector<304x8xbf16> to vector<256x8xbf16>
    %cst_15 = arith.constant 0.000000e+00 : bf16
    %63 = vector.broadcast %cst_15 : bf16 to vector<256x8xbf16>
    %64 = vector.shape_cast %33 : vector<256x1xi1> to vector<256x1xi1>
    %65 = vector.broadcast %64 : vector<256x1xi1> to vector<256x8xi1>
    %66 = arith.select %65, %62, %63 : vector<256x8xi1>, vector<256x8xbf16>
    %67 = tpu.concatenate %38, %39, %44, %49, %50, %55, %60, %61, %66 in 1 : vector<256x8xbf16>, vector<256x8xbf16>, vector<256x8xbf16>, vector<256x8xbf16>, vector<256x8xbf16>, vector<256x8xbf16>, vector<256x8xbf16>, vector<256x8xbf16>, vector<256x8xbf16> -> vector<256x72xbf16>
    %c0_16 = arith.constant 0 : index
    %c0_17 = arith.constant 0 : index
    %68 = vector.load %arg4[%c0_16, %c0_17] : memref<72x8xbf16, #tpu.memory_space<vmem>>, vector<72x8xbf16>
    %cst_18 = arith.constant dense<0.000000e+00> : vector<256x8xf32>
    %69 = tpu.matmul %67, %68, %cst_18 {dimension_numbers = #tpu.dot_dimension_numbers<[1], [0], [0], [1], [0, 0, 1, 1], [], []>} : vector<256x72xbf16>, vector<72x8xbf16>, vector<256x8xf32> -> vector<256x8xf32>
    %c0_19 = arith.constant 0 : index
    %c0_20 = arith.constant 0 : index
    %70 = vector.load %arg5[%c0_19, %c0_20] : memref<1x8xf32, #tpu.memory_space<vmem>>, vector<1x8xf32>
    %71 = vector.broadcast %70 : vector<1x8xf32> to vector<256x8xf32>
    %72 = arith.addf %69, %71 : vector<256x8xf32>
    %73 = arith.truncf %72 : vector<256x8xf32> to vector<256x8xbf16>
    %c0_21 = arith.constant 0 : index
    %c0_22 = arith.constant 0 : index
    %74 = vector.load %arg6[%c0_21, %c0_22] : memref<256x8xbf16, #tpu.memory_space<vmem>>, vector<256x8xbf16>
    tpu.vector_store %arg6[%c0_21, %c0_22], %73 {strides = array<i32>} : memref<256x8xbf16, #tpu.memory_space<vmem>>, vector<256x8xbf16>,
    %cst_23 = arith.constant dense<0.000000e+00> : vector<8xf32>
    %75 = vector.multi_reduction <add>, %72, %cst_23 [0] : vector<256x8xf32> to vector<8xf32>
    %76 = vector.shape_cast %75 : vector<8xf32> to vector<1x8xf32>
    %77 = arith.mulf %72, %72 : vector<256x8xf32>
    %cst_24 = arith.constant dense<0.000000e+00> : vector<8xf32>
    %78 = vector.multi_reduction <add>, %77, %cst_24 [0] : vector<256x8xf32> to vector<8xf32>
    %79 = vector.shape_cast %78 : vector<8xf32> to vector<1x8xf32>
    %80 = tpu.concatenate %76, %79 in 0 : vector<1x8xf32>, vector<1x8xf32> -> vector<2x8xf32>
    %81 = vector.shape_cast %80 : vector<2x8xf32> to vector<1x2x8xf32>
    %c0_25 = arith.constant 0 : index
    %c0_26 = arith.constant 0 : index
    %c0_27 = arith.constant 0 : index
    %82 = vector.load %arg7[%c0_25, %c0_26, %c0_27] : memref<1x2x8xf32, #tpu.memory_space<vmem>>, vector<1x2x8xf32>
    tpu.vector_store %arg7[%c0_25, %c0_26, %c0_27], %81 {strides = array<i32>} : memref<1x2x8xf32, #tpu.memory_space<vmem>>, vector<1x2x8xf32>,
    return
  }
  func.func @transform_0(%arg0: i32) -> (i32, i32) {
    %c0_i32 = arith.constant 0 : i32
    %c0_i32_0 = arith.constant 0 : i32
    return %arg0, %c0_i32 : i32, i32
  }
  func.func @transform_1(%arg0: i32) -> (i32, i32) {
    %c0_i32 = arith.constant 0 : i32
    %c0_i32_0 = arith.constant 0 : i32
    %c0_i32_1 = arith.constant 0 : i32
    return %c0_i32, %c0_i32_0 : i32, i32
  }
  func.func @transform_2(%arg0: i32) -> (i32, i32) {
    %c0_i32 = arith.constant 0 : i32
    %c0_i32_0 = arith.constant 0 : i32
    %c0_i32_1 = arith.constant 0 : i32
    return %c0_i32, %c0_i32_0 : i32, i32
  }
  func.func @transform_3(%arg0: i32) -> (i32, i32) {
    %c0_i32 = arith.constant 0 : i32
    %c0_i32_0 = arith.constant 0 : i32
    %c0_i32_1 = arith.constant 0 : i32
    return %c0_i32, %c0_i32_0 : i32, i32
  }
  func.func @transform_4(%arg0: i32) -> (i32, i32) {
    %c0_i32 = arith.constant 0 : i32
    %c0_i32_0 = arith.constant 0 : i32
    %c0_i32_1 = arith.constant 0 : i32
    return %c0_i32, %c0_i32_0 : i32, i32
  }
  func.func @transform_5(%arg0: i32) -> (i32, i32) {
    %c0_i32 = arith.constant 0 : i32
    %c0_i32_0 = arith.constant 0 : i32
    return %arg0, %c0_i32 : i32, i32
  }
  func.func @transform_6(%arg0: i32) -> (i32, i32, i32) {
    %c0_i32 = arith.constant 0 : i32
    %c0_i32_0 = arith.constant 0 : i32
    %c0_i32_1 = arith.constant 0 : i32
    return %arg0, %c0_i32, %c0_i32_0 : i32, i32, i32
  }
}

module attributes {stable_mosaic.version = 11 : i64} {
  func.func @kernel(%arg0: i32, %arg1: memref<256x8xbf16, #tpu.memory_space<vmem>>, %arg2: memref<256x8xbf16, #tpu.memory_space<vmem>>, %arg3: memref<1x8xf32, #tpu.memory_space<vmem>>, %arg4: memref<1x8xf32, #tpu.memory_space<vmem>>, %arg5: memref<72x128xbf16, #tpu.memory_space<vmem>>, %arg6: memref<1x128xf32, #tpu.memory_space<vmem>>, %arg7: memref<8x128xbf16, #tpu.memory_space<vmem>>, %arg8: memref<1x128xf32, #tpu.memory_space<vmem>>, %arg9: memref<256x128xf32, #tpu.memory_space<vmem>>) attributes {dimension_semantics = [#tpu.dimension_semantics<parallel>], iteration_bounds = array<i64: 2>, scalar_prefetch = 0 : i64, scratch_operands = 0 : i64, tpu.core_type = #tpu.core_type<tc>, window_params = [{transform_indices = @transform_0, window_bounds = array<i64: 256, 8>}, {transform_indices = @transform_1, window_bounds = array<i64: 256, 8>}, {pipeline_mode = #tpu.pipeline_mode<synchronous>, transform_indices = @transform_2, window_bounds = array<i64: 1, 8>}, {pipeline_mode = #tpu.pipeline_mode<synchronous>, transform_indices = @transform_3, window_bounds = array<i64: 1, 8>}, {pipeline_mode = #tpu.pipeline_mode<synchronous>, transform_indices = @transform_4, window_bounds = array<i64: 72, 128>}, {pipeline_mode = #tpu.pipeline_mode<synchronous>, transform_indices = @transform_5, window_bounds = array<i64: 1, 128>}, {pipeline_mode = #tpu.pipeline_mode<synchronous>, transform_indices = @transform_6, window_bounds = array<i64: 8, 128>}, {pipeline_mode = #tpu.pipeline_mode<synchronous>, transform_indices = @transform_7, window_bounds = array<i64: 1, 128>}, {transform_indices = @transform_8, window_bounds = array<i64: 256, 128>}]} {
    %c0 = arith.constant 0 : index
    %c0_0 = arith.constant 0 : index
    %0 = vector.load %arg1[%c0, %c0_0] : memref<256x8xbf16, #tpu.memory_space<vmem>>, vector<256x8xbf16>
    %1 = arith.extf %0 : vector<256x8xbf16> to vector<256x8xf32>
    %c0_1 = arith.constant 0 : index
    %c0_2 = arith.constant 0 : index
    %2 = vector.load %arg3[%c0_1, %c0_2] : memref<1x8xf32, #tpu.memory_space<vmem>>, vector<1x8xf32>
    %3 = vector.broadcast %2 : vector<1x8xf32> to vector<256x8xf32>
    %4 = arith.mulf %1, %3 : vector<256x8xf32>
    %c0_3 = arith.constant 0 : index
    %c0_4 = arith.constant 0 : index
    %5 = vector.load %arg4[%c0_3, %c0_4] : memref<1x8xf32, #tpu.memory_space<vmem>>, vector<1x8xf32>
    %6 = vector.broadcast %5 : vector<1x8xf32> to vector<256x8xf32>
    %7 = arith.addf %4, %6 : vector<256x8xf32>
    %cst = arith.constant 0.000000e+00 : f32
    %8 = vector.broadcast %cst : f32 to vector<256x8xf32>
    %9 = arith.maximumf %7, %8 : vector<256x8xf32>
    %10 = arith.truncf %9 : vector<256x8xf32> to vector<256x8xbf16>
    %cst_5 = arith.constant 0.000000e+00 : bf16
    %11 = vector.broadcast %cst_5 : bf16 to vector<24x8xbf16>
    %12 = tpu.concatenate %11, %10, %11 in 0 : vector<24x8xbf16>, vector<256x8xbf16>, vector<24x8xbf16> -> vector<304x8xbf16>
    %13 = tpu.iota {dimensions = array<i32: 0>} : vector<256x1xi32>
    %c16_i32 = arith.constant 16 : i32
    %c0_i32 = arith.constant 0 : i32
    %14 = arith.cmpi eq, %c16_i32, %c0_i32 : i32
    %c1_i32 = arith.constant 1 : i32
    %15 = arith.select %14, %c1_i32, %c16_i32 : i32
    %16 = vector.broadcast %15 : i32 to vector<256x1xi32>
    %17 = arith.remsi %13, %16 : vector<256x1xi32>
    %c0_i32_6 = arith.constant 0 : i32
    %18 = vector.broadcast %c0_i32_6 : i32 to vector<256x1xi32>
    %19 = arith.cmpi ne, %17, %18 : vector<256x1xi32>
    %c0_i32_7 = arith.constant 0 : i32
    %20 = vector.broadcast %c0_i32_7 : i32 to vector<256x1xi32>
    %21 = arith.cmpi slt, %17, %20 : vector<256x1xi32>
    %c0_i32_8 = arith.constant 0 : i32
    %22 = arith.cmpi slt, %15, %c0_i32_8 : i32
    %23 = vector.broadcast %22 : i1 to vector<256x1xi1>
    %24 = vector.broadcast %23 : vector<256x1xi1> to vector<256x1xi1>
    %25 = arith.xori %21, %24 : vector<256x1xi1>
    %26 = arith.andi %25, %19 : vector<256x1xi1>
    %27 = vector.broadcast %15 : i32 to vector<256x1xi32>
    %28 = arith.addi %17, %27 : vector<256x1xi32>
    %29 = arith.select %26, %28, %17 : vector<256x1xi1>, vector<256x1xi32>
    %c0_i32_9 = arith.constant 0 : i32
    %30 = vector.broadcast %c0_i32_9 : i32 to vector<256x1xi32>
    %31 = arith.cmpi sgt, %29, %30 : vector<256x1xi32>
    %c15_i32 = arith.constant 15 : i32
    %32 = vector.broadcast %c15_i32 : i32 to vector<256x1xi32>
    %33 = arith.cmpi slt, %29, %32 : vector<256x1xi32>
    %34 = vector.extract_strided_slice %12 {offsets = [7, 0], sizes = [256, 8], strides = [1, 1]} : vector<304x8xbf16> to vector<256x8xbf16>
    %cst_10 = arith.constant 0.000000e+00 : bf16
    %35 = vector.broadcast %cst_10 : bf16 to vector<256x8xbf16>
    %36 = vector.shape_cast %31 : vector<256x1xi1> to vector<256x1xi1>
    %37 = vector.broadcast %36 : vector<256x1xi1> to vector<256x8xi1>
    %38 = arith.select %37, %34, %35 : vector<256x8xi1>, vector<256x8xbf16>
    %39 = vector.extract_strided_slice %12 {offsets = [8, 0], sizes = [256, 8], strides = [1, 1]} : vector<304x8xbf16> to vector<256x8xbf16>
    %40 = vector.extract_strided_slice %12 {offsets = [9, 0], sizes = [256, 8], strides = [1, 1]} : vector<304x8xbf16> to vector<256x8xbf16>
    %cst_11 = arith.constant 0.000000e+00 : bf16
    %41 = vector.broadcast %cst_11 : bf16 to vector<256x8xbf16>
    %42 = vector.shape_cast %33 : vector<256x1xi1> to vector<256x1xi1>
    %43 = vector.broadcast %42 : vector<256x1xi1> to vector<256x8xi1>
    %44 = arith.select %43, %40, %41 : vector<256x8xi1>, vector<256x8xbf16>
    %45 = vector.extract_strided_slice %12 {offsets = [23, 0], sizes = [256, 8], strides = [1, 1]} : vector<304x8xbf16> to vector<256x8xbf16>
    %cst_12 = arith.constant 0.000000e+00 : bf16
    %46 = vector.broadcast %cst_12 : bf16 to vector<256x8xbf16>
    %47 = vector.shape_cast %31 : vector<256x1xi1> to vector<256x1xi1>
    %48 = vector.broadcast %47 : vector<256x1xi1> to vector<256x8xi1>
    %49 = arith.select %48, %45, %46 : vector<256x8xi1>, vector<256x8xbf16>
    %50 = vector.extract_strided_slice %12 {offsets = [24, 0], sizes = [256, 8], strides = [1, 1]} : vector<304x8xbf16> to vector<256x8xbf16>
    %51 = vector.extract_strided_slice %12 {offsets = [25, 0], sizes = [256, 8], strides = [1, 1]} : vector<304x8xbf16> to vector<256x8xbf16>
    %cst_13 = arith.constant 0.000000e+00 : bf16
    %52 = vector.broadcast %cst_13 : bf16 to vector<256x8xbf16>
    %53 = vector.shape_cast %33 : vector<256x1xi1> to vector<256x1xi1>
    %54 = vector.broadcast %53 : vector<256x1xi1> to vector<256x8xi1>
    %55 = arith.select %54, %51, %52 : vector<256x8xi1>, vector<256x8xbf16>
    %56 = vector.extract_strided_slice %12 {offsets = [39, 0], sizes = [256, 8], strides = [1, 1]} : vector<304x8xbf16> to vector<256x8xbf16>
    %cst_14 = arith.constant 0.000000e+00 : bf16
    %57 = vector.broadcast %cst_14 : bf16 to vector<256x8xbf16>
    %58 = vector.shape_cast %31 : vector<256x1xi1> to vector<256x1xi1>
    %59 = vector.broadcast %58 : vector<256x1xi1> to vector<256x8xi1>
    %60 = arith.select %59, %56, %57 : vector<256x8xi1>, vector<256x8xbf16>
    %61 = vector.extract_strided_slice %12 {offsets = [40, 0], sizes = [256, 8], strides = [1, 1]} : vector<304x8xbf16> to vector<256x8xbf16>
    %62 = vector.extract_strided_slice %12 {offsets = [41, 0], sizes = [256, 8], strides = [1, 1]} : vector<304x8xbf16> to vector<256x8xbf16>
    %cst_15 = arith.constant 0.000000e+00 : bf16
    %63 = vector.broadcast %cst_15 : bf16 to vector<256x8xbf16>
    %64 = vector.shape_cast %33 : vector<256x1xi1> to vector<256x1xi1>
    %65 = vector.broadcast %64 : vector<256x1xi1> to vector<256x8xi1>
    %66 = arith.select %65, %62, %63 : vector<256x8xi1>, vector<256x8xbf16>
    %67 = tpu.concatenate %38, %39, %44, %49, %50, %55, %60, %61, %66 in 1 : vector<256x8xbf16>, vector<256x8xbf16>, vector<256x8xbf16>, vector<256x8xbf16>, vector<256x8xbf16>, vector<256x8xbf16>, vector<256x8xbf16>, vector<256x8xbf16>, vector<256x8xbf16> -> vector<256x72xbf16>
    %c0_16 = arith.constant 0 : index
    %c0_17 = arith.constant 0 : index
    %68 = vector.load %arg5[%c0_16, %c0_17] : memref<72x128xbf16, #tpu.memory_space<vmem>>, vector<72x128xbf16>
    %cst_18 = arith.constant dense<0.000000e+00> : vector<256x128xf32>
    %69 = tpu.matmul %67, %68, %cst_18 {dimension_numbers = #tpu.dot_dimension_numbers<[1], [0], [0], [1], [0, 0, 1, 1], [], []>} : vector<256x72xbf16>, vector<72x128xbf16>, vector<256x128xf32> -> vector<256x128xf32>
    %c0_19 = arith.constant 0 : index
    %c0_20 = arith.constant 0 : index
    %70 = vector.load %arg6[%c0_19, %c0_20] : memref<1x128xf32, #tpu.memory_space<vmem>>, vector<1x128xf32>
    %71 = vector.broadcast %70 : vector<1x128xf32> to vector<256x128xf32>
    %72 = arith.addf %69, %71 : vector<256x128xf32>
    %c0_21 = arith.constant 0 : index
    %c0_22 = arith.constant 0 : index
    %73 = vector.load %arg2[%c0_21, %c0_22] : memref<256x8xbf16, #tpu.memory_space<vmem>>, vector<256x8xbf16>
    %c0_23 = arith.constant 0 : index
    %c0_24 = arith.constant 0 : index
    %74 = vector.load %arg7[%c0_23, %c0_24] : memref<8x128xbf16, #tpu.memory_space<vmem>>, vector<8x128xbf16>
    %cst_25 = arith.constant dense<0.000000e+00> : vector<256x128xf32>
    %75 = tpu.matmul %73, %74, %cst_25 {dimension_numbers = #tpu.dot_dimension_numbers<[1], [0], [0], [1], [0, 0, 1, 1], [], []>} : vector<256x8xbf16>, vector<8x128xbf16>, vector<256x128xf32> -> vector<256x128xf32>
    %c0_26 = arith.constant 0 : index
    %c0_27 = arith.constant 0 : index
    %76 = vector.load %arg8[%c0_26, %c0_27] : memref<1x128xf32, #tpu.memory_space<vmem>>, vector<1x128xf32>
    %77 = vector.broadcast %76 : vector<1x128xf32> to vector<256x128xf32>
    %78 = arith.addf %75, %77 : vector<256x128xf32>
    %79 = arith.addf %72, %78 : vector<256x128xf32>
    %c0_28 = arith.constant 0 : index
    %c0_29 = arith.constant 0 : index
    %80 = vector.load %arg9[%c0_28, %c0_29] : memref<256x128xf32, #tpu.memory_space<vmem>>, vector<256x128xf32>
    tpu.vector_store %arg9[%c0_28, %c0_29], %79 {strides = array<i32>} : memref<256x128xf32, #tpu.memory_space<vmem>>, vector<256x128xf32>,
    return
  }
  func.func @transform_0(%arg0: i32) -> (i32, i32) {
    %c0_i32 = arith.constant 0 : i32
    %c0_i32_0 = arith.constant 0 : i32
    return %arg0, %c0_i32 : i32, i32
  }
  func.func @transform_1(%arg0: i32) -> (i32, i32) {
    %c0_i32 = arith.constant 0 : i32
    %c0_i32_0 = arith.constant 0 : i32
    return %arg0, %c0_i32 : i32, i32
  }
  func.func @transform_2(%arg0: i32) -> (i32, i32) {
    %c0_i32 = arith.constant 0 : i32
    %c0_i32_0 = arith.constant 0 : i32
    %c0_i32_1 = arith.constant 0 : i32
    return %c0_i32, %c0_i32_0 : i32, i32
  }
  func.func @transform_3(%arg0: i32) -> (i32, i32) {
    %c0_i32 = arith.constant 0 : i32
    %c0_i32_0 = arith.constant 0 : i32
    %c0_i32_1 = arith.constant 0 : i32
    return %c0_i32, %c0_i32_0 : i32, i32
  }
  func.func @transform_4(%arg0: i32) -> (i32, i32) {
    %c0_i32 = arith.constant 0 : i32
    %c0_i32_0 = arith.constant 0 : i32
    %c0_i32_1 = arith.constant 0 : i32
    return %c0_i32, %c0_i32_0 : i32, i32
  }
  func.func @transform_5(%arg0: i32) -> (i32, i32) {
    %c0_i32 = arith.constant 0 : i32
    %c0_i32_0 = arith.constant 0 : i32
    %c0_i32_1 = arith.constant 0 : i32
    return %c0_i32, %c0_i32_0 : i32, i32
  }
  func.func @transform_6(%arg0: i32) -> (i32, i32) {
    %c0_i32 = arith.constant 0 : i32
    %c0_i32_0 = arith.constant 0 : i32
    %c0_i32_1 = arith.constant 0 : i32
    return %c0_i32, %c0_i32_0 : i32, i32
  }
  func.func @transform_7(%arg0: i32) -> (i32, i32) {
    %c0_i32 = arith.constant 0 : i32
    %c0_i32_0 = arith.constant 0 : i32
    %c0_i32_1 = arith.constant 0 : i32
    return %c0_i32, %c0_i32_0 : i32, i32
  }
  func.func @transform_8(%arg0: i32) -> (i32, i32) {
    %c0_i32 = arith.constant 0 : i32
    %c0_i32_0 = arith.constant 0 : i32
    return %arg0, %c0_i32 : i32, i32
  }
}

</mosaic_0001>

<bundles_post_ra>
// kernel: pruned_wide_basic_forward.3
= control target key start
LH: loop header
LB: loop body
LE: loop exit
PB: predicated region body
PF: predicated region fallthrough
CT: control target
= control target key end

     0   :  { %s524_s6 = smov 0   ;;  %s628_s0 = inlined_call_operand.vmem [shape: bf16[512,8], index: 0, kind: input, shape index: {}]   ;;  %s629_s1 = inlined_call_operand.vmem [shape: f32[2,2,8], index: 1, kind: output, shape index: {}]  }
   0x1 LB: > { %s530_s7 = sadd.s32 4294967295, %s512_s6   ;;  %p413_p0 = scmp.ge.s32.totalorder %s512_s6, 1  ;;  %s512_s6 = sphi %s524_s6, %s11_s6  }
   0x2   : > { %p88_p1 = scmp.lt.s32.totalorder %s512_s6, 3 }
   0x4   : > { %p89_p2 = pnand %p413_p0, %p88_p1 }
   0x5   : > { %s414_s8 = sshll.u32 (!%p89_p2), %s530_s7, 5  ;;  %vm181_vm0 = vcmask (!%p89_p2), 64512   ;;  %p113_p4 = scmp.lt.s32.totalorder (!%p89_p2), %s530_s7, 1  ;;  %vm352_vm1 = vcmask (!%p89_p2), 1040384   ;;  %vm354_vm2 = vcmask (!%p89_p2), 58368  }
   0x6   : > { %92 = sbr.rel (%p89_p2) target bundleno = 102 (0x66), region = 24  ;;  %p108_p3 = scmp.lt.s32.totalorder (!%p89_p2), %s414_s8, 63 }
   0xd   : > { %s631_s8 = smov (!%p108_p3, %s414_s8), 63  ;;  %s633_s7 = smov (!%p113_p4, %s530_s7), 1 }
   0xe   : > { %s415_s9 = sshll.u32 %s631_s8, 2  ;;  %s416_s13 = sshll.u32 %s633_s7, 1 }
   0xf   : > { %s538_s12 = scalar_lea.vmem %s628_s0, %s415_s9  ;;  %s116_s16 = scalar_lea.vmem %s629_s1, %s416_s13 }
  0x10   : > { %v420_v0 = vld [vmem:[%s538_s12] sm:$0xff]   ;;  %v483_v1 = vld [vmem:[%s538_s12 + $0x8] sm:$0xff]   ;;  %v484_v5 = vld [vmem:[%s538_s12 + $0x10] sm:$0xff]  }
  0x11   : > { %v421_v2 = vunpack.c.l.bf16 %v420_v0  ;;  %v422_v3 = vunpack.c.h.bf16 %v420_v0  ;;  %v425_v4 = vunpack.c.l.bf16 %v483_v1  ;;  %v426_v6 = vunpack.c.h.bf16 %v483_v1  ;;  %v485_v13 = vld [vmem:[%s538_s12 + $0x18] sm:$0xff]   ;;  %v486_v20 = vld [vmem:[%s538_s12 + $0x20] sm:$0xff]   ;;  %v487_v26 = vld [vmem:[%s538_s12 + $0x28] sm:$0xff]  }
  0x12   : > { %v429_v11 = vunpack.c.l.bf16 %v484_v5  ;;  %v430_v15 = vunpack.c.h.bf16 %v484_v5  ;;  %v433_v18 = vunpack.c.l.bf16 %v485_v13  ;;  %v434_v22 = vunpack.c.h.bf16 %v485_v13  ;;  %v488_v33 = vld [vmem:[%s538_s12 + $0x30] sm:$0xff]   ;;  %v489_v49 = vld [vmem:[%s538_s12 + $0x38] sm:$0xff]   ;;  %v490_v62 = vld [vmem:[%s538_s12 + $0x40] sm:$0xff]  }
  0x13   : > { %v182_v7 = vsel %vm181_vm0, %v421_v2, 0.0  ;;  %v183_v8 = vsel %vm181_vm0, %v422_v3, 0.0  ;;  %v185_v9 = vsel %vm181_vm0, %v425_v4, 0.0  ;;  %v187_v12 = vsel %vm181_vm0, %v426_v6, 0.0 }
  0x14   : > { %v184_v10 = vadd.f32 %v183_v8, %v182_v7  ;;  %v189_v16 = vsel %vm181_vm0, %v429_v11, 0.0  ;;  %v191_v19 = vsel %vm181_vm0, %v430_v15, 0.0  ;;  %v193_v23 = vsel %vm181_vm0, %v433_v18, 0.0 }
  0x15   : > { %v437_v25 = vunpack.c.l.bf16 %v486_v20  ;;  %v195_v27 = vsel %vm181_vm0, %v434_v22, 0.0  ;;  %v438_v29 = vunpack.c.h.bf16 %v486_v20  ;;  %v441_v31 = vunpack.c.l.bf16 %v487_v26 }
  0x16   : > { %v186_v14 = vadd.f32 %v185_v9, %v184_v10  ;;  %v251_v35 = vmul.f32 %v421_v2, %v421_v2  ;;  %v252_v36 = vmul.f32 %v422_v3, %v422_v3  ;;  %v253_v37 = vmul.f32 %v425_v4, %v425_v4 }
  0x17   : > { %v197_v30 = vsel %vm181_vm0, %v437_v25, 0.0  ;;  %v199_v34 = vsel %vm181_vm0, %v438_v29, 0.0  ;;  %v442_v38 = vunpack.c.h.bf16 %v487_v26  ;;  %v201_v40 = vsel %vm181_vm0, %v441_v31, 0.0 }
  0x18   : > { %v188_v17 = vadd.f32 %v187_v12, %v186_v14  ;;  %v254_v41 = vmul.f32 %v426_v6, %v426_v6  ;;  %v445_v42 = vunpack.c.l.bf16 %v488_v33  ;;  %v255_v45 = vmul.f32 %v429_v11, %v429_v11  ;;  %v491_v11 = vld [vmem:[%s538_s12 + $0x48] sm:$0xff]  }
  0x19   : > { %v203_v44 = vsel %vm181_vm0, %v442_v38, 0.0  ;;  %v283_v46 = vsel %vm181_vm0, %v251_v35, 0.0  ;;  %v284_v47 = vsel %vm181_vm0, %v252_v36, 0.0  ;;  %v286_v48 = vsel %vm181_vm0, %v253_v37, 0.0  ;;  %v493_v37 = vld [vmem:[%s538_s12 + $0x58] sm:$0xff]  }
  0x1a   : > { %v190_v21 = vadd.f32 %v189_v16, %v188_v17  ;;  %v285_v51 = vadd.f32 %v284_v47, %v283_v46  ;;  %v446_v52 = vunpack.c.h.bf16 %v488_v33  ;;  %v205_v53 = vsel %vm181_vm0, %v445_v42, 0.0 }
  0x1b   : > { %v256_v54 = vmul.f32 %v430_v15, %v430_v15  ;;  %v288_v55 = vsel %vm181_vm0, %v254_v41, 0.0  ;;  %v449_v58 = vunpack.c.l.bf16 %v489_v49  ;;  %v257_v60 = vmul.f32 %v433_v18, %v433_v18 }
  0x1c   : > { %v192_v24 = vadd.f32 %v191_v19, %v190_v21  ;;  %v287_v57 = vadd.f32 %v286_v48, %v285_v51  ;;  %v207_v59 = vsel %vm181_vm0, %v446_v52, 0.0  ;;  %v290_v61 = vsel %vm181_vm0, %v255_v45, 0.0 }
  0x1d   : > { %v450_v1 = vunpack.c.h.bf16 %v489_v49  ;;  %v209_v2 = vsel %vm181_vm0, %v449_v58, 0.0  ;;  %v258_v3 = vmul.f32 %v434_v22, %v434_v22  ;;  %v292_v4 = vsel %vm181_vm0, %v256_v54, 0.0 }
  0x1e   : > { %v194_v28 = vadd.f32 %v193_v23, %v192_v24  ;;  %v289_v0 = vadd.f32 %v288_v55, %v287_v57  ;;  %v453_v7 = vunpack.c.l.bf16 %v490_v62  ;;  %v259_v9 = vmul.f32 %v437_v25, %v437_v25  ;;  %v492_v24 = vld [vmem:[%s538_s12 + $0x50] sm:$0xff]  }
  0x1f   : > { %v211_v8 = vsel %vm181_vm0, %v450_v1, 0.0  ;;  %v294_v10 = vsel %vm181_vm0, %v257_v60, 0.0  ;;  %v454_v14 = vunpack.c.h.bf16 %v490_v62  ;;  %v260_v16 = vmul.f32 %v438_v29, %v438_v29 }
  0x20   : > { %v196_v32 = vadd.f32 %v195_v27, %v194_v28  ;;  %v291_v6 = vadd.f32 %v290_v61, %v289_v0  ;;  %v213_v15 = vsel %vm181_vm0, %v453_v7, 0.0  ;;  %v296_v17 = vsel %vm181_vm0, %v258_v3, 0.0 }
  0x21   : > { %v457_v20 = vunpack.c.l.bf16 %v491_v11  ;;  %v215_v21 = vsel %vm181_vm0, %v454_v14, 0.0  ;;  %v261_v22 = vmul.f32 %v441_v31, %v441_v31  ;;  %v298_v23 = vsel %vm181_vm0, %v259_v9, 0.0 }
  0x22   : > { %v198_v39 = vadd.f32 %v197_v30, %v196_v32  ;;  %v293_v13 = vadd.f32 %v292_v4, %v291_v6  ;;  %v458_v27 = vunpack.c.h.bf16 %v491_v11  ;;  %v262_v30 = vmul.f32 %v442_v38, %v442_v38 }
  0x23   : > { %v217_v28 = vsel %vm181_vm0, %v457_v20, 0.0  ;;  %v300_v29 = vsel %vm181_vm0, %v260_v16, 0.0  ;;  %v263_v36 = vmul.f32 %v445_v42, %v445_v42  ;;  %v302_v31 = vsel %vm181_vm0, %v261_v22, 0.0 }
  0x24   : > { %v200_v43 = vadd.f32 %v199_v34, %v198_v39  ;;  %v295_v19 = vadd.f32 %v294_v10, %v293_v13  ;;  %v461_v34 = vunpack.c.l.bf16 %v492_v24  ;;  %v219_v35 = vsel %vm181_vm0, %v458_v27, 0.0 }
  0x25   : > { %v462_v41 = vunpack.c.h.bf16 %v492_v24  ;;  %v304_v38 = vsel %vm181_vm0, %v262_v30, 0.0  ;;  %v465_v47 = vunpack.c.l.bf16 %v493_v37  ;;  %v265_v49 = vmul.f32 %v449_v58, %v449_v58 }
  0x26   : > { %v202_v50 = vadd.f32 %v201_v40, %v200_v43  ;;  %v297_v26 = vadd.f32 %v296_v17, %v295_v19  ;;  %v221_v43 = vsel %vm181_vm0, %v461_v34, 0.0  ;;  %v306_v42 = vsel %vm181_vm0, %v263_v36, 0.0 }
  0x27   : > { %v223_v48 = vsel %vm181_vm0, %v462_v41, 0.0  ;;  %v466_v54 = vunpack.c.h.bf16 %v493_v37  ;;  %v225_v55 = vsel %vm181_vm0, %v465_v47, 0.0  ;;  %v267_v62 = vmul.f32 %v453_v7, %v453_v7  ;;  %v496_v7 = vld [vmem:[%s538_s12 + $0x70] sm:$0xff]  }
  0x28   : > { %v204_v56 = vadd.f32 %v203_v44, %v202_v50  ;;  %v299_v33 = vadd.f32 %v298_v23, %v297_v26  ;;  %v264_v44 = vmul.f32 %v446_v52, %v446_v52  ;;  %v494_v50 = vld [vmem:[%s538_s12 + $0x60] sm:$0xff]   ;;  %v310_v58 = vsel %vm181_vm0, %v265_v49, 0.0 }
  0x29   : > { %v469_v60 = vunpack.c.l.bf16 %v494_v50  ;;  %v227_v61 = vsel %vm181_vm0, %v466_v54, 0.0  ;;  %v470_v3 = vunpack.c.h.bf16 %v494_v50  ;;  %v269_v11 = vmul.f32 %v457_v20, %v457_v20 }
  0x2a   : > { %v206_v63 = vadd.f32 %v205_v53, %v204_v56  ;;  %v301_v40 = vadd.f32 %v300_v29, %v299_v33  ;;  %v266_v56 = vmul.f32 %v450_v1, %v450_v1  ;;  %v308_v52 = vsel %vm181_vm0, %v264_v44, 0.0  ;;  %v497_v33 = vld [vmem:[%s538_s12 + $0x78] sm:$0xff]  }
  0x2b   : > { %v229_v4 = vsel %vm181_vm0, %v469_v60, 0.0  ;;  %v231_v10 = vsel %vm181_vm0, %v470_v3, 0.0  ;;  %v477_v22 = vunpack.c.l.bf16 %v496_v7  ;;  %v271_v24 = vmul.f32 %v461_v34, %v461_v34 }
  0x2c   : > { %v208_v5 = vadd.f32 %v207_v59, %v206_v63  ;;  %v303_v46 = vadd.f32 %v302_v31, %v301_v40  ;;  %v495_v63 = vld [vmem:[%s538_s12 + $0x68] sm:$0xff]   ;;  %v312_v1 = vsel %vm181_vm0, %v266_v56, 0.0  ;;  %v318_v20 = vsel %vm181_vm0, %v269_v11, 0.0 }
  0x2d   : > { %v473_v9 = vunpack.c.l.bf16 %v495_v63  ;;  %v474_v16 = vunpack.c.h.bf16 %v495_v63  ;;  %v237_v30 = vsel %vm181_vm0, %v477_v22, 0.0  ;;  %v272_v29 = vmul.f32 %v462_v41, %v462_v41 }
  0x2e   : > { %v210_v12 = vadd.f32 %v209_v2, %v208_v5  ;;  %v305_v53 = vadd.f32 %v304_v38, %v303_v46  ;;  %v268_v5 = vmul.f32 %v454_v14, %v454_v14  ;;  %v273_v31 = vmul.f32 %v465_v47, %v465_v47 }
  0x2f   : > { %v233_v17 = vsel %vm181_vm0, %v473_v9, 0.0  ;;  %v235_v23 = vsel %vm181_vm0, %v474_v16, 0.0  ;;  %v322_v37 = vsel %vm181_vm0, %v271_v24, 0.0  ;;  %v481_v40 = vunpack.c.l.bf16 %v497_v33 }
  0x30   : > { %v212_v18 = vadd.f32 %v211_v8, %v210_v12  ;;  %v307_v59 = vadd.f32 %v306_v42, %v305_v53  ;;  %v314_v12 = vsel %vm181_vm0, %v267_v62, 0.0  ;;  %v316_v14 = vsel %vm181_vm0, %v268_v5, 0.0 }
  0x31   : > { %v324_v44 = vsel %vm181_vm0, %v272_v29, 0.0  ;;  %v241_v41 = vsel %vm181_vm0, %v481_v40, 0.0  ;;  %v275_v46 = vmul.f32 %v469_v60, %v469_v60  ;;  %v482_v42 = vunpack.c.h.bf16 %v497_v33 }
  0x32   : > { %v214_v25 = vadd.f32 %v213_v15, %v212_v18  ;;  %v309_v2 = vadd.f32 %v308_v52, %v307_v59  ;;  %v270_v18 = vmul.f32 %v458_v27, %v458_v27  ;;  %v276_v50 = vmul.f32 %v470_v3, %v470_v3 }
  0x33   : > { %v277_v56 = vmul.f32 %v473_v9, %v473_v9  ;;  %v279_v62 = vmul.f32 %v477_v22, %v477_v22  ;;  %v281_v5 = vmul.f32 %v481_v40, %v481_v40 }
  0x34   : > { %v216_v32 = vadd.f32 %v215_v21, %v214_v25  ;;  %v311_v8 = vadd.f32 %v310_v58, %v309_v2  ;;  %v332_v59 = vsel %vm181_vm0, %v276_v50, 0.0 }
  0x35   : > { %v334_v58 = vsel %vm181_vm0, %v277_v56, 0.0 }
  0x36   : > { %v218_v39 = vadd.f32 %v217_v28, %v216_v32  ;;  %v313_v15 = vadd.f32 %v312_v1, %v311_v8  ;;  %v478_v28 = vunpack.c.h.bf16 %v496_v7  ;;  %v320_v32 = vsel %vm181_vm0, %v270_v18, 0.0 }
  0x37   : > { %v338_v1 = vsel %vm181_vm0, %v279_v62, 0.0  ;;  %v282_v8 = vmul.f32 %v482_v42, %v482_v42 }
  0x38   : > { %v220_v45 = vadd.f32 %v219_v35, %v218_v39  ;;  %v315_v21 = vadd.f32 %v314_v12, %v313_v15  ;;  %v239_v36 = vsel %vm181_vm0, %v478_v28, 0.0  ;;  %v342_v12 = vsel %vm181_vm0, %v281_v5, 0.0 }
  0x3a   : > { %v222_v51 = vadd.f32 %v221_v43, %v220_v45  ;;  %v317_v26 = vadd.f32 %v316_v14, %v315_v21  ;;  %v274_v43 = vmul.f32 %v466_v54, %v466_v54  ;;  %v330_v54 = vsel %vm181_vm0, %v275_v46, 0.0 }
  0x3c   : > { %v224_v57 = vadd.f32 %v223_v48, %v222_v51  ;;  %v319_v35 = vadd.f32 %v318_v20, %v317_v26  ;;  %v326_v48 = vsel %vm181_vm0, %v273_v31, 0.0  ;;  %v328_v47 = vsel %vm181_vm0, %v274_v43, 0.0 }
  0x3e   : > { %v226_v0 = vadd.f32 %v225_v55, %v224_v57  ;;  %v321_v34 = vadd.f32 %v320_v32, %v319_v35  ;;  %v243_v55 = vsel %vm181_vm0, %v482_v42, 0.0  ;;  %v278_v57 = vmul.f32 %v474_v16, %v474_v16 }
  0x40   : > { %v228_v6 = vadd.f32 %v227_v61, %v226_v0  ;;  %v323_v45 = vadd.f32 %v322_v37, %v321_v34  ;;  %v280_v0 = vmul.f32 %v478_v28, %v478_v28  ;;  %v336_v2 = vsel %vm181_vm0, %v278_v57, 0.0 }
  0x42   : > { %v230_v13 = vadd.f32 %v229_v4, %v228_v6  ;;  %v325_v49 = vadd.f32 %v324_v44, %v323_v45  ;;  %v340_v9 = vsel %vm181_vm0, %v280_v0, 0.0 }
  0x44   : > { %v232_v19 = vadd.f32 %v231_v10, %v230_v13  ;;  %v327_v53 = vadd.f32 %v326_v48, %v325_v49  ;;  %v344_v13 = vsel %vm181_vm0, %v282_v8, 0.0 }
  0x46   : > { %v234_v25 = vadd.f32 %v233_v17, %v232_v19  ;;  %v329_v52 = vadd.f32 %v328_v47, %v327_v53 }
  0x48   : > { %v236_v27 = vadd.f32 %v235_v23, %v234_v25  ;;  %v331_v60 = vadd.f32 %v330_v54, %v329_v52 }
  0x4a   : > { %v238_v39 = vadd.f32 %v237_v30, %v236_v27  ;;  %v333_v63 = vadd.f32 %v332_v59, %v331_v60 }
  0x4c   : > { %v240_v38 = vadd.f32 %v239_v36, %v238_v39  ;;  %v335_v4 = vadd.f32 %v334_v58, %v333_v63 }
  0x4e   : > { %v242_v51 = vadd.f32 %v241_v41, %v240_v38  ;;  %v337_v6 = vadd.f32 %v336_v2, %v335_v4 }
  0x50   : > { %v244_v61 = vadd.f32 %v243_v55, %v242_v51  ;;  %v339_v11 = vadd.f32 %v338_v1, %v337_v6 }
  0x52   : > { %v245_v3 = vrot.slane %v244_v61, 4  ;;  %v341_v7 = vadd.f32 %v340_v9, %v339_v11 }
  0x54   : > { %v246_v10 = vadd.f32 %v245_v3, %v244_v61  ;;  %v343_v16 = vadd.f32 %v342_v12, %v341_v7 }
  0x56   : > { %v247_v15 = vrot.slane %v246_v10, 2  ;;  %v345_v17 = vadd.f32 %v344_v13, %v343_v16 }
  0x58   : > { %v248_v18 = vadd.f32 %v247_v15, %v246_v10  ;;  %v346_v14 = vrot.slane %v345_v17, 4 }
  0x5a   : > { %v347_v19 = vadd.f32 %v346_v14, %v345_v17  ;;  %v249_v21 = vrot.slane %v248_v18, 1 }
  0x5c   : > { %v348_v22 = vrot.slane %v347_v19, 2  ;;  %v250_v24 = vadd.f32 %v249_v21, %v248_v18 }
  0x5e   : > { %v349_v23 = vadd.f32 %v348_v22, %v347_v19 }
  0x60   : > { %v350_v20 = vrot.slane %v349_v23, 1 }
  0x62   : > { %v351_v25 = vadd.f32 %v350_v20, %v349_v23 }
  0x64   : > { %v353_v26 = vsel %vm352_vm1, %v250_v24, %v351_v25 }
  0x65   : > { %355 = vst.msk [vmem:[%s116_s16] sm:$0x3] %vm354_vm2, %v353_v26 }
  0x66 PF: > { %s11_s6 = sadd.s32 1, %s512_s6  }
  0x67   : > { %p8_p5 = scmp.ge.s32.totalorder %s11_s6, 4  }
  0x69   :  { %10 = sbr.rel (!%p8_p5) target bundleno = 1 (0x1), region = 54 }

// kernel: pruned_wide_basic_forward.4
= control target key start
LH: loop header
LB: loop body
LE: loop exit
PB: predicated region body
PF: predicated region fallthrough
CT: control target
= control target key end

     0   :  { %s3852_s21 = smov 0   ;;  %s5942_s0 = inlined_call_operand.vmem [shape: bf16[512,8], index: 0, kind: input, shape index: {}]   ;;  %s5943_s1 = inlined_call_operand.vmem [shape: f32[1,8], index: 1, kind: input, shape index: {}]   ;;  %s5944_s2 = inlined_call_operand.vmem [shape: f32[1,8], index: 2, kind: input, shape index: {}]   ;;  %s5945_s3 = inlined_call_operand.vmem [shape: bf16[72,8], index: 3, kind: input, shape index: {}]   ;;  %s5946_s4 = inlined_call_operand.vmem [shape: f32[1,8], index: 4, kind: input, shape index: {}]   ;;  %s5947_s5 = inlined_call_operand.vmem [shape: bf16[512,8], index: 5, kind: output, shape index: {0}]   ;;  %s5948_s6 = inlined_call_operand.vmem [shape: f32[2,2,8], index: 6, kind: output, shape index: {1}]  }
   0x1 LB: > { %s3858_s22 = sadd.s32 4294967295, %s3805_s21   ;;  %p3492_p0 = scmp.ge.s32.totalorder %s3805_s21, 1  ;;  %s3805_s21 = sphi %s3852_s21, %s17_s21  }
   0x2   : > { %p216_p1 = scmp.lt.s32.totalorder %s3805_s21, 3 }
   0x4   : > { %p217_p2 = pnand %p3492_p0, %p216_p1 }
   0x6   : > { %220 = sbr.rel (%p217_p2) target bundleno = 679 (0x2a7), region = 40 }
   0xd   : > { %s3493_s23 = sshll.u32 %s3858_s22, 5  ;;  %v530_v0 = vlaneseq  ;;  %vm3807_vm0 = vmmov 1   ;;  %v3879_v6 = vld [vmem:[%s5943_s1] ss:$0 sm:$0xff]  ;;  %v5953_v8 = vmov 0   ;;  %vm475_vm4 = vcmask 1043456  }
   0xe   : > { %p251_p3 = scmp.lt.s32.totalorder %s3493_s23, 63  ;;  %vm1076_vm1 = vmpackc.low %vm3807_vm0, %vm3807_vm0  ;;  %v3885_v9 = vrot.slane %v5953_v8, 1  ;;  %v3921_v27 = vld [vmem:[%s5944_s2] ss:$0 sm:$0xff]  ;;  %vm5965_vm7 = vsmask.f32 3328 }
   0xf   : > { %v3863_v1 = vshrl.u32 %v530_v0, 7  ;;  %v3905_v13 = vsel %vm1076_vm1, 65537, %v5953_v8  ;;  %vm5976_vm15 = vsmask.f32 4352  ;;  %s3809_s8 = smov 24   ;;  %s3810_s9 = smov 48  }
  0x10   : > { %s6210_s23 = smov (!%p251_p3, %s3493_s23), 63  ;;  %5996 = vst [vmem:[#allocation2_spill] sm:$0xff] %v3885_v9  ;;  %s3811_s10 = smov 16  }
  0x11   : > { %v567_v2 = vand.u32 15, %v3863_v1  ;;  %v533_v3 = vadd.s32 16, %v3863_v1  ;;  %v3870_v4 = vadd.s32 32, %v3863_v1  ;;  %v3873_v5 = vadd.s32 8, %v3863_v1  ;;  %s3494_s24 = sshll.u32 %s6210_s23, 2  ;;  %s3812_s11 = smov 40  }
  0x12   : > { %v3882_v7 = vadd.s32 24, %v3863_v1  ;;  %v3888_v10 = vadd.s32 40, %v3863_v1  ;;  %v3891_v11 = vadd.s32 56, %v3863_v1  ;;  %s3898_s29 = scalar_lea.vmem %s5942_s0, %s3494_s24  ;;  %s3813_s12 = smov 8  }
  0x13   : > { %vm3900_vm2 = vcmp.gt.s32.totalorder %v567_v2, 0  ;;  %v581_v14 = vand.u32 15, %v533_v3  ;;  %v595_v15 = vand.u32 15, %v3870_v4  ;;  %v3621_v16 = vld [vmem:[%s3898_s29] sm:$0xff]   ;;  %v3684_v17 = vld [vmem:[%s3898_s29 + $0x8] sm:$0xff]   ;;  %v574_v18 = vand.u32 15, %v3873_v5 }
  0x14   : > { %vm1075_vm3 = vmpackc.low %vm3900_vm2, %vm3900_vm2  ;;  %v588_v19 = vand.u32 15, %v3882_v7  ;;  %v602_v20 = vand.u32 15, %v3888_v10  ;;  %v616_v21 = vand.u32 15, %v3891_v11  ;;  %v3622_v22 = vunpack.c.l.bf16 %v3621_v16  ;;  %v3685_v26 = vld [vmem:[%s3898_s29 + $0x10] sm:$0xff]   ;;  %s3814_s15 = smov 32   ;;  %s3815_s26 = smov 56  }
  0x15   : > { %v3623_v23 = vunpack.c.h.bf16 %v3621_v16  ;;  %v3626_v24 = vunpack.c.l.bf16 %v3684_v17  ;;  %v3627_v25 = vunpack.c.h.bf16 %v3684_v17  ;;  %v1107_v28 = vsel %vm1075_vm3, 65537, %v5953_v8  ;;  %s3816_s30 = smov 64   ;;  %p262_p4 = scmp.lt.s32.totalorder %s3858_s22, 1 }
  0x16   : > { %vm949_vm5 = vcmp.gt.s32.totalorder %v581_v14, 0  ;;  %v3630_v29 = vunpack.c.l.bf16 %v3685_v26  ;;  %v3631_v30 = vunpack.c.h.bf16 %v3685_v26  ;;  %v340_v31 = vmul.f32 %v3622_v22, %v3879_v6 }
  0x17   : > { %v341_v32 = vmul.f32 %v3623_v23, %v3879_v6  ;;  %v342_v33 = vmul.f32 %v3626_v24, %v3879_v6  ;;  %v343_v34 = vmul.f32 %v3627_v25, %v3879_v6  ;;  %vm1077_vm6 = vmpackc.low %vm949_vm5, %vm949_vm5  ;;  %v3500_v35 = vcombine.low %v1107_v28, %v3905_v13  ;;  %s6212_s22 = smov (!%p262_p4, %s3858_s22), 1 }
  0x18   : > { %v1109_v36 = vsel %vm1077_vm6, 65537, %v5953_v8  ;;  %v344_v37 = vmul.f32 %v3630_v29, %v3879_v6  ;;  %v345_v38 = vmul.f32 %v3631_v30, %v3879_v6  ;;  %v379_v39 = vadd.f32 %v3921_v27, %v340_v31  ;;  %s3497_s23 = sshll.u32 %s6212_s22, 1 }
  0x19   : > { %v380_v40 = vadd.f32 %v3921_v27, %v341_v32  ;;  %v381_v41 = vadd.f32 %v3921_v27, %v342_v33  ;;  %v382_v42 = vadd.f32 %v3921_v27, %v343_v34  ;;  %v1189_v43 = vshrl.u32 %v3500_v35, 16  ;;  %v3686_v32 = vld [vmem:[%s3898_s29 + $0x18] sm:$0xff]  }
  0x1a   : > { %v1192_v44 = vshll.u32 %v3500_v35, 16  ;;  %v3501_v45 = vcombine.low %v1109_v36, %v3905_v13  ;;  %v383_v46 = vadd.f32 %v3921_v27, %v344_v37  ;;  %v411_v47 = vmax.f32 %v379_v39, 0.0 }
  0x1b   : > { %v412_v48 = vmax.f32 %v380_v40, 0.0  ;;  %v413_v49 = vmax.f32 %v381_v41, 0.0  ;;  %v414_v50 = vmax.f32 %v382_v42, 0.0  ;;  %v1191_v51 = vrot.slane %v1189_v43, 4 }
  0x1c   : > { %v1194_v52 = vrot.slane %v1192_v44, 5  ;;  %v1197_v53 = vshrl.u32 %v3501_v45, 16  ;;  %v1200_v54 = vshll.u32 %v3501_v45, 16  ;;  %v384_v57 = vadd.f32 %v3921_v27, %v345_v38 }
  0x1d   : > { %v443_v55 = vpack.c.bf16 %v412_v48, %v411_v47  ;;  %v444_v56 = vpack.c.bf16 %v414_v50, %v413_v49  ;;  %v415_v58 = vmax.f32 %v383_v46, 0.0  ;;  %vm951_vm8 = vcmp.gt.s32.totalorder %v595_v15, 0 }
  0x1e   : > { %v1195_v59 = vor.u32 %v1194_v52, %v1191_v51  ;;  %v1199_v60 = vrot.slane %v1197_v53, 4  ;;  %v1202_v61 = vrot.slane %v1200_v54, 5  ;;  %v416_v0 = vmax.f32 %v384_v57, 0.0  ;;  %vm1079_vm9 = vmpackc.low %vm951_vm8, %vm951_vm8 }
  0x1f   : > { %v476_v62 = vrot.slane %v443_v55, 4  ;;  %v477_v63 = vrot.slane %v444_v56, 4  ;;  %vm980_vm10 = vcmp.lt.s32.totalorder %v574_v18, 15  ;;  %v1111_v3 = vsel %vm1079_vm9, 65537, %v5953_v8 }
  0x20   : > { %vm1715_vm11 = vcmp.ne.s16.totalorder %v1195_v59, 0  ;;  %v1203_v2 = vor.u32 %v1202_v61, %v1199_v60  ;;  %vm3940_vm12 = vcmp.lt.s32.totalorder %v588_v19, 15  ;;  %vm1428_vm13 = vmpackc.low %vm980_vm10, %vm980_vm10  ;;  %v3950_v12 = vpack.c.bf16 %v416_v0, %v415_v58 }
  0x21   : > { %v3945_v5 = vsel %vm475_vm4, 0, %v476_v62  ;;  %v3948_v7 = vsel %vm475_vm4, %v476_v62, %v477_v63  ;;  %v3502_v14 = vcombine.low %v1111_v3, %v3905_v13  ;;  %vm1430_vm14 = vmpackc.low %vm3940_vm12, %vm3940_vm12  ;;  %v1460_v18 = vsel %vm1428_vm13, 65537, %v5953_v8 }
  0x22   : > { %v1716_v15 = vsel %vm1715_vm11, %v3945_v5, 0  ;;  %v3958_v16 = vsel %vm5965_vm7, %v1195_v59, %v1203_v2  ;;  %v1751_v17 = vsel %vm1715_vm11, %v3948_v7, 0  ;;  %v479_v19 = vrot.slane %v3950_v12, 4 }
  0x23   : > { %2053 = vrot.lane.b32.xlu0 %v1716_v15, %s3809_s8  ;;  %vm1331_vm0 = vcmp.ne.s16.totalorder %v3958_v16, 0  ;;  %v1206_v22 = vshrl.u32 %v3502_v14, 16  ;;  %v1209_v23 = vshll.u32 %v3502_v14, 16  ;;  %v1462_v25 = vsel %vm1430_vm14, 65537, %v5953_v8 }
  0x24   : > { %v1717_v24 = vsel %vm1331_vm0, %v3948_v7, 0  ;;  %v3516_v26 = vcombine.low %v3905_v13, %v1460_v18  ;;  %vm984_vm1 = vcmp.lt.s32.totalorder %v602_v20, 15  ;;  %v3976_v28 = vsel %vm475_vm4, %v477_v63, %v479_v19 }
  0x25   : > { %2055 = vrot.lane.b32.xlu1 %v1717_v24, %s3809_s8  ;;  %v1208_v29 = vrot.slane %v1206_v22, 4  ;;  %v1211_v30 = vrot.slane %v1209_v23, 5  ;;  %v3517_v31 = vcombine.low %v3905_v13, %v1462_v25  ;;  %vm1432_vm2 = vmpackc.low %vm984_vm1, %vm984_vm1  ;;  %vm986_vm3 = vcmp.lt.s32.totalorder %v616_v21, 15 }
  0x26   : > { %v1541_v33 = vshrl.u32 %v3516_v26, 16  ;;  %v1544_v34 = vshll.u32 %v3516_v26, 16  ;;  %v1464_v35 = vsel %vm1432_vm2, 65537, %v5953_v8  ;;  %vm1434_vm5 = vmpackc.low %vm986_vm3, %vm986_vm3  ;;  %v3634_v41 = vunpack.c.l.bf16 %v3686_v32 }
  0x27   : > { %v3983_v10 = vor.u32 %v1211_v30, %v1208_v29  ;;  %v1549_v20 = vshrl.u32 %v3517_v31, 16  ;;  %v1552_v36 = vshll.u32 %v3517_v31, 16  ;;  %v3518_v37 = vcombine.low %v3905_v13, %v1464_v35 }
  0x28   : > { %v1543_v38 = vrot.slane %v1541_v33, 3  ;;  %v1546_v39 = vrot.slane %v1544_v34, 4  ;;  %v1466_v40 = vsel %vm1434_vm5, 65537, %v5953_v8  ;;  %v3635_v50 = vunpack.c.h.bf16 %v3686_v32 }
  0x29   : > { %v3989_v42 = vsel %vm5965_vm7, %v1203_v2, %v3983_v10  ;;  %2228 = vrot.lane.b32.xlu1 %v1751_v17, %s3810_s9  ;;  %v1551_v11 = vrot.slane %v1549_v20, 3  ;;  %v1554_v21 = vrot.slane %v1552_v36, 4  ;;  %v1558_v43 = vshrl.u32 %v3518_v37, 16 }
  0x2a   : > { %vm1332_vm6 = vcmp.ne.s16.totalorder %v3989_v42, 0  ;;  %v3993_v44 = vor.u32 %v1546_v39, %v1543_v38  ;;  %v1561_v45 = vshll.u32 %v3518_v37, 16  ;;  %v3519_v46 = vcombine.low %v3905_v13, %v1466_v40 }
  0x2b   : > { %v1718_v47 = vsel %vm1332_vm6, %v3976_v28, 0  ;;  %v1555_v48 = vor.u32 %v1554_v21, %v1551_v11  ;;  %v1560_v49 = vrot.slane %v1558_v43, 3  ;;  %v346_v56 = vmul.f32 %v3634_v41, %v3879_v6  ;;  %v3687_v21 = vld [vmem:[%s3898_s29 + $0x20] sm:$0xff]  }
  0x2c   : > { %2057 = vrot.lane.b32.xlu0 %v1718_v47, %s3809_s8  ;;  %v1563_v51 = vrot.slane %v1561_v45, 4  ;;  %v1567_v52 = vshrl.u32 %v3519_v46, 16  ;;  %v1570_v53 = vshll.u32 %v3519_v46, 16  ;;  %vm1733_vm8 = vcmp.ne.s16.totalorder %v3993_v44, 0 }
  0x2d   : > { %v4003_v54 = vsel %vm5976_vm15, %v3993_v44, %v1555_v48  ;;  %v1734_v55 = vsel %vm1733_vm8, %v3945_v5, 0  ;;  %v347_v57 = vmul.f32 %v3635_v50, %v3879_v6  ;;  %vm1968_vm10 = vcmask 1046528  }
  0x2e   : > { %vm1683_vm9 = vcmp.ne.s16.totalorder %v4003_v54, 0  ;;  %v1564_v58 = vor.u32 %v1563_v51, %v1560_v49  ;;  %v1569_v59 = vrot.slane %v1567_v52, 3  ;;  %v1572_v60 = vrot.slane %v1570_v53, 4 }
  0x2f   : > { %v1699_v61 = vsel %vm1683_vm9, %v3945_v5, 0  ;;  %v1735_v62 = vsel %vm1683_vm9, %v3948_v7, 0  ;;  %v385_v63 = vadd.f32 %v3921_v27, %v346_v56  ;;  %v2145_v4 = vrot.slane %v1734_v55, 1 }
  0x30   : > { %v1970_v0 = vrot.slane %v1699_v61, 1  ;;  %v4019_v2 = vsel %vm5976_vm15, %v1555_v48, %v1564_v58  ;;  %v4021_v3 = vor.u32 %v1572_v60, %v1569_v59  ;;  %v386_v14 = vadd.f32 %v3921_v27, %v347_v57 }
  0x31   : > { %vm1684_vm11 = vcmp.ne.s16.totalorder %v4019_v2, 0  ;;  %v417_v15 = vmax.f32 %v385_v63, 0.0  ;;  %v1798_v17 = vshll.u32 %v3948_v7, 16  ;;  %v2146_v24 = vrot.slane %v1735_v62, 1 }
  0x32   : > { %v1971_v18 = vsel %vm1968_vm10, %v3885_v9, %v1970_v0  ;;  %v1700_v22 = vsel %vm1684_vm11, %v3948_v7, 0  ;;  %v4033_v23 = vsel %vm5976_vm15, %v1564_v58, %v4021_v3  ;;  %v1736_v26 = vsel %vm1684_vm11, %v3976_v28, 0  ;;  %v3688_v58 = vld [vmem:[%s3898_s29 + $0x28] sm:$0xff]  }
  0x33   : > { %2002 = vrot.lane.b32.xlu1 %v1971_v18, %s3811_s10  ;;  %v1972_v25 = vrot.slane %v1700_v22, 1  ;;  %vm1685_vm12 = vcmp.ne.s16.totalorder %v4033_v23, 0  ;;  %v418_v29 = vmax.f32 %v386_v14, 0.0  ;;  %v2148_v31 = vrot.slane %v1736_v26, 1 }
  0x34   : > { %v4043_v30 = vsel %vm1685_vm12, %v3976_v28, 0  ;;  %v1800_v32 = vrot.slane %v1798_v17, 1  ;;  %v1802_v33 = vshrl.u32 %v3948_v7, 16  ;;  %v1806_v36 = vshll.u32 %v3976_v28, 16 }
  0x35   : > { %v1973_v34 = vsel %vm1968_vm10, %v1970_v0, %v1972_v25  ;;  %v1974_v35 = vrot.slane %v4043_v30, 1  ;;  %v4048_v20 = vpack.c.bf16 %v418_v29, %v417_v15  ;;  %v1790_v37 = vshll.u32 %v3945_v5, 16 }
  0x36   : > { %2004 = vrot.lane.b32.xlu0 %v1973_v34, %s3811_s10  ;;  %v1794_v38 = vshrl.u32 %v3945_v5, 16  ;;  %v2147_v40 = vsel %vm1968_vm10, %v2145_v4, %v2146_v24  ;;  %v2149_v43 = vsel %vm1968_vm10, %v2146_v24, %v2148_v31  ;;  %v1804_v46 = vor.u32 %v1802_v33, %v1800_v32 }
  0x37   : > { %v1975_v39 = vsel %vm1968_vm10, %v1972_v25, %v1974_v35  ;;  %v481_v41 = vrot.slane %v4048_v20, 4  ;;  %v1792_v11 = vrot.slane %v1790_v37, 1  ;;  %v1808_v47 = vrot.slane %v1806_v36, 1  ;;  %v3792_v36 = vld [vmem:[%s5945_s3] sm:$0xff]  }
  0x38   : > { %2006 = vrot.lane.b32.xlu1 %v1975_v39, %s3811_s10  ;;  %vm1783_vm13 = vsmask.f32 7424  ;;  %v1810_v50 = vshrl.u32 %v3976_v28, 16  ;;  %v3638_v51 = vunpack.c.l.bf16 %v3687_v21  ;;  %v3639_v53 = vunpack.c.h.bf16 %v3687_v21  ;;  %3720 = vmatprep.subr.bf16.mxu0 %v3792_v36 }
  0x39   : > { %v4067_v45 = vsel %vm475_vm4, %v479_v19, %v481_v41  ;;  %v1796_v49 = vor.u32 %v1794_v38, %v1792_v11  ;;  %v540_v19 = vadd.s32 72, %v3863_v1  ;;  %v4084_v56 = vsel %vm1783_vm13, %v1804_v46, %v1808_v47  ;;  %3762 = vmatprep.subr.bf16.mxu1 %v3792_v36  ;;  %3721 = vmatpush3.bf16.msra.mxu0 %v3792_v36 }
  0x3a   : > { %2178 = vrot.lane.b32.xlu0 %v2147_v40, %s3812_s11  ;;  %v4073_v48 = vsel %vm1685_vm12, %v4067_v45, 0  ;;  %v1814_v52 = vshll.u32 %v4067_v45, 16  ;;  %v348_v57 = vmul.f32 %v3638_v51, %v3879_v6  ;;  %v1793_v59 = vsel %vm1783_vm13, %v3885_v9, %v1792_v11  ;;  %3767 = vmatpush3.bf16.msra.mxu1 %v3792_v36 }
  0x3b   : > { %v2150_v12 = vrot.slane %v4073_v48, 1  ;;  %v1801_v60 = vsel %vm1783_vm13, %v1796_v49, %v1800_v32  ;;  %v1812_v61 = vor.u32 %v1810_v50, %v1808_v47  ;;  %v349_v62 = vmul.f32 %v3639_v53, %v3879_v6  ;;  %v3793_v53 = vld [vmem:[%s5945_s3 + $0x8] sm:$0xff]  }
  0x3c   : > { %2180 = vrot.lane.b32.xlu1 %v2149_v43, %s3812_s11  ;;  %v387_v63 = vadd.f32 %v3921_v27, %v348_v57  ;;  %v542_v0 = vadd.s32 88, %v3863_v1  ;;  %v630_v4 = vand.u32 15, %v540_v19  ;;  %v537_v14 = vadd.s32 48, %v3863_v1  ;;  %3722 = vmatprep.subr.bf16.mxu0 %v3793_v53 }
  0x3d   : > { %v2151_v55 = vsel %vm1968_vm10, %v2148_v31, %v2150_v12  ;;  %v4098_v15 = vrot.slane %v1814_v52, 1  ;;  %v388_v17 = vadd.f32 %v3921_v27, %v349_v62  ;;  %v539_v18 = vadd.s32 64, %v3863_v1  ;;  %3763 = vmatprep.subr.bf16.mxu1 %v3793_v53  ;;  %3723 = vmatpush3.bf16.msra.mxu0 %v3793_v53 }
  0x3e   : > { %2182 = vrot.lane.b32.xlu0 %v2151_v55, %s3812_s11  ;;  %v3642_v22 = vunpack.c.l.bf16 %v3688_v58  ;;  %v419_v24 = vmax.f32 %v387_v63, 0.0  ;;  %v644_v25 = vand.u32 15, %v542_v0  ;;  %vm988_vm14 = vcmp.lt.s32.totalorder %v630_v4, 15  ;;  %v3689_v4 = vld [vmem:[%s3898_s29 + $0x30] sm:$0xff]   ;;  %3768 = vmatpush3.bf16.msra.mxu1 %v3793_v53 }
  0x3f   : > { %v609_v26 = vand.u32 15, %v537_v14  ;;  %v420_v29 = vmax.f32 %v388_v17, 0.0  ;;  %vm1436_vm1 = vmpackc.low %vm988_vm14, %vm988_vm14  ;;  %v623_v31 = vand.u32 15, %v539_v18  ;;  %v3643_v34 = vunpack.c.h.bf16 %v3688_v58 }
  0x40   : > { %1921 = vrot.lane.b32.xlu1 %v4084_v56, %s3813_s12  ;;  %vm990_vm2 = vcmp.lt.s32.totalorder %v644_v25, 15  ;;  %v1468_v32 = vsel %vm1436_vm1, 65537, %v5953_v8  ;;  %v4121_v40 = vsel %vm1783_vm13, %v1812_v61, %v4098_v15  ;;  %v4126_v11 = vsel %vm1733_vm8, %v3948_v7, 0 }
  0x41   : > { %vm4104_vm3 = vcmp.gt.s32.totalorder %v609_v26, 0  ;;  %v4112_v37 = vpack.c.bf16 %v420_v29, %v419_v24  ;;  %vm1438_vm5 = vmpackc.low %vm990_vm2, %vm990_vm2  ;;  %v3520_v38 = vcombine.low %v3905_v13, %v1468_v32  ;;  %vm4115_vm14 = vcmp.gt.s32.totalorder %v623_v31, 0  ;;  %v3794_v24 = vld [vmem:[%s5945_s3 + $0x10] sm:$0xff]  }
  0x42   : > { %1917 = vrot.lane.b32.xlu0 %v1793_v59, %s3813_s12  ;;  %v1470_v21 = vsel %vm1438_vm5, 65537, %v5953_v8  ;;  %vm1081_vm1 = vmpackc.low %vm4104_vm3, %vm4104_vm3  ;;  %v350_v43 = vmul.f32 %v3642_v22, %v3879_v6  ;;  %v4142_v50 = vsel %vm1683_vm9, %v3976_v28, 0  ;;  %v351_v52 = vmul.f32 %v3643_v34, %v3879_v6  ;;  %3724 = vmatprep.subr.bf16.mxu0 %v3794_v24 }
  0x43   : > { %v483_v46 = vrot.slane %v4112_v37, 4  ;;  %v3521_v47 = vcombine.low %v3905_v13, %v1470_v21  ;;  %v1576_v49 = vshrl.u32 %v3520_v38, 16  ;;  %v1579_v44 = vshll.u32 %v3520_v38, 16  ;;  %vm1083_vm8 = vmpackc.low %vm4115_vm14, %vm4115_vm14  ;;  %3764 = vmatprep.subr.bf16.mxu1 %v3794_v24  ;;  %3725 = vmatpush3.bf16.msra.mxu0 %v3794_v24 }
  0x44   : > { %2094 = vrot.lane.b32.xlu1 %v1801_v60, %s3814_s15  ;;  %v1113_v51 = vsel %vm1081_vm1, 65537, %v5953_v8  ;;  %v1115_v19 = vsel %vm1083_vm8, 65537, %v5953_v8  ;;  %v1753_v59 = vsel %vm1332_vm6, %v4067_v45, 0  ;;  %v1752_v20 = vsel %vm1331_vm0, %v3976_v28, 0  ;;  %3769 = vmatpush3.bf16.msra.mxu1 %v3794_v24 }
  0x45   : > { %v4157_v54 = vsel %vm475_vm4, %v481_v41, %v483_v46  ;;  %v1578_v55 = vrot.slane %v1576_v49, 3  ;;  %v1581_v57 = vrot.slane %v1579_v44, 4  ;;  %v1585_v58 = vshrl.u32 %v3521_v47, 16 }
  0x46   : > { %1919 = vrot.lane.b32.xlu0 %v1801_v60, %s3813_s12  ;;  %6005 = vst [vmem:[#allocation3_spill] sm:$0xff] %v4157_v54  ;;  %v1818_v60 = vshrl.u32 %v4067_v45, 16  ;;  %v1822_v61 = vshll.u32 %v4157_v54, 16  ;;  %v1588_v62 = vshll.u32 %v3521_v47, 16  ;;  %v3503_v63 = vcombine.low %v1113_v51, %v3905_v13  ;;  %v3795_v47 = vld [vmem:[%s5945_s3 + $0x18] sm:$0xff]  }
  0x47   : > { %v1587_v41 = vrot.slane %v1585_v58, 3  ;;  %v389_v0 = vadd.f32 %v3921_v27, %v350_v43  ;;  %v1582_v14 = vor.u32 %v1581_v57, %v1578_v55  ;;  %v3504_v18 = vcombine.low %v1115_v19, %v3905_v13  ;;  %3726 = vmatprep.subr.bf16.mxu0 %v3795_v47  ;;  %3765 = vmatprep.subr.bf16.mxu1 %v3795_v47 }
  0x48   : > { %2098 = vrot.lane.b32.xlu1 %v4121_v40, %s3814_s15  ;;  %v1590_v17 = vrot.slane %v1588_v62, 4  ;;  %v390_v22 = vadd.f32 %v3921_v27, %v351_v52  ;;  %v2313_v25 = vrot.slane %v4126_v11, 1  ;;  %v2314_v26 = vrot.slane %v4142_v50, 1  ;;  %3727 = vmatpush3.bf16.msra.mxu0 %v3795_v47 }
  0x49   : > { %v4183_v29 = vsel %vm1684_vm11, %v4067_v45, 0  ;;  %v1820_v31 = vor.u32 %v1818_v60, %v4098_v15  ;;  %v4186_v32 = vrot.slane %v1822_v61, 1  ;;  %v3646_v34 = vunpack.c.l.bf16 %v3689_v4  ;;  %3770 = vmatpush3.bf16.msra.mxu1 %v3795_v47 }
  0x4a   : > { %2096 = vrot.lane.b32.xlu0 %v4084_v56, %s3814_s15  ;;  %v4188_v33 = vor.u32 %v1590_v17, %v1587_v41  ;;  %v1215_v36 = vshrl.u32 %v3503_v63, 16  ;;  %v1218_v38 = vshll.u32 %v3503_v63, 16  ;;  %v421_v39 = vmax.f32 %v389_v0, 0.0 }
  0x4b   : > { %v3647_v11 = vunpack.c.h.bf16 %v3689_v4  ;;  %v4193_v2 = vsel %vm5976_vm15, %v4021_v3, %v1582_v14  ;;  %v1224_v21 = vshrl.u32 %v3504_v18, 16  ;;  %v1227_v15 = vshll.u32 %v3504_v18, 16 }
  0x4c   : > { %2232 = vrot.lane.b32.xlu1 %v1753_v59, %s3810_s9  ;;  %v422_v43 = vmax.f32 %v390_v22, 0.0  ;;  %v2315_v49 = vsel %vm1968_vm10, %v2313_v25, %v2314_v26  ;;  %v4203_v44 = vsel %vm5976_vm15, %v1582_v14, %v4188_v33  ;;  %v4207_v3 = vsel %vm1783_vm13, %v1820_v31, %v4186_v32  ;;  %v4226_v59 = vld [vmem:[%s5945_s3 + $0x20] ss:$0 sps:$4 sm:$0xff]  }
  0x4d   : > { %v2316_v50 = vrot.slane %v4183_v29, 1  ;;  %v4213_v51 = vsel %vm1685_vm12, %v4157_v54, 0  ;;  %v352_v19 = vmul.f32 %v3646_v34, %v3879_v6  ;;  %vm1686_vm9 = vcmp.ne.s16.totalorder %v4193_v2, 0  ;;  %3772 = vmatprep.subr.msk.bf16.mxu0 %vm475_vm4, %v4226_v59  ;;  %3773 = vmatprep.subr.msk.bf16.mxu1 %vm475_vm4, %v4226_v59 }
  0x4e   : > { %2230 = vrot.lane.b32.xlu0 %v1752_v20, %s3810_s9  ;;  %v1217_v52 = vrot.slane %v1215_v36, 4  ;;  %v1220_v53 = vrot.slane %v1218_v38, 5  ;;  %v4219_v55 = vpack.c.bf16 %v422_v43, %v421_v39  ;;  %vm1687_vm11 = vcmp.ne.s16.totalorder %v4203_v44, 0 }
  0x4f   : > { %v1226_v57 = vrot.slane %v1224_v21, 4  ;;  %v1229_v23 = vrot.slane %v1227_v15, 5  ;;  %v353_v58 = vmul.f32 %v3647_v11, %v3879_v6  ;;  %v391_v60 = vadd.f32 %v3921_v27, %v352_v19 }
  0x50   : > { %2265 = vrot.lane.b32.xlu1 %v4121_v40, %s3815_s26  ;;  %v2318_v62 = vrot.slane %v4213_v51, 1  ;;  %v1702_v20 = vsel %vm1686_vm9, %v4067_v45, 0  ;;  %v4245_v41 = vsel %vm1687_vm11, %v4157_v54, 0  ;;  %v485_v63 = vrot.slane %v4219_v55, 4 }
  0x51   : > { %v392_v61 = vadd.f32 %v3921_v27, %v353_v58  ;;  %v1221_v0 = vor.u32 %v1220_v53, %v1217_v52  ;;  %v4248_v4 = vor.u32 %v1229_v23, %v1226_v57  ;;  %v423_v14 = vmax.f32 %v391_v60, 0.0  ;;  %v3690_v52 = vld [vmem:[%s3898_s29 + $0x38] sm:$0xff]  }
  0x52   : > { %2263 = vrot.lane.b32.xlu0 %v4084_v56, %s3815_s26  ;;  %v2317_v56 = vsel %vm1968_vm10, %v2314_v26, %v2316_v50  ;;  %v544_v18 = vadd.s32 104, %v3863_v1  ;;  %v546_v22 = vadd.s32 120, %v3863_v1  ;;  %v1976_v24 = vrot.slane %v1702_v20, 1 }
  0x53   : > { %v424_v17 = vmax.f32 %v392_v61, 0.0  ;;  %v1978_v25 = vrot.slane %v4245_v41, 1  ;;  %v541_v26 = vadd.s32 80, %v3863_v1  ;;  %v543_v29 = vadd.s32 96, %v3863_v1 }
  0x54   : > { %2345 = vrot.lane.b32.xlu1 %v2315_v49, %s3816_s30  ;;  %v2319_v31 = vsel %vm1968_vm10, %v2316_v50, %v2318_v62  ;;  %v658_v34 = vand.u32 15, %v544_v18  ;;  %v4268_v36 = vsel %vm5965_vm7, %v1221_v0, %v4248_v4  ;;  %v672_v39 = vand.u32 15, %v546_v22 }
  0x55   : > { %6007 = vst [vmem:[#allocation5_spill] sm:$0xff] %v4268_v36  ;;  %v4270_v38 = vpack.c.bf16 %v424_v17, %v423_v14  ;;  %v637_v11 = vand.u32 15, %v541_v26  ;;  %v1826_v21 = vshrl.u32 %v4157_v54, 16  ;;  %v651_v37 = vand.u32 15, %v543_v29 }
  0x56   : > { %2267 = vrot.lane.b32.xlu0 %v4207_v3, %s3815_s26  ;;  %vm992_vm12 = vcmp.lt.s32.totalorder %v658_v34, 15  ;;  %v4280_v15 = vsel %vm5965_vm7, %v3983_v10, %v1221_v0  ;;  %vm994_vm2 = vcmp.lt.s32.totalorder %v672_v39, 15  ;;  %vm5949_vm5 = vcmp.ne.s16.totalorder %v4268_v36, 0 }
  0x57   : > { %vm1440_vm3 = vmpackc.low %vm992_vm12, %vm992_vm12  ;;  %v1977_v49 = vsel %vm1968_vm10, %v1974_v35, %v1976_v24  ;;  %v487_v50 = vrot.slane %v4270_v38, 4  ;;  %vm4291_vm1 = vcmp.gt.s32.totalorder %v637_v11, 0  ;;  %vm5973_vm8 = vcmp.ne.s16.totalorder %v4280_v15, 0 }
  0x58   : > { %1923 = vrot.lane.b32.xlu1 %v4121_v40, %s3813_s12  ;;  %v4264_v40 = vsel %vm475_vm4, %v483_v46, %v485_v63  ;;  %v1979_v46 = vsel %vm1968_vm10, %v1976_v24, %v1978_v25  ;;  %vm1442_vm14 = vmpackc.low %vm994_vm2, %vm994_vm2  ;;  %v1472_v47 = vsel %vm1440_vm3, 65537, %v5953_v8  ;;  %vm4300_vm12 = vcmp.gt.s32.totalorder %v651_v37, 0 }
  0x59   : > { %6006 = vst [vmem:[#allocation4_spill] sm:$0xff] %v4264_v40  ;;  %v1830_v43 = vshll.u32 %v4264_v40, 16  ;;  %v1474_v10 = vsel %vm1442_vm14, 65537, %v5953_v8  ;;  %v3522_v53 = vcombine.low %v3905_v13, %v1472_v47  ;;  %v1720_v35 = vsel %vm5949_vm5, %v4157_v54, 0  ;;  %vm1085_vm2 = vmpackc.low %vm4291_vm1, %vm4291_vm1  ;;  %v3691_v47 = vld [vmem:[%s3898_s29 + $0x40] sm:$0xff]  }
  0x5a   : > { %2347 = vrot.lane.b32.xlu0 %v2317_v56, %s3816_s30  ;;  %v3523_v55 = vcombine.low %v3905_v13, %v1474_v10  ;;  %v1828_v57 = vor.u32 %v1826_v21, %v4186_v32  ;;  %v1738_v58 = vsel %vm1686_vm9, %v4157_v54, 0  ;;  %v4315_v56 = vsel %vm1687_vm11, %v4264_v40, 0  ;;  %vm1087_vm3 = vmpackc.low %vm4300_vm12, %vm4300_vm12 }
  0x5b   : > { %v1832_v23 = vrot.slane %v1830_v43, 1  ;;  %v3650_v60 = vunpack.c.l.bf16 %v3690_v52  ;;  %v3651_v61 = vunpack.c.h.bf16 %v3690_v52  ;;  %v1719_v32 = vsel %vm5973_vm8, %v4067_v45, 0 }
  0x5c   : > { %1925 = vrot.lane.b32.xlu1 %v4207_v3, %s3813_s12  ;;  %v4326_v20 = vsel %vm475_vm4, %v485_v63, %v487_v50  ;;  %v1594_v0 = vshrl.u32 %v3522_v53, 16  ;;  %v1597_v14 = vshll.u32 %v3522_v53, 16  ;;  %v1603_v17 = vshrl.u32 %v3523_v55, 16 }
  0x5d   : > { %6012 = vst [vmem:[#allocation6_spill] sm:$0xff] %v4326_v20  ;;  %v1606_v18 = vshll.u32 %v3523_v55, 16  ;;  %v4333_v22 = vsel %vm1783_vm13, %v1828_v57, %v1832_v23  ;;  %v2152_v24 = vrot.slane %v1738_v58, 1  ;;  %v2154_v26 = vrot.slane %v4315_v56, 1 }
  0x5e   : > { %2349 = vrot.lane.b32.xlu0 %v2319_v31, %s3816_s30  ;;  %v1117_v63 = vsel %vm1085_vm2, 65537, %v5953_v8  ;;  %v1119_v29 = vsel %vm1087_vm3, 65537, %v5953_v8  ;;  %v354_v31 = vmul.f32 %v3650_v60, %v3879_v6  ;;  %v355_v34 = vmul.f32 %v3651_v61, %v3879_v6 }
  0x5f   : > { %v1834_v39 = vshrl.u32 %v4264_v40, 16  ;;  %v1838_v11 = vshll.u32 %v4326_v20, 16  ;;  %v1596_v21 = vrot.slane %v1594_v0, 3  ;;  %v1599_v37 = vrot.slane %v1597_v14, 4 }
  0x60   : > { %2010 = vrot.lane.b32.xlu1 %v1979_v46, %s3811_s10  ;;  %v1605_v46 = vrot.slane %v1603_v17, 3  ;;  %v1608_v43 = vrot.slane %v1606_v18, 4  ;;  %v3505_v10 = vcombine.low %v1117_v63, %v3905_v13  ;;  %v3506_v19 = vcombine.low %v1119_v29, %v3905_v13 }
  0x61   : > { %v393_v52 = vadd.f32 %v3921_v27, %v354_v31  ;;  %v394_v53 = vadd.f32 %v3921_v27, %v355_v34  ;;  %v2153_v55 = vsel %vm1968_vm10, %v2150_v12, %v2152_v24  ;;  %v1771_v30 = vsel %vm1686_vm9, %v4264_v40, 0 }
  0x62   : > { %2008 = vrot.lane.b32.xlu0 %v1977_v49, %s3811_s10  ;;  %v2155_v49 = vsel %vm1968_vm10, %v2152_v24, %v2154_v26  ;;  %v1836_v57 = vor.u32 %v1834_v39, %v1832_v23  ;;  %v4362_v58 = vrot.slane %v1838_v11, 1  ;;  %v1600_v60 = vor.u32 %v1599_v37, %v1596_v21 }
  0x63   : > { %v1755_v61 = vsel %vm5949_vm5, %v4264_v40, 0  ;;  %v1233_v48 = vshrl.u32 %v3505_v10, 16  ;;  %v1242_v12 = vshrl.u32 %v3506_v19, 16  ;;  %v1754_v2 = vsel %vm5973_vm8, %v4157_v54, 0 }
  0x64   : > { %2061 = vrot.lane.b32.xlu1 %v1720_v35, %s3809_s8  ;;  %v3654_v35 = vunpack.c.l.bf16 %v3691_v47  ;;  %v1245_v0 = vshll.u32 %v3506_v19, 16  ;;  %v425_v23 = vmax.f32 %v393_v52, 0.0  ;;  %v426_v14 = vmax.f32 %v394_v53, 0.0 }
  0x65   : > { %v2320_v17 = vrot.slane %v1771_v30, 1  ;;  %v4376_v18 = vsel %vm1687_vm11, %v4326_v20, 0  ;;  %v3655_v24 = vunpack.c.h.bf16 %v3691_v47  ;;  %v4382_v29 = vsel %vm1783_vm13, %v1836_v57, %v4362_v58 }
  0x66   : > { %2059 = vrot.lane.b32.xlu0 %v1719_v32, %s3809_s8  ;;  %v1236_v32 = vshll.u32 %v3505_v10, 16  ;;  %v356_v63 = vmul.f32 %v3654_v35, %v3879_v6  ;;  %v4386_v31 = vsel %vm5976_vm15, %v4188_v33, %v1600_v60  ;;  %v548_v44 = vadd.s32 136, %v3863_v1 }
  0x67   : > { %v1235_v39 = vrot.slane %v1233_v48, 4  ;;  %v1244_v21 = vrot.slane %v1242_v12, 4  ;;  %v357_v37 = vmul.f32 %v3655_v24, %v3879_v6  ;;  %v550_v47 = vadd.s32 152, %v3863_v1 }
  0x68   : > { %2102 = vrot.lane.b32.xlu1 %v4333_v22, %s3814_s15  ;;  %v1238_v11 = vrot.slane %v1236_v32, 5  ;;  %v686_v33 = vand.u32 15, %v548_v44  ;;  %vm1688_vm9 = vcmp.ne.s16.totalorder %v4386_v31, 0  ;;  %v2321_v52 = vsel %vm1968_vm10, %v2318_v62, %v2320_v17 }
  0x69   : > { %v396_v10 = vadd.f32 %v3921_v27, %v357_v37  ;;  %v700_v6 = vand.u32 15, %v550_v47  ;;  %v2322_v53 = vrot.slane %v4376_v18, 1  ;;  %v547_v48 = vadd.s32 128, %v3863_v1  ;;  %v3694_v18 = vld [vmem:[%s3898_s29 + $0x58] sm:$0xff]  }
  0x6a   : > { %2100 = vrot.lane.b32.xlu0 %v4207_v3, %s3814_s15  ;;  %v4364_v3 = vor.u32 %v1608_v43, %v1605_v46  ;;  %v1247_v46 = vrot.slane %v1245_v0, 5  ;;  %v4395_v43 = vpack.c.bf16 %v426_v14, %v425_v23  ;;  %vm4404_vm14 = vcmp.lt.s32.totalorder %v686_v33, 15 }
  0x6b   : > { %vm4423_vm1 = vcmp.lt.s32.totalorder %v700_v6, 15  ;;  %vm1444_vm12 = vmpackc.low %vm4404_vm14, %vm4404_vm14  ;;  %v1842_v0 = vshrl.u32 %v4326_v20, 16  ;;  %v1740_v33 = vsel %vm1688_vm9, %v4326_v20, 0  ;;  %vm5984_vm8 = vcmask 457728  }
  0x6c   : > { %2186 = vrot.lane.b32.xlu1 %v2155_v49, %s3812_s11  ;;  %v4390_v34 = vsel %vm5976_vm15, %v1600_v60, %v4364_v3  ;;  %v395_v49 = vadd.f32 %v3921_v27, %v356_v63  ;;  %v1704_v27 = vsel %vm1688_vm9, %v4264_v40, 0  ;;  %v489_v35 = vrot.slane %v4395_v43, 4  ;;  %vm1446_vm2 = vmpackc.low %vm4423_vm1, %vm4423_vm1 }
  0x6d   : > { %vm1689_vm11 = vcmp.ne.s16.totalorder %v4390_v34, 0  ;;  %v4427_v62 = vor.u32 %v1247_v46, %v1244_v21  ;;  %v428_v60 = vmax.f32 %v396_v10, 0.0  ;;  %v1980_v32 = vrot.slane %v1704_v27, 1  ;;  %v3692_v21 = vld [vmem:[%s3898_s29 + $0x48] sm:$0xff]  }
  0x6e   : > { %2184 = vrot.lane.b32.xlu0 %v2153_v55, %s3812_s11  ;;  %v1239_v55 = vor.u32 %v1238_v11, %v1235_v39  ;;  %v4420_v30 = vsel %vm1689_vm11, %v4326_v20, 0  ;;  %v427_v57 = vmax.f32 %v395_v49, 0.0  ;;  %v1476_v23 = vsel %vm1444_vm12, 65537, %v5953_v8 }
  0x6f   : > { %v1982_v12 = vrot.slane %v4420_v30, 1  ;;  %v1478_v38 = vsel %vm1446_vm2, 65537, %v5953_v8  ;;  %v3524_v11 = vcombine.low %v3905_v13, %v1476_v23  ;;  %v1981_v37 = vsel %vm1968_vm10, %v1978_v25, %v1980_v32 }
  0x70   : > { %2236 = vrot.lane.b32.xlu1 %v1755_v61, %s3810_s9  ;;  %v545_v61 = vadd.s32 112, %v3863_v1  ;;  %v4453_v14 = vsel %vm5965_vm7, %v1239_v55, %v4427_v62  ;;  %v4457_v24 = vsel %vm5965_vm7, %v4248_v4, %v1239_v55  ;;  %v4459_v63 = vpack.c.bf16 %v428_v60, %v427_v57 }
  0x71   : > { %6018 = vst [vmem:[#allocation8_spill] sm:$0xff] %v4453_v14  ;;  %6019 = vst [vmem:[#allocation9_spill] sm:$0xff] %v4457_v24  ;;  %v1983_v44 = vsel %vm1968_vm10, %v1980_v32, %v1982_v12  ;;  %vm5950_vm3 = vcmp.ne.s16.totalorder %v4453_v14, 0  ;;  %vm5964_vm14 = vcmp.ne.s16.totalorder %v4457_v24, 0  ;;  %v1844_v4 = vor.u32 %v1842_v0, %v4362_v58 }
  0x72   : > { %2234 = vrot.lane.b32.xlu0 %v1754_v2, %s3810_s9  ;;  %v2323_v2 = vsel %vm1968_vm10, %v2320_v17, %v2322_v53  ;;  %v665_v17 = vand.u32 15, %v545_v61  ;;  %v491_v46 = vrot.slane %v4459_v63, 4  ;;  %v3525_v43 = vcombine.low %v3905_v13, %v1478_v38  ;;  %v4518_v61 = vld [vmem:[%s5943_s1] ss:$0 sm:$0xff] }
  0x73   : > { %v3658_v41 = vunpack.c.l.bf16 %v3692_v21  ;;  %v3659_v25 = vunpack.c.h.bf16 %v3692_v21  ;;  %v1722_v49 = vsel %vm5950_vm3, %v4326_v20, 0  ;;  %v1612_v6 = vshrl.u32 %v3524_v11, 16  ;;  %v4541_v21 = vld [vmem:[%s5944_s2] ss:$0 sm:$0xff] }
  0x74   : > { %2271 = vrot.lane.b32.xlu1 %v4382_v29, %s3815_s26  ;;  %vm4479_vm1 = vcmp.gt.s32.totalorder %v665_v17, 0  ;;  %v1615_v19 = vshll.u32 %v3524_v11, 16  ;;  %v1721_v55 = vsel %vm5964_vm14, %v4264_v40, 0  ;;  %v4509_v27 = vsel %vm475_vm4, %v489_v35, %v491_v46 }
  0x75   : > { %vm1089_vm2 = vmpackc.low %vm4479_vm1, %vm4479_vm1  ;;  %6024 = vst [vmem:[#allocation10_spill] sm:$0xff] %v4509_v27  ;;  %v1621_v51 = vshrl.u32 %v3525_v43, 16  ;;  %v1624_v57 = vshll.u32 %v3525_v43, 16  ;;  %v2156_v60 = vrot.slane %v1740_v33, 1  ;;  %v359_v32 = vmul.f32 %v4518_v61, %v3659_v25  ;;  %v3693_v43 = vld [vmem:[%s3898_s29 + $0x50] sm:$0xff]  }
  0x76   : > { %2269 = vrot.lane.b32.xlu0 %v4333_v22, %s3815_s26  ;;  %v1614_v0 = vrot.slane %v1612_v6, 3  ;;  %v1617_v23 = vrot.slane %v1615_v19, 4  ;;  %v1854_v38 = vshll.u32 %v4509_v27, 16  ;;  %v552_v34 = vadd.s32 168, %v3863_v1 }
  0x77   : > { %v1626_v11 = vrot.slane %v1624_v57, 4  ;;  %v3662_v57 = vunpack.c.l.bf16 %v3693_v43 }
  0x78   : > { %1927 = vrot.lane.b32.xlu1 %v4333_v22, %s3813_s12  ;;  %v4447_v22 = vsel %vm475_vm4, %v487_v50, %v489_v35  ;;  %v679_v50 = vand.u32 15, %v547_v48  ;;  %v358_v48 = vmul.f32 %v4518_v61, %v3658_v41  ;;  %v1618_v33 = vor.u32 %v1617_v23, %v1614_v0 }
  0x79   : > { %6017 = vst [vmem:[#allocation7_spill] sm:$0xff] %v4447_v22  ;;  %v1846_v39 = vshll.u32 %v4447_v22, 16  ;;  %v1850_v17 = vshrl.u32 %v4447_v22, 16  ;;  %v1757_v25 = vsel %vm5950_vm3, %v4447_v22, 0  ;;  %v4559_v19 = vrot.slane %v1854_v38, 1 }
  0x7a   : > { %2351 = vrot.lane.b32.xlu0 %v2321_v52, %s3816_s30  ;;  %vm4487_vm12 = vcmp.gt.s32.totalorder %v679_v50, 0  ;;  %v4498_v52 = vsel %vm1689_vm11, %v4447_v22, 0  ;;  %v1121_v50 = vsel %vm1089_vm2, 65537, %v5953_v8  ;;  %v554_v38 = vadd.s32 184, %v3863_v1 }
  0x7b   : > { %v1848_v10 = vrot.slane %v1846_v39, 1  ;;  %vm1091_vm5 = vmpackc.low %vm4487_vm12, %vm4487_vm12  ;;  %v1623_v39 = vrot.slane %v1621_v51, 3  ;;  %v3507_v58 = vcombine.low %v1121_v50, %v3905_v13 }
  0x7c   : > { %1929 = vrot.lane.b32.xlu1 %v4382_v29, %s3813_s12 }
  0x7d   : > { %v4523_v35 = vsel %vm1783_vm13, %v1844_v4, %v1848_v10  ;;  %v397_v4 = vadd.f32 %v4541_v21, %v358_v48  ;;  %v1852_v6 = vor.u32 %v1850_v17, %v1848_v10  ;;  %v4564_v51 = vor.u32 %v1626_v11, %v1623_v39 }
  0x7e   : > { %2353 = vrot.lane.b32.xlu0 %v2323_v2, %s3816_s30  ;;  %v5955_v2 = vrot.slane %v4498_v52, 1  ;;  %v3663_v48 = vunpack.c.h.bf16 %v3693_v43  ;;  %v4575_v10 = vsel %vm1689_vm11, %v4509_v27, 0  ;;  %v1254_v0 = vshll.u32 %v3507_v58, 16 }
  0x7f   : > { %v4584_v31 = vsel %vm1783_vm13, %v1852_v6, %v4559_v19  ;;  %v4590_v50 = vsel %vm5976_vm15, %v1618_v33, %v4564_v51  ;;  %v549_v39 = vadd.s32 144, %v3863_v1  ;;  %v551_v43 = vadd.s32 160, %v3863_v1 }
  0x80   : > { %2014 = vrot.lane.b32.xlu1 %v1983_v44, %s3811_s10  ;;  %v1123_v44 = vsel %vm1091_vm5, 65537, %v5953_v8  ;;  %v2159_v47 = vsel %vm1968_vm10, %v2156_v60, %v5955_v2  ;;  %vm1691_vm1 = vcmp.ne.s16.totalorder %v4590_v50, 0 }
  0x81   : > { %v3508_v41 = vcombine.low %v1123_v44, %v3905_v13  ;;  %v361_v44 = vmul.f32 %v4518_v61, %v3663_v48 }
  0x82   : > { %2012 = vrot.lane.b32.xlu0 %v1981_v37, %s3811_s10  ;;  %v398_v37 = vadd.f32 %v4541_v21, %v359_v32  ;;  %v429_v32 = vmax.f32 %v397_v4, 0.0  ;;  %v714_v4 = vand.u32 15, %v552_v34 }
  0x83   : > { %v1260_v23 = vshrl.u32 %v3508_v41, 16  ;;  %v1263_v17 = vshll.u32 %v3508_v41, 16 }
  0x84   : > { %2065 = vrot.lane.b32.xlu1 %v1722_v49, %s3809_s8  ;;  %v1756_v49 = vsel %vm5964_vm14, %v4326_v20, 0  ;;  %v430_v56 = vmax.f32 %v398_v37, 0.0  ;;  %v728_v37 = vand.u32 15, %v554_v38  ;;  %vm5989_vm14 = vcmask 195584  }
  0x85   : > { %v1265_v41 = vrot.slane %v1263_v17, 5  ;;  %v4632_v17 = vsel %vm1691_vm1, %v4509_v27, 0 }
  0x86   : > { %2063 = vrot.lane.b32.xlu0 %v1721_v55, %s3809_s8  ;;  %v2157_v55 = vsel %vm1968_vm10, %v2154_v26, %v2156_v60  ;;  %v4579_v26 = vsel %vm5976_vm15, %v4364_v3, %v1618_v33  ;;  %v1251_v60 = vshrl.u32 %v3507_v58, 16  ;;  %v360_v3 = vmul.f32 %v4518_v61, %v3662_v57 }
  0x87   : > { %v4596_v11 = vpack.c.bf16 %v430_v56, %v429_v32  ;;  %vm1690_vm5 = vcmp.ne.s16.totalorder %v4579_v26, 0  ;;  %v1256_v58 = vrot.slane %v1254_v0, 5  ;;  %v1262_v33 = vrot.slane %v1260_v23, 4 }
  0x88   : > { %2106 = vrot.lane.b32.xlu1 %v4523_v35, %s3814_s15  ;;  %vm4605_vm11 = vcmp.lt.s32.totalorder %v728_v37, 15  ;;  %v399_v48 = vadd.f32 %v4541_v21, %v360_v3  ;;  %v400_v32 = vadd.f32 %v4541_v21, %v361_v44  ;;  %v5952_v56 = vrot.slane %v4575_v10, 1 }
  0x89   : > { %vm1450_vm2 = vmpackc.low %vm4605_vm11, %vm4605_vm11  ;;  %v4634_v34 = vor.u32 %v1265_v41, %v1262_v33  ;;  %v5951_v33 = vrot.slane %v4632_v17, 1  ;;  %v1858_v41 = vshrl.u32 %v4509_v27, 16  ;;  %v4678_v6 = vsel %vm1690_vm5, %v4509_v27, 0 }
  0x8a   : > { %2104 = vrot.lane.b32.xlu0 %v4382_v29, %s3814_s15  ;;  %v4570_v29 = vsel %vm1688_vm9, %v4447_v22, 0  ;;  %vm4601_vm9 = vcmp.lt.s32.totalorder %v714_v4, 15  ;;  %v1482_v38 = vsel %vm1450_vm2, 65537, %v5953_v8  ;;  %v432_v4 = vmax.f32 %v400_v32, 0.0 }
  0x8b   : > { %v2324_v57 = vrot.slane %v4570_v29, 1  ;;  %vm1448_vm12 = vmpackc.low %vm4601_vm9, %vm4601_vm9  ;;  %v707_v29 = vand.u32 15, %v551_v43 }
  0x8c   : > { %2190 = vrot.lane.b32.xlu1 %v2159_v47, %s3812_s11  ;;  %v1253_v47 = vrot.slane %v1251_v60, 4  ;;  %v1706_v60 = vsel %vm1690_vm5, %v4447_v22, 0  ;;  %v1480_v23 = vsel %vm1448_vm12, 65537, %v5953_v8 }
  0x8d   : > { %v2325_v44 = vsel %vm1968_vm10, %v2322_v53, %v2324_v57  ;;  %v3526_v43 = vcombine.low %v3905_v13, %v1480_v23  ;;  %vm4654_vm11 = vcmp.gt.s32.totalorder %v707_v29, 0  ;;  %v2327_v63 = vsel %vm1968_vm10, %v2324_v57, %v5952_v56 }
  0x8e   : > { %2188 = vrot.lane.b32.xlu0 %v2157_v55, %s3812_s11  ;;  %v693_v55 = vand.u32 15, %v549_v39  ;;  %v1257_v0 = vor.u32 %v1256_v58, %v1253_v47  ;;  %v431_v39 = vmax.f32 %v399_v48, 0.0  ;;  %v1984_v58 = vrot.slane %v1706_v60, 1  ;;  %vm1095_vm2 = vmpackc.low %vm4654_vm11, %vm4654_vm11 }
  0x8f   : > { %v3666_v57 = vunpack.c.l.bf16 %v3694_v18  ;;  %v1630_v29 = vshrl.u32 %v3526_v43, 16  ;;  %v1633_v60 = vshll.u32 %v3526_v43, 16 }
  0x90   : > { %2240 = vrot.lane.b32.xlu1 %v1757_v25, %s3810_s9  ;;  %vm4637_vm9 = vcmp.gt.s32.totalorder %v693_v55, 0  ;;  %v4682_v25 = vsel %vm5965_vm7, %v4427_v62, %v1257_v0  ;;  %v4685_v48 = vpack.c.bf16 %v432_v4, %v431_v39  ;;  %v3667_v62 = vunpack.c.h.bf16 %v3694_v18 }
  0x91   : > { %vm1093_vm12 = vmpackc.low %vm4637_vm9, %vm4637_vm9  ;;  %6035 = vst [vmem:[#allocation13_spill] sm:$0xff] %v4682_v25  ;;  %vm5963_vm3 = vcmp.ne.s16.totalorder %v4682_v25, 0  ;;  %v1860_v39 = vor.u32 %v1858_v41, %v4559_v19  ;;  %v1127_v4 = vsel %vm1095_vm2, 65537, %v5953_v8  ;;  %v362_v19 = vmul.f32 %v4518_v61, %v3666_v57 }
  0x92   : > { %2238 = vrot.lane.b32.xlu0 %v1756_v49, %s3810_s9  ;;  %v493_v49 = vrot.slane %v4596_v11, 4  ;;  %v1125_v23 = vsel %vm1093_vm12, 65537, %v5953_v8  ;;  %v1632_v47 = vrot.slane %v1630_v29, 3  ;;  %v3510_v56 = vcombine.low %v1127_v4, %v3905_v13 }
  0x93   : > { %v3509_v18 = vcombine.low %v1125_v23, %v3905_v13  ;;  %v1723_v23 = vsel %vm5963_vm3, %v4447_v22, 0  ;;  %v2160_v29 = vrot.slane %v4678_v6, 1  ;;  %vm2379_vm2 = vcmask 64512  }
  0x94   : > { %2275 = vrot.lane.b32.xlu1 %v4584_v31, %s3815_s26  ;;  %v4651_v37 = vsel %vm475_vm4, %v491_v46, %v493_v49  ;;  %v4672_v46 = vsel %vm5965_vm7, %v1257_v0, %v4634_v34  ;;  %v1987_v0 = vsel %vm1968_vm10, %v1984_v58, %v5951_v33 }
  0x95   : > { %6031 = vst [vmem:[#allocation11_spill] sm:$0xff] %v4651_v37  ;;  %6034 = vst [vmem:[#allocation12_spill] sm:$0xff] %v4672_v46  ;;  %v1862_v55 = vshll.u32 %v4651_v37, 16  ;;  %v4692_v32 = vpop.permute.xlu0 %2053  ;;  %vm5962_vm9 = vcmp.ne.s16.totalorder %v4672_v46, 0  ;;  %v4718_v43 = vsel %vm1691_vm1, %v4651_v37, 0  ;;  %v1272_v4 = vshll.u32 %v3509_v18, 16 }
  0x96   : > { %2273 = vrot.lane.b32.xlu0 %v4523_v35, %s3815_s26  ;;  %v1724_v41 = vsel %vm5962_vm9, %v4509_v27, 0  ;;  %v1866_v11 = vshrl.u32 %v4651_v37, 16 }
  0x97   : > { %v4659_v53 = vpop.permute.xlu1 %2055 }
  0x98   : > { %1931 = vrot.lane.b32.xlu1 %v4523_v35, %s3813_s12  ;;  %v3527_v35 = vcombine.low %v3905_v13, %v1482_v38  ;;  %v1985_v38 = vsel %vm1968_vm10, %v1982_v12, %v1984_v58  ;;  %v4713_v12 = vrot.slane %v1862_v55, 1  ;;  %v5956_v58 = vrot.slane %v4685_v48, 4 }
  0x9a   : > { %2355 = vrot.lane.b32.xlu0 %v2325_v44, %s3816_s30  ;;  %v1639_v3 = vshrl.u32 %v3527_v35, 16  ;;  %v1642_v44 = vshll.u32 %v3527_v35, 16  ;;  %v1635_v35 = vrot.slane %v1633_v60, 4  ;;  %v4738_v60 = vsel %vm1783_vm13, %v1860_v39, %v4713_v12 }
  0x9b   : > { %v4711_v30 = vpop.permute.xlu1 %2228 }
  0x9c   : > { %1933 = vrot.lane.b32.xlu1 %v4584_v31, %s3813_s12  ;;  %v1641_v55 = vrot.slane %v1639_v3, 3  ;;  %v1644_v33 = vrot.slane %v1642_v44, 4  ;;  %v401_v3 = vadd.f32 %v4541_v21, %v362_v19  ;;  %v3695_v44 = vld [vmem:[%s3898_s29 + $0x60] sm:$0xff]   ;;  %v1636_v6 = vor.u32 %v1635_v35, %v1632_v47 }
  0x9d   : > { %v1281_v19 = vshll.u32 %v3510_v56, 16 }
  0x9e   : > { %2357 = vrot.lane.b32.xlu0 %v2327_v63, %s3816_s30  ;;  %v363_v63 = vmul.f32 %v4518_v61, %v3667_v62  ;;  %v4730_v57 = vpop.permute.xlu0 %2057  ;;  %v4754_v2 = vor.u32 %v1644_v33, %v1641_v55  ;;  %v1278_v62 = vshrl.u32 %v3510_v56, 16  ;;  %v4772_v9 = vsel %vm5976_vm15, %v4564_v51, %v1636_v6 }
  0x9f   : > { %v6038_v51 = vrot.slane %v4498_v52, 1  ;;  %vm1692_vm11 = vcmp.ne.s16.totalorder %v4772_v9, 0 }
  0xa0   : > { %2018 = vrot.lane.b32.xlu1 %v1987_v0, %s3811_s10  ;;  %v1269_v0 = vshrl.u32 %v3509_v18, 16  ;;  %v402_v39 = vadd.f32 %v4541_v21, %v363_v63  ;;  %v6037_v18 = vrot.slane %v4718_v43, 1  ;;  %v433_v63 = vmax.f32 %v401_v3, 0.0 }
  0xa1   : > { %v1280_v3 = vrot.slane %v1278_v62, 4  ;;  %v2161_v14 = vsel %vm1968_vm10, %v6038_v51, %v2160_v29  ;;  %v1759_v62 = vsel %vm5962_vm9, %v4651_v37, 0  ;;  %vm2430_vm9 = vcmask 130048  }
  0xa2   : > { %2016 = vrot.lane.b32.xlu0 %v1985_v38, %s3811_s10  ;;  %v4749_v38 = vsel %vm475_vm4, %v493_v49, %v5956_v58  ;;  %v3670_v49 = vunpack.c.l.bf16 %v3695_v44  ;;  %v3671_v58 = vunpack.c.h.bf16 %v3695_v44  ;;  %v2163_v47 = vsel %vm1968_vm10, %v2160_v29, %v6037_v18 }
  0xa3   : > { %6036 = vst [vmem:[#allocation14_spill] sm:$0xff] %v4749_v38  ;;  %v1870_v35 = vshll.u32 %v4749_v38, 16  ;;  %v1271_v33 = vrot.slane %v1269_v0, 4  ;;  %v434_v55 = vmax.f32 %v402_v39, 0.0  ;;  %v558_v44 = vadd.s32 216, %v3863_v1 }
  0xa4   : > { %2069 = vrot.lane.b32.xlu1 %v1724_v41, %s3809_s8  ;;  %v2903_v41 = vsel %vm475_vm4, %v4226_v59, 0  ;;  %v1274_v59 = vrot.slane %v1272_v4, 5  ;;  %v4776_v0 = vsel %vm5976_vm15, %v1636_v6, %v4754_v2  ;;  %v364_v4 = vmul.f32 %v4518_v61, %v3670_v49 }
  0xa5   : > { %v4752_v8 = vpop.permute.xlu1 %2002  ;;  %3729 = vmatpush3.bf16.msra.mxu0 %v2903_v41  ;;  %3771 = vmatpush3.bf16.msra.mxu1 %v2903_v41  ;;  %v1283_v41 = vrot.slane %v1281_v19, 5  ;;  %v365_v39 = vmul.f32 %v4518_v61, %v3671_v58  ;;  %v756_v20 = vand.u32 15, %v558_v44  ;;  %v1868_v58 = vor.u32 %v1866_v11, %v4713_v12 }
  0xa6   : > { %2067 = vrot.lane.b32.xlu0 %v1723_v23, %s3809_s8  ;;  %v556_v23 = vadd.s32 200, %v3863_v1  ;;  %v1872_v19 = vrot.slane %v1870_v35, 1  ;;  %v4800_v52 = vsel %vm1691_vm1, %v4749_v38, 0  ;;  %vm1693_vm12 = vcmp.ne.s16.totalorder %v4776_v0, 0 }
  0xa7   : > { %v1275_v29 = vor.u32 %v1274_v59, %v1271_v33  ;;  %v4804_v49 = vpack.c.bf16 %v434_v55, %v433_v63  ;;  %v4813_v11 = vor.u32 %v1283_v41, %v1280_v3  ;;  %v403_v50 = vadd.f32 %v4541_v21, %v364_v4 }
  0xa8   : > { %v4764_v56 = vpop.permute.xlu0 %2004  ;;  %2110 = vrot.lane.b32.xlu1 %v4738_v60, %s3814_s15  ;;  %v742_v22 = vand.u32 15, %v556_v23  ;;  %vm4817_vm1 = vcmp.lt.s32.totalorder %v756_v20, 15  ;;  %v5966_v20 = vrot.slane %v4800_v52, 1  ;;  %v1708_v59 = vsel %vm1692_vm11, %v4651_v37, 0 }
  0xa9   : > { %v4840_v55 = vsel %vm1783_vm13, %v1868_v58, %v1872_v19  ;;  %v4849_v42 = vsel %vm5965_vm7, %v4634_v34, %v1275_v29  ;;  %v5967_v23 = vrot.slane %v4804_v49, 4  ;;  %v4860_v3 = vsel %vm5965_vm7, %v1275_v29, %v4813_v11 }
  0xaa   : > { %2108 = vrot.lane.b32.xlu0 %v4584_v31, %s3814_s15  ;;  %v4780_v18 = vpop.permute.xlu1 %2006  ;;  %v1775_v31 = vsel %vm1690_vm5, %v4651_v37, 0  ;;  %vm4806_vm5 = vcmp.lt.s32.totalorder %v742_v22, 15  ;;  %v1758_v22 = vsel %vm5963_vm3, %v4509_v27, 0  ;;  %6044 = vst [vmem:[#allocation16_spill] sm:$0xff] %v4849_v42  ;;  %6045 = vst [vmem:[#allocation17_spill] sm:$0xff] %v4860_v3  ;;  %v435_v41 = vmax.f32 %v403_v50, 0.0 }
  0xab   : > { %v2328_v63 = vrot.slane %v1775_v31, 1  ;;  %vm1452_vm3 = vmpackc.low %vm4806_vm5, %vm4806_vm5  ;;  %v1347_v34 = vsel %vm1331_vm0, %v3945_v5, 0  ;;  %v1988_v51 = vrot.slane %v1708_v59, 1  ;;  %v6046_v31 = vmov 0  }
  0xac   : > { %v4793_v6 = vpop.permute.xlu0 %2178  ;;  %2194 = vrot.lane.b32.xlu1 %v2163_v47, %s3812_s11  ;;  %v404_v47 = vadd.f32 %v4541_v21, %v365_v39  ;;  %v553_v39 = vadd.s32 176, %v3863_v1  ;;  %v1484_v58 = vsel %vm1452_vm3, 65537, %v6046_v31  ;;  %vm5988_vm7 = vcmask 261120  }
  0xad   : > { %v6047_v50 = vrot.slane %v4575_v10, 1  ;;  %v2331_v16 = vsel %vm1968_vm10, %v2328_v63, %v5966_v20  ;;  %vm5982_vm0 = vcmp.ne.s16.totalorder %v4860_v3, 0  ;;  %vm5983_vm3 = vcmp.ne.s16.totalorder %v4849_v42, 0 }
  0xae   : > { %2192 = vrot.lane.b32.xlu0 %v2161_v14, %s3812_s11  ;;  %v4811_v12 = vpop.permute.xlu1 %2180  ;;  %v4830_v14 = vsel %vm1332_vm6, %v3948_v7, 0  ;;  %v4845_v7 = vsel %vm1693_vm12, %v4749_v38, 0  ;;  %vm1454_vm6 = vmpackc.low %vm4817_vm1, %vm4817_vm1  ;;  %v436_v4 = vmax.f32 %v404_v47, 0.0  ;;  %v6048_v10 = vrot.slane %v4685_v48, 4  ;;  %v3696_v48 = vld [vmem:[%s3898_s29 + $0x68] sm:$0xff]  }
  0xaf   : > { %6043 = vst [vmem:[#allocation15_spill] sm:$0xff] %v4845_v7  ;;  %v2329_v5 = vsel %vm1968_vm10, %v6047_v50, %v2328_v63  ;;  %v1486_v26 = vsel %vm1454_vm6, 65537, %v6046_v31  ;;  %v4900_v63 = vsel %vm1692_vm11, %v4749_v38, 0  ;;  %v3528_v20 = vcombine.low %v3905_v13, %v1484_v58 }
  0xb0   : > { %v4824_v33 = vpop.permute.xlu0 %2182  ;;  %2244 = vrot.lane.b32.xlu1 %v1759_v62, %s3810_s9  ;;  %v1874_v62 = vshrl.u32 %v4749_v38, 16  ;;  %v4905_v50 = vpack.c.bf16 %v436_v4, %v435_v41  ;;  %v721_v47 = vand.u32 15, %v553_v39  ;;  %vm5987_vm5 = vcmask 326656  }
  0xb1   : > { %v3529_v46 = vcombine.low %v3905_v13, %v1486_v26  ;;  %v6050_v41 = vrot.slane %v4845_v7, 1  ;;  %v4922_v39 = vsel %vm5982_vm0, %v4749_v38, 0  ;;  %v3674_v58 = vunpack.c.l.bf16 %v3696_v48 }
  0xb2   : > { %2242 = vrot.lane.b32.xlu0 %v1758_v22, %s3810_s9  ;;  %v4856_v44 = vpop.permute.xlu1 %1921  ;;  %v4895_v22 = vsel %vm475_vm4, %v6048_v10, %v5967_v23  ;;  %v6049_v10 = vrot.slane %v4632_v17, 1  ;;  %v1876_v27 = vor.u32 %v1874_v62, %v1872_v19  ;;  %v4927_v17 = vsel %vm5983_vm3, %v4651_v37, 0 }
  0xb3   : > { %v1991_v4 = vsel %vm1968_vm10, %v1988_v51, %v6050_v41  ;;  %v4932_v19 = vsel %vm1693_vm12, %v4895_v22, 0  ;;  %v2164_v62 = vrot.slane %v4900_v63, 1  ;;  %vm5985_vm1 = vcmask 392192  }
  0xb4   : > { %v1918_v29 = vpop.permute.xlu0 %1917  ;;  %2279 = vrot.lane.b32.xlu1 %v4840_v55, %s3815_s26  ;;  %v1989_v23 = vsel %vm1968_vm10, %v6049_v10, %v1988_v51  ;;  %v1878_v51 = vshll.u32 %v4895_v22, 16  ;;  %v1648_v41 = vshrl.u32 %v3528_v20, 16  ;;  %v1651_v37 = vshll.u32 %v3528_v20, 16 }
  0xb5   : > { %v2381_v35 = vsel %vm2379_vm2, 0, %v1918_v29  ;;  %v555_v29 = vadd.s32 192, %v3863_v1  ;;  %vm4942_vm6 = vcmp.gt.s32.totalorder %v721_v47, 0  ;;  %v1660_v24 = vshll.u32 %v3529_v46, 16 }
  0xb6   : > { %2277 = vrot.lane.b32.xlu0 %v4738_v60, %s3815_s26  ;;  %v2095_v59 = vpop.permute.xlu1 %2094  ;;  %v4954_v20 = vsel %vm5982_vm0, %v4895_v22, 0  ;;  %v4959_v47 = vsel %vm5983_vm3, %v4749_v38, 0  ;;  %vm1097_vm15 = vmpackc.low %vm4942_vm6, %vm4942_vm6  ;;  %v1650_v3 = vrot.slane %v1648_v41, 3  ;;  %v1653_v42 = vrot.slane %v1651_v37, 4 }
  0xb7   : > { %v735_v63 = vand.u32 15, %v555_v29  ;;  %v1880_v29 = vrot.slane %v1878_v51, 1  ;;  %v6054_v51 = vrot.slane %v4804_v49, 4  ;;  %v6057_v41 = vrot.slane %v4932_v19, 1 }
  0xb8   : > { %v1920_v25 = vpop.permute.xlu0 %1919  ;;  %1935 = vrot.lane.b32.xlu1 %v4738_v60, %s3813_s12  ;;  %v2432_v60 = vsel %vm2430_vm9, %v2381_v35, %v4752_v8  ;;  %v1657_v35 = vshrl.u32 %v3529_v46, 16  ;;  %v3675_v46 = vunpack.c.h.bf16 %v3696_v48  ;;  %v1882_v8 = vshrl.u32 %v4895_v22, 16 }
  0xb9   : > { %v2384_v10 = vsel %vm2379_vm2, %v1347_v34, %v1920_v25  ;;  %v6053_v48 = vrot.slane %v4905_v50, 4  ;;  %v2387_v34 = vsel %vm2379_vm2, %v4830_v14, %v4856_v44  ;;  %v2167_v14 = vsel %vm1968_vm10, %v2164_v62, %v6057_v41 }
  0xba   : > { %2359 = vrot.lane.b32.xlu0 %v2329_v5, %s3816_s30  ;;  %v4939_v26 = vpop.permute.xlu1 %2098  ;;  %v2467_v5 = vsel %vm5989_vm14, %v2432_v60, %v4692_v32  ;;  %v4965_v32 = vsel %vm1692_vm11, %v4895_v22, 0  ;;  %v366_v60 = vmul.f32 %v4518_v61, %v3674_v58  ;;  %v1659_v36 = vrot.slane %v1657_v35, 3  ;;  %v5007_v35 = vld [vmem:[%s3898_s29 + $0x70] sm:$0xff]  }
  0xbb   : > { %v4980_v9 = vsel %vm475_vm4, %v6054_v51, %v6053_v48  ;;  %v2502_v7 = vsel %vm5988_vm7, %v2467_v5, %v2095_v59  ;;  %v1662_v58 = vrot.slane %v1660_v24, 4  ;;  %vm4983_vm11 = vcmp.gt.s32.totalorder %v735_v63, 0 }
  0xbc   : > { %v2097_v54 = vpop.permute.xlu0 %2096  ;;  %1937 = vrot.lane.b32.xlu1 %v4840_v55, %s3813_s12  ;;  %v2332_v49 = vrot.slane %v4965_v32, 1  ;;  %v1129_v24 = vsel %vm1097_vm15, 65537, %v6046_v31  ;;  %v367_v37 = vmul.f32 %v4518_v61, %v3675_v46  ;;  %v2434_v59 = vsel %vm2430_vm9, %v2384_v10, %v4764_v56  ;;  %vm1099_vm15 = vmpackc.low %vm4983_vm11, %vm4983_vm11 }
  0xbd   : > { %v1886_v44 = vshll.u32 %v4980_v9, 16  ;;  %v2537_v40 = vsel %vm5987_vm5, %v2502_v7, %v4793_v6  ;;  %v5013_v5 = vsel %vm1783_vm13, %v1876_v27, %v1880_v29  ;;  %v6058_v56 = vrot.slane %v4718_v43, 1 }
  0xbe   : > { %2361 = vrot.lane.b32.xlu0 %v2331_v16, %s3816_s30  ;;  %v4973_v38 = vpop.permute.xlu1 %2232  ;;  %v1654_v46 = vor.u32 %v1653_v42, %v1650_v3  ;;  %v1884_v48 = vor.u32 %v1882_v8, %v1880_v29  ;;  %v5023_v6 = vor.u32 %v1662_v58, %v1659_v36  ;;  %v3511_v7 = vcombine.low %v1129_v24, %v3905_v13 }
  0xbf   : > { %v2165_v10 = vsel %vm1968_vm10, %v6058_v56, %v2164_v62  ;;  %v2469_v27 = vsel %vm5989_vm14, %v2434_v59, %v4659_v53  ;;  %v6059_v43 = vrot.slane %v4800_v52, 1  ;;  %v3678_v36 = vunpack.c.l.bf16 %v5007_v35 }
  0xc0   : > { %v2231_v16 = vpop.permute.xlu0 %2230  ;;  %2022 = vrot.lane.b32.xlu1 %v1991_v4, %s3811_s10  ;;  %v405_v4 = vadd.f32 %v4541_v21, %v366_v60  ;;  %v2436_v60 = vsel %vm2430_vm9, %v2387_v34, %v4780_v18  ;;  %v406_v18 = vadd.f32 %v4541_v21, %v367_v37  ;;  %v2572_v3 = vsel %vm5985_vm1, %v2537_v40, %v4711_v30 }
  0xc1   : > { %v5035_v42 = vsel %vm1968_vm10, %v6059_v43, %v2332_v49  ;;  %v5041_v62 = vrot.slane %v1886_v44, 1  ;;  %v1131_v53 = vsel %vm1099_vm15, 65537, %v6046_v31  ;;  %v5052_v51 = vsel %vm1693_vm12, %v4980_v9, 0 }
  0xc2   : > { %2020 = vrot.lane.b32.xlu0 %v1989_v23, %s3811_s10  ;;  %v2266_v63 = vpop.permute.xlu1 %2265  ;;  %v437_v8 = vmax.f32 %v405_v4, 0.0  ;;  %vm6060_vm6 = vsmask.f32 4352  ;;  %v2504_v58 = vsel %vm5988_vm7, %v2469_v27, %v2097_v54  ;;  %vm6061_vm11 = vcmask 523264  }
  0xc3   : > { %v5056_v30 = vsel %vm6060_vm6, %v4754_v2, %v1654_v46  ;;  %vm6062_vm15 = vmmov %vm6060_vm6  ;;  %v1287_v34 = vshrl.u32 %v3511_v7, 16  ;;  %v3512_v0 = vcombine.low %v1131_v53, %v3905_v13  ;;  %v438_v2 = vmax.f32 %v406_v18, 0.0 }
  0xc4   : > { %v2264_v23 = vpop.permute.xlu0 %2263  ;;  %2073 = vrot.lane.b32.xlu1 %v4922_v39, %s3809_s8  ;;  %v2471_v39 = vsel %vm5989_vm14, %v2436_v60, %v4730_v57  ;;  %v5062_v57 = vsel %vm6062_vm15, %v1654_v46, %v5023_v6  ;;  %v3679_v37 = vunpack.c.h.bf16 %v5007_v35  ;;  %v5072_v41 = vsel %vm1783_vm13, %v1884_v48, %v5041_v62 }
  0xc5   : > { %v2607_v52 = vsel %vm5984_vm8, %v2572_v3, %v2264_v23  ;;  %v5993_v44 = vrot.slane %v5052_v51, 1  ;;  %vm2853_vm12 = vcmask 588800   ;;  %vm5986_vm6 = vcmp.ne.s16.totalorder %v5056_v30, 0 }
  0xc6   : > { %2071 = vrot.lane.b32.xlu0 %v4927_v17, %s3809_s8  ;;  %v2346_v29 = vpop.permute.xlu1 %2345  ;;  %v2506_v17 = vsel %vm5988_vm7, %v2471_v39, %v4939_v26  ;;  %v2539_v26 = vsel %vm5987_vm5, %v2504_v58, %v4811_v12  ;;  %v1290_v35 = vshll.u32 %v3511_v7, 16  ;;  %v1289_v46 = vrot.slane %v1287_v34, 4 }
  0xc7   : > { %v2642_v25 = vsel %vm6061_vm11, %v2607_v52, %v2346_v29  ;;  %vm1695_vm11 = vcmp.ne.s16.totalorder %v5062_v57, 0  ;;  %v2541_v40 = vsel %vm5987_vm5, %v2506_v17, %v4824_v33  ;;  %v2574_v56 = vsel %vm5985_vm1, %v2539_v26, %v2231_v16 }
  0xc8   : > { %v2268_v24 = vpop.permute.xlu0 %2267  ;;  %2114 = vrot.lane.b32.xlu1 %v5013_v5, %s3814_s15  ;;  %v2691_v54 = vshrl.u32 %v2642_v25, 16  ;;  %v2694_v59 = vshll.u32 %v2642_v25, 16  ;;  %v560_v60 = vadd.s32 232, %v3863_v1  ;;  %v2609_v12 = vsel %vm5984_vm8, %v2574_v56, %v2266_v63 }
  0xc9   : > { %v1299_v27 = vshll.u32 %v3512_v0, 16  ;;  %v5089_v23 = vpack.c.bf16 %v438_v2, %v437_v8  ;;  %vm6063_vm15 = vcmask 523264   ;;  %v562_v33 = vadd.s32 248, %v3863_v1 }
  0xca   : > { %2112 = vrot.lane.b32.xlu0 %v4840_v55, %s3814_s15  ;;  %v5079_v4 = vpop.permute.xlu1 %1923  ;;  %v1296_v55 = vshrl.u32 %v3512_v0, 16  ;;  %v2693_v43 = vrot.slane %v2691_v54, 3  ;;  %v2696_v18 = vrot.slane %v2694_v59, 4  ;;  %v1292_v63 = vrot.slane %v1290_v35, 5 }
  0xcb   : > { %v557_v39 = vadd.s32 208, %v3863_v1  ;;  %v368_v8 = vmul.f32 %v4518_v61, %v3678_v36  ;;  %v369_v52 = vmul.f32 %v4518_v61, %v3679_v37  ;;  %v770_v29 = vand.u32 15, %v560_v60 }
  0xcc   : > { %v2348_v48 = vpop.permute.xlu0 %2347  ;;  %2198 = vrot.lane.b32.xlu1 %v2167_v14, %s3812_s11  ;;  %v2576_v14 = vsel %vm5985_vm1, %v2541_v40, %v4973_v38  ;;  %v2697_v2 = vor.u32 %v2696_v18, %v2693_v43  ;;  %v784_v54 = vand.u32 15, %v562_v33  ;;  %v559_v38 = vadd.s32 224, %v3863_v1 }
  0xcd   : > { %v2644_v7 = vsel %vm6063_vm15, %v2609_v12, %v2348_v48  ;;  %v2611_v58 = vsel %vm5984_vm8, %v2576_v14, %v2268_v24  ;;  %v749_v26 = vand.u32 15, %v557_v39  ;;  %v1301_v35 = vrot.slane %v1299_v27, 5 }
  0xce   : > { %v2698_v3 = vshrl.u32 %v2644_v7, 16  ;;  %v2701_v16 = vshll.u32 %v2644_v7, 16  ;;  %2196 = vrot.lane.b32.xlu0 %v2165_v10, %s3812_s11  ;;  %v5094_v53 = vpop.permute.xlu1 %1925  ;;  %v1298_v10 = vrot.slane %v1296_v55, 4  ;;  %v407_v40 = vadd.f32 %v4541_v21, %v368_v8 }
  0xcf   : > { %vm5112_vm0 = vcmp.lt.s32.totalorder %v770_v29, 15  ;;  %v5128_v27 = vsel %vm1695_vm11, %v4980_v9, 0  ;;  %v1293_v43 = vor.u32 %v1292_v63, %v1289_v46  ;;  %v501_v18 = vrot.slane %v5089_v23, 4 }
  0xd0   : > { %v2700_v25 = vrot.slane %v2698_v3, 3  ;;  %v2703_v34 = vrot.slane %v2701_v16, 4  ;;  %v2350_v17 = vpop.permute.xlu0 %2349  ;;  %2248 = vrot.lane.b32.xlu1 %v4954_v20, %s3810_s9  ;;  %v408_v20 = vadd.f32 %v4541_v21, %v369_v52  ;;  %v763_v7 = vand.u32 15, %v559_v38  ;;  %vm1456_vm3 = vmpackc.low %vm5112_vm0, %vm5112_vm0 }
  0xd1   : > { %v2646_v0 = vsel %vm6063_vm15, %v2611_v58, %v2350_v17  ;;  %vm6066_vm15 = vsmask.f32 4352  ;;  %v1746_v16 = vsel %vm5986_vm6, %v4980_v9, 0  ;;  %vm5147_vm8 = vcmp.gt.s32.totalorder %v749_v26, 0 }
  0xd2   : > { %v2706_v59 = vshrl.u32 %v2646_v0, 16  ;;  %v2709_v36 = vshll.u32 %v2646_v0, 16  ;;  %2246 = vrot.lane.b32.xlu0 %v4959_v47, %s3810_s9  ;;  %v5108_v37 = vpop.permute.xlu1 %2010  ;;  %v2704_v24 = vor.u32 %v2703_v34, %v2700_v25  ;;  %v1710_v47 = vsel %vm5986_vm6, %v4895_v22, 0  ;;  %vm1101_vm6 = vmpackc.low %vm5147_vm8, %vm5147_vm8 }
  0xd3   : > { %v5151_v63 = vor.u32 %v1301_v35, %v1298_v10  ;;  %v439_v14 = vmax.f32 %v407_v40, 0.0  ;;  %v440_v8 = vmax.f32 %v408_v20, 0.0  ;;  %vm5153_vm1 = vcmp.gt.s32.totalorder %v763_v7, 0  ;;  %v6080_v40 = vld [vmem:[#allocation15_spill] sm:$0xff] }
  0xd4   : > { %v2708_v60 = vrot.slane %v2706_v59, 3  ;;  %v2711_v12 = vrot.slane %v2709_v36, 4  ;;  %v5116_v48 = vpop.permute.xlu0 %2008  ;;  %v2705_v55 = vsel %vm6066_vm15, %v2697_v2, %v2704_v24  ;;  %2283 = vrot.lane.b32.xlu1 %v5072_v41, %s3815_s26  ;;  %vm5140_vm15 = vcmp.lt.s32.totalorder %v784_v54, 15  ;;  %vm1103_vm14 = vmpackc.low %vm5153_vm1, %vm5153_vm1  ;;  %v6078_v59 = vld [vmem:[#allocation5_spill] sm:$0xff] }
  0xd5   : > { %3730 = vmatprep.mubr.msk.bf16.mxu0 %vm2853_vm12, %v2705_v55  ;;  %vm6073_vm5 = vcmp.ne.s16.totalorder %v4280_v15, 0  ;;  %vm6074_vm7 = vsmask.f32 4352  ;;  %v2335_v34 = vsel %vm1968_vm10, %v2332_v49, %v5993_v44  ;;  %v5991_v15 = vrot.slane %v5128_v27, 1  ;;  %v3698_v55 = vld [vmem:[%s3898_s29 + $0x78] sm:$0xff]  }
  0xd6   : > { %v5131_v33 = vor.u32 %v2711_v12, %v2708_v60  ;;  %2281 = vrot.lane.b32.xlu0 %v5013_v5, %s3815_s26  ;;  %v5135_v3 = vpop.permute.xlu1 %2061  ;;  %v5163_v29 = vsel %vm6073_vm5, %v3976_v28, 0  ;;  %v1992_v28 = vrot.slane %v1710_v47, 1  ;;  %vm1458_vm5 = vmpackc.low %vm5140_vm15, %vm5140_vm15  ;;  %v1890_v10 = vshrl.u32 %v4980_v9, 16 }
  0xd7   : > { %v1133_v0 = vsel %vm1101_vm6, 65537, %v6046_v31  ;;  %v5215_v2 = vpack.c.bf16 %v440_v8, %v439_v14  ;;  %v1488_v54 = vsel %vm1456_vm3, 65537, %v6046_v31  ;;  %v1135_v38 = vsel %vm1103_vm14, 65537, %v6046_v31 }
  0xd8   : > { %v5165_v58 = vpop.permute.xlu0 %2059  ;;  %v2713_v25 = vsel %vm6074_vm7, %v2704_v24, %v5131_v33  ;;  %1939 = vrot.lane.b32.xlu1 %v5013_v5, %s3813_s12  ;;  %vm6075_vm7 = vsmask.f32 3328  ;;  %v6076_v5 = vrot.slane %v4905_v50, 4  ;;  %v2168_v50 = vrot.slane %v1746_v16, 1 }
  0xd9   : > { %3731 = vmatmul.mubr.msk.bf16.vlgmr.msra.gmra.mrb[0].mxu0 %vm2853_vm12, %v2713_v25  ;;  %v5183_v17 = vsel %vm6075_vm7, %v4813_v11, %v1293_v43  ;;  %vm6079_vm8 = vcmp.ne.s16.totalorder %v6078_v59, 0  ;;  %v1490_v35 = vsel %vm1458_vm5, 65537, %v6046_v31  ;;  %v6081_v20 = vrot.slane %v6080_v40, 1 }
  0xda   : > { %v5190_v32 = vsel %vm475_vm4, %v6076_v5, %v501_v18  ;;  %2363 = vrot.lane.b32.xlu0 %v5035_v42, %s3816_s30  ;;  %v5197_v49 = vpop.permute.xlu1 %2102  ;;  %v5213_v42 = vsel %vm6075_vm7, %v1293_v43, %v5151_v63  ;;  %v1350_v36 = vsel %vm6079_vm8, %v4067_v45, 0  ;;  %vm1341_vm6 = vcmp.ne.s16.totalorder %v5183_v17, 0 }
  0xdb   : > { %v5203_v11 = vsel %vm1695_vm11, %v5190_v32, 0  ;;  %6077 = vst [vmem:[#allocation18_spill] sm:$0xff] %v5213_v42  ;;  %v1894_v26 = vshll.u32 %v5190_v32, 16  ;;  %v1995_v45 = vsel %vm1968_vm10, %v1992_v28, %v5991_v15  ;;  %v1993_v56 = vsel %vm1968_vm10, %v6081_v20, %v1992_v28 }
  0xdc   : > { %v5232_v24 = vpop.permute.xlu0 %2100  ;;  %1941 = vrot.lane.b32.xlu1 %v5072_v41, %s3813_s12  ;;  %v5990_v60 = vrot.slane %v5203_v11, 1  ;;  %v3513_v12 = vcombine.low %v1133_v0, %v3905_v13  ;;  %vm5995_vm14 = vcmp.ne.s16.totalorder %v5213_v42, 0  ;;  %v1892_v43 = vor.u32 %v1890_v10, %v5041_v62 }
  0xdd   : > { %v3530_v7 = vcombine.low %v3905_v13, %v1488_v54  ;;  %v3514_v16 = vcombine.low %v1135_v38, %v3905_v13  ;;  %v1727_v39 = vsel %vm1341_vm6, %v4895_v22, 0  ;;  %v6082_v46 = vrot.slane %v4932_v19, 1 }
  0xde   : > { %2365 = vrot.lane.b32.xlu0 %v2335_v34, %s3816_s30  ;;  %v5254_v47 = vpop.permute.xlu1 %2186  ;;  %v5992_v8 = vrot.slane %v5215_v2, 4  ;;  %v3531_v52 = vcombine.low %v3905_v13, %v1490_v35  ;;  %v1896_v62 = vrot.slane %v1894_v26, 1  ;;  %v5274_v34 = vsel %vm1341_vm6, %v4980_v9, 0 }
  0xdf   : > { %v5266_v14 = vsel %vm1968_vm10, %v6082_v46, %v2168_v50  ;;  %v3682_v28 = vunpack.c.l.bf16 %v3698_v55  ;;  %v3683_v5 = vunpack.c.h.bf16 %v3698_v55  ;;  %v1728_v19 = vsel %vm5995_vm14, %v4980_v9, 0 }
  0xe0   : > { %v2185_v25 = vpop.permute.xlu0 %2184  ;;  %2026 = vrot.lane.b32.xlu1 %v1995_v45, %s3811_s10  ;;  %v2171_v10 = vsel %vm1968_vm10, %v2168_v50, %v5990_v60  ;;  %v1305_v0 = vshrl.u32 %v3513_v12, 16  ;;  %v1308_v54 = vshll.u32 %v3513_v12, 16  ;;  %v5288_v59 = vsel %vm5995_vm14, %v5190_v32, 0 }
  0xe1   : > { %v1666_v26 = vshrl.u32 %v3530_v7, 16  ;;  %v1314_v35 = vshrl.u32 %v3514_v16, 16  ;;  %v1317_v45 = vshll.u32 %v3514_v16, 16  ;;  %v5295_v50 = vsel %vm475_vm4, %v501_v18, %v5992_v8 }
  0xe2   : > { %2024 = vrot.lane.b32.xlu0 %v1993_v56, %s3811_s10  ;;  %v5283_v38 = vpop.permute.xlu1 %2236  ;;  %v1669_v40 = vshll.u32 %v3530_v7, 16  ;;  %v1675_v20 = vshrl.u32 %v3531_v52, 16  ;;  %v1678_v56 = vshll.u32 %v3531_v52, 16  ;;  %v5299_v55 = vsel %vm1783_vm13, %v1892_v43, %v1896_v62 }
  0xe3   : > { %v1898_v46 = vshrl.u32 %v5190_v32, 16  ;;  %v370_v16 = vmul.f32 %v4518_v61, %v3682_v28  ;;  %v371_v60 = vmul.f32 %v4518_v61, %v3683_v5  ;;  %v2390_v23 = vsel %vm2379_vm2, %v5163_v29, %v5079_v4 }
  0xe4   : > { %v2235_v12 = vpop.permute.xlu0 %2234  ;;  %2077 = vrot.lane.b32.xlu1 %v1728_v19, %s3809_s8  ;;  %v2393_v18 = vsel %vm2379_vm2, %v1350_v36, %v5094_v53  ;;  %v1307_v7 = vrot.slane %v1305_v0, 4  ;;  %v1310_v52 = vrot.slane %v1308_v54, 5  ;;  %v1902_v43 = vshll.u32 %v5295_v50, 16 }
  0xe5   : > { %v1668_v15 = vrot.slane %v1666_v26, 3  ;;  %v1316_v8 = vrot.slane %v1314_v35, 4  ;;  %v1319_v44 = vrot.slane %v1317_v45, 5  ;;  %v2438_v61 = vsel %vm2430_vm9, %v2390_v23, %v5116_v48 }
  0xe6   : > { %2075 = vrot.lane.b32.xlu0 %v1727_v39, %s3809_s8  ;;  %v2272_v19 = vpop.permute.xlu1 %2271  ;;  %v1671_v28 = vrot.slane %v1669_v40, 4  ;;  %v1677_v5 = vrot.slane %v1675_v20, 3  ;;  %v1680_v42 = vrot.slane %v1678_v56, 4  ;;  %vm6083_vm0 = vcmask 195584  }
  0xe7   : > { %v2473_v4 = vsel %vm6083_vm0, %v2438_v61, %v5165_v58  ;;  %v409_v29 = vadd.f32 %v4541_v21, %v370_v16  ;;  %v410_v36 = vadd.f32 %v4541_v21, %v371_v60  ;;  %v561_v39 = vadd.s32 240, %v3863_v1  ;;  %vm6085_vm1 = vmmov %vm6083_vm0 }
  0xe8   : > { %v2270_v53 = vpop.permute.xlu0 %2269  ;;  %2118 = vrot.lane.b32.xlu1 %v5299_v55, %s3814_s15  ;;  %v2440_v0 = vsel %vm2430_vm9, %v2393_v18, %v5108_v37  ;;  %vm6084_vm3 = vcmask 261120   ;;  %v1900_v54 = vor.u32 %v1898_v46, %v1896_v62  ;;  %v1311_v26 = vor.u32 %v1310_v52, %v1307_v7 }
  0xe9   : > { %v2508_v48 = vsel %vm6084_vm3, %v2473_v4, %v5232_v24  ;;  %v2475_v58 = vsel %vm6085_vm1, %v2440_v0, %v5135_v3  ;;  %vm6086_vm15 = vcmask 326656   ;;  %v5331_v21 = vrot.slane %v1902_v43, 1  ;;  %vm6087_vm5 = vmmov %vm6084_vm3 }
  0xea   : > { %v2543_v35 = vsel %vm6086_vm15, %v2508_v48, %v2185_v25  ;;  %2116 = vrot.lane.b32.xlu0 %v5072_v41, %s3814_s15  ;;  %v5329_v45 = vpop.permute.xlu1 %1927  ;;  %v5333_v1 = vor.u32 %v1319_v44, %v1316_v8  ;;  %v2510_v37 = vsel %vm6087_vm5, %v2475_v58, %v5197_v49  ;;  %vm6088_vm7 = vcmask 392192   ;;  %vm6090_vm0 = vmmov %vm6086_vm15 }
  0xeb   : > { %v2578_v24 = vsel %vm6088_vm7, %v2543_v35, %v2235_v12  ;;  %v1672_v60 = vor.u32 %v1671_v28, %v1668_v15  ;;  %v5338_v62 = vor.u32 %v1680_v42, %v1677_v5  ;;  %vm6089_vm8 = vcmask 457728  }
  0xec   : > { %v2613_v3 = vsel %vm6089_vm8, %v2578_v24, %v2270_v53  ;;  %v2352_v25 = vpop.permute.xlu0 %2351  ;;  %2202 = vrot.lane.b32.xlu1 %v2171_v10, %s3812_s11  ;;  %v441_v41 = vmax.f32 %v409_v29, 0.0  ;;  %v442_v40 = vmax.f32 %v410_v36, 0.0  ;;  %v777_v20 = vand.u32 15, %v561_v39 }
  0xed   : > { %v2545_v44 = vsel %vm6090_vm0, %v2510_v37, %v5254_v47  ;;  %vm6091_vm3 = vcmask 523264   ;;  %vm6092_vm1 = vcmp.ne.s16.totalorder %v5056_v30, 0  ;;  %vm6093_vm15 = vsmask.f32 3328 }
  0xee   : > { %v2648_v8 = vsel %vm6091_vm3, %v2613_v3, %v2352_v25  ;;  %v1779_v49 = vsel %vm6092_vm1, %v5190_v32, 0  ;;  %v5350_v15 = vsel %vm6093_vm15, %v5151_v63, %v1311_v26  ;;  %2200 = vrot.lane.b32.xlu0 %v5266_v14, %s3812_s11  ;;  %v5354_v10 = vpop.permute.xlu1 %1929  ;;  %vm6094_vm5 = vmmov %vm6093_vm15  ;;  %vm5360_vm7 = vcmp.gt.s32.totalorder %v777_v20, 0 }
  0xef   : > { %v2714_v42 = vshrl.u32 %v2648_v8, 16  ;;  %v2717_v56 = vshll.u32 %v2648_v8, 16  ;;  %v5358_v47 = vsel %vm6094_vm5, %v1311_v26, %v5333_v1  ;;  %vm6097_vm8 = vcmask 392192   ;;  %vm1105_vm1 = vmpackc.low %vm5360_vm7, %vm5360_vm7 }
  0xf0   : > { %v2580_v30 = vsel %vm6097_vm8, %v2545_v44, %v5283_v38  ;;  %v5368_v63 = vsel %vm1783_vm13, %v1900_v54, %v5331_v21  ;;  %vm6098_vm0 = vsmask.f32 4352  ;;  %vm6100_vm15 = vcmask 457728   ;;  %v2354_v18 = vpop.permute.xlu0 %2353  ;;  %2252 = vrot.lane.b32.xlu1 %v5288_v59, %s3810_s9 }
  0xf1   : > { %v5372_v14 = vsel %vm6098_vm0, %v5023_v6, %v1672_v60  ;;  %vm6099_vm3 = vmmov %vm6098_vm0  ;;  %v2615_v16 = vsel %vm6100_vm15, %v2580_v30, %v2272_v19  ;;  %v2716_v23 = vrot.slane %v2714_v42, 3  ;;  %v2719_v38 = vrot.slane %v2717_v56, 4 }
  0xf2   : > { %v5376_v46 = vsel %vm6099_vm3, %v1672_v60, %v5338_v62  ;;  %v5384_v7 = vpack.c.bf16 %v442_v40, %v441_v41  ;;  %vm6101_vm5 = vcmask 523264   ;;  %vm1344_vm8 = vcmp.ne.s16.totalorder %v5358_v47, 0  ;;  %2250 = vrot.lane.b32.xlu0 %v5274_v34, %s3810_s9  ;;  %v5392_v19 = vpop.permute.xlu1 %2014 }
  0xf3   : > { %v2650_v6 = vsel %vm6101_vm5, %v2615_v16, %v2354_v18  ;;  %vm1343_vm0 = vcmp.ne.s16.totalorder %v5350_v15, 0  ;;  %v1137_v52 = vsel %vm1105_vm1, 65537, %v6046_v31  ;;  %v2720_v43 = vor.u32 %v2719_v38, %v2716_v23 }
  0xf4   : > { %v2722_v61 = vshrl.u32 %v2650_v6, 16  ;;  %v2725_v28 = vshll.u32 %v2650_v6, 16  ;;  %v5397_v59 = vsel %vm1343_vm0, %v4980_v9, 0  ;;  %v2336_v5 = vrot.slane %v1779_v49, 1  ;;  %v2013_v34 = vpop.permute.xlu0 %2012  ;;  %2287 = vrot.lane.b32.xlu1 %v5368_v63, %s3815_s26 }
  0xf5   : > { %vm1696_vm7 = vcmp.ne.s16.totalorder %v5372_v14, 0  ;;  %vm1697_vm3 = vcmp.ne.s16.totalorder %v5376_v46, 0  ;;  %v5404_v4 = vsel %vm1344_vm8, %v5190_v32, 0  ;;  %vm6102_vm1 = vsmask.f32 4352 }
  0xf6   : > { %v2724_v53 = vrot.slane %v2722_v61, 3  ;;  %v2727_v29 = vrot.slane %v2725_v28, 4  ;;  %v2721_v36 = vsel %vm6102_vm1, %v5131_v33, %v2720_v43  ;;  %v5413_v9 = vsel %vm1695_vm11, %v5295_v50, 0  ;;  %2285 = vrot.lane.b32.xlu0 %v5299_v55, %s3815_s26  ;;  %v5421_v48 = vpop.permute.xlu1 %2065  ;;  %vm6104_vm11 = vmmov %vm6102_vm1  ;;  %v6108_v61 = vld [vmem:[#allocation9_spill] sm:$0xff] }
  0xf7   : > { %3734 = vmatprep.mubr.msk.bf16.mxu0 %vm2853_vm12, %v2721_v36  ;;  %v3515_v39 = vcombine.low %v1137_v52, %v3905_v13  ;;  %v1712_v33 = vsel %vm1696_vm7, %v5190_v32, 0  ;;  %v5429_v57 = vsel %vm1697_vm3, %v5295_v50, 0  ;;  %v505_v54 = vrot.slane %v5384_v7, 4 }
  0xf8   : > { %v5417_v0 = vor.u32 %v2727_v29, %v2724_v53  ;;  %v6103_v13 = vrot.slane %v5052_v51, 1  ;;  %v2338_v58 = vrot.slane %v5413_v9, 1  ;;  %v2064_v35 = vpop.permute.xlu0 %2063  ;;  %1943 = vrot.lane.b32.xlu1 %v5299_v55, %s3813_s12  ;;  %v1996_v24 = vrot.slane %v1712_v33, 1 }
  0xf9   : > { %v1998_v60 = vrot.slane %v5429_v57, 1  ;;  %v1323_v3 = vshrl.u32 %v3515_v39, 16  ;;  %v1326_v25 = vshll.u32 %v3515_v39, 16  ;;  %v6105_v41 = vrot.slane %v5215_v2, 4 }
  0xfa   : > { %v2337_v26 = vsel %vm1968_vm10, %v6103_v13, %v2336_v5  ;;  %v2729_v37 = vsel %vm6104_vm11, %v2720_v43, %v5417_v0  ;;  %v2107_v51 = vpop.permute.xlu1 %2106  ;;  %v2339_v20 = vsel %vm1968_vm10, %v2336_v5, %v2338_v58  ;;  %v1906_v44 = vshrl.u32 %v5295_v50, 16  ;;  %v6107_v43 = vld [vmem:[#allocation3_spill] sm:$0xff] }
  0xfb   : > { %3735 = vmatmul.mubr.msk.bf16.gmra.mrb[4].mxu0 %vm2853_vm12, %v2729_v37  ;;  %2367 = vrot.lane.b32.xlu0 %v2337_v26, %s3816_s30  ;;  %v5446_v40 = vsel %vm475_vm4, %v6105_v41, %v505_v54  ;;  %v1999_v8 = vsel %vm1968_vm10, %v1996_v24, %v1998_v60  ;;  %v1325_v2 = vrot.slane %v1323_v3, 4  ;;  %v1328_v42 = vrot.slane %v1326_v25, 5  ;;  %v6111_v26 = vld [vmem:[#allocation4_spill] sm:$0xff] }
  0xfc   : > { %v2105_v55 = vpop.permute.xlu0 %2104  ;;  %1945 = vrot.lane.b32.xlu1 %v5368_v63, %s3813_s12  ;;  %v1910_v49 = vshll.u32 %v5446_v40, 16  ;;  %v6106_v12 = vrot.slane %v5128_v27, 1  ;;  %v1730_v23 = vsel %vm1344_vm8, %v5295_v50, 0  ;;  %v1908_v38 = vor.u32 %v1906_v44, %v5331_v21  ;;  %v6112_v37 = vld [vmem:[#allocation8_spill] sm:$0xff] }
  0xfd   : > { %v5467_v7 = vor.u32 %v1328_v42, %v1325_v2  ;;  %v1748_v27 = vsel %vm1696_vm7, %v5295_v50, 0  ;;  %v5476_v52 = vsel %vm1697_vm3, %v5446_v40, 0  ;;  %vm6109_vm15 = vcmp.ne.s16.totalorder %v6108_v61, 0 }
  0xfe   : > { %v2191_v56 = vpop.permute.xlu1 %2190  ;;  %v1997_v30 = vsel %vm1968_vm10, %v6106_v12, %v1996_v24  ;;  %v1912_v18 = vrot.slane %v1910_v49, 1  ;;  %v1351_v28 = vsel %vm6109_vm15, %v6107_v43, 0  ;;  %v1729_v21 = vsel %vm1343_vm0, %v5190_v32, 0 }
  0xff   : > { %2369 = vrot.lane.b32.xlu0 %v2339_v20, %s3816_s30  ;;  %v2172_v29 = vrot.slane %v1748_v27, 1  ;;  %v2174_v36 = vrot.slane %v5476_v52, 1  ;;  %vm6110_vm5 = vsmask.f32 3328  ;;  %v2396_v33 = vsel %vm2379_vm2, %v1351_v28, %v5329_v45 }
 0x100   : > { %v2189_v16 = vpop.permute.xlu0 %2188  ;;  %2030 = vrot.lane.b32.xlu1 %v1999_v8, %s3811_s10  ;;  %v5486_v53 = vsel %vm1783_vm13, %v1908_v38, %v1912_v18  ;;  %v5492_v39 = vsel %vm6110_vm5, %v5333_v1, %v5467_v7  ;;  %v5498_v13 = vsel %vm475_vm4, %v505_v54, 0  ;;  %vm6113_vm1 = vcmp.ne.s16.totalorder %v6112_v37, 0 }
 0x101   : > { %v1352_v24 = vsel %vm6113_vm1, %v6111_v26, 0  ;;  %v2442_v3 = vsel %vm2430_vm9, %v2396_v33, %v2013_v34  ;;  %vm6114_vm11 = vcmask 195584   ;;  %v1914_v45 = vshrl.u32 %v5446_v40, 16 }
 0x102   : > { %v2241_v6 = vpop.permute.xlu1 %2240  ;;  %v2477_v25 = vsel %vm6114_vm11, %v2442_v3, %v2064_v35  ;;  %vm1345_vm15 = vcmp.ne.s16.totalorder %v5492_v39, 0  ;;  %vm6115_vm5 = vcmask 261120   ;;  %v2175_v54 = vsel %vm1968_vm10, %v2172_v29, %v2174_v36 }
 0x103   : > { %2028 = vrot.lane.b32.xlu0 %v1997_v30, %s3811_s10  ;;  %v2512_v1 = vsel %vm6115_vm5, %v2477_v25, %v2105_v55  ;;  %v2087_v20 = vshll.u32 %v5498_v13, 16  ;;  %v5517_v34 = vsel %vm1345_vm15, %v5295_v50, 0  ;;  %v2399_v35 = vsel %vm2379_vm2, %v1352_v24, %v5354_v10 }
 0x104   : > { %v2239_v5 = vpop.permute.xlu0 %2238  ;;  %2081 = vrot.lane.b32.xlu1 %v1730_v23, %s3809_s8  ;;  %vm6116_vm4 = vcmask 326656   ;;  %v2444_v8 = vsel %vm2430_vm9, %v2399_v35, %v5392_v19  ;;  %vm6117_vm1 = vcmask 392192   ;;  %v6118_v2 = vrot.slane %v5203_v11, 1 }
 0x105   : > { %v2547_v44 = vsel %vm6116_vm4, %v2512_v1, %v2189_v16  ;;  %v2479_v12 = vsel %vm6114_vm11, %v2444_v8, %v5421_v48  ;;  %vm6119_vm5 = vcmask 457728   ;;  %vm6120_vm4 = vcmask 261120  }
 0x106   : > { %v2276_v32 = vpop.permute.xlu1 %2275  ;;  %v2582_v49 = vsel %vm6117_vm1, %v2547_v44, %v2239_v5  ;;  %v2173_v42 = vsel %vm1968_vm10, %v6118_v2, %v2172_v29  ;;  %v2514_v19 = vsel %vm6120_vm4, %v2479_v12, %v2107_v51  ;;  %vm6121_vm14 = vcmask 523264  }
 0x107   : > { %2079 = vrot.lane.b32.xlu0 %v1729_v21, %s3809_s8  ;;  %v1916_v23 = vor.u32 %v1914_v45, %v1912_v18  ;;  %v2089_v11 = vrot.slane %v2087_v20, 1  ;;  %vm6122_vm1 = vcmask 326656   ;;  %vm6123_vm11 = vcmask 392192  }
 0x108   : > { %v2274_v41 = vpop.permute.xlu0 %2273  ;;  %2122 = vrot.lane.b32.xlu1 %v5486_v53, %s3814_s15  ;;  %v2549_v38 = vsel %vm6122_vm1, %v2514_v19, %v2191_v56  ;;  %v1764_v47 = vsel %vm1343_vm0, %v5295_v50, 0  ;;  %v1781_v51 = vsel %vm1696_vm7, %v5446_v40, 0  ;;  %vm6126_vm0 = vsmask.f32 4352 }
 0x109   : > { %v2617_v10 = vsel %vm6119_vm5, %v2582_v49, %v2274_v41  ;;  %v2584_v61 = vsel %vm6123_vm11, %v2549_v38, %v2241_v6  ;;  %v2090_v6 = vsel %vm1783_vm13, %v1916_v23, %v2089_v11  ;;  %v5569_v25 = vsel %vm1697_vm3, %v5498_v13, 0  ;;  %vm6127_vm3 = vmmov %vm6126_vm0  ;;  %v6131_v38 = vld [vmem:[#allocation7_spill] sm:$0xff] }
 0x10a   : > { %v5524_v55 = vpop.permute.xlu1 %1931  ;;  %vm1698_vm7 = vcmp.ne.s16.totalorder %v5338_v62, 0  ;;  %v2342_v1 = vrot.slane %v5569_v25, 1  ;;  %v2091_v2 = vshrl.u32 %v5498_v13, 16  ;;  %v1731_v57 = vsel %vm1345_vm15, %v5446_v40, 0 }
 0x10b   : > { %2120 = vrot.lane.b32.xlu0 %v5368_v63, %s3814_s15  ;;  %v1765_v63 = vsel %vm1344_vm8, %v5446_v40, 0  ;;  %vm1346_vm8 = vcmp.ne.s16.totalorder %v5467_v7, 0  ;;  %v1714_v20 = vsel %vm1698_vm7, %v5446_v40, 0  ;;  %v1750_v7 = vsel %vm1698_vm7, %v5498_v13, 0 }
 0x10c   : > { %v2356_v30 = vpop.permute.xlu0 %2355  ;;  %2206 = vrot.lane.b32.xlu1 %v2175_v54, %s3812_s11  ;;  %v5560_v50 = vsel %vm1346_vm8, %v5446_v40, 0  ;;  %v2000_v35 = vrot.slane %v1714_v20, 1  ;;  %v2093_v19 = vor.u32 %v2091_v2, %v2089_v11  ;;  %vm6134_vm11 = vcmask 195584  }
 0x10d   : > { %v2652_v16 = vsel %vm6121_vm14, %v2617_v10, %v2356_v30  ;;  %vm6124_vm14 = vmmov %vm6119_vm5  ;;  %vm6125_vm5 = vcmask 523264   ;;  %v6128_v10 = vld [vmem:[#allocation6_spill] sm:$0xff]  ;;  %v6129_v30 = vld [vmem:[#allocation13_spill] sm:$0xff]  ;;  %vm6139_vm7 = vcmask 457728  }
 0x10e   : > { %v2730_v27 = vshrl.u32 %v2652_v16, 16  ;;  %v2733_v43 = vshll.u32 %v2652_v16, 16  ;;  %v5543_v48 = vpop.permute.xlu1 %1933  ;;  %v2619_v18 = vsel %vm6124_vm14, %v2584_v61, %v2276_v32  ;;  %v2340_v32 = vrot.slane %v1781_v51, 1 }
 0x10f   : > { %2204 = vrot.lane.b32.xlu0 %v2173_v42, %s3812_s11  ;;  %v2001_v8 = vsel %vm1968_vm10, %v1998_v60, %v2000_v35  ;;  %v1732_v42 = vsel %vm1346_vm8, %v5498_v13, 0  ;;  %vm6130_vm4 = vcmp.ne.s16.totalorder %v6129_v30, 0  ;;  %v2176_v61 = vrot.slane %v1750_v7, 1 }
 0x110   : > { %v2732_v28 = vrot.slane %v2730_v27, 3  ;;  %v2735_v56 = vrot.slane %v2733_v43, 4  ;;  %v2358_v21 = vpop.permute.xlu0 %2357  ;;  %2256 = vrot.lane.b32.xlu1 %v1765_v63, %s3810_s9  ;;  %v1353_v63 = vsel %vm6130_vm4, %v6128_v10, 0  ;;  %v6132_v27 = vld [vmem:[#allocation12_spill] sm:$0xff]  ;;  %vm6135_vm14 = vcmask 261120  }
 0x111   : > { %v2654_v5 = vsel %vm6125_vm5, %v2619_v18, %v2358_v21  ;;  %v2402_v16 = vsel %vm2379_vm2, %v1353_v63, %v5524_v55  ;;  %vm6133_vm1 = vcmp.ne.s16.totalorder %v6132_v27, 0  ;;  %vm6136_vm8 = vcmask 326656  }
 0x112   : > { %v2736_v15 = vor.u32 %v2735_v56, %v2732_v28  ;;  %v2738_v14 = vshrl.u32 %v2654_v5, 16  ;;  %v2741_v29 = vshll.u32 %v2654_v5, 16  ;;  %v2019_v33 = vpop.permute.xlu1 %2018  ;;  %v1354_v43 = vsel %vm6133_vm1, %v6131_v38, 0  ;;  %vm6142_vm1 = vmmov %vm6136_vm8 }
 0x113   : > { %2254 = vrot.lane.b32.xlu0 %v1764_v47, %s3810_s9  ;;  %v2405_v55 = vsel %vm2379_vm2, %v1354_v43, %v5543_v48  ;;  %vm6137_vm5 = vcmask 392192   ;;  %v2177_v21 = vsel %vm1968_vm10, %v2174_v36, %v2176_v61  ;;  %vm6141_vm4 = vcmask 523264  }
 0x114   : > { %v2740_v26 = vrot.slane %v2738_v14, 3  ;;  %v2743_v37 = vrot.slane %v2741_v29, 4  ;;  %v2017_v24 = vpop.permute.xlu0 %2016  ;;  %v2737_v3 = vsel %vm6126_vm0, %v5417_v0, %v2736_v15  ;;  %2291 = vrot.lane.b32.xlu1 %v2090_v6, %s3815_s26  ;;  %v2341_v0 = vsel %vm1968_vm10, %v2338_v58, %v2340_v32  ;;  %vm6138_vm0 = vmmov %vm6134_vm11 }
 0x115   : > { %3738 = vmatprep.mubr.msk.bf16.mxu0 %vm2853_vm12, %v2737_v3  ;;  %v2343_v58 = vsel %vm1968_vm10, %v2340_v32, %v2342_v1  ;;  %v2446_v40 = vsel %vm2430_vm9, %v2402_v16, %v2017_v24  ;;  %v2448_v28 = vsel %vm2430_vm9, %v2405_v55, %v2019_v33  ;;  %v6152_v16 = vld [vmem:[#allocation11_spill] sm:$0xff] }
 0x116   : > { %v5573_v41 = vor.u32 %v2743_v37, %v2740_v26  ;;  %v2070_v45 = vpop.permute.xlu1 %2069  ;;  %v1766_v26 = vsel %vm1345_vm15, %v5498_v13, 0  ;;  %vm6147_vm15 = vsmask.f32 4352 }
 0x117   : > { %2289 = vrot.lane.b32.xlu0 %v5486_v53, %s3815_s26  ;;  %v2483_v5 = vsel %vm6138_vm0, %v2448_v28, %v2070_v45 }
 0x118   : > { %v2068_v54 = vpop.permute.xlu0 %2067  ;;  %v2745_v46 = vsel %vm6127_vm3, %v2736_v15, %v5573_v41  ;;  %1947 = vrot.lane.b32.xlu1 %v5486_v53, %s3813_s12  ;;  %vm6140_vm3 = vmmov %vm6135_vm14 }
 0x119   : > { %3739 = vmatmul.mubr.msk.bf16.gmra.mrb[8].mxu0 %vm2853_vm12, %v2745_v46  ;;  %v2481_v47 = vsel %vm6134_vm11, %v2446_v40, %v2068_v54  ;;  %vm6143_vm11 = vmmov %vm6137_vm5 }
 0x11a   : > { %v2111_v9 = vpop.permute.xlu1 %2110 }
 0x11b   : > { %2371 = vrot.lane.b32.xlu0 %v2341_v0, %s3816_s30  ;;  %v2518_v48 = vsel %vm6140_vm3, %v2483_v5, %v2111_v9 }
 0x11c   : > { %v2109_v44 = vpop.permute.xlu0 %2108  ;;  %1949 = vrot.lane.b32.xlu1 %v1916_v23, %s3813_s12 }
 0x11d   : > { %v2516_v62 = vsel %vm6135_vm14, %v2481_v47, %v2109_v44  ;;  %vm6144_vm14 = vmmov %vm6139_vm7 }
 0x11e   : > { %v2195_v53 = vpop.permute.xlu1 %2194 }
 0x11f   : > { %2373 = vrot.lane.b32.xlu0 %v2343_v58, %s3816_s30  ;;  %v2553_v29 = vsel %vm6142_vm1, %v2518_v48, %v2195_v53  ;;  %v6146_v58 = vld [vmem:[#allocation2_spill] sm:$0xff] }
 0x120   : > { %v2193_v49 = vpop.permute.xlu0 %2192  ;;  %2034 = vrot.lane.b32.xlu1 %v2000_v35, %s3811_s10  ;;  %v2262_v39 = vsel %vm1783_vm13, %v2093_v19, %v6146_v58  ;;  %vm6148_vm13 = vmmov %vm6147_vm15 }
 0x121   : > { %v2551_v51 = vsel %vm6136_vm8, %v2516_v62, %v2193_v49  ;;  %vm6145_vm8 = vmmov %vm6141_vm4  ;;  %v2344_v49 = vsel %vm1968_vm10, %v2342_v1, %v6146_v58 }
 0x122   : > { %v2245_v12 = vpop.permute.xlu1 %2244 }
 0x123   : > { %2032 = vrot.lane.b32.xlu0 %v2001_v8, %s3811_s10  ;;  %v2588_v36 = vsel %vm6143_vm11, %v2553_v29, %v2245_v12 }
 0x124   : > { %v2243_v60 = vpop.permute.xlu0 %2242  ;;  %2085 = vrot.lane.b32.xlu1 %v1732_v42, %s3809_s8 }
 0x125   : > { %v2586_v56 = vsel %vm6137_vm5, %v2551_v51, %v2243_v60  ;;  %v6150_v60 = vld [vmem:[#allocation16_spill] sm:$0xff] }
 0x126   : > { %v2280_v23 = vpop.permute.xlu1 %2279  ;;  %vm6151_vm5 = vcmp.ne.s16.totalorder %v6150_v60, 0 }
 0x127   : > { %2083 = vrot.lane.b32.xlu0 %v1731_v57, %s3809_s8  ;;  %v2623_v37 = vsel %vm6144_vm14, %v2588_v36, %v2280_v23  ;;  %v6149_v57 = vld [vmem:[#allocation10_spill] sm:$0xff]  ;;  %v6153_v23 = vld [vmem:[#allocation17_spill] sm:$0xff] }
 0x128   : > { %v2278_v11 = vpop.permute.xlu0 %2277  ;;  %2126 = vrot.lane.b32.xlu1 %v2093_v19, %s3814_s15  ;;  %v1355_v25 = vsel %vm6151_vm5, %v6149_v57, 0  ;;  %vm6154_vm10 = vcmp.ne.s16.totalorder %v6153_v23, 0 }
 0x129   : > { %v2621_v15 = vsel %vm6139_vm7, %v2586_v56, %v2278_v11  ;;  %v1356_v38 = vsel %vm6154_vm10, %v6152_v16, 0  ;;  %vm6155_vm7 = vmmov %vm6140_vm3 }
 0x12a   : > { %v1936_v18 = vpop.permute.xlu1 %1935  ;;  %vm6156_vm3 = vmmov %vm6142_vm1 }
 0x12b   : > { %2124 = vrot.lane.b32.xlu0 %v2090_v6, %s3814_s15  ;;  %v2408_v19 = vsel %vm2379_vm2, %v1355_v25, %v1936_v18  ;;  %vm6158_vm1 = vmmov %vm6138_vm0  ;;  %s265_s15 = scalar_lea.vmem %s5948_s6, %s3497_s23 }
 0x12c   : > { %v2360_v14 = vpop.permute.xlu0 %2359  ;;  %2210 = vrot.lane.b32.xlu1 %v2176_v61, %s3812_s11  ;;  %vm6164_vm10 = vmmov %vm6145_vm8 }
 0x12d   : > { %v2656_v6 = vsel %vm6141_vm4, %v2621_v15, %v2360_v14  ;;  %vm6157_vm4 = vmmov %vm6143_vm11 }
 0x12e   : > { %v2746_v33 = vshrl.u32 %v2656_v6, 16  ;;  %v2749_v32 = vshll.u32 %v2656_v6, 16  ;;  %v1938_v52 = vpop.permute.xlu1 %1937  ;;  %vm6159_vm11 = vmmov %vm6144_vm14 }
 0x12f   : > { %2208 = vrot.lane.b32.xlu0 %v2177_v21, %s3812_s11  ;;  %v2411_v47 = vsel %vm2379_vm2, %v1356_v38, %v1938_v52  ;;  %vm6160_vm14 = vmmov %vm6155_vm7  ;;  %s5769_s11 = scalar_lea.vmem %s5947_s5, %s3494_s24 }
 0x130   : > { %v2748_v24 = vrot.slane %v2746_v33, 3  ;;  %v2751_v3 = vrot.slane %v2749_v32, 4  ;;  %v2362_v45 = vpop.permute.xlu0 %2361  ;;  %2260 = vrot.lane.b32.xlu1 %v6046_v31, %s3810_s9  ;;  %vm6163_vm5 = vmmov %vm6159_vm11 }
 0x131   : > { %v2658_v0 = vsel %vm6145_vm8, %v2623_v37, %v2362_v45 }
 0x132   : > { %v2752_v54 = vor.u32 %v2751_v3, %v2748_v24  ;;  %v2754_v46 = vshrl.u32 %v2658_v0, 16  ;;  %v2757_v20 = vshll.u32 %v2658_v0, 16  ;;  %v2023_v9 = vpop.permute.xlu1 %2022 }
 0x133   : > { %2258 = vrot.lane.b32.xlu0 %v1766_v26, %s3810_s9  ;;  %v2452_v55 = vsel %vm2430_vm9, %v2411_v47, %v2023_v9 }
 0x134   : > { %v2756_v13 = vrot.slane %v2754_v46, 3  ;;  %v2759_v35 = vrot.slane %v2757_v20, 4  ;;  %v2021_v44 = vpop.permute.xlu0 %2020  ;;  %v2753_v53 = vsel %vm6147_vm15, %v5573_v41, %v2752_v54  ;;  %2295 = vrot.lane.b32.xlu1 %v6146_v58, %s3815_s26  ;;  %vm6161_vm15 = vmmov %vm6156_vm3 }
 0x135   : > { %3742 = vmatprep.mubr.msk.bf16.mxu0 %vm2853_vm12, %v2753_v53  ;;  %v2450_v27 = vsel %vm2430_vm9, %v2408_v19, %v2021_v44 }
 0x136   : > { %v2760_v31 = vor.u32 %v2759_v35, %v2756_v13  ;;  %v2074_v8 = vpop.permute.xlu1 %2073 }
 0x137   : > { %2293 = vrot.lane.b32.xlu0 %v2262_v39, %s3815_s26  ;;  %v2487_v18 = vsel %vm6158_vm1, %v2452_v55, %v2074_v8 }
 0x138   : > { %v2072_v2 = vpop.permute.xlu0 %2071  ;;  %v2761_v42 = vsel %vm6148_vm13, %v2752_v54, %v2760_v31  ;;  %2377 = vrot.lane.b32.xlu1 %v6146_v58, %s3816_s30  ;;  %vm6162_vm13 = vmmov %vm6157_vm4 }
 0x139   : > { %3743 = vmatmul.mubr.msk.bf16.gmra.mrb[12].mxu0 %vm2853_vm12, %v2761_v42  ;;  %v2485_v43 = vsel %vm6138_vm0, %v2450_v27, %v2072_v2  ;;  %vm6165_vm0 = vsmask.f32 4352  ;;  %v6167_v2 = vld [vmem:[#allocation14_spill] sm:$0xff] }
 0x13a   : > { %v2115_v41 = vpop.permute.xlu1 %2114  ;;  %v1357_v42 = vsel %vm1341_vm6, %v6167_v2, 0  ;;  %vm6173_vm6 = vmmov %vm6162_vm13 }
 0x13b   : > { %2375 = vrot.lane.b32.xlu0 %v2344_v49, %s3816_s30  ;;  %v2522_v21 = vsel %vm6160_vm14, %v2487_v18, %v2115_v41 }
 0x13c   : > { %v2113_v12 = vpop.permute.xlu0 %2112 }
 0x13d   : > { %v2520_v61 = vsel %vm6155_vm7, %v2485_v43, %v2113_v12  ;;  %vm6166_vm7 = vmmov %vm6165_vm0 }
 0x13e   : > { %v2199_v10 = vpop.permute.xlu1 %2198 }
 0x13f   : > { %v2557_v15 = vsel %vm6161_vm15, %v2522_v21, %v2199_v10  ;;  %v6168_v10 = vld [vmem:[#allocation18_spill] sm:$0xff] }
 0x140   : > { %v2197_v30 = vpop.permute.xlu0 %2196 }
 0x141   : > { %v2555_v11 = vsel %vm6156_vm3, %v2520_v61, %v2197_v30  ;;  %vm6169_vm3 = vcmp.ne.s16.totalorder %v6168_v10, 0 }
 0x142   : > { %v2249_v63 = vpop.permute.xlu1 %2248  ;;  %v1358_v30 = vsel %vm6169_vm3, %v4895_v22, 0  ;;  %vm6182_vm3 = vsmask.f32 4352 }
 0x143   : > { %v2592_v29 = vsel %vm6162_vm13, %v2557_v15, %v2249_v63  ;;  %vm6177_vm13 = vmmov %vm6164_vm10 }
 0x144   : > { %v2247_v1 = vpop.permute.xlu0 %2246 }
 0x145   : > { %v2590_v51 = vsel %vm6157_vm4, %v2555_v11, %v2247_v1  ;;  %vm6170_vm4 = vmmov %vm6158_vm1 }
 0x146   : > { %v2284_v7 = vpop.permute.xlu1 %2283  ;;  %vm6171_vm1 = vmmov %vm6160_vm14 }
 0x147   : > { %v2627_v33 = vsel %vm6163_vm5, %v2592_v29, %v2284_v7  ;;  %vm6174_vm14 = vmmov %vm6170_vm4 }
 0x148   : > { %v2282_v40 = vpop.permute.xlu0 %2281 }
 0x149   : > { %v2625_v28 = vsel %vm6159_vm11, %v2590_v51, %v2282_v40  ;;  %vm6172_vm11 = vmmov %vm6161_vm15 }
 0x14a   : > { %v1940_v62 = vpop.permute.xlu1 %1939  ;;  %vm6176_vm15 = vmmov %vm6171_vm1 }
 0x14c   : > { %v2364_v56 = vpop.permute.xlu0 %2363 }
 0x14d   : > { %v2660_v5 = vsel %vm6145_vm8, %v2625_v28, %v2364_v56  ;;  %vm6175_vm8 = vmmov %vm6163_vm5 }
 0x14e   : > { %v2762_v14 = vshrl.u32 %v2660_v5, 16  ;;  %v2765_v48 = vshll.u32 %v2660_v5, 16  ;;  %v1942_v6 = vpop.permute.xlu1 %1941  ;;  %vm6178_vm5 = vmmov %vm6172_vm11 }
 0x14f   : > { %v2417_v1 = vsel %vm2379_vm2, %v1358_v30, %v1942_v6 }
 0x150   : > { %v2764_v32 = vrot.slane %v2762_v14, 3  ;;  %v2767_v52 = vrot.slane %v2765_v48, 4  ;;  %v2366_v36 = vpop.permute.xlu0 %2365 }
 0x151   : > { %v2662_v26 = vsel %vm6164_vm10, %v2627_v33, %v2366_v36  ;;  %vm6179_vm10 = vmmov %vm6173_vm6 }
 0x152   : > { %v2770_v37 = vshrl.u32 %v2662_v26, 16  ;;  %v2773_v24 = vshll.u32 %v2662_v26, 16  ;;  %v2027_v3 = vpop.permute.xlu1 %2026  ;;  %v2768_v45 = vor.u32 %v2767_v52, %v2764_v32 }
 0x153   : > { %v2456_v7 = vsel %vm2430_vm9, %v2417_v1, %v2027_v3 }
 0x154   : > { %v2772_v0 = vrot.slane %v2770_v37, 3  ;;  %v2775_v54 = vrot.slane %v2773_v24, 4  ;;  %v2025_v46 = vpop.permute.xlu0 %2024  ;;  %v2769_v20 = vsel %vm6165_vm0, %v2760_v31, %v2768_v45  ;;  %v2414_v31 = vsel %vm2379_vm2, %v1357_v42, %v1940_v62  ;;  %vm6180_vm0 = vmmov %vm6175_vm8 }
 0x155   : > { %3746 = vmatprep.mubr.msk.bf16.mxu1 %vm2853_vm12, %v2769_v20  ;;  %v2454_v63 = vsel %vm2430_vm9, %v2414_v31, %v2025_v46 }
 0x156   : > { %v2776_v9 = vor.u32 %v2775_v54, %v2772_v0  ;;  %v2078_v58 = vpop.permute.xlu1 %2077 }
 0x157   : > { %v2491_v23 = vsel %vm6174_vm14, %v2456_v7, %v2078_v58 }
 0x158   : > { %v2076_v39 = vpop.permute.xlu0 %2075  ;;  %v2777_v13 = vsel %vm6166_vm7, %v2768_v45, %v2776_v9  ;;  %vm6181_vm7 = vmmov %vm6177_vm13 }
 0x159   : > { %3747 = vmatmul.mubr.msk.bf16.vlgmr.msra.gmra.mrb[0].mxu1 %vm2853_vm12, %v2777_v13  ;;  %v2489_v57 = vsel %vm6170_vm4, %v2454_v63, %v2076_v39  ;;  %vm6183_vm4 = vmmov %vm6182_vm3 }
 0x15a   : > { %v2119_v35 = vpop.permute.xlu1 %2118 }
 0x15b   : > { %v2526_v27 = vsel %vm6176_vm15, %v2491_v23, %v2119_v35 }
 0x15c   : > { %v2117_v44 = vpop.permute.xlu0 %2116 }
 0x15d   : > { %v2524_v25 = vsel %vm6171_vm1, %v2489_v57, %v2117_v44  ;;  %vm6184_vm1 = vmmov %vm6174_vm14 }
 0x15e   : > { %v2203_v53 = vpop.permute.xlu1 %2202  ;;  %vm6187_vm14 = vmmov %vm6179_vm10 }
 0x15f   : > { %v2561_v40 = vsel %vm6178_vm5, %v2526_v27, %v2203_v53 }
 0x160   : > { %v2201_v8 = vpop.permute.xlu0 %2200 }
 0x161   : > { %v2559_v17 = vsel %vm6172_vm11, %v2524_v25, %v2201_v8  ;;  %vm6185_vm11 = vmmov %vm6176_vm15 }
 0x162   : > { %v2253_v49 = vpop.permute.xlu1 %2252  ;;  %vm6189_vm15 = vmmov %vm6180_vm0 }
 0x163   : > { %v2596_v62 = vsel %vm6179_vm10, %v2561_v40, %v2253_v49 }
 0x164   : > { %v2251_v41 = vpop.permute.xlu0 %2250 }
 0x165   : > { %v2594_v16 = vsel %vm6173_vm6, %v2559_v17, %v2251_v41  ;;  %vm6186_vm6 = vmmov %vm6178_vm5 }
 0x166   : > { %v2288_v12 = vpop.permute.xlu1 %2287  ;;  %vm6191_vm5 = vmmov %vm6181_vm7 }
 0x167   : > { %v2631_v55 = vsel %vm6180_vm0, %v2596_v62, %v2288_v12  ;;  %vm6192_vm10 = vmmov %vm6186_vm6 }
 0x168   : > { %v2286_v60 = vpop.permute.xlu0 %2285  ;;  %vm6193_vm0 = vmmov %vm6187_vm14 }
 0x169   : > { %v2629_v22 = vsel %vm6175_vm8, %v2594_v16, %v2286_v60  ;;  %vm6188_vm8 = vmmov %vm6184_vm1 }
 0x16a   : > { %v1944_v19 = vpop.permute.xlu1 %1943 }
 0x16b   : > { %v2420_v46 = vsel %vm2379_vm2, %v5397_v59, %v1944_v19 }
 0x16d   : > { %v2368_v38 = vpop.permute.xlu0 %2367 }
 0x16e   : > { %v2664_v43 = vsel %vm6177_vm13, %v2629_v22, %v2368_v38  ;;  %v1946_v11 = vpop.permute.xlu1 %1945  ;;  %vm6190_vm13 = vmmov %vm6185_vm11 }
 0x16f   : > { %v2778_v61 = vshrl.u32 %v2664_v43, 16  ;;  %v2781_v47 = vshll.u32 %v2664_v43, 16  ;;  %v2423_v35 = vsel %vm2379_vm2, %v5404_v4, %v1946_v11 }
 0x171   : > { %v2780_v51 = vrot.slane %v2778_v61, 3  ;;  %v2783_v18 = vrot.slane %v2781_v47, 4  ;;  %v2370_v28 = vpop.permute.xlu0 %2369 }
 0x172   : > { %v2666_v56 = vsel %vm6181_vm7, %v2631_v55, %v2370_v28  ;;  %v2031_v14 = vpop.permute.xlu1 %2030  ;;  %vm6194_vm7 = vmmov %vm6189_vm15 }
 0x173   : > { %v2784_v21 = vor.u32 %v2783_v18, %v2780_v51  ;;  %v2786_v5 = vshrl.u32 %v2666_v56, 16  ;;  %v2789_v15 = vshll.u32 %v2666_v56, 16  ;;  %v2460_v8 = vsel %vm2430_vm9, %v2423_v35, %v2031_v14 }
 0x175   : > { %v2788_v48 = vrot.slane %v2786_v5, 3  ;;  %v2791_v6 = vrot.slane %v2789_v15, 4  ;;  %v2029_v29 = vpop.permute.xlu0 %2028  ;;  %v2785_v33 = vsel %vm6182_vm3, %v2776_v9, %v2784_v21  ;;  %vm6195_vm3 = vmmov %vm6191_vm5 }
 0x176   : > { %3750 = vmatprep.mubr.msk.bf16.mxu1 %vm2853_vm12, %v2785_v33  ;;  %v2082_v52 = vpop.permute.xlu1 %2081  ;;  %v2458_v9 = vsel %vm2430_vm9, %v2420_v46, %v2029_v29 }
 0x177   : > { %v2792_v32 = vor.u32 %v2791_v6, %v2788_v48  ;;  %v2495_v59 = vsel %vm6188_vm8, %v2460_v8, %v2082_v52 }
 0x179   : > { %v2080_v36 = vpop.permute.xlu0 %2079  ;;  %v2793_v26 = vsel %vm6183_vm4, %v2784_v21, %v2792_v32 }
 0x17a   : > { %3751 = vmatmul.mubr.msk.bf16.gmra.mrb[4].mxu1 %vm2853_vm12, %v2793_v26  ;;  %v2123_v37 = vpop.permute.xlu1 %2122  ;;  %v2493_v58 = vsel %vm6184_vm1, %v2458_v9, %v2080_v36  ;;  %vm6196_vm1 = vmmov %vm6183_vm4 }
 0x17b   : > { %v2530_v41 = vsel %vm6190_vm13, %v2495_v59, %v2123_v37 }
 0x17d   : > { %v2121_v24 = vpop.permute.xlu0 %2120 }
 0x17e   : > { %v2207_v3 = vpop.permute.xlu1 %2206  ;;  %v2528_v13 = vsel %vm6185_vm11, %v2493_v58, %v2121_v24  ;;  %vm6197_vm11 = vmmov %vm6188_vm8  ;;  %v5757_v24 = vld [vmem:[%s5946_s4] ss:$0 sm:$0xff] }
 0x17f   : > { %v2565_v12 = vsel %vm6192_vm10, %v2530_v41, %v2207_v3 }
 0x181   : > { %v2205_v45 = vpop.permute.xlu0 %2204 }
 0x182   : > { %v2257_v0 = vpop.permute.xlu1 %2256  ;;  %v2563_v44 = vsel %vm6186_vm6, %v2528_v13, %v2205_v45  ;;  %vm6198_vm6 = vmmov %vm6190_vm13 }
 0x183   : > { %v2600_v63 = vsel %vm6193_vm0, %v2565_v12, %v2257_v0  ;;  %vm6202_vm13 = vmmov %vm6193_vm0 }
 0x185   : > { %v2255_v54 = vpop.permute.xlu0 %2254 }
 0x186   : > { %v2292_v20 = vpop.permute.xlu1 %2291  ;;  %v2598_v49 = vsel %vm6187_vm14, %v2563_v44, %v2255_v54  ;;  %vm6199_vm14 = vmmov %vm6188_vm8 }
 0x187   : > { %v2635_v57 = vsel %vm6194_vm7, %v2600_v63, %v2292_v20  ;;  %vm6200_vm8 = vmmov %vm6192_vm10 }
 0x188   : > { %vm6204_vm10 = vmmov %vm6194_vm7 }
 0x189   : > { %v2290_v39 = vpop.permute.xlu0 %2289 }
 0x18a   : > { %v1948_v53 = vpop.permute.xlu1 %1947  ;;  %v2633_v2 = vsel %vm6189_vm15, %v2598_v49, %v2290_v39  ;;  %vm6201_vm15 = vmmov %vm6198_vm6 }
 0x18b   : > { %v2426_v15 = vsel %vm2379_vm2, %v5517_v34, %v1948_v53 }
 0x18d   : > { %v2372_v42 = vpop.permute.xlu0 %2371 }
 0x18e   : > { %v2668_v31 = vsel %vm6191_vm5, %v2633_v2, %v2372_v42  ;;  %v1950_v30 = vpop.permute.xlu1 %1949  ;;  %vm6203_vm5 = vmmov %vm6200_vm8 }
 0x18f   : > { %v2794_v10 = vshrl.u32 %v2668_v31, 16  ;;  %v2797_v4 = vshll.u32 %v2668_v31, 16  ;;  %v2429_v56 = vsel %vm2379_vm2, %v5560_v50, %v1950_v30 }
 0x191   : > { %v2796_v60 = vrot.slane %v2794_v10, 3  ;;  %v2799_v25 = vrot.slane %v2797_v4, 4  ;;  %v2374_v1 = vpop.permute.xlu0 %2373 }
 0x192   : > { %v2670_v17 = vsel %vm6195_vm3, %v2635_v57, %v2374_v1  ;;  %v2035_v23 = vpop.permute.xlu1 %2034 }
 0x193   : > { %v2800_v19 = vor.u32 %v2799_v25, %v2796_v60  ;;  %v2802_v7 = vshrl.u32 %v2670_v17, 16  ;;  %v2805_v16 = vshll.u32 %v2670_v17, 16  ;;  %v2464_v5 = vsel %vm2430_vm9, %v2429_v56, %v2035_v23 }
 0x195   : > { %v2804_v22 = vrot.slane %v2802_v7, 3  ;;  %v2807_v38 = vrot.slane %v2805_v16, 4  ;;  %v2033_v27 = vpop.permute.xlu0 %2032  ;;  %v2801_v43 = vsel %vm6183_vm4, %v2792_v32, %v2800_v19  ;;  %vm3194_vm4 = vcmask 60416  }
 0x196   : > { %3754 = vmatprep.mubr.msk.bf16.mxu1 %vm2853_vm12, %v2801_v43  ;;  %v2086_v61 = vpop.permute.xlu1 %2085  ;;  %v2462_v6 = vsel %vm2430_vm9, %v2426_v15, %v2033_v27  ;;  %vm6205_vm9 = vmmov %vm6193_vm0 }
 0x197   : > { %v2808_v40 = vor.u32 %v2807_v38, %v2804_v22  ;;  %v2499_v14 = vsel %vm6197_vm11, %v2464_v5, %v2086_v61  ;;  %vm6206_vm0 = vmmov %vm6195_vm3 }
 0x198   : > { %vm6207_vm3 = vmmov %vm6206_vm0 }
 0x199   : > { %v2084_v47 = vpop.permute.xlu0 %2083  ;;  %v2809_v11 = vsel %vm6196_vm1, %v2800_v19, %v2808_v40  ;;  %vm6208_vm11 = vmmov %vm6196_vm1 }
 0x19a   : > { %3755 = vmatmul.mubr.msk.bf16.gmra.mrb[8].mxu1 %vm2853_vm12, %v2809_v11  ;;  %v2127_v62 = vpop.permute.xlu1 %2126  ;;  %v2497_v33 = vsel %vm6199_vm14, %v2462_v6, %v2084_v47 }
 0x19b   : > { %v2534_v29 = vsel %vm6198_vm6, %v2499_v14, %v2127_v62 }
 0x19d   : > { %v2125_v55 = vpop.permute.xlu0 %2124 }
 0x19e   : > { %v2211_v51 = vpop.permute.xlu1 %2210  ;;  %v2532_v50 = vsel %vm6201_vm15, %v2497_v33, %v2125_v55 }
 0x19f   : > { %v2569_v32 = vsel %vm6200_vm8, %v2534_v29, %v2211_v51 }
 0x1a1   : > { %v2209_v18 = vpop.permute.xlu0 %2208 }
 0x1a2   : > { %v2261_v28 = vpop.permute.xlu1 %2260  ;;  %v2567_v26 = vsel %vm6203_vm5, %v2532_v50, %v2209_v18 }
 0x1a3   : > { %v2604_v36 = vsel %vm6202_vm13, %v2569_v32, %v2261_v28 }
 0x1a5   : > { %v2259_v21 = vpop.permute.xlu0 %2258 }
 0x1a6   : > { %v2296_v48 = vpop.permute.xlu1 %2295  ;;  %v2602_v3 = vsel %vm6205_vm9, %v2567_v26, %v2259_v21 }
 0x1a7   : > { %v2639_v34 = vsel %vm6204_vm10, %v2604_v36, %v2296_v48 }
 0x1a9   : > { %v2294_v52 = vpop.permute.xlu0 %2293 }
 0x1aa   : > { %v2378_v37 = vpop.permute.xlu1 %2377  ;;  %v2637_v0 = vsel %vm6194_vm7, %v2602_v3, %v2294_v52 }
 0x1ab   : > { %v2674_v45 = vsel %vm6206_vm0, %v2639_v34, %v2378_v37 }
 0x1ac   : > { %v2818_v54 = vshrl.u32 %v2674_v45, 16  ;;  %v2821_v46 = vshll.u32 %v2674_v45, 16  ;;  %v3732_v9 = vpop.f32.mrb[0].mxu0 }
 0x1ad   : > { %v2376_v20 = vpop.permute.xlu0 %2375  ;;  %v2948_v39 = vadd.f32 %v3732_v9, %v5757_v24  ;;  %v2939_v13 = vpop.f32.mrb[1].mxu0 }
 0x1ae   : > { %v2672_v58 = vsel %vm6207_vm3, %v2637_v0, %v2376_v20  ;;  %v2820_v35 = vrot.slane %v2818_v54, 3  ;;  %v2823_v44 = vrot.slane %v2821_v46, 4  ;;  %v3733_v49 = vpop.f32.mrb[2].mxu0  ;;  %v2940_v2 = vadd.f32 %v5757_v24, %v2939_v13 }
 0x1af   : > { %v2810_v53 = vshrl.u32 %v2672_v58, 16  ;;  %v2813_v8 = vshll.u32 %v2672_v58, 16  ;;  %v3590_v59 = vpack.c.bf16 %v2948_v39, %v2948_v39  ;;  %v2942_v42 = vpop.f32.mrb[3].mxu0  ;;  %v2951_v10 = vadd.f32 %v3733_v49, %v5757_v24 }
 0x1b0   : > { %v2824_v41 = vor.u32 %v2823_v44, %v2820_v35  ;;  %v3588_v4 = vpack.c.bf16 %v2940_v2, %v2940_v2  ;;  %v3296_v57 = vmul.f32 %v2940_v2, %v2940_v2  ;;  %v2943_v60 = vadd.f32 %v5757_v24, %v2942_v42 }
 0x1b1   : > { %v2812_v31 = vrot.slane %v2810_v53, 3  ;;  %v2815_v12 = vrot.slane %v2813_v8, 4  ;;  %3197 = vst.msk [vmem:[%s5769_s11 + $0x8] sm:$0xf] %vm3194_vm4, %v3590_v59  ;;  %v3591_v63 = vpack.c.bf16 %v2951_v10, %v2951_v10  ;;  %v3298_v25 = vmul.f32 %v2948_v39, %v2948_v39 }
 0x1b2   : > { %3195 = vst.msk [vmem:[%s5769_s11] sm:$0xf] %vm3194_vm4, %v3588_v4  ;;  %v3227_v19 = vsel %vm2379_vm2, %v2940_v2, 0.0  ;;  %v3589_v7 = vpack.c.bf16 %v2943_v60, %v2943_v60  ;;  %v3228_v16 = vsel %vm2379_vm2, %v2943_v60, 0.0  ;;  %v3297_v23 = vmul.f32 %v2943_v60, %v2943_v60 }
 0x1b3   : > { %v2816_v30 = vor.u32 %v2815_v12, %v2812_v31  ;;  %3198 = vst.msk [vmem:[%s5769_s11 + $0xc] sm:$0xf] %vm3194_vm4, %v3591_v63  ;;  %v3229_v22 = vadd.f32 %v3228_v16, %v3227_v19  ;;  %v3230_v38 = vsel %vm2379_vm2, %v2948_v39, 0.0  ;;  %v3328_v27 = vsel %vm2379_vm2, %v3296_v57, 0.0 }
 0x1b4   : > { %v3299_v43 = vmul.f32 %v2951_v10, %v2951_v10  ;;  %3196 = vst.msk [vmem:[%s5769_s11 + $0x4] sm:$0xf] %vm3194_vm4, %v3589_v7  ;;  %v3331_v11 = vsel %vm2379_vm2, %v3298_v25, 0.0  ;;  %v3232_v62 = vsel %vm2379_vm2, %v2951_v10, 0.0 }
 0x1b5   : > { %v2817_v1 = vsel %vm6196_vm1, %v2808_v40, %v2816_v30  ;;  %v2825_v17 = vsel %vm6208_vm11, %v2816_v30, %v2824_v41  ;;  %v3329_v40 = vsel %vm2379_vm2, %v3297_v23, 0.0  ;;  %v3231_v61 = vadd.f32 %v3230_v38, %v3229_v22 }
 0x1b6   : > { %3758 = vmatprep.mubr.msk.bf16.mxu1 %vm2853_vm12, %v2817_v1  ;;  %v3330_v47 = vadd.f32 %v3329_v40, %v3328_v27  ;;  %v3333_v18 = vsel %vm2379_vm2, %v3299_v43, 0.0 }
 0x1b7   : > { %3759 = vmatmul.mubr.msk.bf16.gmra.mrb[12].mxu1 %vm2853_vm12, %v2825_v17  ;;  %v3233_v51 = vadd.f32 %v3232_v62, %v3231_v61  ;;  %vm3397_vm12 = vcmask 1040384  }
 0x1b8   : > { %v3332_v55 = vadd.f32 %v3331_v11, %v3330_v47 }
 0x1ba   : > { %v3334_v28 = vadd.f32 %v3333_v18, %v3332_v55 }
 0x1ce   : > { %v3736_v56 = vpop.f32.mrb[4].mxu0 }
 0x1cf   : > { %v2964_v21 = vadd.f32 %v3736_v56, %v5757_v24  ;;  %v2955_v5 = vpop.f32.mrb[5].mxu0 }
 0x1d0   : > { %v2956_v15 = vadd.f32 %v5757_v24, %v2955_v5  ;;  %v3737_v14 = vpop.f32.mrb[6].mxu0 }
 0x1d1   : > { %v3594_v48 = vpack.c.bf16 %v2964_v21, %v2964_v21  ;;  %v2967_v6 = vadd.f32 %v3737_v14, %v5757_v24  ;;  %v2958_v29 = vpop.f32.mrb[7].mxu0  ;;  %v3302_v45 = vmul.f32 %v2964_v21, %v2964_v21  ;;  %v3238_v20 = vsel %vm2379_vm2, %v2964_v21, 0.0 }
 0x1d2   : > { %v3592_v33 = vpack.c.bf16 %v2956_v15, %v2956_v15  ;;  %v3234_v32 = vsel %vm2379_vm2, %v2956_v15, 0.0  ;;  %v3300_v52 = vmul.f32 %v2956_v15, %v2956_v15  ;;  %v2959_v50 = vadd.f32 %v5757_v24, %v2958_v29 }
 0x1d3   : > { %3201 = vst.msk [vmem:[%s5769_s11 + $0x18] sm:$0xf] %vm3194_vm4, %v3594_v48  ;;  %v3235_v36 = vadd.f32 %v3234_v32, %v3233_v51  ;;  %v3595_v26 = vpack.c.bf16 %v2967_v6, %v2967_v6  ;;  %v3303_v9 = vmul.f32 %v2967_v6, %v2967_v6  ;;  %v3240_v13 = vsel %vm2379_vm2, %v2967_v6, 0.0 }
 0x1d4   : > { %3199 = vst.msk [vmem:[%s5769_s11 + $0x10] sm:$0xf] %vm3194_vm4, %v3592_v33  ;;  %v3335_v34 = vsel %vm2379_vm2, %v3300_v52, 0.0  ;;  %v3593_v37 = vpack.c.bf16 %v2959_v50, %v2959_v50  ;;  %v3236_v3 = vsel %vm2379_vm2, %v2959_v50, 0.0  ;;  %v3301_v46 = vmul.f32 %v2959_v50, %v2959_v50 }
 0x1d5   : > { %v3336_v0 = vadd.f32 %v3335_v34, %v3334_v28  ;;  %3202 = vst.msk [vmem:[%s5769_s11 + $0x1c] sm:$0xf] %vm3194_vm4, %v3595_v26  ;;  %v3237_v54 = vadd.f32 %v3236_v3, %v3235_v36  ;;  %v3339_v44 = vsel %vm2379_vm2, %v3302_v45, 0.0  ;;  %v3341_v49 = vsel %vm2379_vm2, %v3303_v9, 0.0 }
 0x1d6   : > { %3200 = vst.msk [vmem:[%s5769_s11 + $0x14] sm:$0xf] %vm3194_vm4, %v3593_v37  ;;  %v3337_v39 = vsel %vm2379_vm2, %v3301_v46, 0.0 }
 0x1d7   : > { %v3239_v58 = vadd.f32 %v3238_v20, %v3237_v54  ;;  %v3338_v35 = vadd.f32 %v3337_v39, %v3336_v0 }
 0x1d9   : > { %v3241_v53 = vadd.f32 %v3240_v13, %v3239_v58  ;;  %v3340_v8 = vadd.f32 %v3339_v44, %v3338_v35 }
 0x1db   : > { %v3342_v59 = vadd.f32 %v3341_v49, %v3340_v8 }
 0x1ec   : > { %v3740_v2 = vpop.f32.mrb[8].mxu0 }
 0x1ed   : > { %v2980_v42 = vadd.f32 %v3740_v2, %v5757_v24  ;;  %v2971_v41 = vpop.f32.mrb[9].mxu0 }
 0x1ee   : > { %v2972_v31 = vadd.f32 %v5757_v24, %v2971_v41  ;;  %v3741_v12 = vpop.f32.mrb[10].mxu0 }
 0x1ef   : > { %v3598_v10 = vpack.c.bf16 %v2980_v42, %v2980_v42  ;;  %v2983_v4 = vadd.f32 %v3741_v12, %v5757_v24  ;;  %v2974_v30 = vpop.f32.mrb[11].mxu0  ;;  %v3306_v23 = vmul.f32 %v2980_v42, %v2980_v42  ;;  %v3246_v43 = vsel %vm2379_vm2, %v2980_v42, 0.0 }
 0x1f0   : > { %v3596_v63 = vpack.c.bf16 %v2972_v31, %v2972_v31  ;;  %v3242_v57 = vsel %vm2379_vm2, %v2972_v31, 0.0  ;;  %v3304_v60 = vmul.f32 %v2972_v31, %v2972_v31  ;;  %v2975_v25 = vadd.f32 %v5757_v24, %v2974_v30 }
 0x1f1   : > { %3205 = vst.msk [vmem:[%s5769_s11 + $0x28] sm:$0xf] %vm3194_vm4, %v3598_v10  ;;  %v3243_v1 = vadd.f32 %v3242_v57, %v3241_v53  ;;  %v3599_v17 = vpack.c.bf16 %v2983_v4, %v2983_v4  ;;  %v3307_v40 = vmul.f32 %v2983_v4, %v2983_v4  ;;  %v3248_v11 = vsel %vm2379_vm2, %v2983_v4, 0.0 }
 0x1f2   : > { %3203 = vst.msk [vmem:[%s5769_s11 + $0x20] sm:$0xf] %vm3194_vm4, %v3596_v63  ;;  %v3343_v19 = vsel %vm2379_vm2, %v3304_v60, 0.0  ;;  %v3597_v7 = vpack.c.bf16 %v2975_v25, %v2975_v25  ;;  %v3244_v16 = vsel %vm2379_vm2, %v2975_v25, 0.0  ;;  %v3305_v27 = vmul.f32 %v2975_v25, %v2975_v25 }
 0x1f3   : > { %v3344_v22 = vadd.f32 %v3343_v19, %v3342_v59  ;;  %3206 = vst.msk [vmem:[%s5769_s11 + $0x2c] sm:$0xf] %vm3194_vm4, %v3599_v17  ;;  %v3245_v38 = vadd.f32 %v3244_v16, %v3243_v1  ;;  %v3347_v55 = vsel %vm2379_vm2, %v3306_v23, 0.0  ;;  %v3349_v28 = vsel %vm2379_vm2, %v3307_v40, 0.0 }
 0x1f4   : > { %3204 = vst.msk [vmem:[%s5769_s11 + $0x24] sm:$0xf] %vm3194_vm4, %v3597_v7  ;;  %v3345_v47 = vsel %vm2379_vm2, %v3305_v27, 0.0 }
 0x1f5   : > { %v3247_v61 = vadd.f32 %v3246_v43, %v3245_v38  ;;  %v3346_v62 = vadd.f32 %v3345_v47, %v3344_v22 }
 0x1f7   : > { %v3249_v51 = vadd.f32 %v3248_v11, %v3247_v61  ;;  %v3348_v18 = vadd.f32 %v3347_v55, %v3346_v62 }
 0x1f9   : > { %v3350_v56 = vadd.f32 %v3349_v28, %v3348_v18 }
 0x20c   : > { %v3744_v21 = vpop.f32.mrb[12].mxu0 }
 0x20d   : > { %v2996_v5 = vadd.f32 %v3744_v21, %v5757_v24  ;;  %v2987_v15 = vpop.f32.mrb[13].mxu0 }
 0x20e   : > { %v2988_v14 = vadd.f32 %v5757_v24, %v2987_v15  ;;  %v3745_v48 = vpop.f32.mrb[14].mxu0 }
 0x20f   : > { %v3602_v6 = vpack.c.bf16 %v2996_v5, %v2996_v5  ;;  %v2999_v29 = vadd.f32 %v3745_v48, %v5757_v24  ;;  %v2990_v33 = vpop.f32.mrb[15].mxu0  ;;  %v3310_v0 = vmul.f32 %v2996_v5, %v2996_v5  ;;  %v3254_v9 = vsel %vm2379_vm2, %v2996_v5, 0.0 }
 0x210   : > { %v3600_v32 = vpack.c.bf16 %v2988_v14, %v2988_v14  ;;  %v3250_v52 = vsel %vm2379_vm2, %v2988_v14, 0.0  ;;  %v3308_v50 = vmul.f32 %v2988_v14, %v2988_v14  ;;  %v2991_v36 = vadd.f32 %v5757_v24, %v2990_v33 }
 0x211   : > { %3209 = vst.msk [vmem:[%s5769_s11 + $0x38] sm:$0xf] %vm3194_vm4, %v3602_v6  ;;  %v3251_v26 = vadd.f32 %v3250_v52, %v3249_v51  ;;  %v3603_v34 = vpack.c.bf16 %v2999_v29, %v2999_v29  ;;  %v3311_v58 = vmul.f32 %v2999_v29, %v2999_v29  ;;  %v3256_v35 = vsel %vm2379_vm2, %v2999_v29, 0.0 }
 0x212   : > { %3207 = vst.msk [vmem:[%s5769_s11 + $0x30] sm:$0xf] %vm3194_vm4, %v3600_v32  ;;  %v3351_v37 = vsel %vm2379_vm2, %v3308_v50, 0.0  ;;  %v3601_v3 = vpack.c.bf16 %v2991_v36, %v2991_v36  ;;  %v3252_v45 = vsel %vm2379_vm2, %v2991_v36, 0.0  ;;  %v3309_v20 = vmul.f32 %v2991_v36, %v2991_v36 }
 0x213   : > { %v3352_v54 = vadd.f32 %v3351_v37, %v3350_v56  ;;  %3210 = vst.msk [vmem:[%s5769_s11 + $0x3c] sm:$0xf] %vm3194_vm4, %v3603_v34  ;;  %v3253_v46 = vadd.f32 %v3252_v45, %v3251_v26  ;;  %v3355_v53 = vsel %vm2379_vm2, %v3310_v0, 0.0  ;;  %v3357_v59 = vsel %vm2379_vm2, %v3311_v58, 0.0 }
 0x214   : > { %3208 = vst.msk [vmem:[%s5769_s11 + $0x34] sm:$0xf] %vm3194_vm4, %v3601_v3  ;;  %v3353_v13 = vsel %vm2379_vm2, %v3309_v20, 0.0 }
 0x215   : > { %v3255_v39 = vadd.f32 %v3254_v9, %v3253_v46  ;;  %v3354_v44 = vadd.f32 %v3353_v13, %v3352_v54 }
 0x217   : > { %v3257_v8 = vadd.f32 %v3256_v35, %v3255_v39  ;;  %v3356_v49 = vadd.f32 %v3355_v53, %v3354_v44 }
 0x219   : > { %v3358_v2 = vadd.f32 %v3357_v59, %v3356_v49 }
 0x22c   : > { %v3748_v42 = vpop.f32.mrb[0].mxu1 }
 0x22d   : > { %v3012_v41 = vadd.f32 %v3748_v42, %v5757_v24  ;;  %v3003_v31 = vpop.f32.mrb[1].mxu1 }
 0x22e   : > { %v3004_v12 = vadd.f32 %v5757_v24, %v3003_v31  ;;  %v3749_v10 = vpop.f32.mrb[2].mxu1 }
 0x22f   : > { %v3606_v4 = vpack.c.bf16 %v3012_v41, %v3012_v41  ;;  %v3015_v30 = vadd.f32 %v3749_v10, %v5757_v24  ;;  %v3006_v63 = vpop.f32.mrb[3].mxu1  ;;  %v3314_v22 = vmul.f32 %v3012_v41, %v3012_v41  ;;  %v3262_v40 = vsel %vm2379_vm2, %v3012_v41, 0.0 }
 0x230   : > { %v3604_v57 = vpack.c.bf16 %v3004_v12, %v3004_v12  ;;  %v3258_v60 = vsel %vm2379_vm2, %v3004_v12, 0.0  ;;  %v3312_v25 = vmul.f32 %v3004_v12, %v3004_v12  ;;  %v3007_v1 = vadd.f32 %v5757_v24, %v3006_v63 }
 0x231   : > { %3213 = vst.msk [vmem:[%s5769_s11 + $0x48] sm:$0xf] %vm3194_vm4, %v3606_v4  ;;  %v3259_v17 = vadd.f32 %v3258_v60, %v3257_v8  ;;  %v3607_v19 = vpack.c.bf16 %v3015_v30, %v3015_v30  ;;  %v3315_v61 = vmul.f32 %v3015_v30, %v3015_v30  ;;  %v3264_v62 = vsel %vm2379_vm2, %v3015_v30, 0.0 }
 0x232   : > { %3211 = vst.msk [vmem:[%s5769_s11 + $0x40] sm:$0xf] %vm3194_vm4, %v3604_v57  ;;  %v3359_v7 = vsel %vm2379_vm2, %v3312_v25, 0.0  ;;  %v3605_v16 = vpack.c.bf16 %v3007_v1, %v3007_v1  ;;  %v3260_v23 = vsel %vm2379_vm2, %v3007_v1, 0.0  ;;  %v3313_v43 = vmul.f32 %v3007_v1, %v3007_v1 }
 0x233   : > { %v3360_v38 = vadd.f32 %v3359_v7, %v3358_v2  ;;  %3214 = vst.msk [vmem:[%s5769_s11 + $0x4c] sm:$0xf] %vm3194_vm4, %v3607_v19  ;;  %v3261_v27 = vadd.f32 %v3260_v23, %v3259_v17  ;;  %v3363_v51 = vsel %vm2379_vm2, %v3314_v22, 0.0  ;;  %v3365_v56 = vsel %vm2379_vm2, %v3315_v61, 0.0 }
 0x234   : > { %3212 = vst.msk [vmem:[%s5769_s11 + $0x44] sm:$0xf] %vm3194_vm4, %v3605_v16  ;;  %v3361_v11 = vsel %vm2379_vm2, %v3313_v43, 0.0 }
 0x235   : > { %v3263_v47 = vadd.f32 %v3262_v40, %v3261_v27  ;;  %v3362_v55 = vadd.f32 %v3361_v11, %v3360_v38 }
 0x237   : > { %v3265_v18 = vadd.f32 %v3264_v62, %v3263_v47  ;;  %v3364_v28 = vadd.f32 %v3363_v51, %v3362_v55 }
 0x239   : > { %v3366_v21 = vadd.f32 %v3365_v56, %v3364_v28 }
 0x24d   : > { %v3752_v5 = vpop.f32.mrb[4].mxu1 }
 0x24e   : > { %v3028_v15 = vadd.f32 %v3752_v5, %v5757_v24  ;;  %v3019_v14 = vpop.f32.mrb[5].mxu1 }
 0x24f   : > { %v3020_v48 = vadd.f32 %v5757_v24, %v3019_v14  ;;  %v3753_v6 = vpop.f32.mrb[6].mxu1 }
 0x250   : > { %v3610_v29 = vpack.c.bf16 %v3028_v15, %v3028_v15  ;;  %v3031_v33 = vadd.f32 %v3753_v6, %v5757_v24  ;;  %v3022_v32 = vpop.f32.mrb[7].mxu1  ;;  %v3318_v54 = vmul.f32 %v3028_v15, %v3028_v15  ;;  %v3270_v58 = vsel %vm2379_vm2, %v3028_v15, 0.0 }
 0x251   : > { %v3608_v52 = vpack.c.bf16 %v3020_v48, %v3020_v48  ;;  %v3266_v50 = vsel %vm2379_vm2, %v3020_v48, 0.0  ;;  %v3316_v36 = vmul.f32 %v3020_v48, %v3020_v48  ;;  %v3023_v26 = vadd.f32 %v5757_v24, %v3022_v32 }
 0x252   : > { %3217 = vst.msk [vmem:[%s5769_s11 + $0x58] sm:$0xf] %vm3194_vm4, %v3610_v29  ;;  %v3267_v34 = vadd.f32 %v3266_v50, %v3265_v18  ;;  %v3611_v37 = vpack.c.bf16 %v3031_v33, %v3031_v33  ;;  %v3319_v39 = vmul.f32 %v3031_v33, %v3031_v33  ;;  %v3272_v44 = vsel %vm2379_vm2, %v3031_v33, 0.0 }
 0x253   : > { %3215 = vst.msk [vmem:[%s5769_s11 + $0x50] sm:$0xf] %vm3194_vm4, %v3608_v52  ;;  %v3367_v3 = vsel %vm2379_vm2, %v3316_v36, 0.0  ;;  %v3609_v45 = vpack.c.bf16 %v3023_v26, %v3023_v26  ;;  %v3268_v0 = vsel %vm2379_vm2, %v3023_v26, 0.0  ;;  %v3317_v9 = vmul.f32 %v3023_v26, %v3023_v26 }
 0x254   : > { %v3368_v46 = vadd.f32 %v3367_v3, %v3366_v21  ;;  %3218 = vst.msk [vmem:[%s5769_s11 + $0x5c] sm:$0xf] %vm3194_vm4, %v3611_v37  ;;  %v3269_v20 = vadd.f32 %v3268_v0, %v3267_v34  ;;  %v3371_v8 = vsel %vm2379_vm2, %v3318_v54, 0.0  ;;  %v3373_v2 = vsel %vm2379_vm2, %v3319_v39, 0.0 }
 0x255   : > { %3216 = vst.msk [vmem:[%s5769_s11 + $0x54] sm:$0xf] %vm3194_vm4, %v3609_v45  ;;  %v3369_v35 = vsel %vm2379_vm2, %v3317_v9, 0.0 }
 0x256   : > { %v3271_v13 = vadd.f32 %v3270_v58, %v3269_v20  ;;  %v3370_v53 = vadd.f32 %v3369_v35, %v3368_v46 }
 0x258   : > { %v3273_v49 = vadd.f32 %v3272_v44, %v3271_v13  ;;  %v3372_v59 = vadd.f32 %v3371_v8, %v3370_v53 }
 0x25a   : > { %v3374_v42 = vadd.f32 %v3373_v2, %v3372_v59 }
 0x26d   : > { %v3756_v41 = vpop.f32.mrb[8].mxu1 }
 0x26e   : > { %v3044_v31 = vadd.f32 %v3756_v41, %v5757_v24  ;;  %v3035_v12 = vpop.f32.mrb[9].mxu1 }
 0x26f   : > { %v3036_v10 = vadd.f32 %v5757_v24, %v3035_v12  ;;  %v3757_v4 = vpop.f32.mrb[10].mxu1 }
 0x270   : > { %v3614_v30 = vpack.c.bf16 %v3044_v31, %v3044_v31  ;;  %v3047_v63 = vadd.f32 %v3757_v4, %v5757_v24  ;;  %v3038_v57 = vpop.f32.mrb[11].mxu1  ;;  %v3322_v38 = vmul.f32 %v3044_v31, %v3044_v31  ;;  %v3278_v61 = vsel %vm2379_vm2, %v3044_v31, 0.0 }
 0x271   : > { %v3612_v60 = vpack.c.bf16 %v3036_v10, %v3036_v10  ;;  %v3274_v25 = vsel %vm2379_vm2, %v3036_v10, 0.0  ;;  %v3320_v1 = vmul.f32 %v3036_v10, %v3036_v10  ;;  %v3039_v17 = vadd.f32 %v5757_v24, %v3038_v57 }
 0x272   : > { %3221 = vst.msk [vmem:[%s5769_s11 + $0x68] sm:$0xf] %vm3194_vm4, %v3614_v30  ;;  %v3275_v19 = vadd.f32 %v3274_v25, %v3273_v49  ;;  %v3615_v7 = vpack.c.bf16 %v3047_v63, %v3047_v63  ;;  %v3323_v47 = vmul.f32 %v3047_v63, %v3047_v63  ;;  %v3280_v55 = vsel %vm2379_vm2, %v3047_v63, 0.0 }
 0x273   : > { %3219 = vst.msk [vmem:[%s5769_s11 + $0x60] sm:$0xf] %vm3194_vm4, %v3612_v60  ;;  %v3375_v16 = vsel %vm2379_vm2, %v3320_v1, 0.0  ;;  %v3613_v23 = vpack.c.bf16 %v3039_v17, %v3039_v17  ;;  %v3276_v22 = vsel %vm2379_vm2, %v3039_v17, 0.0  ;;  %v3321_v40 = vmul.f32 %v3039_v17, %v3039_v17 }
 0x274   : > { %v3376_v27 = vadd.f32 %v3375_v16, %v3374_v42  ;;  %3222 = vst.msk [vmem:[%s5769_s11 + $0x6c] sm:$0xf] %vm3194_vm4, %v3615_v7  ;;  %v3277_v43 = vadd.f32 %v3276_v22, %v3275_v19  ;;  %v3379_v18 = vsel %vm2379_vm2, %v3322_v38, 0.0  ;;  %v3381_v21 = vsel %vm2379_vm2, %v3323_v47, 0.0 }
 0x275   : > { %3220 = vst.msk [vmem:[%s5769_s11 + $0x64] sm:$0xf] %vm3194_vm4, %v3613_v23  ;;  %v3377_v62 = vsel %vm2379_vm2, %v3321_v40, 0.0 }
 0x276   : > { %v3279_v11 = vadd.f32 %v3278_v61, %v3277_v43  ;;  %v3378_v51 = vadd.f32 %v3377_v62, %v3376_v27 }
 0x278   : > { %v3281_v28 = vadd.f32 %v3280_v55, %v3279_v11  ;;  %v3380_v56 = vadd.f32 %v3379_v18, %v3378_v51 }
 0x27a   : > { %v3382_v5 = vadd.f32 %v3381_v21, %v3380_v56 }
 0x28a   : > { %v3760_v15 = vpop.f32.mrb[12].mxu1 }
 0x28b   : > { %v3060_v14 = vadd.f32 %v3760_v15, %v5757_v24  ;;  %v3051_v48 = vpop.f32.mrb[13].mxu1 }
 0x28c   : > { %v3052_v6 = vadd.f32 %v5757_v24, %v3051_v48  ;;  %v3761_v29 = vpop.f32.mrb[14].mxu1 }
 0x28d   : > { %v3618_v33 = vpack.c.bf16 %v3060_v14, %v3060_v14  ;;  %v3063_v32 = vadd.f32 %v3761_v29, %v5757_v24  ;;  %v3054_v52 = vpop.f32.mrb[15].mxu1  ;;  %v3326_v46 = vmul.f32 %v3060_v14, %v3060_v14 }
 0x28e   : > { %v3616_v50 = vpack.c.bf16 %v3052_v6, %v3052_v6  ;;  %v3282_v36 = vsel %vm2379_vm2, %v3052_v6, 0.0  ;;  %v3324_v26 = vmul.f32 %v3052_v6, %v3052_v6  ;;  %v3055_v34 = vadd.f32 %v5757_v24, %v3054_v52 }
 0x28f   : > { %3225 = vst.msk [vmem:[%s5769_s11 + $0x78] sm:$0xf] %vm3194_vm4, %v3618_v33  ;;  %v3283_v37 = vadd.f32 %v3282_v36, %v3281_v28  ;;  %v3619_v3 = vpack.c.bf16 %v3063_v32, %v3063_v32  ;;  %v3286_v24 = vsel %vm2379_vm2, %v3060_v14, 0.0  ;;  %v3327_v39 = vmul.f32 %v3063_v32, %v3063_v32 }
 0x290   : > { %3223 = vst.msk [vmem:[%s5769_s11 + $0x70] sm:$0xf] %vm3194_vm4, %v3616_v50  ;;  %v3383_v45 = vsel %vm2379_vm2, %v3324_v26, 0.0  ;;  %v3617_v0 = vpack.c.bf16 %v3055_v34, %v3055_v34  ;;  %v3284_v54 = vsel %vm2379_vm2, %v3055_v34, 0.0  ;;  %v3325_v58 = vmul.f32 %v3055_v34, %v3055_v34 }
 0x291   : > { %v3384_v20 = vadd.f32 %v3383_v45, %v3382_v5  ;;  %3226 = vst.msk [vmem:[%s5769_s11 + $0x7c] sm:$0xf] %vm3194_vm4, %v3619_v3  ;;  %v3285_v9 = vadd.f32 %v3284_v54, %v3283_v37  ;;  %v3288_v44 = vsel %vm2379_vm2, %v3063_v32, 0.0  ;;  %v3387_v8 = vsel %vm2379_vm2, %v3326_v46, 0.0 }
 0x292   : > { %3224 = vst.msk [vmem:[%s5769_s11 + $0x74] sm:$0xf] %vm3194_vm4, %v3617_v0  ;;  %v3385_v35 = vsel %vm2379_vm2, %v3325_v58, 0.0  ;;  %v3389_v2 = vsel %vm2379_vm2, %v3327_v39, 0.0  ;;  %vm3399_vm2 = vcmask 58368  }
 0x293   : > { %v3287_v13 = vadd.f32 %v3286_v24, %v3285_v9  ;;  %v3386_v53 = vadd.f32 %v3385_v35, %v3384_v20 }
 0x295   : > { %v3289_v49 = vadd.f32 %v3288_v44, %v3287_v13  ;;  %v3388_v59 = vadd.f32 %v3387_v8, %v3386_v53 }
 0x297   : > { %v3290_v42 = vrot.slane %v3289_v49, 4  ;;  %v3390_v41 = vadd.f32 %v3389_v2, %v3388_v59 }
 0x299   : > { %v3291_v31 = vadd.f32 %v3290_v42, %v3289_v49  ;;  %v3391_v12 = vrot.slane %v3390_v41, 4 }
 0x29b   : > { %v3292_v10 = vrot.slane %v3291_v31, 2  ;;  %v3392_v4 = vadd.f32 %v3391_v12, %v3390_v41 }
 0x29d   : > { %v3293_v30 = vadd.f32 %v3292_v10, %v3291_v31  ;;  %v3393_v63 = vrot.slane %v3392_v4, 2 }
 0x29f   : > { %v3294_v57 = vrot.slane %v3293_v30, 1  ;;  %v3394_v60 = vadd.f32 %v3393_v63, %v3392_v4 }
 0x2a1   : > { %v3395_v25 = vrot.slane %v3394_v60, 1  ;;  %v3295_v1 = vadd.f32 %v3294_v57, %v3293_v30 }
 0x2a3   : > { %v3396_v17 = vadd.f32 %v3395_v25, %v3394_v60 }
 0x2a5   : > { %v3398_v19 = vsel %vm3397_vm12, %v3295_v1, %v3396_v17 }
 0x2a6   : > { %3400 = vst.msk [vmem:[%s265_s15] sm:$0x3] %vm3399_vm2, %v3398_v19 }
 0x2a7 PF: > { %s17_s21 = sadd.s32 1, %s3805_s21  }
 0x2a8   : > { %p14_p5 = scmp.ge.s32.totalorder %s17_s21, 4  }
 0x2aa   :  { %16 = sbr.rel (!%p14_p5) target bundleno = 1 (0x1), region = 82 }

// kernel: pruned_wide_basic_forward.5
= control target key start
LH: loop header
LB: loop body
LE: loop exit
PB: predicated region body
PF: predicated region fallthrough
CT: control target
= control target key end

     0   :  { %s4094_s27 = smov 0   ;;  %s6295_s0 = inlined_call_operand.vmem [shape: bf16[512,8], index: 0, kind: input, shape index: {}]   ;;  %s6296_s1 = inlined_call_operand.vmem [shape: bf16[512,8], index: 1, kind: input, shape index: {}]   ;;  %s6297_s2 = inlined_call_operand.vmem [shape: f32[1,8], index: 2, kind: input, shape index: {}]   ;;  %s6298_s3 = inlined_call_operand.vmem [shape: f32[1,8], index: 3, kind: input, shape index: {}]   ;;  %s6299_s4 = inlined_call_operand.vmem [shape: bf16[72,128], index: 4, kind: input, shape index: {}]   ;;  %s6300_s5 = inlined_call_operand.vmem [shape: f32[1,128], index: 5, kind: input, shape index: {}]   ;;  %s6301_s6 = inlined_call_operand.vmem [shape: bf16[8,128], index: 6, kind: input, shape index: {}]   ;;  %s6302_s7 = inlined_call_operand.vmem [shape: f32[1,128], index: 7, kind: input, shape index: {}]   ;;  %s6303_s8 = inlined_call_operand.vmem [shape: f32[512,128], index: 8, kind: output, shape index: {}]  }
   0x1 LB: > { %s3595_s28 = sadd.s32 4294967295, %s4037_s27   ;;  %p3599_p0 = scmp.ge.s32.totalorder %s4037_s27, 1  ;;  %s4037_s27 = sphi %s4094_s27, %s18_s27  }
   0x2   : > { %p274_p1 = scmp.lt.s32.totalorder %s4037_s27, 3 }
   0x4   : > { %p275_p2 = pnand %p3599_p0, %p274_p1 }
   0x6   : > { %278 = sbr.rel (%p275_p2) target bundleno = 660 (0x294), region = 52 }
   0xd   : > { %s3600_s29 = sshll.u32 %s3595_s28, 5  ;;  %v595_v0 = vlaneseq  ;;  %vm4039_vm0 = vmmov 1   ;;  %v4118_v6 = vld [vmem:[%s6297_s2] ss:$0 sm:$0xff]  ;;  %v6310_v8 = vmov 0   ;;  %vm540_vm4 = vcmask 1043456  }
   0xe   : > { %p314_p3 = scmp.lt.s32.totalorder %s3600_s29, 63  ;;  %vm1141_vm1 = vmpackc.low %vm4039_vm0, %vm4039_vm0  ;;  %v4124_v9 = vrot.slane %v6310_v8, 1  ;;  %v4160_v27 = vld [vmem:[%s6298_s3] ss:$0 sm:$0xff]  ;;  %vm6327_vm7 = vsmask.f32 3328 }
   0xf   : > { %v4102_v1 = vshrl.u32 %v595_v0, 7  ;;  %v4144_v13 = vsel %vm1141_vm1, 65537, %v6310_v8  ;;  %vm6331_vm15 = vsmask.f32 4352  ;;  %s4041_s19 = smov 24   ;;  %s4042_s20 = smov 48  }
  0x10   : > { %s6548_s29 = smov (!%p314_p3, %s3600_s29), 63  ;;  %6345 = vst [vmem:[#allocation2_spill] sm:$0xff] %v4124_v9  ;;  %s4043_s21 = smov 16  }
  0x11   : > { %v632_v2 = vand.u32 15, %v4102_v1  ;;  %v598_v3 = vadd.s32 16, %v4102_v1  ;;  %v4109_v4 = vadd.s32 32, %v4102_v1  ;;  %v4112_v5 = vadd.s32 8, %v4102_v1  ;;  %s3601_s30 = sshll.u32 %s6548_s29, 2  ;;  %s4044_s22 = smov 40  }
  0x12   : > { %v4121_v7 = vadd.s32 24, %v4102_v1  ;;  %v4127_v10 = vadd.s32 40, %v4102_v1  ;;  %v4130_v11 = vadd.s32 56, %v4102_v1  ;;  %s4137_s13 = scalar_lea.vmem %s6295_s0, %s3601_s30  ;;  %s4180_s18 = scalar_lea.vmem %s6296_s1, %s3601_s30 }
  0x13   : > { %vm4139_vm2 = vcmp.gt.s32.totalorder %v632_v2, 0  ;;  %v646_v14 = vand.u32 15, %v598_v3  ;;  %v660_v15 = vand.u32 15, %v4109_v4  ;;  %v3698_v16 = vld [vmem:[%s4137_s13] sm:$0xff]   ;;  %v3761_v17 = vld [vmem:[%s4137_s13 + $0x8] sm:$0xff]   ;;  %v639_v18 = vand.u32 15, %v4112_v5 }
  0x14   : > { %vm1140_vm3 = vmpackc.low %vm4139_vm2, %vm4139_vm2  ;;  %v653_v19 = vand.u32 15, %v4121_v7  ;;  %v667_v20 = vand.u32 15, %v4127_v10  ;;  %v681_v21 = vand.u32 15, %v4130_v11  ;;  %v3699_v22 = vunpack.c.l.bf16 %v3698_v16  ;;  %v3762_v26 = vld [vmem:[%s4137_s13 + $0x10] sm:$0xff]   ;;  %s4045_s23 = smov 8   ;;  %s4046_s26 = smov 32  }
  0x15   : > { %v3700_v23 = vunpack.c.h.bf16 %v3698_v16  ;;  %v3703_v24 = vunpack.c.l.bf16 %v3761_v17  ;;  %v3704_v25 = vunpack.c.h.bf16 %v3761_v17  ;;  %v1172_v28 = vsel %vm1140_vm3, 65537, %v6310_v8  ;;  %s4047_s14 = smov 56   ;;  %s4048_s17 = smov 64  }
  0x16   : > { %vm1014_vm5 = vcmp.gt.s32.totalorder %v646_v14, 0  ;;  %v3707_v29 = vunpack.c.l.bf16 %v3762_v26  ;;  %v3708_v30 = vunpack.c.h.bf16 %v3762_v26  ;;  %v405_v31 = vmul.f32 %v3699_v22, %v4118_v6 }
  0x17   : > { %v406_v32 = vmul.f32 %v3700_v23, %v4118_v6  ;;  %v407_v33 = vmul.f32 %v3703_v24, %v4118_v6  ;;  %v408_v34 = vmul.f32 %v3704_v25, %v4118_v6  ;;  %vm1142_vm6 = vmpackc.low %vm1014_vm5, %vm1014_vm5  ;;  %v3608_v35 = vcombine.low %v1172_v28, %v4144_v13  ;;  %v3763_v28 = vld [vmem:[%s4137_s13 + $0x18] sm:$0xff]  }
  0x18   : > { %v1174_v36 = vsel %vm1142_vm6, 65537, %v6310_v8  ;;  %v409_v37 = vmul.f32 %v3707_v29, %v4118_v6  ;;  %v410_v38 = vmul.f32 %v3708_v30, %v4118_v6  ;;  %v444_v39 = vadd.f32 %v4160_v27, %v405_v31 }
  0x19   : > { %v445_v40 = vadd.f32 %v4160_v27, %v406_v32  ;;  %v446_v41 = vadd.f32 %v4160_v27, %v407_v33  ;;  %v447_v42 = vadd.f32 %v4160_v27, %v408_v34  ;;  %v1254_v43 = vshrl.u32 %v3608_v35, 16 }
  0x1a   : > { %v1257_v44 = vshll.u32 %v3608_v35, 16  ;;  %v3609_v45 = vcombine.low %v1174_v36, %v4144_v13  ;;  %v448_v46 = vadd.f32 %v4160_v27, %v409_v37  ;;  %v476_v47 = vmax.f32 %v444_v39, 0.0 }
  0x1b   : > { %v477_v48 = vmax.f32 %v445_v40, 0.0  ;;  %v478_v49 = vmax.f32 %v446_v41, 0.0  ;;  %v479_v50 = vmax.f32 %v447_v42, 0.0  ;;  %v1256_v51 = vrot.slane %v1254_v43, 4 }
  0x1c   : > { %v1259_v52 = vrot.slane %v1257_v44, 5  ;;  %v1262_v53 = vshrl.u32 %v3609_v45, 16  ;;  %v1265_v54 = vshll.u32 %v3609_v45, 16  ;;  %v449_v57 = vadd.f32 %v4160_v27, %v410_v38 }
  0x1d   : > { %v508_v55 = vpack.c.bf16 %v477_v48, %v476_v47  ;;  %v509_v56 = vpack.c.bf16 %v479_v50, %v478_v49  ;;  %v480_v58 = vmax.f32 %v448_v46, 0.0  ;;  %vm1016_vm8 = vcmp.gt.s32.totalorder %v660_v15, 0 }
  0x1e   : > { %v1260_v59 = vor.u32 %v1259_v52, %v1256_v51  ;;  %v1264_v60 = vrot.slane %v1262_v53, 4  ;;  %v1267_v61 = vrot.slane %v1265_v54, 5  ;;  %v481_v0 = vmax.f32 %v449_v57, 0.0  ;;  %vm1144_vm9 = vmpackc.low %vm1016_vm8, %vm1016_vm8 }
  0x1f   : > { %v541_v62 = vrot.slane %v508_v55, 4  ;;  %v542_v63 = vrot.slane %v509_v56, 4  ;;  %vm1045_vm10 = vcmp.lt.s32.totalorder %v639_v18, 15  ;;  %v1176_v3 = vsel %vm1144_vm9, 65537, %v6310_v8 }
  0x20   : > { %vm1780_vm11 = vcmp.ne.s16.totalorder %v1260_v59, 0  ;;  %v1268_v2 = vor.u32 %v1267_v61, %v1264_v60  ;;  %vm4186_vm12 = vcmp.lt.s32.totalorder %v653_v19, 15  ;;  %vm1493_vm13 = vmpackc.low %vm1045_vm10, %vm1045_vm10  ;;  %v4196_v12 = vpack.c.bf16 %v481_v0, %v480_v58 }
  0x21   : > { %v4191_v5 = vsel %vm540_vm4, 0, %v541_v62  ;;  %v4194_v7 = vsel %vm540_vm4, %v541_v62, %v542_v63  ;;  %v3610_v14 = vcombine.low %v1176_v3, %v4144_v13  ;;  %vm1495_vm14 = vmpackc.low %vm4186_vm12, %vm4186_vm12  ;;  %v1525_v18 = vsel %vm1493_vm13, 65537, %v6310_v8 }
  0x22   : > { %v1781_v15 = vsel %vm1780_vm11, %v4191_v5, 0  ;;  %v4204_v16 = vsel %vm6327_vm7, %v1260_v59, %v1268_v2  ;;  %v1816_v17 = vsel %vm1780_vm11, %v4194_v7, 0  ;;  %v544_v19 = vrot.slane %v4196_v12, 4 }
  0x23   : > { %2118 = vrot.lane.b32.xlu0 %v1781_v15, %s4041_s19  ;;  %vm1396_vm0 = vcmp.ne.s16.totalorder %v4204_v16, 0  ;;  %v1271_v22 = vshrl.u32 %v3610_v14, 16  ;;  %v1274_v23 = vshll.u32 %v3610_v14, 16  ;;  %v1527_v25 = vsel %vm1495_vm14, 65537, %v6310_v8 }
  0x24   : > { %v1782_v24 = vsel %vm1396_vm0, %v4194_v7, 0  ;;  %v3624_v26 = vcombine.low %v4144_v13, %v1525_v18  ;;  %vm1049_vm1 = vcmp.lt.s32.totalorder %v667_v20, 15  ;;  %v4223_v29 = vsel %vm540_vm4, %v542_v63, %v544_v19 }
  0x25   : > { %2120 = vrot.lane.b32.xlu1 %v1782_v24, %s4041_s19  ;;  %v1273_v30 = vrot.slane %v1271_v22, 4  ;;  %v1276_v31 = vrot.slane %v1274_v23, 5  ;;  %v3625_v32 = vcombine.low %v4144_v13, %v1527_v25  ;;  %vm1497_vm2 = vmpackc.low %vm1049_vm1, %vm1049_vm1  ;;  %vm1051_vm3 = vcmp.lt.s32.totalorder %v681_v21, 15 }
  0x26   : > { %v1606_v33 = vshrl.u32 %v3624_v26, 16  ;;  %v1609_v34 = vshll.u32 %v3624_v26, 16  ;;  %v1529_v35 = vsel %vm1497_vm2, 65537, %v6310_v8  ;;  %vm1499_vm5 = vmpackc.low %vm1051_vm3, %vm1051_vm3  ;;  %v3711_v41 = vunpack.c.l.bf16 %v3763_v28 }
  0x27   : > { %v4229_v10 = vor.u32 %v1276_v31, %v1273_v30  ;;  %v1614_v20 = vshrl.u32 %v3625_v32, 16  ;;  %v1617_v36 = vshll.u32 %v3625_v32, 16  ;;  %v3626_v37 = vcombine.low %v4144_v13, %v1529_v35 }
  0x28   : > { %v1608_v38 = vrot.slane %v1606_v33, 3  ;;  %v1611_v39 = vrot.slane %v1609_v34, 4  ;;  %v1531_v40 = vsel %vm1499_vm5, 65537, %v6310_v8  ;;  %v3712_v50 = vunpack.c.h.bf16 %v3763_v28 }
  0x29   : > { %v4235_v42 = vsel %vm6327_vm7, %v1268_v2, %v4229_v10  ;;  %2293 = vrot.lane.b32.xlu1 %v1816_v17, %s4042_s20  ;;  %v1616_v11 = vrot.slane %v1614_v20, 3  ;;  %v1619_v21 = vrot.slane %v1617_v36, 4  ;;  %v1623_v43 = vshrl.u32 %v3626_v37, 16 }
  0x2a   : > { %vm1397_vm6 = vcmp.ne.s16.totalorder %v4235_v42, 0  ;;  %v4239_v44 = vor.u32 %v1611_v39, %v1608_v38  ;;  %v1626_v45 = vshll.u32 %v3626_v37, 16  ;;  %v3627_v46 = vcombine.low %v4144_v13, %v1531_v40 }
  0x2b   : > { %v1783_v47 = vsel %vm1397_vm6, %v4223_v29, 0  ;;  %v1620_v48 = vor.u32 %v1619_v21, %v1616_v11  ;;  %v1625_v49 = vrot.slane %v1623_v43, 3  ;;  %v411_v56 = vmul.f32 %v3711_v41, %v4118_v6  ;;  %v3764_v21 = vld [vmem:[%s4137_s13 + $0x20] sm:$0xff]  }
  0x2c   : > { %2122 = vrot.lane.b32.xlu0 %v1783_v47, %s4041_s19  ;;  %v1628_v51 = vrot.slane %v1626_v45, 4  ;;  %v1632_v52 = vshrl.u32 %v3627_v46, 16  ;;  %v1635_v53 = vshll.u32 %v3627_v46, 16  ;;  %vm1798_vm8 = vcmp.ne.s16.totalorder %v4239_v44, 0 }
  0x2d   : > { %v4249_v54 = vsel %vm6331_vm15, %v4239_v44, %v1620_v48  ;;  %v1799_v55 = vsel %vm1798_vm8, %v4191_v5, 0  ;;  %v412_v57 = vmul.f32 %v3712_v50, %v4118_v6  ;;  %vm2033_vm10 = vcmask 1046528  }
  0x2e   : > { %vm1748_vm9 = vcmp.ne.s16.totalorder %v4249_v54, 0  ;;  %v1629_v58 = vor.u32 %v1628_v51, %v1625_v49  ;;  %v1634_v59 = vrot.slane %v1632_v52, 3  ;;  %v1637_v60 = vrot.slane %v1635_v53, 4 }
  0x2f   : > { %v1764_v61 = vsel %vm1748_vm9, %v4191_v5, 0  ;;  %v1800_v62 = vsel %vm1748_vm9, %v4194_v7, 0  ;;  %v450_v63 = vadd.f32 %v4160_v27, %v411_v56  ;;  %v2210_v4 = vrot.slane %v1799_v55, 1 }
  0x30   : > { %v2035_v0 = vrot.slane %v1764_v61, 1  ;;  %v4265_v2 = vsel %vm6331_vm15, %v1620_v48, %v1629_v58  ;;  %v4267_v3 = vor.u32 %v1637_v60, %v1634_v59  ;;  %v451_v14 = vadd.f32 %v4160_v27, %v412_v57 }
  0x31   : > { %vm1749_vm11 = vcmp.ne.s16.totalorder %v4265_v2, 0  ;;  %v482_v15 = vmax.f32 %v450_v63, 0.0  ;;  %v1863_v17 = vshll.u32 %v4194_v7, 16  ;;  %v2211_v24 = vrot.slane %v1800_v62, 1 }
  0x32   : > { %v2036_v18 = vsel %vm2033_vm10, %v4124_v9, %v2035_v0  ;;  %v1765_v22 = vsel %vm1749_vm11, %v4194_v7, 0  ;;  %v4279_v23 = vsel %vm6331_vm15, %v1629_v58, %v4267_v3  ;;  %v1801_v26 = vsel %vm1749_vm11, %v4223_v29, 0  ;;  %v3765_v58 = vld [vmem:[%s4137_s13 + $0x28] sm:$0xff]  }
  0x33   : > { %2067 = vrot.lane.b32.xlu1 %v2036_v18, %s4043_s21  ;;  %v2037_v25 = vrot.slane %v1765_v22, 1  ;;  %vm1750_vm12 = vcmp.ne.s16.totalorder %v4279_v23, 0  ;;  %v483_v28 = vmax.f32 %v451_v14, 0.0  ;;  %v2213_v31 = vrot.slane %v1801_v26, 1 }
  0x34   : > { %v4289_v30 = vsel %vm1750_vm12, %v4223_v29, 0  ;;  %v1865_v32 = vrot.slane %v1863_v17, 1  ;;  %v1867_v33 = vshrl.u32 %v4194_v7, 16  ;;  %v1871_v36 = vshll.u32 %v4223_v29, 16 }
  0x35   : > { %v2038_v34 = vsel %vm2033_vm10, %v2035_v0, %v2037_v25  ;;  %v2039_v35 = vrot.slane %v4289_v30, 1  ;;  %v4294_v20 = vpack.c.bf16 %v483_v28, %v482_v15  ;;  %v1855_v37 = vshll.u32 %v4191_v5, 16 }
  0x36   : > { %2069 = vrot.lane.b32.xlu0 %v2038_v34, %s4043_s21  ;;  %v1859_v38 = vshrl.u32 %v4191_v5, 16  ;;  %v2212_v40 = vsel %vm2033_vm10, %v2210_v4, %v2211_v24  ;;  %v2214_v43 = vsel %vm2033_vm10, %v2211_v24, %v2213_v31  ;;  %v1869_v46 = vor.u32 %v1867_v33, %v1865_v32 }
  0x37   : > { %v2040_v39 = vsel %vm2033_vm10, %v2037_v25, %v2039_v35  ;;  %v546_v41 = vrot.slane %v4294_v20, 4  ;;  %v1857_v11 = vrot.slane %v1855_v37, 1  ;;  %v1873_v47 = vrot.slane %v1871_v36, 1 }
  0x38   : > { %2071 = vrot.lane.b32.xlu1 %v2040_v39, %s4043_s21  ;;  %vm1848_vm13 = vsmask.f32 7424  ;;  %v1875_v50 = vshrl.u32 %v4223_v29, 16  ;;  %v3715_v51 = vunpack.c.l.bf16 %v3764_v21  ;;  %v3716_v53 = vunpack.c.h.bf16 %v3764_v21 }
  0x39   : > { %v4313_v45 = vsel %vm540_vm4, %v544_v19, %v546_v41  ;;  %v1861_v49 = vor.u32 %v1859_v38, %v1857_v11  ;;  %v605_v19 = vadd.s32 72, %v4102_v1  ;;  %v4330_v56 = vsel %vm1848_vm13, %v1869_v46, %v1873_v47  ;;  %v4006_v38 = vld [vmem:[%s6299_s4] sm:$0xff]  }
  0x3a   : > { %2243 = vrot.lane.b32.xlu0 %v2212_v40, %s4044_s22  ;;  %v4319_v48 = vsel %vm1750_vm12, %v4313_v45, 0  ;;  %v1879_v52 = vshll.u32 %v4313_v45, 16  ;;  %v413_v57 = vmul.f32 %v3715_v51, %v4118_v6  ;;  %v1858_v59 = vsel %vm1848_vm13, %v4124_v9, %v1857_v11  ;;  %3814 = vmatprep.subr.bf16.mxu1 %v4006_v38 }
  0x3b   : > { %v2215_v12 = vrot.slane %v4319_v48, 1  ;;  %v1866_v60 = vsel %vm1848_vm13, %v1861_v49, %v1865_v32  ;;  %v1877_v61 = vor.u32 %v1875_v50, %v1873_v47  ;;  %v414_v62 = vmul.f32 %v3716_v53, %v4118_v6  ;;  %3815 = vmatpush3.bf16.msra.mxu1 %v4006_v38 }
  0x3c   : > { %2245 = vrot.lane.b32.xlu1 %v2214_v43, %s4044_s22  ;;  %v452_v63 = vadd.f32 %v4160_v27, %v413_v57  ;;  %v607_v0 = vadd.s32 88, %v4102_v1  ;;  %v695_v4 = vand.u32 15, %v605_v19  ;;  %v602_v14 = vadd.s32 48, %v4102_v1 }
  0x3d   : > { %v2216_v55 = vsel %vm2033_vm10, %v2213_v31, %v2215_v12  ;;  %v4344_v15 = vrot.slane %v1879_v52, 1  ;;  %v453_v17 = vadd.f32 %v4160_v27, %v414_v62  ;;  %v604_v18 = vadd.s32 64, %v4102_v1 }
  0x3e   : > { %2247 = vrot.lane.b32.xlu0 %v2216_v55, %s4044_s22  ;;  %v3719_v22 = vunpack.c.l.bf16 %v3765_v58  ;;  %v484_v24 = vmax.f32 %v452_v63, 0.0  ;;  %v709_v25 = vand.u32 15, %v607_v0  ;;  %vm1053_vm14 = vcmp.lt.s32.totalorder %v695_v4, 15  ;;  %v4007_v55 = vld [vmem:[%s6299_s4 + $0x8] sm:$0xff]   ;;  %v3766_v4 = vld [vmem:[%s4137_s13 + $0x30] sm:$0xff]  }
  0x3f   : > { %v674_v26 = vand.u32 15, %v602_v14  ;;  %v4352_v28 = vsel %vm1798_vm8, %v4194_v7, 0  ;;  %v485_v31 = vmax.f32 %v453_v17, 0.0  ;;  %vm1501_vm1 = vmpackc.low %vm1053_vm14, %vm1053_vm14  ;;  %v688_v32 = vand.u32 15, %v604_v18  ;;  %3816 = vmatprep.subr.bf16.mxu1 %v4007_v55 }
  0x40   : > { %1986 = vrot.lane.b32.xlu1 %v4330_v56, %s4045_s23  ;;  %v3720_v33 = vunpack.c.h.bf16 %v3765_v58  ;;  %vm1055_vm2 = vcmp.lt.s32.totalorder %v709_v25, 15  ;;  %v1533_v34 = vsel %vm1501_vm1, 65537, %v6310_v8  ;;  %v415_v37 = vmul.f32 %v3719_v22, %v4118_v6  ;;  %3817 = vmatpush3.bf16.msra.mxu1 %v4007_v55 }
  0x41   : > { %vm4355_vm3 = vcmp.gt.s32.totalorder %v674_v26, 0  ;;  %v4364_v44 = vpack.c.bf16 %v485_v31, %v484_v24  ;;  %vm1503_vm5 = vmpackc.low %vm1055_vm2, %vm1055_vm2  ;;  %v3628_v39 = vcombine.low %v4144_v13, %v1533_v34  ;;  %vm4367_vm8 = vcmp.gt.s32.totalorder %v688_v32, 0  ;;  %v4008_v26 = vld [vmem:[%s6299_s4 + $0x10] sm:$0xff]  }
  0x42   : > { %1982 = vrot.lane.b32.xlu0 %v1858_v59, %s4045_s23  ;;  %v4373_v11 = vsel %vm1848_vm13, %v1877_v61, %v4344_v15  ;;  %v4378_v21 = vsel %vm1748_vm9, %v4223_v29, 0  ;;  %v2378_v43 = vrot.slane %v4352_v28, 1  ;;  %v1535_v46 = vsel %vm1503_vm5, 65537, %v6310_v8  ;;  %vm1146_vm14 = vmpackc.low %vm4355_vm3, %vm4355_vm3  ;;  %3818 = vmatprep.subr.bf16.mxu1 %v4008_v26 }
  0x43   : > { %v548_v47 = vrot.slane %v4364_v44, 4  ;;  %v3629_v49 = vcombine.low %v4144_v13, %v1535_v46  ;;  %v1641_v50 = vshrl.u32 %v3628_v39, 16  ;;  %v1644_v51 = vshll.u32 %v3628_v39, 16  ;;  %vm1148_vm9 = vmpackc.low %vm4367_vm8, %vm4367_vm8 }
  0x44   : > { %2159 = vrot.lane.b32.xlu1 %v1866_v60, %s4046_s26  ;;  %v1178_v54 = vsel %vm1146_vm14, 65537, %v6310_v8  ;;  %v1180_v19 = vsel %vm1148_vm9, 65537, %v6310_v8  ;;  %v416_v52 = vmul.f32 %v3720_v33, %v4118_v6  ;;  %v454_v53 = vadd.f32 %v4160_v27, %v415_v37  ;;  %3819 = vmatpush3.bf16.msra.mxu1 %v4008_v26 }
  0x45   : > { %v4405_v57 = vsel %vm540_vm4, %v546_v41, %v548_v47  ;;  %v1643_v58 = vrot.slane %v1641_v50, 3  ;;  %v1646_v59 = vrot.slane %v1644_v51, 4  ;;  %v1818_v61 = vsel %vm1397_vm6, %v4313_v45, 0 }
  0x46   : > { %1984 = vrot.lane.b32.xlu0 %v1866_v60, %s4045_s23  ;;  %6354 = vst [vmem:[#allocation3_spill] sm:$0xff] %v4405_v57  ;;  %v1650_v60 = vshrl.u32 %v3629_v49, 16  ;;  %v2379_v62 = vrot.slane %v4378_v21, 1  ;;  %v1653_v63 = vshll.u32 %v3629_v49, 16  ;;  %v3611_v0 = vcombine.low %v1178_v54, %v4144_v13  ;;  %v4009_v54 = vld [vmem:[%s6299_s4 + $0x18] sm:$0xff]  }
  0x47   : > { %v1883_v20 = vshrl.u32 %v4313_v45, 16  ;;  %v1647_v41 = vor.u32 %v1646_v59, %v1643_v58  ;;  %v3612_v17 = vcombine.low %v1180_v19, %v4144_v13  ;;  %v1817_v18 = vsel %vm1396_vm0, %v4223_v29, 0  ;;  %3820 = vmatprep.subr.bf16.mxu1 %v4009_v54 }
  0x48   : > { %2163 = vrot.lane.b32.xlu1 %v4373_v11, %s4046_s26  ;;  %v1652_v14 = vrot.slane %v1650_v60, 3  ;;  %v1887_v22 = vshll.u32 %v4405_v57, 16  ;;  %v1655_v24 = vrot.slane %v1653_v63, 4  ;;  %v455_v25 = vadd.f32 %v4160_v27, %v416_v52  ;;  %3821 = vmatpush3.bf16.msra.mxu1 %v4009_v54  ;;  %v4466_v60 = vld [vmem:[%s6299_s4 + $0x20] ss:$0 sps:$4 sm:$0xff]  }
  0x49   : > { %v1280_v28 = vshrl.u32 %v3611_v0, 16  ;;  %v1283_v31 = vshll.u32 %v3611_v0, 16  ;;  %v486_v32 = vmax.f32 %v454_v53, 0.0  ;;  %v3723_v33 = vunpack.c.l.bf16 %v3766_v4  ;;  %3986 = vmatprep.subr.msk.bf16.mxu1 %vm540_vm4, %v4466_v60 }
  0x4a   : > { %2161 = vrot.lane.b32.xlu0 %v4330_v56, %s4046_s26  ;;  %v4428_v34 = vsel %vm6331_vm15, %v4267_v3, %v1647_v41  ;;  %v4430_v36 = vor.u32 %v1655_v24, %v1652_v14  ;;  %v1289_v37 = vshrl.u32 %v3612_v17, 16  ;;  %v1292_v38 = vshll.u32 %v3612_v17, 16  ;;  %v4494_v14 = vld [vmem:[%s6301_s6] sm:$0xf] }
  0x4b   : > { %v2380_v39 = vsel %vm2033_vm10, %v2378_v43, %v2379_v62  ;;  %v1885_v40 = vor.u32 %v1883_v20, %v4344_v15  ;;  %v1834_v46 = vsel %vm1749_vm11, %v4313_v45, 0  ;;  %v4440_v3 = vrot.slane %v1887_v22, 1  ;;  %3987 = vmatprep.subr.msk.bf16.mxu0 %vm540_vm4, %v4494_v14 }
  0x4c   : > { %2297 = vrot.lane.b32.xlu1 %v1818_v61, %s4042_s20  ;;  %v4444_v49 = vsel %vm6331_vm15, %v1647_v41, %v4430_v36  ;;  %v487_v50 = vmax.f32 %v455_v25, 0.0  ;;  %v3724_v51 = vunpack.c.h.bf16 %v3766_v4  ;;  %vm1751_vm1 = vcmp.ne.s16.totalorder %v4428_v34, 0 }
  0x4d   : > { %v1282_v2 = vrot.slane %v1280_v28, 4  ;;  %v1285_v15 = vrot.slane %v1283_v31, 5  ;;  %v417_v43 = vmul.f32 %v3723_v33, %v4118_v6  ;;  %vm1752_vm11 = vcmp.ne.s16.totalorder %v4444_v49, 0 }
  0x4e   : > { %2295 = vrot.lane.b32.xlu0 %v1817_v18, %s4042_s20  ;;  %v1291_v19 = vrot.slane %v1289_v37, 4  ;;  %v1294_v52 = vrot.slane %v1292_v38, 5  ;;  %v4454_v53 = vpack.c.bf16 %v487_v50, %v486_v32  ;;  %v4460_v55 = vsel %vm1848_vm13, %v1885_v40, %v4440_v3 }
  0x4f   : > { %v2381_v58 = vrot.slane %v1834_v46, 1  ;;  %v418_v59 = vmul.f32 %v3724_v51, %v4118_v6  ;;  %v1767_v61 = vsel %vm1751_vm1, %v4313_v45, 0  ;;  %v4480_v63 = vsel %vm1752_vm11, %v4405_v57, 0 }
  0x50   : > { %2330 = vrot.lane.b32.xlu1 %v4373_v11, %s4047_s14  ;;  %v1286_v0 = vor.u32 %v1285_v15, %v1282_v2  ;;  %v4482_v4 = vor.u32 %v1294_v52, %v1291_v19  ;;  %v550_v20 = vrot.slane %v4454_v53, 4  ;;  %v456_v41 = vadd.f32 %v4160_v27, %v417_v43  ;;  %v3767_v43 = vld [vmem:[%s4137_s13 + $0x38] sm:$0xff]  }
  0x51   : > { %v457_v23 = vadd.f32 %v4160_v27, %v418_v59  ;;  %v2382_v17 = vsel %vm2033_vm10, %v2379_v62, %v2381_v58  ;;  %v2041_v22 = vrot.slane %v1767_v61, 1  ;;  %v2043_v24 = vrot.slane %v4480_v63, 1  ;;  %v3768_v61 = vld [vmem:[%s4137_s13 + $0x40] sm:$0xff]  }
  0x52   : > { %2328 = vrot.lane.b32.xlu0 %v4330_v56, %s4047_s14  ;;  %v4472_v56 = vsel %vm1750_vm12, %v4405_v57, 0  ;;  %v488_v25 = vmax.f32 %v456_v41, 0.0  ;;  %v609_v28 = vadd.s32 104, %v4102_v1  ;;  %v611_v31 = vadd.s32 120, %v4102_v1 }
  0x53   : > { %v2383_v18 = vrot.slane %v4472_v56, 1  ;;  %v489_v26 = vmax.f32 %v457_v23, 0.0  ;;  %v4509_v21 = vsel %vm6327_vm7, %v1286_v0, %v4482_v4  ;;  %v4516_v62 = vsel %vm540_vm4, %v548_v47, %v550_v20 }
  0x54   : > { %2410 = vrot.lane.b32.xlu1 %v2380_v39, %s4048_s17  ;;  %6355 = vst [vmem:[#allocation4_spill] sm:$0xff] %v4516_v62  ;;  %v606_v32 = vadd.s32 80, %v4102_v1  ;;  %v1891_v33 = vshrl.u32 %v4405_v57, 16  ;;  %v723_v37 = vand.u32 15, %v609_v28  ;;  %v4527_v39 = vsel %vm6327_vm7, %v4229_v10, %v1286_v0 }
  0x55   : > { %v2384_v38 = vsel %vm2033_vm10, %v2381_v58, %v2383_v18  ;;  %v737_v44 = vand.u32 15, %v611_v31  ;;  %vm6304_vm12 = vcmp.ne.s16.totalorder %v4509_v21, 0  ;;  %v1895_v47 = vshll.u32 %v4516_v62, 16 }
  0x56   : > { %2332 = vrot.lane.b32.xlu0 %v4460_v55, %s4047_s14  ;;  %v4533_v40 = vpack.c.bf16 %v489_v26, %v488_v25  ;;  %vm1057_vm2 = vcmp.lt.s32.totalorder %v723_v37, 15  ;;  %v2044_v46 = vsel %vm2033_vm10, %v2041_v22, %v2043_v24  ;;  %v702_v10 = vand.u32 15, %v606_v32 }
  0x57   : > { %vm1059_vm3 = vcmp.lt.s32.totalorder %v737_v44, 15  ;;  %vm1505_vm5 = vmpackc.low %vm1057_vm2, %vm1057_vm2  ;;  %v2042_v51 = vsel %vm2033_vm10, %v2039_v35, %v2041_v22  ;;  %v1893_v54 = vor.u32 %v1891_v33, %v4440_v3  ;;  %v1803_v2 = vsel %vm1751_vm1, %v4405_v57, 0 }
  0x58   : > { %1988 = vrot.lane.b32.xlu1 %v4373_v11, %s4045_s23  ;;  %v608_v11 = vadd.s32 96, %v4102_v1  ;;  %vm1507_vm8 = vmpackc.low %vm1059_vm3, %vm1059_vm3  ;;  %v1537_v15 = vsel %vm1505_vm5, 65537, %v6310_v8  ;;  %v1785_v19 = vsel %vm6304_vm12, %v4405_v57, 0  ;;  %vm6305_vm14 = vcmp.ne.s16.totalorder %v4527_v39, 0 }
  0x59   : > { %v1539_v30 = vsel %vm1507_vm8, 65537, %v6310_v8  ;;  %v3630_v35 = vcombine.low %v4144_v13, %v1537_v15  ;;  %v1897_v3 = vrot.slane %v1895_v47, 1  ;;  %v4558_v52 = vsel %vm1752_vm11, %v4516_v62, 0 }
  0x5a   : > { %2412 = vrot.lane.b32.xlu0 %v2382_v17, %s4048_s17  ;;  %v716_v50 = vand.u32 15, %v608_v11  ;;  %v552_v58 = vrot.slane %v4533_v40, 4  ;;  %v3631_v59 = vcombine.low %v4144_v13, %v1539_v30  ;;  %vm4562_vm9 = vcmp.gt.s32.totalorder %v702_v10, 0 }
  0x5b   : > { %v3727_v41 = vunpack.c.l.bf16 %v3767_v43  ;;  %v3728_v23 = vunpack.c.h.bf16 %v3767_v43  ;;  %v1659_v17 = vshrl.u32 %v3630_v35, 16  ;;  %v1662_v22 = vshll.u32 %v3630_v35, 16  ;;  %vm1150_vm3 = vmpackc.low %vm4562_vm9, %vm4562_vm9 }
  0x5c   : > { %1990 = vrot.lane.b32.xlu1 %v4460_v55, %s4045_s23  ;;  %vm4566_vm2 = vcmp.gt.s32.totalorder %v716_v50, 0  ;;  %v1668_v25 = vshrl.u32 %v3631_v59, 16  ;;  %v1671_v26 = vshll.u32 %v3631_v59, 16  ;;  %v1784_v28 = vsel %vm6305_vm14, %v4313_v45, 0 }
  0x5d   : > { %v2217_v31 = vrot.slane %v1803_v2, 1  ;;  %v2219_v32 = vrot.slane %v4558_v52, 1  ;;  %v4580_v11 = vsel %vm1848_vm13, %v1893_v54, %v1897_v3  ;;  %v4587_v33 = vsel %vm540_vm4, %v550_v20, %v552_v58  ;;  %vm1152_vm5 = vmpackc.low %vm4566_vm2, %vm4566_vm2 }
  0x5e   : > { %2414 = vrot.lane.b32.xlu0 %v2384_v38, %s4048_s17  ;;  %6360 = vst [vmem:[#allocation5_spill] sm:$0xff] %v4587_v33  ;;  %v419_v37 = vmul.f32 %v3727_v41, %v4118_v6  ;;  %v420_v38 = vmul.f32 %v3728_v23, %v4118_v6  ;;  %v1661_v44 = vrot.slane %v1659_v17, 3  ;;  %v1664_v47 = vrot.slane %v1662_v22, 4 }
  0x5f   : > { %v1673_v10 = vrot.slane %v1671_v26, 4  ;;  %v1182_v53 = vsel %vm1150_vm3, 65537, %v6310_v8  ;;  %v1899_v20 = vshrl.u32 %v4516_v62, 16  ;;  %v1184_v50 = vsel %vm1152_vm5, 65537, %v6310_v8 }
  0x60   : > { %2075 = vrot.lane.b32.xlu1 %v2044_v46, %s4043_s21  ;;  %v1670_v46 = vrot.slane %v1668_v25, 3  ;;  %v1903_v54 = vshll.u32 %v4587_v33, 16  ;;  %v458_v2 = vadd.f32 %v4160_v27, %v419_v37  ;;  %v459_v15 = vadd.f32 %v4160_v27, %v420_v38 }
  0x61   : > { %v1665_v43 = vor.u32 %v1664_v47, %v1661_v44  ;;  %v3613_v30 = vcombine.low %v1182_v53, %v4144_v13  ;;  %v2218_v35 = vsel %vm2033_vm10, %v2215_v12, %v2217_v31  ;;  %v3614_v59 = vcombine.low %v1184_v50, %v4144_v13 }
  0x62   : > { %2073 = vrot.lane.b32.xlu0 %v2042_v51, %s4043_s21  ;;  %v2220_v51 = vsel %vm2033_vm10, %v2217_v31, %v2219_v32  ;;  %v1820_v0 = vsel %vm6304_vm12, %v4516_v62, 0  ;;  %v1836_v41 = vsel %vm1751_vm1, %v4516_v62, 0  ;;  %v1901_v48 = vor.u32 %v1899_v20, %v1897_v3 }
  0x63   : > { %v4626_v23 = vrot.slane %v1903_v54, 1  ;;  %v490_v12 = vmax.f32 %v458_v2, 0.0  ;;  %v491_v17 = vmax.f32 %v459_v15, 0.0  ;;  %v4631_v22 = vsel %vm6331_vm15, %v4430_v36, %v1665_v43  ;;  %v4011_v15 = vld [vmem:[%s4180_s18] sm:$0xff]  }
  0x64   : > { %2126 = vrot.lane.b32.xlu1 %v1785_v19, %s4041_s19  ;;  %v4608_v19 = vor.u32 %v1673_v10, %v1670_v46  ;;  %v1298_v26 = vshrl.u32 %v3613_v30, 16  ;;  %v1301_v31 = vshll.u32 %v3613_v30, 16  ;;  %v1307_v34 = vshrl.u32 %v3614_v59, 16 }
  0x65   : > { %v1310_v37 = vshll.u32 %v3614_v59, 16  ;;  %v3732_v3 = vunpack.c.h.bf16 %v3768_v61  ;;  %v2385_v38 = vrot.slane %v1836_v41, 1  ;;  %v613_v44 = vadd.s32 136, %v4102_v1 }
  0x66   : > { %2124 = vrot.lane.b32.xlu0 %v1784_v28, %s4041_s19  ;;  %v4635_v25 = vsel %vm6331_vm15, %v1665_v43, %v4608_v19  ;;  %v3731_v28 = vunpack.c.l.bf16 %v3768_v61  ;;  %v4641_v36 = vsel %vm1848_vm13, %v1901_v48, %v4626_v23  ;;  %vm1753_vm1 = vcmp.ne.s16.totalorder %v4631_v22, 0 }
  0x67   : > { %vm1754_vm8 = vcmp.ne.s16.totalorder %v4635_v25, 0  ;;  %v4645_v47 = vpack.c.bf16 %v491_v17, %v490_v12  ;;  %v422_v10 = vmul.f32 %v3732_v3, %v4118_v6  ;;  %v615_v53 = vadd.s32 152, %v4102_v1 }
  0x68   : > { %2167 = vrot.lane.b32.xlu1 %v4580_v11, %s4046_s26  ;;  %v421_v46 = vmul.f32 %v3731_v28, %v4118_v6  ;;  %v751_v20 = vand.u32 15, %v613_v44  ;;  %v1300_v50 = vrot.slane %v1298_v26, 4  ;;  %v1309_v54 = vrot.slane %v1307_v34, 4  ;;  %v3769_v34 = vld [vmem:[%s4137_s13 + $0x48] sm:$0xff]  }
  0x69   : > { %v1312_v2 = vrot.slane %v1310_v37, 5  ;;  %v4657_v43 = vsel %vm1752_vm11, %v4587_v33, 0  ;;  %v765_v30 = vand.u32 15, %v615_v53  ;;  %v1769_v6 = vsel %vm1753_vm1, %v4516_v62, 0 }
  0x6a   : > { %2165 = vrot.lane.b32.xlu0 %v4460_v55, %s4046_s26  ;;  %v1819_v55 = vsel %vm6305_vm14, %v4405_v57, 0  ;;  %v554_v59 = vrot.slane %v4645_v47, 4  ;;  %vm4668_vm9 = vcmp.lt.s32.totalorder %v751_v20, 15  ;;  %v460_v49 = vadd.f32 %v4160_v27, %v421_v46 }
  0x6b   : > { %vm4676_vm11 = vcmp.lt.s32.totalorder %v765_v30, 15  ;;  %vm2444_vm2 = vcmask 64512   ;;  %v2386_v41 = vsel %vm2033_vm10, %v2383_v18, %v2385_v38  ;;  %v2387_v48 = vrot.slane %v4657_v43, 1  ;;  %vm1509_vm3 = vmpackc.low %vm4668_vm9, %vm4668_vm9 }
  0x6c   : > { %2251 = vrot.lane.b32.xlu1 %v2220_v51, %s4044_s22  ;;  %v1303_v51 = vrot.slane %v1301_v31, 5  ;;  %v4684_v17 = vor.u32 %v1312_v2, %v1309_v54  ;;  %3858 = vmatprep.mubr.msk.bf16.mxu0 %vm2444_vm2, %v4011_v15  ;;  %v2045_v56 = vrot.slane %v1769_v6, 1  ;;  %vm1511_vm5 = vmpackc.low %vm4676_vm11, %vm4676_vm11  ;;  %v612_v26 = vadd.s32 128, %v4102_v1 }
  0x6d   : > { %v492_v28 = vmax.f32 %v460_v49, 0.0  ;;  %v2388_v37 = vsel %vm2033_vm10, %v2385_v38, %v2387_v48  ;;  %v1541_v44 = vsel %vm1509_vm3, 65537, %v6310_v8  ;;  %v1543_v46 = vsel %vm1511_vm5, 65537, %v6310_v8 }
  0x6e   : > { %2249 = vrot.lane.b32.xlu0 %v2218_v35, %s4044_s22  ;;  %v4665_v35 = vsel %vm1754_vm8, %v4587_v33, 0  ;;  %v1304_v12 = vor.u32 %v1303_v51, %v1300_v50  ;;  %v744_v20 = vand.u32 15, %v612_v26  ;;  %v3735_v50 = vunpack.c.l.bf16 %v3769_v34 }
  0x6f   : > { %v2047_v18 = vrot.slane %v4665_v35, 1  ;;  %v2046_v54 = vsel %vm2033_vm10, %v2043_v24, %v2045_v56  ;;  %v3633_v2 = vcombine.low %v4144_v13, %v1543_v46  ;;  %v3736_v15 = vunpack.c.h.bf16 %v3769_v34 }
  0x70   : > { %2301 = vrot.lane.b32.xlu1 %v1820_v0, %s4042_s20  ;;  %v461_v0 = vadd.f32 %v4160_v27, %v422_v10  ;;  %v610_v27 = vadd.s32 112, %v4102_v1  ;;  %v4712_v3 = vsel %vm6327_vm7, %v1304_v12, %v4684_v17  ;;  %v4719_v40 = vsel %vm6327_vm7, %v4482_v4, %v1304_v12 }
  0x71   : > { %6366 = vst [vmem:[#allocation7_spill] sm:$0xff] %v4712_v3  ;;  %6367 = vst [vmem:[#allocation8_spill] sm:$0xff] %v4719_v40  ;;  %v2048_v38 = vsel %vm2033_vm10, %v2045_v56, %v2047_v18  ;;  %vm6306_vm9 = vcmp.ne.s16.totalorder %v4712_v3, 0  ;;  %v3632_v4 = vcombine.low %v4144_v13, %v1541_v44  ;;  %vm6307_vm11 = vcmp.ne.s16.totalorder %v4719_v40, 0 }
  0x72   : > { %2299 = vrot.lane.b32.xlu0 %v1819_v55, %s4042_s20  ;;  %v493_v31 = vmax.f32 %v461_v0, 0.0  ;;  %v730_v10 = vand.u32 15, %v610_v27  ;;  %v1805_v6 = vsel %vm1753_vm1, %v4587_v33, 0  ;;  %v1787_v63 = vsel %vm6306_vm9, %v4587_v33, 0 }
  0x73   : > { %vm4749_vm5 = vcmp.gt.s32.totalorder %v744_v20, 0  ;;  %v1677_v12 = vshrl.u32 %v3632_v4, 16  ;;  %v1680_v27 = vshll.u32 %v3632_v4, 16  ;;  %v1786_v56 = vsel %vm6307_vm11, %v4516_v62, 0 }
  0x74   : > { %2336 = vrot.lane.b32.xlu1 %v4641_v36, %s4047_s14  ;;  %v4729_v51 = vpack.c.bf16 %v493_v31, %v492_v28  ;;  %vm4742_vm3 = vcmp.gt.s32.totalorder %v730_v10, 0  ;;  %v1686_v26 = vshrl.u32 %v3633_v2, 16  ;;  %v1689_v28 = vshll.u32 %v3633_v2, 16  ;;  %vm1156_vm14 = vmpackc.low %vm4749_vm5, %vm4749_vm5 }
  0x75   : > { %vm1154_vm12 = vmpackc.low %vm4742_vm3, %vm4742_vm3 }
  0x76   : > { %2334 = vrot.lane.b32.xlu0 %v4580_v11, %s4047_s14  ;;  %v1186_v20 = vsel %vm1154_vm12, 65537, %v6310_v8  ;;  %v1691_v4 = vrot.slane %v1689_v28, 4 }
  0x78   : > { %1992 = vrot.lane.b32.xlu1 %v4580_v11, %s4045_s23  ;;  %v4704_v11 = vsel %vm540_vm4, %v552_v58, %v554_v59  ;;  %v1907_v58 = vshrl.u32 %v4587_v33, 16 }
  0x79   : > { %6365 = vst [vmem:[#allocation6_spill] sm:$0xff] %v4704_v11  ;;  %v1911_v53 = vshll.u32 %v4704_v11, 16  ;;  %v4763_v55 = vsel %vm1754_vm8, %v4704_v11, 0  ;;  %v1822_v52 = vsel %vm6306_vm9, %v4704_v11, 0 }
  0x7a   : > { %2416 = vrot.lane.b32.xlu0 %v2386_v41, %s4048_s17  ;;  %v1909_v30 = vor.u32 %v1907_v58, %v4626_v23  ;;  %v4756_v23 = vld [vmem:[%s6297_s2] ss:$0 sm:$0xff]  ;;  %v556_v41 = vrot.slane %v4729_v51, 4  ;;  %v6312_v44 = vrot.slane %v4763_v55, 1  ;;  %v6385_v40 = vrot.slane %v4763_v55, 1 }
  0x7b   : > { %v1913_v24 = vrot.slane %v1911_v53, 1  ;;  %v423_v0 = vmul.f32 %v4756_v23, %v3735_v50  ;;  %v424_v31 = vmul.f32 %v4756_v23, %v3736_v15  ;;  %v4784_v58 = vld [vmem:[%s6298_s3] ss:$0 sm:$0xff]  ;;  %v1682_v53 = vrot.slane %v1680_v27, 4 }
  0x7c   : > { %1994 = vrot.lane.b32.xlu1 %v4641_v36, %s4045_s23  ;;  %v4793_v10 = vsel %vm540_vm4, %v554_v59, %v556_v41  ;;  %v1688_v50 = vrot.slane %v1686_v26, 3  ;;  %v1915_v15 = vshrl.u32 %v4704_v11, 16 }
  0x7d   : > { %v4778_v34 = vsel %vm1848_vm13, %v1909_v30, %v1913_v24  ;;  %v462_v46 = vadd.f32 %v4784_v58, %v423_v0  ;;  %6372 = vst [vmem:[#allocation9_spill] sm:$0xff] %v4793_v10  ;;  %v463_v2 = vadd.f32 %v4784_v58, %v424_v31  ;;  %v3770_v30 = vld [vmem:[%s4137_s13 + $0x50] sm:$0xff]   ;;  %v1919_v59 = vshll.u32 %v4793_v10, 16 }
  0x7e   : > { %2418 = vrot.lane.b32.xlu0 %v2388_v37, %s4048_s17  ;;  %v2221_v37 = vrot.slane %v1805_v6, 1  ;;  %v3615_v6 = vcombine.low %v1186_v20, %v4144_v13  ;;  %v3739_v26 = vunpack.c.l.bf16 %v3770_v30  ;;  %v1917_v22 = vor.u32 %v1915_v15, %v1913_v24 }
  0x7f   : > { %v494_v27 = vmax.f32 %v462_v46, 0.0  ;;  %v4827_v28 = vrot.slane %v1919_v59, 1  ;;  %v617_v20 = vadd.s32 168, %v4102_v1 }
  0x80   : > { %2079 = vrot.lane.b32.xlu1 %v2048_v38, %s4043_s21  ;;  %v1679_v38 = vrot.slane %v1677_v12, 3  ;;  %v2224_v47 = vsel %vm2033_vm10, %v2221_v37, %v6312_v44  ;;  %v2222_v61 = vsel %vm2033_vm10, %v2219_v32, %v2221_v37  ;;  %v4818_v12 = vor.u32 %v1691_v4, %v1688_v50 }
  0x81   : > { %v1821_v32 = vsel %vm6307_vm11, %v4587_v33, 0  ;;  %v1316_v37 = vshrl.u32 %v3615_v6, 16  ;;  %v1319_v46 = vshll.u32 %v3615_v6, 16  ;;  %v619_v50 = vadd.s32 184, %v4102_v1 }
  0x82   : > { %2077 = vrot.lane.b32.xlu0 %v2046_v54, %s4043_s21  ;;  %v1188_v54 = vsel %vm1156_vm14, 65537, %v6310_v8  ;;  %v1683_v49 = vor.u32 %v1682_v53, %v1679_v38  ;;  %v4849_v59 = vsel %vm1848_vm13, %v1917_v22, %v4827_v28  ;;  %v4854_v6 = vsel %vm1754_vm8, %v4793_v10, 0 }
  0x83   : > { %v3616_v0 = vcombine.low %v1188_v54, %v4144_v13 }
  0x84   : > { %2130 = vrot.lane.b32.xlu1 %v1787_v63, %s4041_s19  ;;  %v4815_v63 = vsel %vm1753_vm1, %v4704_v11, 0  ;;  %v4833_v38 = vsel %vm6331_vm15, %v4608_v19, %v1683_v49  ;;  %v4839_v24 = vsel %vm6331_vm15, %v1683_v49, %v4818_v12  ;;  %v779_v19 = vand.u32 15, %v617_v20 }
  0x85   : > { %v2389_v31 = vrot.slane %v4815_v63, 1  ;;  %v1325_v53 = vshrl.u32 %v3616_v0, 16  ;;  %v1328_v4 = vshll.u32 %v3616_v0, 16  ;;  %vm1755_vm12 = vcmp.ne.s16.totalorder %v4833_v38, 0 }
  0x86   : > { %2128 = vrot.lane.b32.xlu0 %v1786_v56, %s4041_s19  ;;  %v495_v56 = vmax.f32 %v463_v2, 0.0  ;;  %v425_v2 = vmul.f32 %v4756_v23, %v3739_v26  ;;  %v1321_v63 = vrot.slane %v1319_v46, 5  ;;  %vm4858_vm14 = vcmp.lt.s32.totalorder %v779_v19, 15 }
  0x87   : > { %vm1756_vm3 = vcmp.ne.s16.totalorder %v4839_v24, 0  ;;  %v1327_v25 = vrot.slane %v1325_v53, 4  ;;  %vm1513_vm8 = vmpackc.low %vm4858_vm14, %vm4858_vm14  ;;  %v1923_v49 = vshrl.u32 %v4793_v10, 16 }
  0x88   : > { %2171 = vrot.lane.b32.xlu1 %v4778_v34, %s4046_s26  ;;  %v4841_v54 = vpack.c.bf16 %v495_v56, %v494_v27  ;;  %v616_v27 = vadd.s32 160, %v4102_v1  ;;  %v1330_v56 = vrot.slane %v1328_v4, 5  ;;  %v4888_v46 = vsel %vm1756_vm3, %v4793_v10, 0 }
  0x89   : > { %v1545_v53 = vsel %vm1513_vm8, 65537, %v6310_v8 }
  0x8a   : > { %2169 = vrot.lane.b32.xlu0 %v4641_v36, %s4046_s26  ;;  %v3740_v36 = vunpack.c.h.bf16 %v3770_v30  ;;  %v793_v30 = vand.u32 15, %v619_v50  ;;  %v558_v26 = vrot.slane %v4841_v54, 4  ;;  %v772_v20 = vand.u32 15, %v616_v27 }
  0x8b   : > { %v2390_v50 = vsel %vm2033_vm10, %v2387_v48, %v2389_v31  ;;  %v3634_v51 = vcombine.low %v4144_v13, %v1545_v53 }
  0x8c   : > { %2255 = vrot.lane.b32.xlu1 %v2224_v47, %s4044_s22  ;;  %v426_v15 = vmul.f32 %v4756_v23, %v3740_v36  ;;  %v614_v47 = vadd.s32 144, %v4102_v1  ;;  %vm4862_vm1 = vcmp.lt.s32.totalorder %v793_v30, 15  ;;  %v6309_v36 = vrot.slane %v4854_v6, 1 }
  0x8d   : > { %vm1515_vm5 = vmpackc.low %vm4862_vm1, %vm4862_vm1  ;;  %vm4920_vm1 = vcmp.gt.s32.totalorder %v772_v20, 0 }
  0x8e   : > { %2253 = vrot.lane.b32.xlu0 %v2222_v61, %s4044_s22  ;;  %v1318_v61 = vrot.slane %v1316_v37, 4  ;;  %v758_v22 = vand.u32 15, %v614_v47  ;;  %v1771_v37 = vsel %vm1755_vm12, %v4704_v11, 0  ;;  %v1547_v47 = vsel %vm1515_vm5, 65537, %v6310_v8  ;;  %vm1160_vm5 = vmpackc.low %vm4920_vm1, %vm4920_vm1 }
  0x8f   : > { %v1192_v43 = vsel %vm1160_vm5, 65537, %v6310_v8  ;;  %vm2495_vm5 = vcmask 130048  }
  0x90   : > { %2305 = vrot.lane.b32.xlu1 %v1822_v52, %s4042_s20  ;;  %v464_v52 = vadd.f32 %v4784_v58, %v425_v2  ;;  %v1322_v4 = vor.u32 %v1321_v63, %v1318_v61  ;;  %v4894_v2 = vor.u32 %v1330_v56, %v1327_v25  ;;  %vm4906_vm14 = vcmp.gt.s32.totalorder %v758_v22, 0 }
  0x91   : > { %v2049_v61 = vrot.slane %v1771_v37, 1  ;;  %v6308_v63 = vrot.slane %v4888_v46, 1  ;;  %vm1158_vm8 = vmpackc.low %vm4906_vm14, %vm4906_vm14  ;;  %v3618_v44 = vcombine.low %v1192_v43, %v4144_v13 }
  0x92   : > { %2303 = vrot.lane.b32.xlu0 %v1821_v32, %s4042_s20  ;;  %v465_v32 = vadd.f32 %v4784_v58, %v426_v15  ;;  %v4901_v15 = vsel %vm540_vm4, %v556_v41, %v558_v26  ;;  %v496_v19 = vmax.f32 %v464_v52, 0.0  ;;  %v3771_v41 = vld [vmem:[%s4137_s13 + $0x58] sm:$0xff]   ;;  %v4926_v27 = vsel %vm6327_vm7, %v1322_v4, %v4894_v2 }
  0x93   : > { %6377 = vst [vmem:[#allocation10_spill] sm:$0xff] %v4901_v15  ;;  %6382 = vst [vmem:[#allocation11_spill] sm:$0xff] %v4926_v27  ;;  %v4930_v25 = vsel %vm6327_vm7, %v4684_v17, %v1322_v4  ;;  %v1927_v56 = vshll.u32 %v4901_v15, 16  ;;  %v3635_v52 = vcombine.low %v4144_v13, %v1547_v47  ;;  %v3743_v22 = vunpack.c.l.bf16 %v3771_v41 }
  0x94   : > { %2340 = vrot.lane.b32.xlu1 %v4849_v59, %s4047_s14  ;;  %v497_v30 = vmax.f32 %v465_v32, 0.0  ;;  %6383 = vst [vmem:[#allocation12_spill] sm:$0xff] %v4930_v25  ;;  %v4944_v32 = vsel %vm1755_vm12, %v4793_v10, 0  ;;  %v3744_v37 = vunpack.c.h.bf16 %v3771_v41  ;;  %v2052_v53 = vsel %vm2033_vm10, %v2049_v61, %v6308_v63 }
  0x95   : > { %v2050_v20 = vsel %vm2033_vm10, %v2047_v18, %v2049_v61  ;;  %v1698_v4 = vshll.u32 %v3634_v51, 16  ;;  %vm6322_vm9 = vcmp.ne.s16.totalorder %v4926_v27, 0  ;;  %vm6323_vm11 = vcmp.ne.s16.totalorder %v4930_v25, 0 }
  0x96   : > { %2338 = vrot.lane.b32.xlu0 %v4778_v34, %s4047_s14  ;;  %v4946_v17 = vpack.c.bf16 %v497_v30, %v496_v19  ;;  %v1925_v19 = vor.u32 %v1923_v49, %v4827_v28  ;;  %v1190_v35 = vsel %vm1158_vm8, 65537, %v6310_v8  ;;  %v4969_v30 = vrot.slane %v1927_v56, 1 }
  0x97   : > { %v4910_v48 = vpop.permute.xlu1 %2120  ;;  %v4974_v47 = vsel %vm1756_vm3, %v4901_v15, 0  ;;  %v1704_v61 = vshrl.u32 %v3635_v52, 16  ;;  %v427_v41 = vmul.f32 %v4756_v23, %v3743_v22  ;;  %v1789_v49 = vsel %vm6322_vm9, %v4793_v10, 0 }
  0x98   : > { %1996 = vrot.lane.b32.xlu1 %v4778_v34, %s4045_s23  ;;  %v2392_v34 = vsel %vm2033_vm10, %v2389_v31, %v6309_v36  ;;  %v4939_v31 = vpop.permute.xlu0 %2118  ;;  %v6313_v28 = vrot.slane %v4946_v17, 4  ;;  %v1700_v56 = vrot.slane %v1698_v4, 4  ;;  %v3617_v63 = vcombine.low %v1190_v35, %v4144_v13 }
  0x99   : > { %v2225_v22 = vrot.slane %v4944_v32, 1  ;;  %v1706_v36 = vrot.slane %v1704_v61, 3  ;;  %v466_v4 = vadd.f32 %v4784_v58, %v427_v41  ;;  %v1931_v54 = vshrl.u32 %v4901_v15, 16 }
  0x9a   : > { %2420 = vrot.lane.b32.xlu0 %v2390_v50, %s4048_s17  ;;  %v1695_v50 = vshrl.u32 %v3634_v51, 16  ;;  %v1707_v51 = vshll.u32 %v3635_v52, 16  ;;  %v5005_v32 = vsel %vm540_vm4, %v558_v26, %v6313_v28  ;;  %v1334_v43 = vshrl.u32 %v3617_v63, 16 }
  0x9b   : > { %v4967_v18 = vpop.permute.xlu1 %2293  ;;  %6384 = vst [vmem:[#allocation13_spill] sm:$0xff] %v5005_v32  ;;  %v3300_v41 = vsel %vm540_vm4, %v4494_v14, 0  ;;  %v621_v14 = vadd.s32 200, %v4102_v1 }
  0x9c   : > { %1998 = vrot.lane.b32.xlu1 %v4849_v59, %s4045_s23  ;;  %v1697_v0 = vrot.slane %v1695_v50, 3  ;;  %v1709_v8 = vrot.slane %v1707_v51, 4  ;;  %v3772_v50 = vld [vmem:[%s4137_s13 + $0x60] sm:$0xff]   ;;  %3857 = vmatpush3.bf16.msra.mxu0 %v3300_v41 }
  0x9d   : > { %v3747_v26 = vunpack.c.l.bf16 %v3772_v50  ;;  %v3748_v28 = vunpack.c.h.bf16 %v3772_v50  ;;  %v1346_v50 = vshll.u32 %v3618_v44, 16 }
  0x9e   : > { %2422 = vrot.lane.b32.xlu0 %v2392_v34, %s4048_s17  ;;  %v428_v34 = vmul.f32 %v4756_v23, %v3744_v37  ;;  %v4986_v52 = vpop.permute.xlu0 %2122  ;;  %v6317_v37 = vrot.slane %v4974_v47, 1  ;;  %v1701_v51 = vor.u32 %v1700_v56, %v1697_v0  ;;  %v5022_v56 = vor.u32 %v1709_v8, %v1706_v36 }
  0x9f   : > { %v1336_v8 = vrot.slane %v1334_v43, 4  ;;  %v429_v3 = vmul.f32 %v4756_v23, %v3747_v26  ;;  %v1348_v38 = vrot.slane %v1346_v50, 5  ;;  %v5102_v50 = vsel %vm1756_vm3, %v5005_v32, 0 }
  0xa0   : > { %2083 = vrot.lane.b32.xlu1 %v2052_v53, %s4043_s21  ;;  %v1788_v53 = vsel %vm6323_vm11, %v4704_v11, 0  ;;  %v467_v35 = vadd.f32 %v4784_v58, %v428_v34  ;;  %v4012_v34 = vld [vmem:[%s4180_s18 + $0x8] sm:$0xff]   ;;  %v2228_v0 = vsel %vm2033_vm10, %v2225_v22, %v6317_v37  ;;  %v623_v11 = vadd.s32 216, %v4102_v1 }
  0xa1   : > { %v5033_v37 = vsel %vm6331_vm15, %v4818_v12, %v1701_v51  ;;  %3859 = vmatmul.mubr.msk.bf16.vlgmr.msra.gmra.mrb[0].mxu0 %vm2444_vm2, %v4012_v34  ;;  %v2226_v12 = vsel %vm2033_vm10, %v6385_v40, %v2225_v22  ;;  %v1933_v40 = vor.u32 %v1931_v54, %v4969_v30  ;;  %vm6341_vm3 = vcmask 326656  }
  0xa2   : > { %2081 = vrot.lane.b32.xlu0 %v2050_v20, %s4043_s21  ;;  %v4998_v20 = vsel %vm1848_vm13, %v1925_v19, %v4969_v30  ;;  %v2968_v19 = vsel %vm540_vm4, %v4466_v60, 0  ;;  %v1343_v60 = vshrl.u32 %v3618_v44, 16  ;;  %v499_v33 = vmax.f32 %v467_v35, 0.0 }
  0xa3   : > { %3823 = vmatpush3.bf16.msra.mxu1 %v2968_v19  ;;  %v498_v19 = vmax.f32 %v466_v4, 0.0  ;;  %v430_v44 = vmul.f32 %v4756_v23, %v3748_v28  ;;  %v807_v4 = vand.u32 15, %v621_v14  ;;  %v821_v62 = vand.u32 15, %v623_v11 }
  0xa4   : > { %2134 = vrot.lane.b32.xlu1 %v1789_v49, %s4041_s19  ;;  %v1337_v49 = vshll.u32 %v3617_v63, 16  ;;  %v1935_v63 = vshll.u32 %v5005_v32, 16  ;;  %v1824_v35 = vsel %vm6322_vm9, %v4901_v15, 0  ;;  %v5055_v28 = vsel %vm6331_vm15, %v1701_v51, %v5022_v56 }
  0xa5   : > { %v5009_v61 = vpop.permute.xlu1 %2067  ;;  %v1345_v22 = vrot.slane %v1343_v60, 4  ;;  %vm5067_vm14 = vcmp.lt.s32.totalorder %v807_v4, 15  ;;  %vm6330_vm1 = vcmp.ne.s16.totalorder %v5055_v28, 0  ;;  %v468_v30 = vadd.f32 %v4784_v58, %v429_v3 }
  0xa6   : > { %2132 = vrot.lane.b32.xlu0 %v1788_v53, %s4041_s19  ;;  %v4013_v53 = vld [vmem:[%s4180_s18 + $0x10] sm:$0xff]   ;;  %v1339_v36 = vrot.slane %v1337_v49, 5  ;;  %v5062_v55 = vrot.slane %v1935_v63, 1  ;;  %v5065_v49 = vpack.c.bf16 %v499_v33, %v498_v19  ;;  %v469_v54 = vadd.f32 %v4784_v58, %v430_v44  ;;  %v4014_v33 = vld [vmem:[%s4180_s18 + $0x18] sm:$0xff]   ;;  %v4015_v63 = vld [vmem:[%s4180_s18 + $0x20] sm:$0xff]  }
  0xa7   : > { %3862 = vmatprep.mubr.msk.bf16.mxu0 %vm2444_vm2, %v4013_v53  ;;  %vm5077_vm8 = vcmp.lt.s32.totalorder %v821_v62, 15  ;;  %v5092_v3 = vsel %vm1397_vm6, %v4194_v7, 0  ;;  %vm1517_vm9 = vmpackc.low %vm5067_vm14, %vm5067_vm14  ;;  %v5113_v42 = vsel %vm6330_vm1, %v5005_v32, 0  ;;  %v5115_v19 = vor.u32 %v1348_v38, %v1345_v22 }
  0xa8   : > { %v5025_v9 = vpop.permute.xlu0 %2069  ;;  %2175 = vrot.lane.b32.xlu1 %v4998_v20, %s4046_s26  ;;  %v1340_v43 = vor.u32 %v1339_v36, %v1336_v8  ;;  %v5096_v62 = vsel %vm1848_vm13, %v1933_v40, %v5062_v55  ;;  %v6325_v24 = vrot.slane %v5065_v49, 4  ;;  %vm1519_vm6 = vmpackc.low %vm5077_vm8, %vm5077_vm8  ;;  %v500_v36 = vmax.f32 %v468_v30, 0.0 }
  0xa9   : > { %v501_v44 = vmax.f32 %v469_v54, 0.0  ;;  %v618_v4 = vadd.s32 176, %v4102_v1  ;;  %3863 = vmatmul.mubr.msk.bf16.gmra.mrb[4].mxu0 %vm2444_vm2, %v4014_v33  ;;  %v6391_v40 = vmov 0   ;;  %v620_v30 = vadd.s32 192, %v4102_v1  ;;  %v4016_v54 = vld [vmem:[%s4180_s18 + $0x28] sm:$0xff]  }
  0xaa   : > { %2173 = vrot.lane.b32.xlu0 %v4849_v59, %s4046_s26  ;;  %v5037_v41 = vpop.permute.xlu1 %2071  ;;  %v5051_v59 = vsel %vm1755_vm12, %v4901_v15, 0  ;;  %vm1757_vm12 = vcmp.ne.s16.totalorder %v5033_v37, 0  ;;  %v5126_v8 = vsel %vm6327_vm7, %v4894_v2, %v1340_v43  ;;  %v1549_v2 = vsel %vm1517_vm9, 65537, %v6391_v40  ;;  %3866 = vmatprep.mubr.msk.bf16.mxu0 %vm2444_vm2, %v4015_v63 }
  0xab   : > { %v2393_v53 = vrot.slane %v5051_v59, 1  ;;  %v1773_v7 = vsel %vm1757_vm12, %v4901_v15, 0  ;;  %6390 = vst [vmem:[#allocation14_spill] sm:$0xff] %v5126_v8  ;;  %v1939_v59 = vshrl.u32 %v5005_v32, 16  ;;  %v1551_v51 = vsel %vm1519_vm6, 65537, %v6391_v40 }
  0xac   : > { %v5058_v11 = vpop.permute.xlu0 %2243  ;;  %2259 = vrot.lane.b32.xlu1 %v2228_v0, %s4044_s22  ;;  %v1823_v0 = vsel %vm6323_vm11, %v4793_v10, 0  ;;  %vm2530_vm11 = vcmask 195584   ;;  %v2053_v38 = vrot.slane %v1773_v7, 1  ;;  %v5159_v33 = vsel %vm6327_vm7, %v1340_v43, %v5115_v19 }
  0xad   : > { %6393 = vst [vmem:[#allocation15_spill] sm:$0xff] %v5159_v33  ;;  %vm6338_vm9 = vcmp.ne.s16.totalorder %v5126_v8, 0  ;;  %v5172_v7 = vpack.c.bf16 %v501_v44, %v500_v36  ;;  %v3636_v43 = vcombine.low %v4144_v13, %v1549_v2  ;;  %v3637_v36 = vcombine.low %v4144_v13, %v1551_v51  ;;  %v4018_v8 = vld [vmem:[%s4180_s18 + $0x38] sm:$0xff]  }
  0xae   : > { %2257 = vrot.lane.b32.xlu0 %v2226_v12, %s4044_s22  ;;  %v5072_v26 = vpop.permute.xlu1 %2245  ;;  %v5133_v12 = vsel %vm1396_vm0, %v4191_v5, 0  ;;  %vm6342_vm0 = vcmask 261120   ;;  %v6392_v5 = vrot.slane %v4854_v6, 1  ;;  %v6394_v6 = vrot.slane %v4946_v17, 4 }
  0xaf   : > { %vm6337_vm14 = vcmp.ne.s16.totalorder %v5159_v33, 0  ;;  %v6396_v51 = vrot.slane %v5113_v42, 1  ;;  %vm6340_vm8 = vcmask 392192   ;;  %vm6339_vm7 = vcmask 457728  }
  0xb0   : > { %v5086_v60 = vpop.permute.xlu0 %2247  ;;  %2309 = vrot.lane.b32.xlu1 %v1824_v35, %s4042_s20  ;;  %v6324_v35 = vrot.slane %v5102_v50, 1  ;;  %v2394_v16 = vsel %vm2033_vm10, %v6392_v5, %v2393_v53  ;;  %v786_v5 = vand.u32 15, %v618_v4  ;;  %v6395_v4 = vrot.slane %v4888_v46, 1 }
  0xb1   : > { %3867 = vmatmul.mubr.msk.bf16.gmra.mrb[8].mxu0 %vm2444_vm2, %v4016_v54  ;;  %v1722_v10 = vshrl.u32 %v3637_v36, 16  ;;  %v1725_v27 = vshll.u32 %v3637_v36, 16 }
  0xb2   : > { %2307 = vrot.lane.b32.xlu0 %v1823_v0, %s4042_s20  ;;  %v5122_v14 = vpop.permute.xlu1 %1986  ;;  %v5167_v0 = vsel %vm540_vm4, %v6394_v6, %v6325_v24  ;;  %v2396_v17 = vsel %vm2033_vm10, %v2393_v53, %v6324_v35  ;;  %v5180_v6 = vor.u32 %v1939_v59, %v5062_v55  ;;  %v2054_v2 = vsel %vm2033_vm10, %v6395_v4, %v2053_v38  ;;  %v3773_v35 = vld [vmem:[%s4137_s13 + $0x68] sm:$0xff]  }
  0xb3   : > { %v5197_v55 = vsel %vm6338_vm9, %v4901_v15, 0  ;;  %v800_v53 = vand.u32 15, %v620_v30  ;;  %v1943_v46 = vshll.u32 %v5167_v0, 16  ;;  %v5208_v4 = vsel %vm6330_vm1, %v5167_v0, 0 }
  0xb4   : > { %v1983_v22 = vpop.permute.xlu0 %1982  ;;  %2344 = vrot.lane.b32.xlu1 %v5096_v62, %s4047_s14  ;;  %vm5215_vm6 = vcmp.gt.s32.totalorder %v786_v5, 0  ;;  %v3751_v5 = vunpack.c.l.bf16 %v3773_v35  ;;  %v3752_v25 = vunpack.c.h.bf16 %v3773_v35 }
  0xb5   : > { %v2446_v34 = vsel %vm2444_vm2, 0, %v1983_v22  ;;  %v5185_v22 = vsel %vm1757_vm12, %v5005_v32, 0  ;;  %vm5231_vm15 = vcmp.gt.s32.totalorder %v800_v53, 0  ;;  %vm1162_vm1 = vmpackc.low %vm5215_vm6, %vm5215_vm6  ;;  %vm6343_vm6 = vcmask 588800  }
  0xb6   : > { %2342 = vrot.lane.b32.xlu0 %v4998_v20, %s4047_s14  ;;  %v2160_v63 = vpop.permute.xlu1 %2159  ;;  %v2497_v59 = vsel %vm2495_vm5, %v2446_v34, %v5009_v61  ;;  %v1713_v61 = vshrl.u32 %v3636_v43, 16  ;;  %v1716_v34 = vshll.u32 %v3636_v43, 16  ;;  %v1194_v37 = vsel %vm1162_vm1, 65537, %v6391_v40 }
  0xb7   : > { %v2532_v30 = vsel %vm2530_vm11, %v2497_v59, %v4939_v31  ;;  %v5240_v31 = vsel %vm6337_vm14, %v5167_v0, 0  ;;  %v5245_v59 = vsel %vm6338_vm9, %v5005_v32, 0 }
  0xb8   : > { %v1985_v44 = vpop.permute.xlu0 %1984  ;;  %2000 = vrot.lane.b32.xlu1 %v4998_v20, %s4045_s23  ;;  %v2056_v20 = vsel %vm2033_vm10, %v2053_v38, %v6396_v51  ;;  %v4017_v38 = vld [vmem:[%s4180_s18 + $0x30] sm:$0xff]   ;;  %v1791_v51 = vsel %vm6337_vm14, %v5005_v32, 0  ;;  %v1715_v32 = vrot.slane %v1713_v61, 3  ;;  %v1718_v33 = vrot.slane %v1716_v34, 4  ;;  %vm1164_vm14 = vmpackc.low %vm5231_vm15, %vm5231_vm15 }
  0xb9   : > { %3870 = vmatprep.mubr.msk.bf16.mxu0 %vm2444_vm2, %v4017_v38  ;;  %v2449_v35 = vsel %vm2444_vm2, %v5133_v12, %v1985_v44  ;;  %v6402_v38 = vrot.slane %v5065_v49, 4  ;;  %v2567_v57 = vsel %vm6342_vm0, %v2532_v30, %v2160_v63  ;;  %v5267_v12 = vsel %vm1757_vm12, %v5167_v0, 0 }
  0xba   : > { %2424 = vrot.lane.b32.xlu0 %v2394_v16, %s4048_s17  ;;  %v5212_v24 = vpop.permute.xlu1 %2163  ;;  %v2229_v16 = vrot.slane %v5185_v22, 1  ;;  %v1945_v22 = vrot.slane %v1943_v46, 1  ;;  %v6401_v46 = vrot.slane %v5172_v7, 4  ;;  %v1727_v44 = vrot.slane %v1725_v27, 4  ;;  %3871 = vmatmul.mubr.msk.bf16.gmra.mrb[12].mxu0 %vm2444_vm2, %v4018_v8 }
  0xbb   : > { %v2452_v49 = vsel %vm2444_vm2, %v5092_v3, %v5122_v14  ;;  %v432_v27 = vmul.f32 %v4756_v23, %v3752_v25  ;;  %v2499_v63 = vsel %vm2495_vm5, %v2449_v35, %v5025_v9  ;;  %v6403_v30 = vrot.slane %v5208_v4, 1 }
  0xbc   : > { %v5227_v43 = vpop.permute.xlu0 %2161  ;;  %2002 = vrot.lane.b32.xlu1 %v5096_v62, %s4045_s23  ;;  %v5260_v36 = vsel %vm540_vm4, %v6402_v38, %v6401_v46  ;;  %v1947_v14 = vshrl.u32 %v5167_v0, 16  ;;  %v2602_v15 = vsel %vm6341_vm3, %v2567_v57, %v5058_v11  ;;  %v1719_v25 = vor.u32 %v1718_v33, %v1715_v32 }
  0xbd   : > { %v2232_v3 = vsel %vm2033_vm10, %v2229_v16, %v6403_v30  ;;  %v1196_v9 = vsel %vm1164_vm14, 65537, %v6391_v40  ;;  %v2501_v35 = vsel %vm2495_vm5, %v2452_v49, %v5037_v41  ;;  %v6404_v57 = vrot.slane %v4974_v47, 1  ;;  %v3774_v49 = vld [vmem:[%s4137_s13 + $0x70] sm:$0xff]  }
  0xbe   : > { %2426 = vrot.lane.b32.xlu0 %v2396_v17, %s4048_s17  ;;  %v5253_v53 = vpop.permute.xlu1 %2297  ;;  %v1724_v17 = vrot.slane %v1722_v10, 3  ;;  %v431_v10 = vmul.f32 %v4756_v23, %v3751_v5  ;;  %v2397_v5 = vrot.slane %v5267_v12, 1  ;;  %v3619_v32 = vcombine.low %v1194_v37, %v4144_v13  ;;  %v4020_v12 = vld [vmem:[%s4180_s18 + $0x48] sm:$0xff]  }
  0xbf   : > { %v2230_v11 = vsel %vm2033_vm10, %v6404_v57, %v2229_v16  ;;  %v2534_v33 = vsel %vm2530_vm11, %v2499_v63, %v4910_v48  ;;  %v5315_v8 = vsel %vm1848_vm13, %v5180_v6, %v1945_v22  ;;  %v471_v47 = vadd.f32 %v4784_v58, %v432_v27 }
  0xc0   : > { %v2296_v61 = vpop.permute.xlu0 %2295  ;;  %2087 = vrot.lane.b32.xlu1 %v2056_v20, %s4043_s21  ;;  %v1951_v20 = vshll.u32 %v5260_v36, 16  ;;  %v470_v41 = vadd.f32 %v4784_v58, %v431_v10  ;;  %v2637_v16 = vsel %vm6340_vm8, %v2602_v15, %v4967_v18  ;;  %v1949_v46 = vor.u32 %v1947_v14, %v1945_v22 }
  0xc1   : > { %v3620_v48 = vcombine.low %v1196_v9, %v4144_v13  ;;  %vm6406_vm15 = vsmask.f32 4352  ;;  %vm6407_vm12 = vcmask 523264   ;;  %v1352_v10 = vshrl.u32 %v3619_v32, 16 }
  0xc2   : > { %2085 = vrot.lane.b32.xlu0 %v2054_v2, %s4043_s21  ;;  %v2331_v34 = vpop.permute.xlu1 %2330  ;;  %v5307_v2 = vor.u32 %v1727_v44, %v1724_v17  ;;  %v5321_v38 = vrot.slane %v1951_v20, 1  ;;  %v2536_v17 = vsel %vm2530_vm11, %v2501_v35, %v4986_v52  ;;  %v6405_v44 = vrot.slane %v5102_v50, 1  ;;  %vm6408_vm1 = vmmov %vm6406_vm15 }
  0xc3   : > { %v5338_v22 = vsel %vm6406_vm15, %v5022_v56, %v1719_v25  ;;  %v2569_v52 = vsel %vm6342_vm0, %v2534_v33, %v5227_v43  ;;  %v2571_v50 = vsel %vm6342_vm0, %v2536_v17, %v5212_v24  ;;  %v1355_v56 = vshll.u32 %v3619_v32, 16 }
  0xc4   : > { %v2329_v54 = vpop.permute.xlu0 %2328  ;;  %2138 = vrot.lane.b32.xlu1 %v1791_v51, %s4041_s19  ;;  %v5334_v18 = vsel %vm2033_vm10, %v6405_v44, %v2397_v5  ;;  %v502_v63 = vmax.f32 %v470_v41, 0.0  ;;  %v503_v30 = vmax.f32 %v471_v47, 0.0  ;;  %v5354_v43 = vsel %vm1848_vm13, %v1949_v46, %v5321_v38 }
  0xc5   : > { %v2672_v51 = vsel %vm6339_vm7, %v2637_v16, %v2329_v54  ;;  %vm6409_vm14 = vcmp.ne.s16.totalorder %v5055_v28, 0  ;;  %v1361_v20 = vshrl.u32 %v3620_v48, 16  ;;  %v3755_v15 = vunpack.c.l.bf16 %v3774_v49 }
  0xc6   : > { %2136 = vrot.lane.b32.xlu0 %v5197_v55, %s4041_s19  ;;  %v2411_v6 = vpop.permute.xlu1 %2410  ;;  %v5346_v55 = vsel %vm6408_vm1, %v1719_v25, %v5307_v2  ;;  %v5359_v14 = vsel %vm6409_vm14, %v5260_v36, 0  ;;  %v2604_v24 = vsel %vm6341_vm3, %v2569_v52, %v5072_v26  ;;  %vm1759_vm15 = vcmp.ne.s16.totalorder %v5338_v22, 0 }
  0xc7   : > { %v2707_v37 = vsel %vm6407_vm12, %v2672_v51, %v2411_v6  ;;  %vm6344_vm12 = vcmp.ne.s16.totalorder %v5346_v55, 0  ;;  %v2606_v28 = vsel %vm6341_vm3, %v2571_v50, %v5086_v60  ;;  %v2639_v57 = vsel %vm6340_vm8, %v2604_v24, %v2296_v61 }
  0xc8   : > { %v2333_v27 = vpop.permute.xlu0 %2332  ;;  %2179 = vrot.lane.b32.xlu1 %v5315_v8, %s4046_s26  ;;  %v2756_v25 = vshrl.u32 %v2707_v37, 16  ;;  %v2759_v9 = vshll.u32 %v2707_v37, 16  ;;  %v1354_v32 = vrot.slane %v1352_v10, 4  ;;  %v3756_v33 = vunpack.c.h.bf16 %v3774_v49 }
  0xc9   : > { %v2674_v26 = vsel %vm6339_vm7, %v2639_v57, %v2331_v34  ;;  %v1364_v41 = vshll.u32 %v3620_v48, 16  ;;  %v5374_v47 = vpack.c.bf16 %v503_v30, %v502_v63  ;;  %vm6410_vm1 = vcmask 523264  }
  0xca   : > { %2177 = vrot.lane.b32.xlu0 %v5096_v62, %s4046_s26  ;;  %v5365_v35 = vpop.permute.xlu1 %1988  ;;  %v1357_v62 = vrot.slane %v1355_v56, 5  ;;  %v1363_v46 = vrot.slane %v1361_v20, 4  ;;  %v625_v17 = vadd.s32 232, %v4102_v1  ;;  %v627_v60 = vadd.s32 248, %v4102_v1  ;;  %vm6411_vm14 = vmmov %vm6410_vm1 }
  0xcb   : > { %v2758_v51 = vrot.slane %v2756_v25, 3  ;;  %v2761_v61 = vrot.slane %v2759_v9, 4  ;;  %v433_v48 = vmul.f32 %v4756_v23, %v3755_v15  ;;  %v434_v49 = vmul.f32 %v4756_v23, %v3756_v33 }
  0xcc   : > { %v2413_v54 = vpop.permute.xlu0 %2412  ;;  %2263 = vrot.lane.b32.xlu1 %v2232_v3, %s4044_s22  ;;  %v2641_v3 = vsel %vm6340_vm8, %v2606_v28, %v5253_v53  ;;  %v622_v52 = vadd.s32 208, %v4102_v1  ;;  %v1366_v30 = vrot.slane %v1364_v41, 5  ;;  %v835_v53 = vand.u32 15, %v625_v17 }
  0xcd   : > { %v2709_v16 = vsel %vm6410_vm1, %v2674_v26, %v2413_v54  ;;  %v2676_v37 = vsel %vm6339_vm7, %v2641_v3, %v2333_v27  ;;  %v849_v20 = vand.u32 15, %v627_v60  ;;  %v2762_v27 = vor.u32 %v2761_v61, %v2758_v51 }
  0xce   : > { %v2763_v6 = vshrl.u32 %v2709_v16, 16  ;;  %v2766_v44 = vshll.u32 %v2709_v16, 16  ;;  %2261 = vrot.lane.b32.xlu0 %v2230_v11, %s4044_s22  ;;  %v5380_v34 = vpop.permute.xlu1 %1990  ;;  %v624_v11 = vadd.s32 224, %v4102_v1  ;;  %v566_v9 = vrot.slane %v5374_v47, 4  ;;  %v4029_v47 = vld [vmem:[%s6297_s2] ss:$0 sm:$0xff] }
  0xcf   : > { %v473_v28 = vadd.f32 %v4784_v58, %v434_v49  ;;  %v814_v57 = vand.u32 15, %v622_v52  ;;  %vm6412_vm1 = vsmask.f32 4352  ;;  %v2399_v16 = vrot.slane %v5359_v14, 1  ;;  %v4021_v14 = vld [vmem:[%s4180_s18 + $0x50] sm:$0xff]  }
  0xd0   : > { %v2765_v10 = vrot.slane %v2763_v6, 3  ;;  %v2768_v50 = vrot.slane %v2766_v44, 4  ;;  %v2415_v56 = vpop.permute.xlu0 %2414  ;;  %2313 = vrot.lane.b32.xlu1 %v5240_v31, %s4042_s20  ;;  %v472_v31 = vadd.f32 %v4784_v58, %v433_v48  ;;  %v1775_v17 = vsel %vm1759_vm15, %v5167_v0, 0 }
  0xd1   : > { %v2711_v63 = vsel %vm6411_vm14, %v2676_v37, %v2415_v56  ;;  %v5412_v58 = vsel %vm6344_vm12, %v5260_v36, 0  ;;  %vm5414_vm14 = vcmp.lt.s32.totalorder %v835_v53, 15  ;;  %v1358_v6 = vor.u32 %v1357_v62, %v1354_v32 }
  0xd2   : > { %v2771_v15 = vshrl.u32 %v2711_v63, 16  ;;  %v2774_v24 = vshll.u32 %v2711_v63, 16  ;;  %2311 = vrot.lane.b32.xlu0 %v5245_v59, %s4042_s20  ;;  %v5394_v23 = vpop.permute.xlu1 %2075  ;;  %v2769_v25 = vor.u32 %v2768_v50, %v2765_v10  ;;  %v828_v59 = vand.u32 15, %v624_v11  ;;  %vm1521_vm8 = vmpackc.low %vm5414_vm14, %vm5414_vm14  ;;  %v4019_v11 = vld [vmem:[%s4180_s18 + $0x40] sm:$0xff]  }
  0xd3   : > { %v5424_v44 = vor.u32 %v1366_v30, %v1363_v46  ;;  %v6417_v48 = vrot.slane %v5172_v7, 4  ;;  %v504_v52 = vmax.f32 %v472_v31, 0.0  ;;  %v505_v37 = vmax.f32 %v473_v28, 0.0  ;;  %3874 = vmatprep.mubr.msk.bf16.mxu0 %vm2444_vm2, %v4019_v11 }
  0xd4   : > { %v2773_v33 = vrot.slane %v2771_v15, 3  ;;  %v2776_v26 = vrot.slane %v2774_v24, 4  ;;  %v5399_v54 = vpop.permute.xlu0 %2073  ;;  %v2770_v41 = vsel %vm6412_vm1, %v2762_v27, %v2769_v25  ;;  %2348 = vrot.lane.b32.xlu1 %v5354_v43, %s4047_s14  ;;  %vm5426_vm1 = vcmp.lt.s32.totalorder %v849_v20, 15  ;;  %3875 = vmatmul.mubr.msk.bf16.gmra.mrb[16].mxu0 %vm2444_vm2, %v4020_v12 }
  0xd5   : > { %3824 = vmatprep.mubr.msk.bf16.mxu1 %vm6343_vm6, %v2770_v41  ;;  %v5435_v49 = vsel %vm540_vm4, %v6417_v48, %v566_v9  ;;  %vm5437_vm9 = vcmp.gt.s32.totalorder %v814_v57, 0  ;;  %vm6420_vm7 = vsmask.f32 4352  ;;  %v2057_v46 = vrot.slane %v1775_v17, 1  ;;  %v3775_v17 = vld [vmem:[%s4137_s13 + $0x78] sm:$0xff]   ;;  %3878 = vmatprep.mubr.msk.bf16.mxu0 %vm2444_vm2, %v4021_v14 }
  0xd6   : > { %v5418_v51 = vor.u32 %v2776_v26, %v2773_v33  ;;  %2346 = vrot.lane.b32.xlu0 %v5315_v8, %s4047_s14  ;;  %v5422_v61 = vpop.permute.xlu1 %2126  ;;  %v2059_v7 = vrot.slane %v5412_v58, 1  ;;  %vm5451_vm3 = vcmp.gt.s32.totalorder %v828_v59, 0  ;;  %v1955_v56 = vshrl.u32 %v5260_v36, 16 }
  0xd7   : > { %vm6423_vm0 = vsmask.f32 3328  ;;  %v1959_v53 = vshll.u32 %v5435_v49, 16  ;;  %v5476_v20 = vsel %vm6344_vm12, %v5435_v49, 0  ;;  %v5490_v15 = vpack.c.bf16 %v505_v37, %v504_v52  ;;  %vm1168_vm12 = vmpackc.low %vm5451_vm3, %vm5451_vm3 }
  0xd8   : > { %v5441_v32 = vpop.permute.xlu0 %2124  ;;  %v2778_v62 = vsel %vm6420_vm7, %v2769_v25, %v5418_v51  ;;  %2004 = vrot.lane.b32.xlu1 %v5315_v8, %s4045_s23  ;;  %v1811_v8 = vsel %vm1759_vm15, %v5260_v36, 0  ;;  %vm1523_vm7 = vmpackc.low %vm5426_vm1, %vm5426_vm1  ;;  %v5470_v30 = vsel %vm6423_vm0, %v5115_v19, %v1358_v6  ;;  %v5488_v19 = vsel %vm6423_vm0, %v1358_v6, %v5424_v44 }
  0xd9   : > { %3825 = vmatmul.mubr.msk.bf16.vlgmr.msra.gmra.mrb[0].mxu1 %vm6343_vm6, %v2778_v62  ;;  %vm1166_vm6 = vmpackc.low %vm5437_vm9, %vm5437_vm9  ;;  %v1553_v24 = vsel %vm1521_vm8, 65537, %v6391_v40  ;;  %v2060_v27 = vsel %vm2033_vm10, %v2057_v46, %v2059_v7  ;;  %v2233_v25 = vrot.slane %v1811_v8, 1  ;;  %v1555_v31 = vsel %vm1523_vm7, 65537, %v6391_v40 }
  0xda   : > { %2428 = vrot.lane.b32.xlu0 %v5334_v18, %s4048_s17  ;;  %v5466_v63 = vpop.permute.xlu1 %2167  ;;  %v2400_v18 = vsel %vm2033_vm10, %v2397_v5, %v2399_v16  ;;  %vm1406_vm8 = vcmp.ne.s16.totalorder %v5470_v30, 0  ;;  %v1957_v28 = vor.u32 %v1955_v56, %v5321_v38  ;;  %v2235_v57 = vrot.slane %v5476_v20, 1 }
  0xdb   : > { %v1198_v33 = vsel %vm1166_vm6, 65537, %v6391_v40  ;;  %vm1407_vm14 = vcmp.ne.s16.totalorder %v5488_v19, 0  ;;  %v5530_v41 = vrot.slane %v1959_v53, 1  ;;  %v3638_v38 = vcombine.low %v4144_v13, %v1553_v24 }
  0xdc   : > { %v5503_v5 = vpop.permute.xlu0 %2165  ;;  %2006 = vrot.lane.b32.xlu1 %v5354_v43, %s4045_s23  ;;  %v1200_v59 = vsel %vm1168_vm12, 65537, %v6391_v40  ;;  %vm6424_vm9 = vcmp.ne.s16.totalorder %v4527_v39, 0  ;;  %v6425_v6 = vrot.slane %v5113_v42, 1  ;;  %v568_v48 = vrot.slane %v5490_v15, 4 }
  0xdd   : > { %v1414_v60 = vsel %vm6424_vm9, %v4223_v29, 0  ;;  %v3639_v52 = vcombine.low %v4144_v13, %v1555_v31  ;;  %vm6426_vm6 = vcmp.ne.s16.totalorder %v4509_v21, 0  ;;  %v1792_v39 = vsel %vm1406_vm8, %v5167_v0, 0 }
  0xde   : > { %2430 = vrot.lane.b32.xlu0 %v2400_v18, %s4048_s17  ;;  %v5527_v26 = vpop.permute.xlu1 %2251  ;;  %v2058_v3 = vsel %vm2033_vm10, %v6425_v6, %v2057_v46  ;;  %v1415_v37 = vsel %vm6426_vm6, %v4313_v45, 0  ;;  %v6427_v29 = vrot.slane %v5208_v4, 1  ;;  %v3621_v62 = vcombine.low %v1198_v33, %v4144_v13 }
  0xdf   : > { %v1793_v46 = vsel %vm1407_vm14, %v5260_v36, 0  ;;  %v3622_v45 = vcombine.low %v1200_v59, %v4144_v13  ;;  %v3759_v21 = vunpack.c.l.bf16 %v3775_v17  ;;  %v3760_v50 = vunpack.c.h.bf16 %v3775_v17 }
  0xe0   : > { %v2250_v10 = vpop.permute.xlu0 %2249  ;;  %2091 = vrot.lane.b32.xlu1 %v2060_v27, %s4043_s21  ;;  %v5558_v42 = vsel %vm2033_vm10, %v6427_v29, %v2233_v25  ;;  %v5570_v4 = vsel %vm1848_vm13, %v1957_v28, %v5530_v41  ;;  %v2236_v8 = vsel %vm2033_vm10, %v2233_v25, %v2235_v57  ;;  %v5578_v11 = vsel %vm1407_vm14, %v5435_v49, 0 }
  0xe1   : > { %v1731_v53 = vshrl.u32 %v3638_v38, 16  ;;  %v5585_v18 = vsel %vm540_vm4, %v566_v9, %v568_v48  ;;  %v1963_v24 = vshrl.u32 %v5435_v49, 16  ;;  %v1734_v12 = vshll.u32 %v3638_v38, 16 }
  0xe2   : > { %2089 = vrot.lane.b32.xlu0 %v2058_v3, %s4043_s21  ;;  %v5566_v56 = vpop.permute.xlu1 %2301  ;;  %v1740_v27 = vshrl.u32 %v3639_v52, 16  ;;  %v2455_v25 = vsel %vm2444_vm2, %v1414_v60, %v5365_v35  ;;  %v1743_v28 = vshll.u32 %v3639_v52, 16  ;;  %v1370_v33 = vshrl.u32 %v3621_v62, 16 }
  0xe3   : > { %v1373_v59 = vshll.u32 %v3621_v62, 16  ;;  %v1379_v17 = vshrl.u32 %v3622_v45, 16  ;;  %v1382_v6 = vshll.u32 %v3622_v45, 16  ;;  %v435_v9 = vmul.f32 %v4029_v47, %v3759_v21 }
  0xe4   : > { %v2300_v31 = vpop.permute.xlu0 %2299  ;;  %2142 = vrot.lane.b32.xlu1 %v1793_v46, %s4041_s19  ;;  %v436_v3 = vmul.f32 %v4029_v47, %v3760_v50  ;;  %v2458_v38 = vsel %vm2444_vm2, %v1415_v37, %v5380_v34  ;;  %v2503_v35 = vsel %vm2495_vm5, %v2455_v25, %v5399_v54  ;;  %v1967_v52 = vshll.u32 %v5585_v18, 16 }
  0xe5   : > { %v1733_v29 = vrot.slane %v1731_v53, 3  ;;  %v2538_v62 = vsel %vm2530_vm11, %v2503_v35, %v5441_v32  ;;  %v1736_v46 = vrot.slane %v1734_v12, 4  ;;  %v1742_v45 = vrot.slane %v1740_v27, 3  ;;  %v4030_v32 = vld [vmem:[%s6298_s3] ss:$0 sm:$0xff] }
  0xe6   : > { %2140 = vrot.lane.b32.xlu0 %v1792_v39, %s4041_s19  ;;  %v2337_v60 = vpop.permute.xlu1 %2336  ;;  %v626_v21 = vadd.s32 240, %v4102_v1  ;;  %vm6428_vm3 = vcmask 261120   ;;  %v1745_v54 = vrot.slane %v1743_v28, 4  ;;  %v1372_v37 = vrot.slane %v1370_v33, 4 }
  0xe7   : > { %v2573_v50 = vsel %vm6428_vm3, %v2538_v62, %v5503_v5  ;;  %v1375_v39 = vrot.slane %v1373_v59, 5  ;;  %v1381_v25 = vrot.slane %v1379_v17, 4  ;;  %v1384_v47 = vrot.slane %v1382_v6, 5  ;;  %vm6431_vm7 = vmmov %vm6428_vm3 }
  0xe8   : > { %v2335_v34 = vpop.permute.xlu0 %2334  ;;  %2183 = vrot.lane.b32.xlu1 %v5570_v4, %s4046_s26  ;;  %v474_v53 = vadd.f32 %v4030_v32, %v435_v9  ;;  %v475_v12 = vadd.f32 %v4030_v32, %v436_v3  ;;  %v2505_v1 = vsel %vm2495_vm5, %v2458_v38, %v5394_v23  ;;  %vm6429_vm12 = vcmask 326656  }
  0xe9   : > { %v2608_v5 = vsel %vm6429_vm12, %v2573_v50, %v2250_v10  ;;  %v1965_v28 = vor.u32 %v1963_v24, %v5530_v41  ;;  %v5618_v33 = vrot.slane %v1967_v52, 1  ;;  %v2540_v59 = vsel %vm2530_vm11, %v2505_v1, %v5422_v61  ;;  %vm6434_vm6 = vmmov %vm6429_vm12 }
  0xea   : > { %2181 = vrot.lane.b32.xlu0 %v5354_v43, %s4046_s26  ;;  %v5615_v27 = vpop.permute.xlu1 %1992  ;;  %vm6430_vm1 = vcmask 392192   ;;  %v1737_v6 = vor.u32 %v1736_v46, %v1733_v29  ;;  %v842_v9 = vand.u32 15, %v626_v21  ;;  %v2575_v23 = vsel %vm6431_vm7, %v2540_v59, %v5466_v63 }
  0xeb   : > { %v2643_v17 = vsel %vm6430_vm1, %v2608_v5, %v2300_v31  ;;  %vm6432_vm0 = vcmask 457728   ;;  %v5627_v43 = vor.u32 %v1745_v54, %v1742_v45  ;;  %v5629_v41 = vor.u32 %v1375_v39, %v1372_v37  ;;  %vm6435_vm3 = vmmov %vm6430_vm1 }
  0xec   : > { %v2678_v10 = vsel %vm6432_vm0, %v2643_v17, %v2335_v34  ;;  %v2417_v3 = vpop.permute.xlu0 %2416  ;;  %2267 = vrot.lane.b32.xlu1 %v2236_v8, %s4044_s22  ;;  %vm6433_vm9 = vcmask 523264   ;;  %v5632_v38 = vor.u32 %v1384_v47, %v1381_v25  ;;  %v506_v61 = vmax.f32 %v474_v53, 0.0  ;;  %vm6439_vm7 = vmmov %vm6432_vm0 }
  0xed   : > { %v2713_v24 = vsel %vm6433_vm9, %v2678_v10, %v2417_v3  ;;  %v507_v31 = vmax.f32 %v475_v12, 0.0  ;;  %v2610_v35 = vsel %vm6434_vm6, %v2575_v23, %v5527_v26  ;;  %v1827_v8 = vsel %vm1406_vm8, %v5260_v36, 0 }
  0xee   : > { %v2779_v52 = vshrl.u32 %v2713_v24, 16  ;;  %v2782_v63 = vshll.u32 %v2713_v24, 16  ;;  %2265 = vrot.lane.b32.xlu0 %v5558_v42, %s4044_s22  ;;  %v5638_v29 = vpop.permute.xlu1 %1994  ;;  %v2645_v62 = vsel %vm6435_vm3, %v2610_v35, %v5566_v56  ;;  %v1844_v46 = vsel %vm1759_vm15, %v5435_v49, 0 }
  0xef   : > { %vm6436_vm12 = vsmask.f32 4352  ;;  %vm5652_vm1 = vcmp.gt.s32.totalorder %v842_v9, 0  ;;  %v2680_v42 = vsel %vm6439_vm7, %v2645_v62, %v2337_v60  ;;  %v5669_v56 = vsel %vm1848_vm13, %v1965_v28, %v5618_v33 }
  0xf0   : > { %v5650_v26 = vsel %vm6436_vm12, %v5307_v2, %v1737_v6  ;;  %v2781_v21 = vrot.slane %v2779_v52, 3  ;;  %v2784_v50 = vrot.slane %v2782_v63, 4  ;;  %v2419_v34 = vpop.permute.xlu0 %2418  ;;  %2317 = vrot.lane.b32.xlu1 %v5578_v11, %s4042_s20  ;;  %vm6440_vm0 = vmmov %vm6436_vm12  ;;  %vm6441_vm6 = vsmask.f32 3328 }
  0xf1   : > { %v5661_v22 = vsel %vm6440_vm0, %v1737_v6, %v5627_v43  ;;  %vm1170_vm15 = vmpackc.low %vm5652_vm1, %vm5652_vm1  ;;  %v2715_v2 = vsel %vm6433_vm9, %v2680_v42, %v2419_v34  ;;  %v5674_v60 = vsel %vm6441_vm6, %v5629_v41, %v5632_v38  ;;  %v5676_v11 = vpack.c.bf16 %v507_v31, %v506_v61 }
  0xf2   : > { %v2785_v54 = vor.u32 %v2784_v50, %v2781_v21  ;;  %v2787_v37 = vshrl.u32 %v2715_v2, 16  ;;  %v2790_v39 = vshll.u32 %v2715_v2, 16  ;;  %2315 = vrot.lane.b32.xlu0 %v1827_v8, %s4042_s20  ;;  %v5679_v25 = vpop.permute.xlu1 %2079  ;;  %v1202_v47 = vsel %vm1170_vm15, 65537, %v6391_v40  ;;  %vm6443_vm7 = vmmov %vm6440_vm0  ;;  %v4022_v8 = vld [vmem:[%s4180_s18 + $0x58] sm:$0xff]  }
  0xf3   : > { %v2401_v32 = vrot.slane %v1844_v46, 1  ;;  %vm6442_vm3 = vcmp.ne.s16.totalorder %v5346_v55, 0  ;;  %vm1761_vm12 = vcmp.ne.s16.totalorder %v5650_v26, 0  ;;  %vm1762_vm1 = vcmp.ne.s16.totalorder %v5661_v22, 0  ;;  %vm6445_vm9 = vmmov %vm6443_vm7  ;;  %3879 = vmatmul.mubr.msk.bf16.gmra.mrb[20].mxu0 %vm2444_vm2, %v4022_v8 }
  0xf4   : > { %v5685_v53 = vsel %vm6442_vm3, %v5585_v18, 0  ;;  %v2789_v12 = vrot.slane %v2787_v37, 3  ;;  %v2792_v1 = vrot.slane %v2790_v39, 4  ;;  %v5689_v5 = vpop.permute.xlu0 %2077  ;;  %v2786_v28 = vsel %vm6443_vm7, %v5418_v51, %v2785_v54  ;;  %2352 = vrot.lane.b32.xlu1 %v5669_v56, %s4047_s14  ;;  %v6448_v39 = vld [vmem:[#allocation3_spill] sm:$0xff] }
  0xf5   : > { %vm1409_vm0 = vcmp.ne.s16.totalorder %v5674_v60, 0  ;;  %vm6444_vm15 = vcmask 588800   ;;  %v3623_v55 = vcombine.low %v1202_v47, %v4144_v13  ;;  %v1777_v6 = vsel %vm1761_vm12, %v5435_v49, 0  ;;  %v6449_v47 = vld [vmem:[#allocation8_spill] sm:$0xff] }
  0xf6   : > { %3828 = vmatprep.mubr.msk.bf16.mxu1 %vm6444_vm15, %v2786_v28  ;;  %v5701_v59 = vsel %vm1409_vm0, %v5435_v49, 0  ;;  %v5703_v17 = vor.u32 %v2792_v1, %v2789_v12  ;;  %2350 = vrot.lane.b32.xlu0 %v5570_v4, %s4047_s14  ;;  %v5707_v51 = vpop.permute.xlu1 %2130  ;;  %v5715_v13 = vsel %vm1762_vm1, %v5585_v18, 0  ;;  %v570_v9 = vrot.slane %v5676_v11, 4  ;;  %vm6446_vm6 = vmmov %vm6444_vm15 }
  0xf7   : > { %v2402_v23 = vsel %vm2033_vm10, %v2399_v16, %v2401_v32  ;;  %v2403_v10 = vrot.slane %v5685_v53, 1  ;;  %v2061_v61 = vrot.slane %v1777_v6, 1  ;;  %v2063_v31 = vrot.slane %v5715_v13, 1 }
  0xf8   : > { %v2129_v3 = vpop.permute.xlu0 %2128  ;;  %v2794_v24 = vsel %vm6445_vm9, %v2785_v54, %v5703_v17  ;;  %2008 = vrot.lane.b32.xlu1 %v5570_v4, %s4045_s23  ;;  %v1388_v35 = vshrl.u32 %v3623_v55, 16  ;;  %v1391_v52 = vshll.u32 %v3623_v55, 16  ;;  %v5735_v63 = vsel %vm540_vm4, %v568_v48, %v570_v9 }
  0xf9   : > { %3829 = vmatmul.mubr.msk.bf16.gmra.mrb[4].mxu1 %vm6446_vm6, %v2794_v24  ;;  %v2404_v4 = vsel %vm2033_vm10, %v2401_v32, %v2403_v10  ;;  %vm6447_vm3 = vsmask.f32 3328  ;;  %v1971_v15 = vshrl.u32 %v5585_v18, 16  ;;  %v2064_v48 = vsel %vm2033_vm10, %v2061_v61, %v2063_v31 }
  0xfa   : > { %2432 = vrot.lane.b32.xlu0 %v2402_v23, %s4048_s17  ;;  %v5730_v16 = vpop.permute.xlu1 %2171  ;;  %v5747_v46 = vsel %vm6447_vm3, %v5424_v44, %v5629_v41  ;;  %v1975_v45 = vshll.u32 %v5735_v63, 16  ;;  %v1390_v42 = vrot.slane %v1388_v35, 4  ;;  %v1393_v21 = vrot.slane %v1391_v52, 5  ;;  %vm6451_vm9 = vmmov %vm6447_vm3  ;;  %v6453_v35 = vld [vmem:[#allocation7_spill] sm:$0xff] }
  0xfb   : > { %v2062_v44 = vsel %vm2033_vm10, %v2059_v7, %v2061_v61  ;;  %vm1408_vm7 = vcmp.ne.s16.totalorder %v5747_v46, 0  ;;  %v1795_v34 = vsel %vm1409_vm0, %v5585_v18, 0  ;;  %v1973_v2 = vor.u32 %v1971_v15, %v5618_v33  ;;  %v6452_v61 = vld [vmem:[#allocation4_spill] sm:$0xff] }
  0xfc   : > { %v2170_v62 = vpop.permute.xlu0 %2169  ;;  %2010 = vrot.lane.b32.xlu1 %v5669_v56, %s4045_s23  ;;  %v1977_v11 = vrot.slane %v1975_v45, 1  ;;  %v5765_v54 = vor.u32 %v1393_v21, %v1390_v42  ;;  %v1813_v58 = vsel %vm1761_vm12, %v5585_v18, 0  ;;  %v5774_v7 = vsel %vm1762_vm1, %v5735_v63, 0 }
  0xfd   : > { %vm6450_vm15 = vcmp.ne.s16.totalorder %v6449_v47, 0  ;;  %v1794_v33 = vsel %vm1408_vm7, %v5435_v49, 0  ;;  %v2237_v28 = vrot.slane %v1813_v58, 1  ;;  %v2239_v55 = vrot.slane %v5774_v7, 1 }
  0xfe   : > { %2434 = vrot.lane.b32.xlu0 %v2404_v4, %s4048_s17  ;;  %v2256_v50 = vpop.permute.xlu1 %2255  ;;  %v1416_v32 = vsel %vm6450_vm15, %v6448_v39, 0  ;;  %v5784_v1 = vsel %vm1848_vm13, %v1973_v2, %v1977_v11  ;;  %v5790_v6 = vsel %vm6451_vm9, %v5632_v38, %v5765_v54  ;;  %v5796_v24 = vsel %vm540_vm4, %v570_v9, 0 }
  0xff   : > { %v2461_v23 = vsel %vm2444_vm2, %v1416_v32, %v5615_v27  ;;  %vm6454_vm6 = vcmp.ne.s16.totalorder %v6453_v35, 0  ;;  %v1979_v27 = vshrl.u32 %v5735_v63, 16  ;;  %vm1410_vm3 = vcmp.ne.s16.totalorder %v5790_v6, 0  ;;  %v6483_v6 = vld [vmem:[#allocation2_spill] sm:$0xff] }
 0x100   : > { %v2254_v41 = vpop.permute.xlu0 %2253  ;;  %2095 = vrot.lane.b32.xlu1 %v2064_v48, %s4043_s21  ;;  %v1417_v52 = vsel %vm6454_vm6, %v6452_v61, 0  ;;  %v2507_v14 = vsel %vm2495_vm5, %v2461_v23, %v5689_v5  ;;  %vm6455_vm15 = vcmask 261120   ;;  %v2240_v8 = vsel %vm2033_vm10, %v2237_v28, %v2239_v55 }
 0x101   : > { %v2542_v4 = vsel %vm2530_vm11, %v2507_v14, %v2129_v3  ;;  %v2152_v15 = vshll.u32 %v5796_v24, 16  ;;  %v5816_v5 = vsel %vm1410_vm3, %v5585_v18, 0  ;;  %v2464_v3 = vsel %vm2444_vm2, %v1417_v52, %v5638_v29 }
 0x102   : > { %2093 = vrot.lane.b32.xlu0 %v2062_v44, %s4043_s21  ;;  %v2306_v37 = vpop.permute.xlu1 %2305  ;;  %v2577_v9 = vsel %vm6455_vm15, %v2542_v4, %v2170_v62  ;;  %vm6456_vm4 = vcmask 326656   ;;  %v2509_v45 = vsel %vm2495_vm5, %v2464_v3, %v5679_v25  ;;  %vm6457_vm9 = vcmask 392192  }
 0x103   : > { %v2612_v48 = vsel %vm6456_vm4, %v2577_v9, %v2254_v41  ;;  %v2238_v21 = vsel %vm2033_vm10, %v2235_v57, %v2237_v28  ;;  %v2544_v44 = vsel %vm2530_vm11, %v2509_v45, %v5707_v51  ;;  %vm6458_vm6 = vcmask 457728  }
 0x104   : > { %v2304_v12 = vpop.permute.xlu0 %2303  ;;  %2146 = vrot.lane.b32.xlu1 %v1795_v34, %s4041_s19  ;;  %v2579_v25 = vsel %vm6455_vm15, %v2544_v44, %v5730_v16  ;;  %vm6459_vm4 = vcmask 523264   ;;  %v1981_v20 = vor.u32 %v1979_v27, %v1977_v11  ;;  %v5841_v2 = vrot.slane %v2152_v15, 1 }
 0x105   : > { %v2647_v42 = vsel %vm6457_vm9, %v2612_v48, %v2304_v12  ;;  %vm6460_vm9 = vcmask 326656   ;;  %v1829_v60 = vsel %vm1408_vm7, %v5585_v18, 0  ;;  %v1846_v16 = vsel %vm1761_vm12, %v5735_v63, 0  ;;  %v4023_v48 = vld [vmem:[%s4180_s18 + $0x60] sm:$0xff]  }
 0x106   : > { %2144 = vrot.lane.b32.xlu0 %v1794_v33, %s4041_s19  ;;  %v2341_v49 = vpop.permute.xlu1 %2340  ;;  %v2614_v57 = vsel %vm6460_vm9, %v2579_v25, %v2256_v50  ;;  %vm1411_vm15 = vcmp.ne.s16.totalorder %v5765_v54, 0  ;;  %v2405_v61 = vrot.slane %v1846_v16, 1  ;;  %vm6463_vm12 = vsmask.f32 4352  ;;  %3882 = vmatprep.mubr.msk.bf16.mxu0 %vm2444_vm2, %v4023_v48  ;;  %v6471_v16 = vld [vmem:[#allocation11_spill] sm:$0xff] }
 0x107   : > { %v5865_v18 = vsel %vm1411_vm15, %v5735_v63, 0  ;;  %vm6464_vm9 = vcmask 588800   ;;  %v1796_v13 = vsel %vm1410_vm3, %v5735_v63, 0 }
 0x108   : > { %v2339_v38 = vpop.permute.xlu0 %2338  ;;  %2187 = vrot.lane.b32.xlu1 %v5784_v1, %s4046_s26 }
 0x109   : > { %v2682_v29 = vsel %vm6458_vm6, %v2647_v42, %v2339_v38  ;;  %vm6461_vm6 = vcmask 392192   ;;  %v5875_v38 = vsel %vm1762_vm1, %v5796_v24, 0  ;;  %vm6465_vm1 = vmmov %vm6463_vm12  ;;  %v4024_v42 = vld [vmem:[%s4180_s18 + $0x68] sm:$0xff]  }
 0x10a   : > { %2185 = vrot.lane.b32.xlu0 %v5669_v56, %s4046_s26  ;;  %v5823_v62 = vpop.permute.xlu1 %1996  ;;  %v1830_v56 = vsel %vm1409_vm0, %v5735_v63, 0  ;;  %v2649_v47 = vsel %vm6461_vm6, %v2614_v57, %v2306_v37  ;;  %vm6462_vm0 = vcmask 457728   ;;  %v5860_v37 = vsel %vm1848_vm13, %v1981_v20, %v5841_v2  ;;  %3883 = vmatmul.mubr.msk.bf16.gmra.mrb[24].mxu0 %vm2444_vm2, %v4024_v42 }
 0x10b   : > { %v2684_v11 = vsel %vm6462_vm0, %v2649_v47, %v2341_v49  ;;  %vm1763_vm6 = vcmp.ne.s16.totalorder %v5627_v43, 0  ;;  %vm6466_vm0 = vmmov %vm6464_vm9 }
 0x10c   : > { %v2421_v41 = vpop.permute.xlu0 %2420  ;;  %2271 = vrot.lane.b32.xlu1 %v2240_v8, %s4044_s22  ;;  %v2407_v8 = vrot.slane %v5875_v38, 1  ;;  %v1779_v3 = vsel %vm1763_vm6, %v5735_v63, 0  ;;  %v1815_v54 = vsel %vm1763_vm6, %v5796_v24, 0  ;;  %vm6475_vm6 = vcmask 392192  }
 0x10d   : > { %v2717_v34 = vsel %vm6459_vm4, %v2682_v29, %v2421_v41  ;;  %v2065_v45 = vrot.slane %v1779_v3, 1  ;;  %v2156_v41 = vshrl.u32 %v5796_v24, 16 }
 0x10e   : > { %v2795_v51 = vshrl.u32 %v2717_v34, 16  ;;  %v2798_v58 = vshll.u32 %v2717_v34, 16  ;;  %2269 = vrot.lane.b32.xlu0 %v2238_v21, %s4044_s22  ;;  %v5845_v39 = vpop.permute.xlu1 %1998  ;;  %v6467_v34 = vld [vmem:[#allocation5_spill] sm:$0xff] }
 0x10f   : > { %v2066_v44 = vsel %vm2033_vm10, %v2063_v31, %v2065_v45 }
 0x110   : > { %v2797_v32 = vrot.slane %v2795_v51, 3  ;;  %v2800_v50 = vrot.slane %v2798_v58, 4  ;;  %v2423_v33 = vpop.permute.xlu0 %2422  ;;  %2321 = vrot.lane.b32.xlu1 %v1830_v56, %s4042_s20  ;;  %v1797_v56 = vsel %vm1411_vm15, %v5796_v24, 0  ;;  %v2158_v51 = vor.u32 %v2156_v41, %v5841_v2 }
 0x111   : > { %v2719_v12 = vsel %vm6459_vm4, %v2684_v11, %v2423_v33  ;;  %vm6472_vm15 = vcmp.ne.s16.totalorder %v6471_v16, 0 }
 0x112   : > { %v2801_v26 = vor.u32 %v2800_v50, %v2797_v32  ;;  %v2803_v28 = vshrl.u32 %v2719_v12, 16  ;;  %v2806_v23 = vshll.u32 %v2719_v12, 16  ;;  %2319 = vrot.lane.b32.xlu0 %v1829_v60, %s4042_s20  ;;  %v2084_v49 = vpop.permute.xlu1 %2083  ;;  %v6470_v60 = vld [vmem:[#allocation6_spill] sm:$0xff]  ;;  %v2241_v32 = vrot.slane %v1815_v54, 1 }
 0x113   : > { %v1419_v11 = vsel %vm6472_vm15, %v6470_v60, 0  ;;  %v6489_v54 = vld [vmem:[#allocation14_spill] sm:$0xff] }
 0x114   : > { %v2805_v35 = vrot.slane %v2803_v28, 3  ;;  %v2808_v52 = vrot.slane %v2806_v23, 4  ;;  %v2082_v14 = vpop.permute.xlu0 %2081  ;;  %v2802_v4 = vsel %vm6463_vm12, %v5703_v17, %v2801_v26  ;;  %2356 = vrot.lane.b32.xlu1 %v5860_v37, %s4047_s14  ;;  %v2406_v17 = vsel %vm2033_vm10, %v2403_v10, %v2405_v61 }
 0x115   : > { %3832 = vmatprep.mubr.msk.bf16.mxu1 %vm6464_vm9, %v2802_v4  ;;  %v2408_v10 = vsel %vm2033_vm10, %v2405_v61, %v2407_v8  ;;  %vm6473_vm12 = vcmask 261120   ;;  %vm6474_vm9 = vcmask 326656   ;;  %v2242_v23 = vsel %vm2033_vm10, %v2239_v55, %v2241_v32 }
 0x116   : > { %v5879_v27 = vor.u32 %v2808_v52, %v2805_v35  ;;  %2354 = vrot.lane.b32.xlu0 %v5784_v1, %s4047_s14  ;;  %v2135_v9 = vpop.permute.xlu1 %2134  ;;  %vm6479_vm15 = vmmov %vm6474_vm9 }
 0x118   : > { %v2133_v22 = vpop.permute.xlu0 %2132  ;;  %v2810_v15 = vsel %vm6465_vm1, %v2801_v26, %v5879_v27  ;;  %2012 = vrot.lane.b32.xlu1 %v5784_v1, %s4045_s23  ;;  %vm6476_vm1 = vcmask 457728  }
 0x119   : > { %3833 = vmatmul.mubr.msk.bf16.gmra.mrb[8].mxu1 %vm6466_vm0, %v2810_v15  ;;  %vm6477_vm0 = vmmov %vm6473_vm12 }
 0x11a   : > { %2436 = vrot.lane.b32.xlu0 %v2406_v17, %s4048_s17  ;;  %v2176_v53 = vpop.permute.xlu1 %2175 }
 0x11c   : > { %v2174_v21 = vpop.permute.xlu0 %2173  ;;  %2014 = vrot.lane.b32.xlu1 %v1981_v20, %s4045_s23  ;;  %v6468_v20 = vld [vmem:[#allocation12_spill] sm:$0xff] }
 0x11d   : > { %vm6469_vm4 = vcmp.ne.s16.totalorder %v6468_v20, 0 }
 0x11e   : > { %2438 = vrot.lane.b32.xlu0 %v2408_v10, %s4048_s17  ;;  %v2260_v1 = vpop.permute.xlu1 %2259  ;;  %v1418_v57 = vsel %vm6469_vm4, %v6467_v34, 0  ;;  %vm6478_vm4 = vcmask 523264   ;;  %v2409_v34 = vsel %vm2033_vm10, %v2407_v8, %v6483_v6  ;;  %v6488_v8 = vld [vmem:[#allocation9_spill] sm:$0xff]  ;;  %vm6490_vm10 = vcmp.ne.s16.totalorder %v6489_v54, 0 }
 0x11f   : > { %v2467_v58 = vsel %vm2444_vm2, %v1418_v57, %v5823_v62  ;;  %v2470_v62 = vsel %vm2444_vm2, %v1419_v11, %v5845_v39  ;;  %v6491_v11 = vld [vmem:[#allocation10_spill] sm:$0xff] }
 0x120   : > { %v2258_v29 = vpop.permute.xlu0 %2257  ;;  %2099 = vrot.lane.b32.xlu1 %v2065_v45, %s4043_s21  ;;  %v2511_v63 = vsel %vm2495_vm5, %v2467_v58, %v2082_v14  ;;  %v2513_v26 = vsel %vm2495_vm5, %v2470_v62, %v2084_v49  ;;  %v1420_v58 = vsel %vm6490_vm10, %v6488_v8, 0 }
 0x121   : > { %v2546_v50 = vsel %vm2530_vm11, %v2511_v63, %v2133_v22  ;;  %v2548_v61 = vsel %vm2530_vm11, %v2513_v26, %v2135_v9  ;;  %v1831_v9 = vsel %vm1410_vm3, %v5796_v24, 0  ;;  %v2327_v24 = vsel %vm1848_vm13, %v2158_v51, %v6483_v6  ;;  %v6492_v63 = vld [vmem:[#allocation15_spill] sm:$0xff] }
 0x122   : > { %2097 = vrot.lane.b32.xlu0 %v2066_v44, %s4043_s21  ;;  %v2310_v25 = vpop.permute.xlu1 %2309  ;;  %v2581_v43 = vsel %vm6473_vm12, %v2546_v50, %v2174_v21  ;;  %v2583_v39 = vsel %vm6477_vm0, %v2548_v61, %v2176_v53  ;;  %vm6480_vm12 = vmmov %vm6475_vm6  ;;  %vm6484_vm3 = vsmask.f32 4352 }
 0x123   : > { %v2616_v33 = vsel %vm6474_vm9, %v2581_v43, %v2258_v29  ;;  %v2618_v14 = vsel %vm6479_vm15, %v2583_v39, %v2260_v1  ;;  %vm6481_vm9 = vmmov %vm6476_vm1  ;;  %vm6494_vm15 = vcmask 261120  }
 0x124   : > { %v2308_v31 = vpop.permute.xlu0 %2307  ;;  %2150 = vrot.lane.b32.xlu1 %v1797_v56, %s4041_s19  ;;  %v2653_v55 = vsel %vm6480_vm12, %v2618_v14, %v2310_v25  ;;  %v4026_v25 = vld [vmem:[%s4180_s18 + $0x78] sm:$0xff]   ;;  %vm6486_vm13 = vmmov %vm6484_vm3  ;;  %vm6495_vm12 = vcmask 326656  }
 0x125   : > { %v2651_v28 = vsel %vm6475_vm6, %v2616_v33, %v2308_v31  ;;  %vm6482_vm6 = vmmov %vm6478_vm4 }
 0x126   : > { %2148 = vrot.lane.b32.xlu0 %v1796_v13, %s4041_s19  ;;  %v2345_v47 = vpop.permute.xlu1 %2344 }
 0x127   : > { %v2688_v17 = vsel %vm6481_vm9, %v2653_v55, %v2345_v47  ;;  %vm6496_vm9 = vcmask 392192  }
 0x128   : > { %v2343_v2 = vpop.permute.xlu0 %2342  ;;  %2191 = vrot.lane.b32.xlu1 %v2158_v51, %s4046_s26 }
 0x129   : > { %v2686_v35 = vsel %vm6476_vm1, %v2651_v28, %v2343_v2  ;;  %vm6485_vm1 = vcmask 588800  }
 0x12a   : > { %2189 = vrot.lane.b32.xlu0 %v5860_v37, %s4046_s26  ;;  %v2001_v12 = vpop.permute.xlu1 %2000  ;;  %vm6487_vm0 = vmmov %vm6485_vm1 }
 0x12b   : > { %v2473_v60 = vsel %vm2444_vm2, %v1420_v58, %v2001_v12 }
 0x12c   : > { %v2425_v52 = vpop.permute.xlu0 %2424  ;;  %2275 = vrot.lane.b32.xlu1 %v2241_v32, %s4044_s22 }
 0x12d   : > { %v2721_v37 = vsel %vm6478_vm4, %v2686_v35, %v2425_v52  ;;  %vm6493_vm4 = vcmp.ne.s16.totalorder %v6492_v63, 0 }
 0x12e   : > { %v2811_v49 = vshrl.u32 %v2721_v37, 16  ;;  %v2814_v4 = vshll.u32 %v2721_v37, 16  ;;  %2273 = vrot.lane.b32.xlu0 %v2242_v23, %s4044_s22  ;;  %v2003_v7 = vpop.permute.xlu1 %2002  ;;  %v1421_v32 = vsel %vm6493_vm4, %v6491_v11, 0 }
 0x12f   : > { %v2476_v33 = vsel %vm2444_vm2, %v1421_v32, %v2003_v7 }
 0x130   : > { %v2813_v22 = vrot.slane %v2811_v49, 3  ;;  %v2816_v15 = vrot.slane %v2814_v4, 4  ;;  %v2427_v3 = vpop.permute.xlu0 %2426  ;;  %2325 = vrot.lane.b32.xlu1 %v6391_v40, %s4042_s20  ;;  %v4025_v40 = vld [vmem:[%s4180_s18 + $0x70] sm:$0xff]  }
 0x131   : > { %v2723_v48 = vsel %vm6482_vm6, %v2688_v17, %v2427_v3  ;;  %3886 = vmatprep.mubr.msk.bf16.mxu0 %vm2444_vm2, %v4025_v40  ;;  %vm6497_vm6 = vcmask 457728  }
 0x132   : > { %v2817_v53 = vor.u32 %v2816_v15, %v2813_v22  ;;  %v2819_v10 = vshrl.u32 %v2723_v48, 16  ;;  %v2822_v45 = vshll.u32 %v2723_v48, 16  ;;  %2323 = vrot.lane.b32.xlu0 %v1831_v9, %s4042_s20  ;;  %v2088_v42 = vpop.permute.xlu1 %2087  ;;  %3887 = vmatmul.mubr.msk.bf16.gmra.mrb[28].mxu0 %vm2444_vm2, %v4026_v25  ;;  %vm6502_vm10 = vmmov %vm6497_vm6  ;;  %s3605_s20 = sshll.u32 %s6548_s29, 3 }
 0x133   : > { %v2517_v23 = vsel %vm2495_vm5, %v2476_v33, %v2088_v42  ;;  %s6129_s26 = scalar_lea.vmem %s6303_s8, %s3605_s20 }
 0x134   : > { %v2821_v21 = vrot.slane %v2819_v10, 3  ;;  %v2824_v1 = vrot.slane %v2822_v45, 4  ;;  %v2086_v44 = vpop.permute.xlu0 %2085  ;;  %v2818_v29 = vsel %vm6484_vm3, %v5879_v27, %v2817_v53  ;;  %2360 = vrot.lane.b32.xlu1 %v6483_v6, %s4047_s14  ;;  %vm6498_vm3 = vmmov %vm6494_vm15 }
 0x135   : > { %3836 = vmatprep.mubr.msk.bf16.mxu1 %vm6485_vm1, %v2818_v29  ;;  %v2515_v50 = vsel %vm2495_vm5, %v2473_v60, %v2086_v44  ;;  %vm6499_vm1 = vcmask 523264  }
 0x136   : > { %v2825_v41 = vor.u32 %v2824_v1, %v2821_v21  ;;  %2358 = vrot.lane.b32.xlu0 %v2327_v24, %s4047_s14  ;;  %v2139_v56 = vpop.permute.xlu1 %2138  ;;  %vm6503_vm4 = vmmov %vm6499_vm1 }
 0x137   : > { %v2552_v61 = vsel %vm2530_vm11, %v2517_v23, %v2139_v56 }
 0x138   : > { %v2137_v20 = vpop.permute.xlu0 %2136  ;;  %v2826_v27 = vsel %vm6486_vm13, %v2817_v53, %v2825_v41  ;;  %2442 = vrot.lane.b32.xlu1 %v6483_v6, %s4048_s17  ;;  %vm6500_vm13 = vmmov %vm6495_vm12 }
 0x139   : > { %3837 = vmatmul.mubr.msk.bf16.gmra.mrb[12].mxu1 %vm6487_vm0, %v2826_v27  ;;  %v2550_v2 = vsel %vm2530_vm11, %v2515_v50, %v2137_v20  ;;  %vm6501_vm0 = vmmov %vm6496_vm9 }
 0x13a   : > { %2440 = vrot.lane.b32.xlu0 %v2409_v34, %s4048_s17  ;;  %v2180_v57 = vpop.permute.xlu1 %2179 }
 0x13b   : > { %v2587_v39 = vsel %vm6498_vm3, %v2552_v61, %v2180_v57  ;;  %v6508_v57 = vld [vmem:[#allocation13_spill] sm:$0xff] }
 0x13c   : > { %v2178_v13 = vpop.permute.xlu0 %2177 }
 0x13d   : > { %v2585_v62 = vsel %vm6494_vm15, %v2550_v2, %v2178_v13  ;;  %vm6504_vm15 = vsmask.f32 4352  ;;  %v1422_v13 = vsel %vm1406_vm8, %v6508_v57, 0  ;;  %vm6510_vm8 = vmmov %vm6501_vm0 }
 0x13e   : > { %v2264_v31 = vpop.permute.xlu1 %2263 }
 0x13f   : > { %v2622_v14 = vsel %vm6500_vm13, %v2587_v39, %v2264_v31 }
 0x140   : > { %v2262_v38 = vpop.permute.xlu0 %2261 }
 0x141   : > { %v2620_v26 = vsel %vm6495_vm12, %v2585_v62, %v2262_v38  ;;  %vm6505_vm12 = vcmask 588800  }
 0x142   : > { %v2314_v51 = vpop.permute.xlu1 %2313 }
 0x143   : > { %v2657_v55 = vsel %vm6501_vm0, %v2622_v14, %v2314_v51  ;;  %v1423_v51 = vsel %vm1407_vm14, %v5167_v0, 0  ;;  %vm6512_vm14 = vmmov %vm6498_vm3 }
 0x144   : > { %v2312_v47 = vpop.permute.xlu0 %2311  ;;  %vm6513_vm0 = vmmov %vm6503_vm4 }
 0x145   : > { %v2655_v12 = vsel %vm6496_vm9, %v2620_v26, %v2312_v47  ;;  %vm6506_vm9 = vmmov %vm6504_vm15 }
 0x146   : > { %v2349_v16 = vpop.permute.xlu1 %2348 }
 0x147   : > { %v2692_v9 = vsel %vm6502_vm10, %v2657_v55, %v2349_v16 }
 0x148   : > { %v2347_v43 = vpop.permute.xlu0 %2346 }
 0x149   : > { %v2690_v35 = vsel %vm6497_vm6, %v2655_v12, %v2347_v43  ;;  %vm6507_vm6 = vmmov %vm6505_vm12 }
 0x14a   : > { %v2005_v28 = vpop.permute.xlu1 %2004 }
 0x14c   : > { %v2429_v52 = vpop.permute.xlu0 %2428 }
 0x14d   : > { %v2725_v37 = vsel %vm6499_vm1, %v2690_v35, %v2429_v52  ;;  %vm6509_vm1 = vmmov %vm6500_vm13 }
 0x14e   : > { %v2827_v49 = vshrl.u32 %v2725_v37, 16  ;;  %v2830_v4 = vshll.u32 %v2725_v37, 16  ;;  %v2007_v7 = vpop.permute.xlu1 %2006  ;;  %vm6511_vm13 = vmmov %vm6502_vm10 }
 0x14f   : > { %v2482_v60 = vsel %vm2444_vm2, %v1423_v51, %v2007_v7  ;;  %vm6514_vm10 = vmmov %vm6509_vm1 }
 0x150   : > { %v2829_v17 = vrot.slane %v2827_v49, 3  ;;  %v2832_v22 = vrot.slane %v2830_v4, 4  ;;  %v2431_v15 = vpop.permute.xlu0 %2430 }
 0x151   : > { %v2727_v3 = vsel %vm6503_vm4, %v2692_v9, %v2431_v15  ;;  %vm6515_vm4 = vmmov %vm6510_vm8 }
 0x152   : > { %v2833_v48 = vor.u32 %v2832_v22, %v2829_v17  ;;  %v2835_v53 = vshrl.u32 %v2727_v3, 16  ;;  %v2838_v10 = vshll.u32 %v2727_v3, 16  ;;  %v2092_v45 = vpop.permute.xlu1 %2091 }
 0x153   : > { %v2521_v11 = vsel %vm2495_vm5, %v2482_v60, %v2092_v45 }
 0x154   : > { %v2837_v42 = vrot.slane %v2835_v53, 3  ;;  %v2840_v6 = vrot.slane %v2838_v10, 4  ;;  %v2090_v24 = vpop.permute.xlu0 %2089  ;;  %v2834_v21 = vsel %vm6504_vm15, %v2825_v41, %v2833_v48  ;;  %v2479_v41 = vsel %vm2444_vm2, %v1422_v13, %v2005_v28  ;;  %vm6516_vm15 = vmmov %vm6511_vm13 }
 0x155   : > { %3840 = vmatprep.mubr.msk.bf16.mxu1 %vm6505_vm12, %v2834_v21  ;;  %v2519_v8 = vsel %vm2495_vm5, %v2479_v41, %v2090_v24  ;;  %vm6517_vm12 = vmmov %vm6513_vm0 }
 0x156   : > { %v2841_v1 = vor.u32 %v2840_v6, %v2837_v42  ;;  %v2143_v44 = vpop.permute.xlu1 %2142 }
 0x157   : > { %v2556_v32 = vsel %vm2530_vm11, %v2521_v11, %v2143_v44  ;;  %v1424_v44 = vsel %vm1408_vm7, %v5260_v36, 0  ;;  %vm6521_vm7 = vmmov %vm6514_vm10 }
 0x158   : > { %v2141_v29 = vpop.permute.xlu0 %2140  ;;  %v2842_v40 = vsel %vm6506_vm9, %v2833_v48, %v2841_v1 }
 0x159   : > { %3841 = vmatmul.mubr.msk.bf16.gmra.mrb[16].mxu1 %vm6507_vm6, %v2842_v40  ;;  %v2554_v54 = vsel %vm2530_vm11, %v2519_v8, %v2141_v29 }
 0x15a   : > { %v2184_v56 = vpop.permute.xlu1 %2183 }
 0x15b   : > { %v2591_v50 = vsel %vm6512_vm14, %v2556_v32, %v2184_v56 }
 0x15c   : > { %v2182_v25 = vpop.permute.xlu0 %2181 }
 0x15d   : > { %v2589_v47 = vsel %vm6498_vm3, %v2554_v54, %v2182_v25  ;;  %vm6518_vm3 = vmmov %vm6506_vm9 }
 0x15e   : > { %v2268_v34 = vpop.permute.xlu1 %2267 }
 0x15f   : > { %v2626_v43 = vsel %vm6514_vm10, %v2591_v50, %v2268_v34  ;;  %vm6525_vm10 = vmmov %vm6517_vm12 }
 0x160   : > { %v2266_v20 = vpop.permute.xlu0 %2265 }
 0x161   : > { %v2624_v30 = vsel %vm6509_vm1, %v2589_v47, %v2266_v20  ;;  %vm6519_vm1 = vmmov %vm6507_vm6 }
 0x162   : > { %v2318_v27 = vpop.permute.xlu1 %2317 }
 0x163   : > { %v2661_v28 = vsel %vm6515_vm4, %v2626_v43, %v2318_v27 }
 0x164   : > { %v2316_v31 = vpop.permute.xlu0 %2315 }
 0x165   : > { %v2659_v63 = vsel %vm6510_vm8, %v2624_v30, %v2316_v31  ;;  %vm6520_vm8 = vmmov %vm6512_vm14 }
 0x166   : > { %v2353_v38 = vpop.permute.xlu1 %2352  ;;  %vm6523_vm14 = vmmov %vm6516_vm15 }
 0x167   : > { %v2696_v23 = vsel %vm6516_vm15, %v2661_v28, %v2353_v38 }
 0x168   : > { %v2351_v58 = vpop.permute.xlu0 %2350 }
 0x169   : > { %v2694_v0 = vsel %vm6511_vm13, %v2659_v63, %v2351_v58  ;;  %vm6522_vm13 = vmmov %vm6515_vm4 }
 0x16a   : > { %v2009_v16 = vpop.permute.xlu1 %2008  ;;  %vm6526_vm4 = vmmov %vm6521_vm7 }
 0x16b   : > { %v2485_v56 = vsel %vm2444_vm2, %v1424_v44, %v2009_v16  ;;  %vm6527_vm15 = vmmov %vm6522_vm13 }
 0x16c   : > { %v2433_v19 = vpop.permute.xlu0 %2432 }
 0x16d   : > { %v2729_v2 = vsel %vm6513_vm0, %v2694_v0, %v2433_v19  ;;  %vm6524_vm0 = vmmov %vm6520_vm8 }
 0x16e   : > { %v2843_v62 = vshrl.u32 %v2729_v2, 16  ;;  %v2846_v33 = vshll.u32 %v2729_v2, 16  ;;  %v2011_v26 = vpop.permute.xlu1 %2010 }
 0x16f   : > { %v2488_v36 = vsel %vm2444_vm2, %v5701_v59, %v2011_v26 }
 0x170   : > { %v2845_v12 = vrot.slane %v2843_v62, 3  ;;  %v2848_v61 = vrot.slane %v2846_v33, 4  ;;  %v2435_v35 = vpop.permute.xlu0 %2434 }
 0x171   : > { %v2731_v52 = vsel %vm6517_vm12, %v2696_v23, %v2435_v35  ;;  %vm6528_vm12 = vmmov %vm6523_vm14 }
 0x172   : > { %v2849_v39 = vor.u32 %v2848_v61, %v2845_v12  ;;  %v2851_v37 = vshrl.u32 %v2731_v52, 16  ;;  %v2854_v14 = vshll.u32 %v2731_v52, 16  ;;  %v2096_v49 = vpop.permute.xlu1 %2095 }
 0x173   : > { %v2525_v51 = vsel %vm2495_vm5, %v2488_v36, %v2096_v49 }
 0x174   : > { %v2853_v4 = vrot.slane %v2851_v37, 3  ;;  %v2856_v7 = vrot.slane %v2854_v14, 4  ;;  %v2094_v55 = vpop.permute.xlu0 %2093  ;;  %v2850_v9 = vsel %vm6506_vm9, %v2841_v1, %v2849_v39  ;;  %v6034_v10 = vpop.f32.mrb[0].mxu0  ;;  %vm6529_vm9 = vmmov %vm6525_vm10 }
 0x175   : > { %3844 = vmatprep.mubr.msk.bf16.mxu1 %vm6507_vm6, %v2850_v9  ;;  %v6036_v42 = vpop.f32.mrb[1].mxu0  ;;  %v2523_v20 = vsel %vm2495_vm5, %v2485_v56, %v2094_v55  ;;  %vm6530_vm6 = vmmov %vm6518_vm3 }
 0x176   : > { %v2857_v17 = vor.u32 %v2856_v7, %v2853_v4  ;;  %v2147_v22 = vpop.permute.xlu1 %2146  ;;  %v6038_v6 = vpop.f32.mrb[2].mxu0 }
 0x177   : > { %v6040_v21 = vpop.f32.mrb[3].mxu0  ;;  %v2560_v54 = vsel %vm2530_vm11, %v2525_v51, %v2147_v22 }
 0x178   : > { %v2145_v15 = vpop.permute.xlu0 %2144  ;;  %v2858_v3 = vsel %vm6518_vm3, %v2849_v39, %v2857_v17  ;;  %vm6531_vm3 = vmmov %vm6519_vm1 }
 0x179   : > { %3845 = vmatmul.mubr.msk.bf16.gmra.mrb[20].mxu1 %vm6519_vm1, %v2858_v3  ;;  %v2558_v57 = vsel %vm2530_vm11, %v2523_v20, %v2145_v15  ;;  %vm6532_vm1 = vmmov %vm6530_vm6 }
 0x17a   : > { %v2188_v48 = vpop.permute.xlu1 %2187 }
 0x17b   : > { %v2595_v60 = vsel %vm6524_vm0, %v2560_v54, %v2188_v48  ;;  %v6110_v54 = vld [vmem:[%s6300_s5] ss:$0 sm:$0xff] }
 0x17c   : > { %v2186_v53 = vpop.permute.xlu0 %2185  ;;  %v6045_v40 = vpop.f32.mrb[4].mxu0 }
 0x17d   : > { %v6048_v34 = vpop.f32.mrb[5].mxu0  ;;  %v2593_v46 = vsel %vm6520_vm8, %v2558_v57, %v2186_v53  ;;  %vm6533_vm8 = vmmov %vm6531_vm3 }
 0x17e   : > { %v2272_v45 = vpop.permute.xlu1 %2271  ;;  %v6051_v27 = vpop.f32.mrb[6].mxu0 }
 0x17f   : > { %v6054_v31 = vpop.f32.mrb[7].mxu0  ;;  %v2630_v59 = vsel %vm6526_vm4, %v2595_v60, %v2272_v45 }
 0x180   : > { %v2270_v24 = vpop.permute.xlu0 %2269 }
 0x181   : > { %v2628_v41 = vsel %vm6521_vm7, %v2593_v46, %v2270_v24  ;;  %vm6534_vm7 = vmmov %vm6524_vm0 }
 0x182   : > { %v2322_v1 = vpop.permute.xlu1 %2321 }
 0x183   : > { %v2665_v19 = vsel %vm6527_vm15, %v2630_v59, %v2322_v1 }
 0x184   : > { %v2320_v29 = vpop.permute.xlu0 %2319  ;;  %v6066_v16 = vpop.f32.mrb[8].mxu0 }
 0x185   : > { %v2663_v8 = vsel %vm6522_vm13, %v2628_v41, %v2320_v29  ;;  %v6069_v0 = vpop.f32.mrb[9].mxu0  ;;  %vm6535_vm13 = vmmov %vm6526_vm4 }
 0x186   : > { %v2357_v25 = vpop.permute.xlu1 %2356  ;;  %v6072_v50 = vpop.f32.mrb[10].mxu0 }
 0x187   : > { %v2700_v2 = vsel %vm6528_vm12, %v2665_v19, %v2357_v25  ;;  %v6075_v26 = vpop.f32.mrb[11].mxu0 }
 0x188   : > { %v2355_v13 = vpop.permute.xlu0 %2354 }
 0x189   : > { %v2698_v58 = vsel %vm6523_vm14, %v2663_v8, %v2355_v13  ;;  %vm6536_vm14 = vmmov %vm6524_vm0 }
 0x18a   : > { %v2013_v38 = vpop.permute.xlu1 %2012  ;;  %vm6537_vm0 = vmmov %vm6527_vm15 }
 0x18b   : > { %v2491_v56 = vsel %vm2444_vm2, %v5816_v5, %v2013_v38  ;;  %vm6543_vm15 = vmmov %vm6529_vm9 }
 0x18c   : > { %v2437_v47 = vpop.permute.xlu0 %2436 }
 0x18d   : > { %v2733_v30 = vsel %vm6525_vm10, %v2698_v58, %v2437_v47  ;;  %v6080_v49 = vpop.f32.mrb[12].mxu0  ;;  %vm6538_vm10 = vmmov %vm6526_vm4 }
 0x18e   : > { %v2859_v11 = vshrl.u32 %v2733_v30, 16  ;;  %v2862_v63 = vshll.u32 %v2733_v30, 16  ;;  %v2015_v32 = vpop.permute.xlu1 %2014  ;;  %v6084_v55 = vpop.f32.mrb[13].mxu0 }
 0x18f   : > { %v6086_v9 = vpop.f32.mrb[14].mxu0  ;;  %v2494_v1 = vsel %vm2444_vm2, %v5865_v18, %v2015_v32  ;;  %vm6539_vm2 = vmmov %vm6528_vm12 }
 0x190   : > { %v2861_v43 = vrot.slane %v2859_v11, 3  ;;  %v2864_v62 = vrot.slane %v2862_v63, 4  ;;  %v2439_v33 = vpop.permute.xlu0 %2438  ;;  %v6090_v3 = vpop.f32.mrb[15].mxu0  ;;  %vm6542_vm4 = vmmov %vm6539_vm2 }
 0x191   : > { %v2735_v28 = vsel %vm6529_vm9, %v2700_v2, %v2439_v33  ;;  %vm6544_vm12 = vmmov %vm6532_vm1 }
 0x192   : > { %v2865_v23 = vor.u32 %v2864_v62, %v2861_v43  ;;  %v2867_v12 = vshrl.u32 %v2735_v28, 16  ;;  %v2870_v61 = vshll.u32 %v2735_v28, 16  ;;  %v2100_v35 = vpop.permute.xlu1 %2099  ;;  %v6121_v43 = vld [vmem:[%s6302_s7] ss:$0 sm:$0xff] }
 0x193   : > { %v2529_v29 = vsel %vm2495_vm5, %v2494_v1, %v2100_v35 }
 0x194   : > { %v2869_v52 = vrot.slane %v2867_v12, 3  ;;  %v2872_v39 = vrot.slane %v2870_v61, 4  ;;  %v2098_v37 = vpop.permute.xlu0 %2097  ;;  %v2866_v14 = vsel %vm6530_vm6, %v2857_v17, %v2865_v23  ;;  %vm6546_vm6 = vmmov %vm6531_vm3 }
 0x195   : > { %3848 = vmatprep.mubr.msk.bf16.mxu1 %vm6531_vm3, %v2866_v14  ;;  %v2527_v57 = vsel %vm2495_vm5, %v2491_v56, %v2098_v37  ;;  %vm6540_vm5 = vmmov %vm6537_vm0 }
 0x196   : > { %v6082_v4 = vor.u32 %v2872_v39, %v2869_v52  ;;  %v2151_v7 = vpop.permute.xlu1 %2150 }
 0x197   : > { %v2564_v25 = vsel %vm2530_vm11, %v2529_v29, %v2151_v7 }
 0x198   : > { %v2149_v22 = vpop.permute.xlu0 %2148  ;;  %v2874_v15 = vsel %vm6532_vm1, %v2865_v23, %v6082_v4 }
 0x199   : > { %3849 = vmatmul.mubr.msk.bf16.gmra.mrb[24].mxu1 %vm6533_vm8, %v2874_v15  ;;  %v2562_v46 = vsel %vm2530_vm11, %v2527_v57, %v2149_v22  ;;  %vm6541_vm11 = vmmov %vm6529_vm9 }
 0x19a   : > { %v2192_v17 = vpop.permute.xlu1 %2191  ;;  %vm6545_vm9 = vmmov %vm6532_vm1 }
 0x19b   : > { %v2599_v13 = vsel %vm6534_vm7, %v2564_v25, %v2192_v17 }
 0x19c   : > { %v2190_v48 = vpop.permute.xlu0 %2189 }
 0x19d   : > { %v2597_v18 = vsel %vm6536_vm14, %v2562_v46, %v2190_v48 }
 0x19e   : > { %v2276_v53 = vpop.permute.xlu1 %2275 }
 0x19f   : > { %v2634_v36 = vsel %vm6535_vm13, %v2599_v13, %v2276_v53 }
 0x1a0   : > { %v2274_v45 = vpop.permute.xlu0 %2273 }
 0x1a1   : > { %v2632_v8 = vsel %vm6538_vm10, %v2597_v18, %v2274_v45 }
 0x1a2   : > { %v2326_v24 = vpop.permute.xlu1 %2325 }
 0x1a3   : > { %v2669_v51 = vsel %vm6537_vm0, %v2634_v36, %v2326_v24 }
 0x1a4   : > { %v2324_v44 = vpop.permute.xlu0 %2323 }
 0x1a5   : > { %v2667_v58 = vsel %vm6540_vm5, %v2632_v8, %v2324_v44 }
 0x1a6   : > { %v2361_v20 = vpop.permute.xlu1 %2360 }
 0x1a7   : > { %v2704_v5 = vsel %vm6539_vm2, %v2669_v51, %v2361_v20  ;;  %v6132_v15 = vpop.f32.mrb[16].mxu0 }
 0x1a8   : > { %v2359_v41 = vpop.permute.xlu0 %2358  ;;  %v6138_v24 = vpop.f32.mrb[17].mxu0 }
 0x1a9   : > { %v2702_v60 = vsel %vm6542_vm4, %v2667_v58, %v2359_v41  ;;  %v6143_v29 = vpop.f32.mrb[18].mxu0 }
 0x1aa   : > { %v2443_v38 = vpop.permute.xlu1 %2442  ;;  %v6149_v20 = vpop.f32.mrb[19].mxu0 }
 0x1ab   : > { %v2739_v47 = vsel %vm6541_vm11, %v2704_v5, %v2443_v38 }
 0x1ac   : > { %v2883_v30 = vshrl.u32 %v2739_v47, 16  ;;  %v2886_v59 = vshll.u32 %v2739_v47, 16  ;;  %v2441_v11 = vpop.permute.xlu0 %2440  ;;  %v3826_v63 = vpop.f32.mrb[0].mxu1 }
 0x1ad   : > { %v2737_v32 = vsel %vm6543_vm15, %v2702_v60, %v2441_v11  ;;  %v3013_v19 = vadd.f32 %v3826_v63, %v6110_v54  ;;  %v3004_v2 = vpop.f32.mrb[1].mxu1 }
 0x1ae   : > { %v2885_v62 = vrot.slane %v2883_v30, 3  ;;  %v2888_v33 = vrot.slane %v2886_v59, 4  ;;  %v2875_v28 = vshrl.u32 %v2737_v32, 16  ;;  %v2878_v23 = vshll.u32 %v2737_v32, 16  ;;  %v3827_v12 = vpop.f32.mrb[2].mxu1 }
 0x1af   : > { %v3005_v61 = vadd.f32 %v6110_v54, %v3004_v2  ;;  %v3016_v35 = vadd.f32 %v3827_v12, %v6110_v54  ;;  %v3891_v52 = vadd.f32 %v6034_v10, %v3013_v19  ;;  %v3007_v39 = vpop.f32.mrb[3].mxu1 }
 0x1b0   : > { %v2889_v37 = vor.u32 %v2888_v33, %v2885_v62  ;;  %v2877_v14 = vrot.slane %v2875_v28, 3  ;;  %v2880_v7 = vrot.slane %v2878_v23, 4  ;;  %v3008_v22 = vadd.f32 %v6110_v54, %v3007_v39 }
 0x1b1   : > { %v3892_v17 = vadd.f32 %v3891_v52, %v6121_v43  ;;  %v3894_v10 = vadd.f32 %v6036_v42, %v3005_v61  ;;  %v3897_v48 = vadd.f32 %v6121_v43, %v3016_v35 }
 0x1b2   : > { %v2881_v53 = vor.u32 %v2880_v7, %v2877_v14  ;;  %v3900_v45 = vadd.f32 %v6121_v43, %v3008_v22 }
 0x1b3   : > { %3497 = vst [vmem:[%s6129_s26 + $0x10] sm:$0xff] %v3892_v17  ;;  %v3895_v1 = vadd.f32 %v3894_v10, %v6121_v43  ;;  %v3898_v44 = vadd.f32 %v3897_v48, %v6038_v6 }
 0x1b4   : > { %v3901_v56 = vadd.f32 %v3900_v45, %v6040_v21  ;;  %v2882_v42 = vsel %vm6544_vm12, %v6082_v4, %v2881_v53  ;;  %v2890_v25 = vsel %vm6545_vm9, %v2881_v53, %v2889_v37 }
 0x1b5   : > { %3495 = vst [vmem:[%s6129_s26] sm:$0xff] %v3895_v1  ;;  %3498 = vst [vmem:[%s6129_s26 + $0x18] sm:$0xff] %v3898_v44  ;;  %3852 = vmatprep.mubr.msk.bf16.mxu1 %vm6546_vm6, %v2882_v42 }
 0x1b6   : > { %3496 = vst [vmem:[%s6129_s26 + $0x8] sm:$0xff] %v3901_v56  ;;  %3853 = vmatmul.mubr.msk.bf16.gmra.mrb[28].mxu1 %vm6531_vm3, %v2890_v25 }
 0x1c6   : > { %v6162_v8 = vpop.f32.mrb[20].mxu0 }
 0x1c7   : > { %v6168_v60 = vpop.f32.mrb[21].mxu0 }
 0x1c8   : > { %v6172_v59 = vpop.f32.mrb[22].mxu0 }
 0x1c9   : > { %v6176_v63 = vpop.f32.mrb[23].mxu0 }
 0x1cc   : > { %v3830_v57 = vpop.f32.mrb[4].mxu1 }
 0x1cd   : > { %v3029_v6 = vadd.f32 %v3830_v57, %v6110_v54  ;;  %v3020_v13 = vpop.f32.mrb[5].mxu1 }
 0x1ce   : > { %v3021_v21 = vadd.f32 %v6110_v54, %v3020_v13  ;;  %v3831_v4 = vpop.f32.mrb[6].mxu1 }
 0x1cf   : > { %v3032_v46 = vadd.f32 %v3831_v4, %v6110_v54  ;;  %v3023_v36 = vpop.f32.mrb[7].mxu1  ;;  %v3903_v41 = vadd.f32 %v6121_v43, %v3029_v6 }
 0x1d0   : > { %v3024_v18 = vadd.f32 %v6110_v54, %v3023_v36  ;;  %v3906_v51 = vadd.f32 %v6121_v43, %v3021_v21 }
 0x1d1   : > { %v3904_v5 = vadd.f32 %v3903_v41, %v6045_v40  ;;  %v3909_v38 = vadd.f32 %v6121_v43, %v3032_v46 }
 0x1d2   : > { %v3907_v58 = vadd.f32 %v3906_v51, %v6048_v34  ;;  %v3912_v47 = vadd.f32 %v6121_v43, %v3024_v18 }
 0x1d3   : > { %3501 = vst [vmem:[%s6129_s26 + $0x30] sm:$0xff] %v3904_v5  ;;  %v3910_v30 = vadd.f32 %v3909_v38, %v6051_v27 }
 0x1d4   : > { %3499 = vst [vmem:[%s6129_s26 + $0x20] sm:$0xff] %v3907_v58  ;;  %v3913_v11 = vadd.f32 %v3912_v47, %v6054_v31 }
 0x1d5   : > { %3502 = vst [vmem:[%s6129_s26 + $0x38] sm:$0xff] %v3910_v30 }
 0x1d6   : > { %3500 = vst [vmem:[%s6129_s26 + $0x28] sm:$0xff] %v3913_v11 }
 0x1dd   : > { %v6186_v23 = vpop.f32.mrb[24].mxu0 }
 0x1de   : > { %v6192_v39 = vpop.f32.mrb[25].mxu0 }
 0x1df   : > { %v6196_v14 = vpop.f32.mrb[26].mxu0 }
 0x1e0   : > { %v6200_v22 = vpop.f32.mrb[27].mxu0 }
 0x1ec   : > { %v3834_v40 = vpop.f32.mrb[8].mxu1 }
 0x1ed   : > { %v3045_v34 = vadd.f32 %v3834_v40, %v6110_v54  ;;  %v3036_v32 = vpop.f32.mrb[9].mxu1 }
 0x1ee   : > { %v3037_v19 = vadd.f32 %v6110_v54, %v3036_v32  ;;  %v3835_v2 = vpop.f32.mrb[10].mxu1 }
 0x1ef   : > { %v3048_v27 = vadd.f32 %v3835_v2, %v6110_v54  ;;  %v3039_v62 = vpop.f32.mrb[11].mxu1  ;;  %v3915_v33 = vadd.f32 %v6121_v43, %v3045_v34 }
 0x1f0   : > { %v3040_v31 = vadd.f32 %v6110_v54, %v3039_v62  ;;  %v3918_v28 = vadd.f32 %v6121_v43, %v3037_v19 }
 0x1f1   : > { %v3916_v12 = vadd.f32 %v3915_v33, %v6066_v16  ;;  %v3921_v61 = vadd.f32 %v6121_v43, %v3048_v27 }
 0x1f2   : > { %v3919_v35 = vadd.f32 %v3918_v28, %v6069_v0  ;;  %v3924_v52 = vadd.f32 %v6121_v43, %v3040_v31 }
 0x1f3   : > { %3505 = vst [vmem:[%s6129_s26 + $0x50] sm:$0xff] %v3916_v12  ;;  %v3922_v37 = vadd.f32 %v3921_v61, %v6072_v50 }
 0x1f4   : > { %3503 = vst [vmem:[%s6129_s26 + $0x40] sm:$0xff] %v3919_v35  ;;  %v3925_v7 = vadd.f32 %v3924_v52, %v6075_v26 }
 0x1f5   : > { %3506 = vst [vmem:[%s6129_s26 + $0x58] sm:$0xff] %v3922_v37 }
 0x1f6   : > { %3504 = vst [vmem:[%s6129_s26 + $0x48] sm:$0xff] %v3925_v7 }
 0x205   : > { %v6204_v16 = vpop.f32.mrb[28].mxu0 }
 0x206   : > { %v6206_v0 = vpop.f32.mrb[29].mxu0 }
 0x207   : > { %v6209_v50 = vpop.f32.mrb[30].mxu0 }
 0x208   : > { %v6212_v45 = vpop.f32.mrb[31].mxu0 }
 0x20c   : > { %v3838_v17 = vpop.f32.mrb[12].mxu1 }
 0x20d   : > { %v3061_v10 = vadd.f32 %v3838_v17, %v6110_v54  ;;  %v3052_v48 = vpop.f32.mrb[13].mxu1 }
 0x20e   : > { %v3053_v53 = vadd.f32 %v6110_v54, %v3052_v48  ;;  %v3839_v26 = vpop.f32.mrb[14].mxu1 }
 0x20f   : > { %v3064_v1 = vadd.f32 %v3839_v26, %v6110_v54  ;;  %v3055_v44 = vpop.f32.mrb[15].mxu1  ;;  %v3927_v56 = vadd.f32 %v6121_v43, %v3061_v10 }
 0x210   : > { %v3056_v42 = vadd.f32 %v6110_v54, %v3055_v44  ;;  %v3930_v25 = vadd.f32 %v6121_v43, %v3053_v53 }
 0x211   : > { %v3928_v57 = vadd.f32 %v3927_v56, %v6080_v49  ;;  %v3933_v6 = vadd.f32 %v6121_v43, %v3064_v1 }
 0x212   : > { %v3931_v13 = vadd.f32 %v3930_v25, %v6084_v55  ;;  %v3936_v21 = vadd.f32 %v6121_v43, %v3056_v42 }
 0x213   : > { %3509 = vst [vmem:[%s6129_s26 + $0x70] sm:$0xff] %v3928_v57  ;;  %v3934_v4 = vadd.f32 %v3933_v6, %v6086_v9 }
 0x214   : > { %3507 = vst [vmem:[%s6129_s26 + $0x60] sm:$0xff] %v3931_v13  ;;  %v3937_v46 = vadd.f32 %v3936_v21, %v6090_v3 }
 0x215   : > { %3510 = vst [vmem:[%s6129_s26 + $0x78] sm:$0xff] %v3934_v4 }
 0x216   : > { %3508 = vst [vmem:[%s6129_s26 + $0x68] sm:$0xff] %v3937_v46 }
 0x22c   : > { %v3842_v36 = vpop.f32.mrb[16].mxu1 }
 0x22d   : > { %v3077_v41 = vadd.f32 %v3842_v36, %v6110_v54  ;;  %v3068_v49 = vpop.f32.mrb[17].mxu1 }
 0x22e   : > { %v3069_v18 = vadd.f32 %v6110_v54, %v3068_v49  ;;  %v3843_v55 = vpop.f32.mrb[18].mxu1 }
 0x22f   : > { %v3080_v51 = vadd.f32 %v3843_v55, %v6110_v54  ;;  %v3071_v5 = vpop.f32.mrb[19].mxu1  ;;  %v3939_v9 = vadd.f32 %v6121_v43, %v3077_v41 }
 0x230   : > { %v3072_v3 = vadd.f32 %v6110_v54, %v3071_v5  ;;  %v3942_v38 = vadd.f32 %v6121_v43, %v3069_v18 }
 0x231   : > { %v3940_v58 = vadd.f32 %v3939_v9, %v6132_v15  ;;  %v3945_v47 = vadd.f32 %v6121_v43, %v3080_v51 }
 0x232   : > { %v3943_v30 = vadd.f32 %v3942_v38, %v6138_v24  ;;  %v3948_v11 = vadd.f32 %v6121_v43, %v3072_v3 }
 0x233   : > { %3513 = vst [vmem:[%s6129_s26 + $0x90] sm:$0xff] %v3940_v58  ;;  %v3946_v40 = vadd.f32 %v3945_v47, %v6143_v29 }
 0x234   : > { %3511 = vst [vmem:[%s6129_s26 + $0x80] sm:$0xff] %v3943_v30  ;;  %v3949_v34 = vadd.f32 %v3948_v11, %v6149_v20 }
 0x235   : > { %3514 = vst [vmem:[%s6129_s26 + $0x98] sm:$0xff] %v3946_v40 }
 0x236   : > { %3512 = vst [vmem:[%s6129_s26 + $0x88] sm:$0xff] %v3949_v34 }
 0x24c   : > { %v3846_v32 = vpop.f32.mrb[20].mxu1 }
 0x24d   : > { %v3093_v19 = vadd.f32 %v3846_v32, %v6110_v54  ;;  %v3084_v15 = vpop.f32.mrb[21].mxu1 }
 0x24e   : > { %v3085_v2 = vadd.f32 %v6110_v54, %v3084_v15  ;;  %v3847_v24 = vpop.f32.mrb[22].mxu1 }
 0x24f   : > { %v3096_v27 = vadd.f32 %v3847_v24, %v6110_v54  ;;  %v3087_v62 = vpop.f32.mrb[23].mxu1  ;;  %v3951_v29 = vadd.f32 %v6121_v43, %v3093_v19 }
 0x250   : > { %v3088_v20 = vadd.f32 %v6110_v54, %v3087_v62  ;;  %v3954_v33 = vadd.f32 %v6121_v43, %v3085_v2 }
 0x251   : > { %v3952_v31 = vadd.f32 %v3951_v29, %v6162_v8  ;;  %v3957_v28 = vadd.f32 %v6121_v43, %v3096_v27 }
 0x252   : > { %v3955_v12 = vadd.f32 %v3954_v33, %v6168_v60  ;;  %v3960_v61 = vadd.f32 %v6121_v43, %v3088_v20 }
 0x253   : > { %3517 = vst [vmem:[%s6129_s26 + $0xb0] sm:$0xff] %v3952_v31  ;;  %v3958_v35 = vadd.f32 %v3957_v28, %v6172_v59 }
 0x254   : > { %3515 = vst [vmem:[%s6129_s26 + $0xa0] sm:$0xff] %v3955_v12  ;;  %v3961_v52 = vadd.f32 %v3960_v61, %v6176_v63 }
 0x255   : > { %3518 = vst [vmem:[%s6129_s26 + $0xb8] sm:$0xff] %v3958_v35 }
 0x256   : > { %3516 = vst [vmem:[%s6129_s26 + $0xa8] sm:$0xff] %v3961_v52 }
 0x26c   : > { %v3850_v37 = vpop.f32.mrb[24].mxu1 }
 0x26d   : > { %v3109_v7 = vadd.f32 %v3850_v37, %v6110_v54  ;;  %v3100_v8 = vpop.f32.mrb[25].mxu1 }
 0x26e   : > { %v3101_v17 = vadd.f32 %v6110_v54, %v3100_v8  ;;  %v3851_v60 = vpop.f32.mrb[26].mxu1 }
 0x26f   : > { %v3112_v10 = vadd.f32 %v3851_v60, %v6110_v54  ;;  %v3103_v48 = vpop.f32.mrb[27].mxu1  ;;  %v3963_v59 = vadd.f32 %v6121_v43, %v3109_v7 }
 0x270   : > { %v3104_v63 = vadd.f32 %v6110_v54, %v3103_v48  ;;  %v3966_v53 = vadd.f32 %v6121_v43, %v3101_v17 }
 0x271   : > { %v3964_v26 = vadd.f32 %v3963_v59, %v6186_v23  ;;  %v3969_v1 = vadd.f32 %v6121_v43, %v3112_v10 }
 0x272   : > { %v3967_v44 = vadd.f32 %v3966_v53, %v6192_v39  ;;  %v3972_v56 = vadd.f32 %v6121_v43, %v3104_v63 }
 0x273   : > { %3521 = vst [vmem:[%s6129_s26 + $0xd0] sm:$0xff] %v3964_v26  ;;  %v3970_v42 = vadd.f32 %v3969_v1, %v6196_v14 }
 0x274   : > { %3519 = vst [vmem:[%s6129_s26 + $0xc0] sm:$0xff] %v3967_v44  ;;  %v3973_v25 = vadd.f32 %v3972_v56, %v6200_v22 }
 0x275   : > { %3522 = vst [vmem:[%s6129_s26 + $0xd8] sm:$0xff] %v3970_v42 }
 0x276   : > { %3520 = vst [vmem:[%s6129_s26 + $0xc8] sm:$0xff] %v3973_v25 }
 0x289   : > { %v3854_v57 = vpop.f32.mrb[28].mxu1 }
 0x28a   : > { %v3125_v6 = vadd.f32 %v3854_v57, %v6110_v54  ;;  %v3116_v23 = vpop.f32.mrb[29].mxu1 }
 0x28b   : > { %v3117_v13 = vadd.f32 %v6110_v54, %v3116_v23  ;;  %v3855_v39 = vpop.f32.mrb[30].mxu1 }
 0x28c   : > { %v3975_v21 = vadd.f32 %v6121_v43, %v3125_v6  ;;  %v3128_v14 = vadd.f32 %v3855_v39, %v6110_v54  ;;  %v3119_v4 = vpop.f32.mrb[31].mxu1 }
 0x28d   : > { %v3978_v22 = vadd.f32 %v6121_v43, %v3117_v13  ;;  %v3120_v46 = vadd.f32 %v6110_v54, %v3119_v4 }
 0x28e   : > { %v3976_v36 = vadd.f32 %v3975_v21, %v6204_v16  ;;  %v3981_v41 = vadd.f32 %v6121_v43, %v3128_v14 }
 0x28f   : > { %v3979_v49 = vadd.f32 %v3978_v22, %v6206_v0  ;;  %v3984_v18 = vadd.f32 %v6121_v43, %v3120_v46 }
 0x290   : > { %3525 = vst [vmem:[%s6129_s26 + $0xf0] sm:$0xff] %v3976_v36  ;;  %v3982_v55 = vadd.f32 %v3981_v41, %v6209_v50 }
 0x291   : > { %3523 = vst [vmem:[%s6129_s26 + $0xe0] sm:$0xff] %v3979_v49  ;;  %v3985_v51 = vadd.f32 %v3984_v18, %v6212_v45 }
 0x292   : > { %3526 = vst [vmem:[%s6129_s26 + $0xf8] sm:$0xff] %v3982_v55 }
 0x293   : > { %3524 = vst [vmem:[%s6129_s26 + $0xe8] sm:$0xff] %v3985_v51 }
 0x294 PF: > { %s18_s27 = sadd.s32 1, %s4037_s27  }
 0x295   : > { %p15_p4 = scmp.ge.s32.totalorder %s18_s27, 4  }
 0x297   :  { %17 = sbr.rel (!%p15_p4) target bundleno = 1 (0x1), region = 85 }

</bundles_post_ra>
